<compile_context>
chip_gen: v7x
topology: tpu7x:2x2x1
jax: 0.10.0
libtpu: 0.0.40
codegen_flags: <defaults>
</compile_context>

<pallas_src>
import functools

import jax
import jax.numpy as jnp
from jax.experimental import pallas as pl
from jax.experimental.pallas import tpu as pltpu

_VMEM_LIMIT = 32 * 1024 * 1024  # safe on v5e/v6e/v7x; tiles sized well below.


def _round_up(x, m):
    return ((x + m - 1) // m) * m


# --------------------- tiled GEMM (fused bias + ReLU) ---------------------- #

def _matmul_kernel(a_ref, b_ref, bias_ref, o_ref, acc_ref, *, relu, k_steps):
    @pl.when(pl.program_id(2) == 0)
    def _():
        acc_ref[...] = jnp.zeros_like(acc_ref)

    acc_ref[...] += jnp.dot(a_ref[...], b_ref[...],
                            preferred_element_type=jnp.float32)

    @pl.when(pl.program_id(2) == k_steps - 1)
    def _():
        out = acc_ref[...] + bias_ref[...]
        if relu:
            out = jnp.maximum(out, 0.0)
        o_ref[...] = out.astype(o_ref.dtype)


def matmul_bias(a, b, bias, relu=False, out_dtype=jnp.float32,
                tm=512, tk=512, tn=512):
    """(M, K) @ (K, N) + bias(N,), optional fused ReLU.

    bf16 operands / f32 accumulation.  Operands are zero-padded so K and N are
    lane-aligned (128) and M sublane-aligned (16); padding is sliced off.
    Tiles fit comfortably in a 32 MiB VMEM budget (v7x-safe, double-buffered).
    """
    M, K = a.shape
    K2, N = b.shape
    assert K == K2
    tm = min(tm, _round_up(M, 16))
    tk = min(tk, _round_up(K, 128))
    tn = min(tn, _round_up(N, 128))
    Mp, Kp, Np = _round_up(M, tm), _round_up(K, tk), _round_up(N, tn)
    a_p = jnp.pad(a.astype(jnp.bfloat16), ((0, Mp - M), (0, Kp - K)))
    b_p = jnp.pad(b.astype(jnp.bfloat16), ((0, Kp - K), (0, Np - N)))
    bias_p = jnp.pad(bias.astype(jnp.float32), (0, Np - N)).reshape(1, Np)
    k_steps = Kp // tk
    out = pl.pallas_call(
        functools.partial(_matmul_kernel, relu=relu, k_steps=k_steps),
        out_shape=jax.ShapeDtypeStruct((Mp, Np), out_dtype),
        grid=(Mp // tm, Np // tn, k_steps),
        in_specs=[
            pl.BlockSpec((tm, tk), lambda i, j, k: (i, k)),
            pl.BlockSpec((tk, tn), lambda i, j, k: (k, j)),
            pl.BlockSpec((1, tn), lambda i, j, k: (0, j)),
        ],
        out_specs=pl.BlockSpec((tm, tn), lambda i, j, k: (i, j)),
        scratch_shapes=[pltpu.VMEM((tm, tn), jnp.float32)],
        compiler_params=pltpu.CompilerParams(
            dimension_semantics=("parallel", "parallel", "arbitrary"),
            vmem_limit_bytes=_VMEM_LIMIT),
    )(a_p, b_p, bias_p)
    if Mp == M and Np == N:
        return out
    return out[:M, :N]


# -------------- fused 3x3 conv + ReLU + 2x2 max-pool kernel ---------------- #

def _conv3x3_relu_pool_kernel(x_ref, w_ref, b_ref, o_ref, acc_ref, *, H, W):
    """One image: 3x3 'same' conv (9 shifted GEMM taps) + ReLU + 2x2 max-pool.

    x_ref:  (1, Sp, Cin)   flattened zero-padded image (row length Wp = W+2)
    w_ref:  (9, Cin, Cout) tap-major weights (ky*3+kx)
    b_ref:  (1, Cout)      f32 bias
    o_ref:  (1, H//2, W//2, Cout)
    acc_ref: VMEM (H*Wp, Cout) f32 accumulator

    Tap (ky, kx) of the conv is a contiguous slice of the flattened padded
    image starting at ky*Wp + kx: the two junk columns per row (wrap-around)
    are pooled into the last pooled column and dropped in the epilogue.
    """
    Wp = W + 2
    M = H * Wp
    acc_ref[...] = jnp.zeros_like(acc_ref)
    for ky in range(3):
        for kx in range(3):
            off = ky * Wp + kx
            a = x_ref[0, off:off + M, :]                       # (M, Cin) bf16
            acc_ref[...] += jnp.dot(a, w_ref[ky * 3 + kx],
                                    preferred_element_type=jnp.float32)
    y = jnp.maximum(acc_ref[...] + b_ref[...], 0.0)            # (M, Cout)
    # Fused 2x2 max-pool: regroup rows as (H/2, 2, Wp/2, 2, C) and reduce.
    y = y.reshape(H // 2, 2, Wp // 2, 2, o_ref.shape[-1])
    y = jnp.max(jnp.max(y, axis=3), axis=1)                    # (H/2, Wp/2, C)
    o_ref[0] = y[:, :W // 2, :].astype(o_ref.dtype)


def conv3x3_relu_pool(x_nhwc, w_oihw, bias, out_dtype=jnp.bfloat16):
    """Conv2d(3x3, stride 1, pad 1) + ReLU + MaxPool2d(2, 2) on NHWC input."""
    B, H, W, Cin = x_nhwc.shape
    Cout = w_oihw.shape[0]
    assert H % 2 == 0 and W % 2 == 0  # matches PyTorch pooling for even dims
    Cin_p = _round_up(Cin, 8)
    Wp = W + 2
    # 1 pad row on top, 2 at the bottom (the extra row keeps the shifted flat
    # slices in range), 1 pad column per side; channels padded to 8-multiple.
    xp = jnp.pad(x_nhwc.astype(jnp.bfloat16),
                 ((0, 0), (1, 2), (1, 1), (0, Cin_p - Cin)))
    Sp = (H + 3) * Wp
    x_flat = xp.reshape(B, Sp, Cin_p)
    w = jnp.transpose(w_oihw, (2, 3, 1, 0))                    # (kh, kw, Cin, Cout)
    w = jnp.pad(w, ((0, 0), (0, 0), (0, Cin_p - Cin), (0, 0)))
    w = w.reshape(9, Cin_p, Cout).astype(jnp.bfloat16)
    b2 = bias.astype(jnp.float32).reshape(1, Cout)
    H2, W2 = H // 2, W // 2
    # TODO(synk): for very tall/wide images add an H-row-tile grid axis; the
    # per-image VMEM footprint here is fine for typical OCR line images.
    return pl.pallas_call(
        functools.partial(_conv3x3_relu_pool_kernel, H=H, W=W),
        out_shape=jax.ShapeDtypeStruct((B, H2, W2, Cout), out_dtype),
        grid=(B,),
        in_specs=[
            pl.BlockSpec((1, Sp, Cin_p), lambda i: (i, 0, 0)),
            pl.BlockSpec((9, Cin_p, Cout), lambda i: (0, 0, 0)),
            pl.BlockSpec((1, Cout), lambda i: (0, 0)),
        ],
        out_specs=pl.BlockSpec((1, H2, W2, Cout), lambda i: (i, 0, 0, 0)),
        scratch_shapes=[pltpu.VMEM((H * Wp, Cout), jnp.float32)],
        compiler_params=pltpu.CompilerParams(
            dimension_semantics=("parallel",),
            vmem_limit_bytes=_VMEM_LIMIT),
    )(x_flat, w, b2)


# ------------------------------ LSTM kernel -------------------------------- #

def _lstm_kernel(xg_ref, whh_ref, o_ref, h_sc, c_sc, *, T):
    """Full LSTM recurrence for one layer in a single kernel invocation.

    xg_ref:  (T, 4, B, H) precomputed x_t @ W_ih^T + b_ih + b_hh; gate index
             on its own axis so every gate tensor is lane-aligned.
    whh_ref: (4, H, H)    per-gate W_hh^T (f32).
    o_ref:   (T, B, H)    hidden-state sequence.
    """
    h_sc[...] = jnp.zeros_like(h_sc)
    c_sc[...] = jnp.zeros_like(c_sc)

    def step(t, carry):
        h = h_sc[...]
        xgt = xg_ref[t]                                        # (4, B, H)
        gi = xgt[0] + jnp.dot(h, whh_ref[0], preferred_element_type=jnp.float32)
        gf = xgt[1] + jnp.dot(h, whh_ref[1], preferred_element_type=jnp.float32)
        gg = xgt[2] + jnp.dot(h, whh_ref[2], preferred_element_type=jnp.float32)
        go = xgt[3] + jnp.dot(h, whh_ref[3], preferred_element_type=jnp.float32)
        i = jax.nn.sigmoid(gi)
        f = jax.nn.sigmoid(gf)
        g = jnp.tanh(gg)
        o = jax.nn.sigmoid(go)
        c = f * c_sc[...] + i * g
        h_new = o * jnp.tanh(c)
        c_sc[...] = c
        h_sc[...] = h_new
        o_ref[t] = h_new.astype(o_ref.dtype)
        return carry

    jax.lax.fori_loop(0, T, step, 0)


def lstm_layer(x_tbf, w_ih, w_hh, b_ih, b_hh, hidden):
    """One PyTorch-style LSTM layer: (T, B, F_in) -> (T, B, hidden)."""
    T, B, F = x_tbf.shape
    # Input projections for all timesteps in one tiled bf16 GEMM (f32 out).
    xg = matmul_bias(x_tbf.reshape(T * B, F), w_ih.T, b_ih + b_hh,
                     relu=False, out_dtype=jnp.float32)        # (T*B, 4H)
    xg = xg.reshape(T, B, 4, hidden).transpose(0, 2, 1, 3)     # (T, 4, B, H)
    whh = jnp.asarray(w_hh, jnp.float32).reshape(4, hidden, hidden)
    whh = jnp.transpose(whh, (0, 2, 1))                        # (4, H, H) = W_hh_k^T
    return pl.pallas_call(
        functools.partial(_lstm_kernel, T=T),
        out_shape=jax.ShapeDtypeStruct((T, B, hidden), jnp.float32),
        grid=(1,),
        in_specs=[
            pl.BlockSpec((T, 4, B, hidden), lambda i: (0, 0, 0, 0)),
            pl.BlockSpec((4, hidden, hidden), lambda i: (0, 0, 0)),
        ],
        out_specs=pl.BlockSpec((T, B, hidden), lambda i: (0, 0, 0)),
        scratch_shapes=[pltpu.VMEM((B, hidden), jnp.float32),   # h
                        pltpu.VMEM((B, hidden), jnp.float32)],  # c
        compiler_params=pltpu.CompilerParams(
            dimension_semantics=("arbitrary",),
            vmem_limit_bytes=_VMEM_LIMIT),
    )(xg, whh)


# ------------------------------ model wrapper ------------------------------ #

def init_params(key, num_chars, input_size, hidden_size, num_layers):
    H, W = input_size
    keys = jax.random.split(key, 6 + 4 * num_layers)
    s = 0.05
    p = {}
    p["conv1_w"] = s * jax.random.normal(keys[0], (64, 3, 3, 3), jnp.float32)
    p["conv1_b"] = jnp.zeros((64,), jnp.float32)
    p["conv2_w"] = s * jax.random.normal(keys[1], (128, 64, 3, 3), jnp.float32)
    p["conv2_b"] = jnp.zeros((128,), jnp.float32)
    p["lin1_w"] = s * jax.random.normal(
        keys[2], (hidden_size * 2, (H // 4) * 128), jnp.float32)
    p["lin1_b"] = jnp.zeros((hidden_size * 2,), jnp.float32)
    for l in range(num_layers):
        in_f = hidden_size * 2 if l == 0 else hidden_size
        p[f"lstm_wih_{l}"] = s * jax.random.normal(
            keys[3 + 4 * l], (4 * hidden_size, in_f), jnp.float32)
        p[f"lstm_whh_{l}"] = s * jax.random.normal(
            keys[4 + 4 * l], (4 * hidden_size, hidden_size), jnp.float32)
        p[f"lstm_bih_{l}"] = jnp.zeros((4 * hidden_size,), jnp.float32)
        p[f"lstm_bhh_{l}"] = jnp.zeros((4 * hidden_size,), jnp.float32)
    p["out_w"] = s * jax.random.normal(
        keys[3 + 4 * num_layers], (num_chars + 1, hidden_size), jnp.float32)
    p["out_b"] = jnp.zeros((num_chars + 1,), jnp.float32)
    return p


def ocr_forward(params, x_nchw, hidden_size, num_layers):
    """Matches OCRModel.forward(x, target=None): returns (logits (T,B,C), None)."""
    B, C, H, W = x_nchw.shape
    x = jnp.transpose(x_nchw, (0, 2, 3, 1))                   # NCHW -> NHWC
    x = conv3x3_relu_pool(x, params["conv1_w"], params["conv1_b"])  # (B,H/2,W/2,64)
    x = conv3x3_relu_pool(x, params["conv2_w"], params["conv2_b"])  # (B,H/4,W/4,128)
    H4, W4 = H // 4, W // 4
    # PyTorch: permute(0,3,1,2).view(B, W/4, 128*(H/4)) => feature = c*H4 + h
    x = jnp.transpose(x, (0, 2, 3, 1)).reshape(B * W4, 128 * H4)
    x = matmul_bias(x, params["lin1_w"].T, params["lin1_b"], relu=True,
                    out_dtype=jnp.bfloat16)                    # (B*W4, 2H)
    # TODO(synk): Dropout(0.2) is identity in eval mode; no RNG mask applied.
    x = x.reshape(B, W4, 2 * hidden_size).transpose(1, 0, 2)   # (T, B, 2H)
    for l in range(num_layers):
        x = lstm_layer(x, params[f"lstm_wih_{l}"], params[f"lstm_whh_{l}"],
                       params[f"lstm_bih_{l}"], params[f"lstm_bhh_{l}"],
                       hidden_size)
    T = W4
    logits = matmul_bias(x.reshape(T * B, hidden_size),
                         params["out_w"].T, params["out_b"], relu=False,
                         out_dtype=jnp.float32)
    logits = logits.reshape(T, B, -1)      # == PyTorch output.permute(1,0,2)
    # TODO(synk): CTC loss branch (target is not None) not implemented.
    return logits, None


if __name__ == "__main__":
    key = jax.random.PRNGKey(0)
    k_in, k_p = jax.random.split(key)

    B = 2
    num_chars = 10
    H, W = 16, 16
    hidden_size = 32
    num_layers = 2

    x = jax.random.normal(k_in, (B, 3, H, W), jnp.float32)
    params = init_params(k_p, num_chars, (H, W), hidden_size, num_layers)

    fwd = jax.jit(functools.partial(ocr_forward, hidden_size=hidden_size,
                                    num_layers=num_layers))
    logits, loss = fwd(params, x)
    logits = jax.block_until_ready(logits)

    assert logits.shape == (W // 4, B, num_chars + 1), logits.shape
    assert loss is None
    print("KERNEL_OK")
</pallas_src>

<mosaic_0001>
module attributes {stable_mosaic.version = 11 : i64} {
  func.func @_conv3x3_relu_pool_kernel(%arg0: i32, %arg1: memref<1x342x8xbf16, #tpu.memory_space<vmem>>, %arg2: memref<9x8x64xbf16, #tpu.memory_space<vmem>>, %arg3: memref<1x64xf32, #tpu.memory_space<vmem>>, %arg4: memref<1x8x8x64xbf16, #tpu.memory_space<vmem>>, %arg5: memref<288x64xf32, #tpu.memory_space<vmem>>) attributes {dimension_semantics = [#tpu.dimension_semantics<parallel>], iteration_bounds = array<i64: 2>, scalar_prefetch = 0 : i64, scratch_operands = 1 : i64, tpu.core_type = #tpu.core_type<tc>, window_params = [{transform_indices = @transform_0, window_bounds = array<i64: 1, 342, 8>}, {pipeline_mode = #tpu.pipeline_mode<synchronous>, transform_indices = @transform_1, window_bounds = array<i64: 9, 8, 64>}, {pipeline_mode = #tpu.pipeline_mode<synchronous>, transform_indices = @transform_2, window_bounds = array<i64: 1, 64>}, {transform_indices = @transform_3, window_bounds = array<i64: 1, 8, 8, 64>}]} {
    %cst = arith.constant 0.000000e+00 : f32
    %0 = vector.broadcast %cst : f32 to vector<288x64xf32>
    %c0 = arith.constant 0 : index
    %c0_0 = arith.constant 0 : index
    %1 = vector.load %arg5[%c0, %c0_0] : memref<288x64xf32, #tpu.memory_space<vmem>>, vector<288x64xf32>
    tpu.vector_store %arg5[%c0, %c0_0], %0 {strides = array<i32>} : memref<288x64xf32, #tpu.memory_space<vmem>>, vector<288x64xf32>,
    %c0_1 = arith.constant 0 : index
    %c0_2 = arith.constant 0 : index
    %c0_3 = arith.constant 0 : index
    %2 = vector.load %arg1[%c0_1, %c0_2, %c0_3] : memref<1x342x8xbf16, #tpu.memory_space<vmem>>, vector<1x288x8xbf16>
    %3 = vector.shape_cast %2 : vector<1x288x8xbf16> to vector<288x8xbf16>
    %c0_4 = arith.constant 0 : index
    %c0_5 = arith.constant 0 : index
    %4 = vector.load %arg5[%c0_4, %c0_5] : memref<288x64xf32, #tpu.memory_space<vmem>>, vector<288x64xf32>
    %c0_6 = arith.constant 0 : index
    %c0_7 = arith.constant 0 : index
    %c0_8 = arith.constant 0 : index
    %5 = vector.load %arg2[%c0_6, %c0_7, %c0_8] : memref<9x8x64xbf16, #tpu.memory_space<vmem>>, vector<1x8x64xbf16>
    %6 = vector.shape_cast %5 : vector<1x8x64xbf16> to vector<8x64xbf16>
    %cst_9 = arith.constant dense<0.000000e+00> : vector<288x64xf32>
    %7 = tpu.matmul %3, %6, %cst_9 {dimension_numbers = #tpu.dot_dimension_numbers<[1], [0], [0], [1], [0, 0, 1, 1], [], []>} : vector<288x8xbf16>, vector<8x64xbf16>, vector<288x64xf32> -> vector<288x64xf32>
    %8 = arith.addf %4, %7 : vector<288x64xf32>
    %c0_10 = arith.constant 0 : index
    %c0_11 = arith.constant 0 : index
    %9 = vector.load %arg5[%c0_10, %c0_11] : memref<288x64xf32, #tpu.memory_space<vmem>>, vector<288x64xf32>
    tpu.vector_store %arg5[%c0_10, %c0_11], %8 {strides = array<i32>} : memref<288x64xf32, #tpu.memory_space<vmem>>, vector<288x64xf32>,
    %c0_12 = arith.constant 0 : index
    %c1 = arith.constant 1 : index
    %c0_13 = arith.constant 0 : index
    %10 = vector.load %arg1[%c0_12, %c1, %c0_13] : memref<1x342x8xbf16, #tpu.memory_space<vmem>>, vector<1x288x8xbf16>
    %11 = vector.shape_cast %10 : vector<1x288x8xbf16> to vector<288x8xbf16>
    %c0_14 = arith.constant 0 : index
    %c0_15 = arith.constant 0 : index
    %12 = vector.load %arg5[%c0_14, %c0_15] : memref<288x64xf32, #tpu.memory_space<vmem>>, vector<288x64xf32>
    %c1_16 = arith.constant 1 : index
    %c0_17 = arith.constant 0 : index
    %c0_18 = arith.constant 0 : index
    %13 = vector.load %arg2[%c1_16, %c0_17, %c0_18] : memref<9x8x64xbf16, #tpu.memory_space<vmem>>, vector<1x8x64xbf16>
    %14 = vector.shape_cast %13 : vector<1x8x64xbf16> to vector<8x64xbf16>
    %cst_19 = arith.constant dense<0.000000e+00> : vector<288x64xf32>
    %15 = tpu.matmul %11, %14, %cst_19 {dimension_numbers = #tpu.dot_dimension_numbers<[1], [0], [0], [1], [0, 0, 1, 1], [], []>} : vector<288x8xbf16>, vector<8x64xbf16>, vector<288x64xf32> -> vector<288x64xf32>
    %16 = arith.addf %12, %15 : vector<288x64xf32>
    %c0_20 = arith.constant 0 : index
    %c0_21 = arith.constant 0 : index
    %17 = vector.load %arg5[%c0_20, %c0_21] : memref<288x64xf32, #tpu.memory_space<vmem>>, vector<288x64xf32>
    tpu.vector_store %arg5[%c0_20, %c0_21], %16 {strides = array<i32>} : memref<288x64xf32, #tpu.memory_space<vmem>>, vector<288x64xf32>,
    %c0_22 = arith.constant 0 : index
    %c2 = arith.constant 2 : index
    %c0_23 = arith.constant 0 : index
    %18 = vector.load %arg1[%c0_22, %c2, %c0_23] : memref<1x342x8xbf16, #tpu.memory_space<vmem>>, vector<1x288x8xbf16>
    %19 = vector.shape_cast %18 : vector<1x288x8xbf16> to vector<288x8xbf16>
    %c0_24 = arith.constant 0 : index
    %c0_25 = arith.constant 0 : index
    %20 = vector.load %arg5[%c0_24, %c0_25] : memref<288x64xf32, #tpu.memory_space<vmem>>, vector<288x64xf32>
    %c2_26 = arith.constant 2 : index
    %c0_27 = arith.constant 0 : index
    %c0_28 = arith.constant 0 : index
    %21 = vector.load %arg2[%c2_26, %c0_27, %c0_28] : memref<9x8x64xbf16, #tpu.memory_space<vmem>>, vector<1x8x64xbf16>
    %22 = vector.shape_cast %21 : vector<1x8x64xbf16> to vector<8x64xbf16>
    %cst_29 = arith.constant dense<0.000000e+00> : vector<288x64xf32>
    %23 = tpu.matmul %19, %22, %cst_29 {dimension_numbers = #tpu.dot_dimension_numbers<[1], [0], [0], [1], [0, 0, 1, 1], [], []>} : vector<288x8xbf16>, vector<8x64xbf16>, vector<288x64xf32> -> vector<288x64xf32>
    %24 = arith.addf %20, %23 : vector<288x64xf32>
    %c0_30 = arith.constant 0 : index
    %c0_31 = arith.constant 0 : index
    %25 = vector.load %arg5[%c0_30, %c0_31] : memref<288x64xf32, #tpu.memory_space<vmem>>, vector<288x64xf32>
    tpu.vector_store %arg5[%c0_30, %c0_31], %24 {strides = array<i32>} : memref<288x64xf32, #tpu.memory_space<vmem>>, vector<288x64xf32>,
    %c0_32 = arith.constant 0 : index
    %c18 = arith.constant 18 : index
    %c0_33 = arith.constant 0 : index
    %26 = vector.load %arg1[%c0_32, %c18, %c0_33] : memref<1x342x8xbf16, #tpu.memory_space<vmem>>, vector<1x288x8xbf16>
    %27 = vector.shape_cast %26 : vector<1x288x8xbf16> to vector<288x8xbf16>
    %c0_34 = arith.constant 0 : index
    %c0_35 = arith.constant 0 : index
    %28 = vector.load %arg5[%c0_34, %c0_35] : memref<288x64xf32, #tpu.memory_space<vmem>>, vector<288x64xf32>
    %c3 = arith.constant 3 : index
    %c0_36 = arith.constant 0 : index
    %c0_37 = arith.constant 0 : index
    %29 = vector.load %arg2[%c3, %c0_36, %c0_37] : memref<9x8x64xbf16, #tpu.memory_space<vmem>>, vector<1x8x64xbf16>
    %30 = vector.shape_cast %29 : vector<1x8x64xbf16> to vector<8x64xbf16>
    %cst_38 = arith.constant dense<0.000000e+00> : vector<288x64xf32>
    %31 = tpu.matmul %27, %30, %cst_38 {dimension_numbers = #tpu.dot_dimension_numbers<[1], [0], [0], [1], [0, 0, 1, 1], [], []>} : vector<288x8xbf16>, vector<8x64xbf16>, vector<288x64xf32> -> vector<288x64xf32>
    %32 = arith.addf %28, %31 : vector<288x64xf32>
    %c0_39 = arith.constant 0 : index
    %c0_40 = arith.constant 0 : index
    %33 = vector.load %arg5[%c0_39, %c0_40] : memref<288x64xf32, #tpu.memory_space<vmem>>, vector<288x64xf32>
    tpu.vector_store %arg5[%c0_39, %c0_40], %32 {strides = array<i32>} : memref<288x64xf32, #tpu.memory_space<vmem>>, vector<288x64xf32>,
    %c0_41 = arith.constant 0 : index
    %c19 = arith.constant 19 : index
    %c0_42 = arith.constant 0 : index
    %34 = vector.load %arg1[%c0_41, %c19, %c0_42] : memref<1x342x8xbf16, #tpu.memory_space<vmem>>, vector<1x288x8xbf16>
    %35 = vector.shape_cast %34 : vector<1x288x8xbf16> to vector<288x8xbf16>
    %c0_43 = arith.constant 0 : index
    %c0_44 = arith.constant 0 : index
    %36 = vector.load %arg5[%c0_43, %c0_44] : memref<288x64xf32, #tpu.memory_space<vmem>>, vector<288x64xf32>
    %c4 = arith.constant 4 : index
    %c0_45 = arith.constant 0 : index
    %c0_46 = arith.constant 0 : index
    %37 = vector.load %arg2[%c4, %c0_45, %c0_46] : memref<9x8x64xbf16, #tpu.memory_space<vmem>>, vector<1x8x64xbf16>
    %38 = vector.shape_cast %37 : vector<1x8x64xbf16> to vector<8x64xbf16>
    %cst_47 = arith.constant dense<0.000000e+00> : vector<288x64xf32>
    %39 = tpu.matmul %35, %38, %cst_47 {dimension_numbers = #tpu.dot_dimension_numbers<[1], [0], [0], [1], [0, 0, 1, 1], [], []>} : vector<288x8xbf16>, vector<8x64xbf16>, vector<288x64xf32> -> vector<288x64xf32>
    %40 = arith.addf %36, %39 : vector<288x64xf32>
    %c0_48 = arith.constant 0 : index
    %c0_49 = arith.constant 0 : index
    %41 = vector.load %arg5[%c0_48, %c0_49] : memref<288x64xf32, #tpu.memory_space<vmem>>, vector<288x64xf32>
    tpu.vector_store %arg5[%c0_48, %c0_49], %40 {strides = array<i32>} : memref<288x64xf32, #tpu.memory_space<vmem>>, vector<288x64xf32>,
    %c0_50 = arith.constant 0 : index
    %c20 = arith.constant 20 : index
    %c0_51 = arith.constant 0 : index
    %42 = vector.load %arg1[%c0_50, %c20, %c0_51] : memref<1x342x8xbf16, #tpu.memory_space<vmem>>, vector<1x288x8xbf16>
    %43 = vector.shape_cast %42 : vector<1x288x8xbf16> to vector<288x8xbf16>
    %c0_52 = arith.constant 0 : index
    %c0_53 = arith.constant 0 : index
    %44 = vector.load %arg5[%c0_52, %c0_53] : memref<288x64xf32, #tpu.memory_space<vmem>>, vector<288x64xf32>
    %c5 = arith.constant 5 : index
    %c0_54 = arith.constant 0 : index
    %c0_55 = arith.constant 0 : index
    %45 = vector.load %arg2[%c5, %c0_54, %c0_55] : memref<9x8x64xbf16, #tpu.memory_space<vmem>>, vector<1x8x64xbf16>
    %46 = vector.shape_cast %45 : vector<1x8x64xbf16> to vector<8x64xbf16>
    %cst_56 = arith.constant dense<0.000000e+00> : vector<288x64xf32>
    %47 = tpu.matmul %43, %46, %cst_56 {dimension_numbers = #tpu.dot_dimension_numbers<[1], [0], [0], [1], [0, 0, 1, 1], [], []>} : vector<288x8xbf16>, vector<8x64xbf16>, vector<288x64xf32> -> vector<288x64xf32>
    %48 = arith.addf %44, %47 : vector<288x64xf32>
    %c0_57 = arith.constant 0 : index
    %c0_58 = arith.constant 0 : index
    %49 = vector.load %arg5[%c0_57, %c0_58] : memref<288x64xf32, #tpu.memory_space<vmem>>, vector<288x64xf32>
    tpu.vector_store %arg5[%c0_57, %c0_58], %48 {strides = array<i32>} : memref<288x64xf32, #tpu.memory_space<vmem>>, vector<288x64xf32>,
    %c0_59 = arith.constant 0 : index
    %c36 = arith.constant 36 : index
    %c0_60 = arith.constant 0 : index
    %50 = vector.load %arg1[%c0_59, %c36, %c0_60] : memref<1x342x8xbf16, #tpu.memory_space<vmem>>, vector<1x288x8xbf16>
    %51 = vector.shape_cast %50 : vector<1x288x8xbf16> to vector<288x8xbf16>
    %c0_61 = arith.constant 0 : index
    %c0_62 = arith.constant 0 : index
    %52 = vector.load %arg5[%c0_61, %c0_62] : memref<288x64xf32, #tpu.memory_space<vmem>>, vector<288x64xf32>
    %c6 = arith.constant 6 : index
    %c0_63 = arith.constant 0 : index
    %c0_64 = arith.constant 0 : index
    %53 = vector.load %arg2[%c6, %c0_63, %c0_64] : memref<9x8x64xbf16, #tpu.memory_space<vmem>>, vector<1x8x64xbf16>
    %54 = vector.shape_cast %53 : vector<1x8x64xbf16> to vector<8x64xbf16>
    %cst_65 = arith.constant dense<0.000000e+00> : vector<288x64xf32>
    %55 = tpu.matmul %51, %54, %cst_65 {dimension_numbers = #tpu.dot_dimension_numbers<[1], [0], [0], [1], [0, 0, 1, 1], [], []>} : vector<288x8xbf16>, vector<8x64xbf16>, vector<288x64xf32> -> vector<288x64xf32>
    %56 = arith.addf %52, %55 : vector<288x64xf32>
    %c0_66 = arith.constant 0 : index
    %c0_67 = arith.constant 0 : index
    %57 = vector.load %arg5[%c0_66, %c0_67] : memref<288x64xf32, #tpu.memory_space<vmem>>, vector<288x64xf32>
    tpu.vector_store %arg5[%c0_66, %c0_67], %56 {strides = array<i32>} : memref<288x64xf32, #tpu.memory_space<vmem>>, vector<288x64xf32>,
    %c0_68 = arith.constant 0 : index
    %c37 = arith.constant 37 : index
    %c0_69 = arith.constant 0 : index
    %58 = vector.load %arg1[%c0_68, %c37, %c0_69] : memref<1x342x8xbf16, #tpu.memory_space<vmem>>, vector<1x288x8xbf16>
    %59 = vector.shape_cast %58 : vector<1x288x8xbf16> to vector<288x8xbf16>
    %c0_70 = arith.constant 0 : index
    %c0_71 = arith.constant 0 : index
    %60 = vector.load %arg5[%c0_70, %c0_71] : memref<288x64xf32, #tpu.memory_space<vmem>>, vector<288x64xf32>
    %c7 = arith.constant 7 : index
    %c0_72 = arith.constant 0 : index
    %c0_73 = arith.constant 0 : index
    %61 = vector.load %arg2[%c7, %c0_72, %c0_73] : memref<9x8x64xbf16, #tpu.memory_space<vmem>>, vector<1x8x64xbf16>
    %62 = vector.shape_cast %61 : vector<1x8x64xbf16> to vector<8x64xbf16>
    %cst_74 = arith.constant dense<0.000000e+00> : vector<288x64xf32>
    %63 = tpu.matmul %59, %62, %cst_74 {dimension_numbers = #tpu.dot_dimension_numbers<[1], [0], [0], [1], [0, 0, 1, 1], [], []>} : vector<288x8xbf16>, vector<8x64xbf16>, vector<288x64xf32> -> vector<288x64xf32>
    %64 = arith.addf %60, %63 : vector<288x64xf32>
    %c0_75 = arith.constant 0 : index
    %c0_76 = arith.constant 0 : index
    %65 = vector.load %arg5[%c0_75, %c0_76] : memref<288x64xf32, #tpu.memory_space<vmem>>, vector<288x64xf32>
    tpu.vector_store %arg5[%c0_75, %c0_76], %64 {strides = array<i32>} : memref<288x64xf32, #tpu.memory_space<vmem>>, vector<288x64xf32>,
    %c0_77 = arith.constant 0 : index
    %c38 = arith.constant 38 : index
    %c0_78 = arith.constant 0 : index
    %66 = vector.load %arg1[%c0_77, %c38, %c0_78] : memref<1x342x8xbf16, #tpu.memory_space<vmem>>, vector<1x288x8xbf16>
    %67 = vector.shape_cast %66 : vector<1x288x8xbf16> to vector<288x8xbf16>
    %c0_79 = arith.constant 0 : index
    %c0_80 = arith.constant 0 : index
    %68 = vector.load %arg5[%c0_79, %c0_80] : memref<288x64xf32, #tpu.memory_space<vmem>>, vector<288x64xf32>
    %c8 = arith.constant 8 : index
    %c0_81 = arith.constant 0 : index
    %c0_82 = arith.constant 0 : index
    %69 = vector.load %arg2[%c8, %c0_81, %c0_82] : memref<9x8x64xbf16, #tpu.memory_space<vmem>>, vector<1x8x64xbf16>
    %70 = vector.shape_cast %69 : vector<1x8x64xbf16> to vector<8x64xbf16>
    %cst_83 = arith.constant dense<0.000000e+00> : vector<288x64xf32>
    %71 = tpu.matmul %67, %70, %cst_83 {dimension_numbers = #tpu.dot_dimension_numbers<[1], [0], [0], [1], [0, 0, 1, 1], [], []>} : vector<288x8xbf16>, vector<8x64xbf16>, vector<288x64xf32> -> vector<288x64xf32>
    %72 = arith.addf %68, %71 : vector<288x64xf32>
    %c0_84 = arith.constant 0 : index
    %c0_85 = arith.constant 0 : index
    %73 = vector.load %arg5[%c0_84, %c0_85] : memref<288x64xf32, #tpu.memory_space<vmem>>, vector<288x64xf32>
    tpu.vector_store %arg5[%c0_84, %c0_85], %72 {strides = array<i32>} : memref<288x64xf32, #tpu.memory_space<vmem>>, vector<288x64xf32>,
    %c0_86 = arith.constant 0 : index
    %c0_87 = arith.constant 0 : index
    %74 = vector.load %arg5[%c0_86, %c0_87] : memref<288x64xf32, #tpu.memory_space<vmem>>, vector<288x64xf32>
    %c0_88 = arith.constant 0 : index
    %c0_89 = arith.constant 0 : index
    %75 = vector.load %arg3[%c0_88, %c0_89] : memref<1x64xf32, #tpu.memory_space<vmem>>, vector<1x64xf32>
    %76 = vector.broadcast %75 : vector<1x64xf32> to vector<288x64xf32>
    %77 = arith.addf %74, %76 : vector<288x64xf32>
    %cst_90 = arith.constant 0.000000e+00 : f32
    %78 = vector.broadcast %cst_90 : f32 to vector<288x64xf32>
    %79 = arith.maximumf %77, %78 : vector<288x64xf32>
    %80 = vector.shape_cast %79 : vector<288x64xf32> to vector<8x2x9x2x64xf32>
    %cst_91 = arith.constant dense<0xFF800000> : vector<8x2x9x64xf32>
    %81 = vector.multi_reduction <maximumf>, %80, %cst_91 [3] : vector<8x2x9x2x64xf32> to vector<8x2x9x64xf32>
    %cst_92 = arith.constant dense<0xFF800000> : vector<8x9x64xf32>
    %82 = vector.multi_reduction <maximumf>, %81, %cst_92 [1] : vector<8x2x9x64xf32> to vector<8x9x64xf32>
    %83 = vector.extract_strided_slice %82 {offsets = [0, 0, 0], sizes = [8, 8, 64], strides = [1, 1, 1]} : vector<8x9x64xf32> to vector<8x8x64xf32>
    %84 = arith.truncf %83 : vector<8x8x64xf32> to vector<8x8x64xbf16>
    %c0_93 = arith.constant 0 : index
    %c0_94 = arith.constant 0 : index
    %c0_95 = arith.constant 0 : index
    %c0_96 = arith.constant 0 : index
    %85 = vector.load %arg4[%c0_93, %c0_94, %c0_95, %c0_96] : memref<1x8x8x64xbf16, #tpu.memory_space<vmem>>, vector<1x8x8x64xbf16>
    %86 = vector.shape_cast %85 : vector<1x8x8x64xbf16> to vector<8x8x64xbf16>
    %87 = vector.shape_cast %84 : vector<8x8x64xbf16> to vector<1x8x8x64xbf16>
    tpu.vector_store %arg4[%c0_93, %c0_94, %c0_95, %c0_96], %87 {strides = array<i32>} : memref<1x8x8x64xbf16, #tpu.memory_space<vmem>>, vector<1x8x8x64xbf16>,
    return
  }
  func.func @transform_0(%arg0: i32) -> (i32, i32, i32) {
    %c0_i32 = arith.constant 0 : i32
    %c0_i32_0 = arith.constant 0 : i32
    %c0_i32_1 = arith.constant 0 : i32
    return %arg0, %c0_i32, %c0_i32_0 : i32, i32, i32
  }
  func.func @transform_1(%arg0: i32) -> (i32, i32, i32) {
    %c0_i32 = arith.constant 0 : i32
    %c0_i32_0 = arith.constant 0 : i32
    %c0_i32_1 = arith.constant 0 : i32
    %c0_i32_2 = arith.constant 0 : i32
    return %c0_i32, %c0_i32_0, %c0_i32_1 : i32, i32, i32
  }
  func.func @transform_2(%arg0: i32) -> (i32, i32) {
    %c0_i32 = arith.constant 0 : i32
    %c0_i32_0 = arith.constant 0 : i32
    %c0_i32_1 = arith.constant 0 : i32
    return %c0_i32, %c0_i32_0 : i32, i32
  }
  func.func @transform_3(%arg0: i32) -> (i32, i32, i32, i32) {
    %c0_i32 = arith.constant 0 : i32
    %c0_i32_0 = arith.constant 0 : i32
    %c0_i32_1 = arith.constant 0 : i32
    %c0_i32_2 = arith.constant 0 : i32
    return %arg0, %c0_i32, %c0_i32_0, %c0_i32_1 : i32, i32, i32, i32
  }
}

module attributes {stable_mosaic.version = 11 : i64} {
  func.func @_conv3x3_relu_pool_kernel(%arg0: i32, %arg1: memref<1x110x64xbf16, #tpu.memory_space<vmem>>, %arg2: memref<9x64x128xbf16, #tpu.memory_space<vmem>>, %arg3: memref<1x128xf32, #tpu.memory_space<vmem>>, %arg4: memref<1x4x4x128xbf16, #tpu.memory_space<vmem>>, %arg5: memref<80x128xf32, #tpu.memory_space<vmem>>) attributes {dimension_semantics = [#tpu.dimension_semantics<parallel>], iteration_bounds = array<i64: 2>, scalar_prefetch = 0 : i64, scratch_operands = 1 : i64, tpu.core_type = #tpu.core_type<tc>, window_params = [{transform_indices = @transform_0, window_bounds = array<i64: 1, 110, 64>}, {pipeline_mode = #tpu.pipeline_mode<synchronous>, transform_indices = @transform_1, window_bounds = array<i64: 9, 64, 128>}, {pipeline_mode = #tpu.pipeline_mode<synchronous>, transform_indices = @transform_2, window_bounds = array<i64: 1, 128>}, {transform_indices = @transform_3, window_bounds = array<i64: 1, 4, 4, 128>}]} {
    %cst = arith.constant 0.000000e+00 : f32
    %0 = vector.broadcast %cst : f32 to vector<80x128xf32>
    %c0 = arith.constant 0 : index
    %c0_0 = arith.constant 0 : index
    %1 = vector.load %arg5[%c0, %c0_0] : memref<80x128xf32, #tpu.memory_space<vmem>>, vector<80x128xf32>
    tpu.vector_store %arg5[%c0, %c0_0], %0 {strides = array<i32>} : memref<80x128xf32, #tpu.memory_space<vmem>>, vector<80x128xf32>,
    %c0_1 = arith.constant 0 : index
    %c0_2 = arith.constant 0 : index
    %c0_3 = arith.constant 0 : index
    %2 = vector.load %arg1[%c0_1, %c0_2, %c0_3] : memref<1x110x64xbf16, #tpu.memory_space<vmem>>, vector<1x80x64xbf16>
    %3 = vector.shape_cast %2 : vector<1x80x64xbf16> to vector<80x64xbf16>
    %c0_4 = arith.constant 0 : index
    %c0_5 = arith.constant 0 : index
    %4 = vector.load %arg5[%c0_4, %c0_5] : memref<80x128xf32, #tpu.memory_space<vmem>>, vector<80x128xf32>
    %c0_6 = arith.constant 0 : index
    %c0_7 = arith.constant 0 : index
    %c0_8 = arith.constant 0 : index
    %5 = vector.load %arg2[%c0_6, %c0_7, %c0_8] : memref<9x64x128xbf16, #tpu.memory_space<vmem>>, vector<1x64x128xbf16>
    %6 = vector.shape_cast %5 : vector<1x64x128xbf16> to vector<64x128xbf16>
    %cst_9 = arith.constant dense<0.000000e+00> : vector<80x128xf32>
    %7 = tpu.matmul %3, %6, %cst_9 {dimension_numbers = #tpu.dot_dimension_numbers<[1], [0], [0], [1], [0, 0, 1, 1], [], []>} : vector<80x64xbf16>, vector<64x128xbf16>, vector<80x128xf32> -> vector<80x128xf32>
    %8 = arith.addf %4, %7 : vector<80x128xf32>
    %c0_10 = arith.constant 0 : index
    %c0_11 = arith.constant 0 : index
    %9 = vector.load %arg5[%c0_10, %c0_11] : memref<80x128xf32, #tpu.memory_space<vmem>>, vector<80x128xf32>
    tpu.vector_store %arg5[%c0_10, %c0_11], %8 {strides = array<i32>} : memref<80x128xf32, #tpu.memory_space<vmem>>, vector<80x128xf32>,
    %c0_12 = arith.constant 0 : index
    %c1 = arith.constant 1 : index
    %c0_13 = arith.constant 0 : index
    %10 = vector.load %arg1[%c0_12, %c1, %c0_13] : memref<1x110x64xbf16, #tpu.memory_space<vmem>>, vector<1x80x64xbf16>
    %11 = vector.shape_cast %10 : vector<1x80x64xbf16> to vector<80x64xbf16>
    %c0_14 = arith.constant 0 : index
    %c0_15 = arith.constant 0 : index
    %12 = vector.load %arg5[%c0_14, %c0_15] : memref<80x128xf32, #tpu.memory_space<vmem>>, vector<80x128xf32>
    %c1_16 = arith.constant 1 : index
    %c0_17 = arith.constant 0 : index
    %c0_18 = arith.constant 0 : index
    %13 = vector.load %arg2[%c1_16, %c0_17, %c0_18] : memref<9x64x128xbf16, #tpu.memory_space<vmem>>, vector<1x64x128xbf16>
    %14 = vector.shape_cast %13 : vector<1x64x128xbf16> to vector<64x128xbf16>
    %cst_19 = arith.constant dense<0.000000e+00> : vector<80x128xf32>
    %15 = tpu.matmul %11, %14, %cst_19 {dimension_numbers = #tpu.dot_dimension_numbers<[1], [0], [0], [1], [0, 0, 1, 1], [], []>} : vector<80x64xbf16>, vector<64x128xbf16>, vector<80x128xf32> -> vector<80x128xf32>
    %16 = arith.addf %12, %15 : vector<80x128xf32>
    %c0_20 = arith.constant 0 : index
    %c0_21 = arith.constant 0 : index
    %17 = vector.load %arg5[%c0_20, %c0_21] : memref<80x128xf32, #tpu.memory_space<vmem>>, vector<80x128xf32>
    tpu.vector_store %arg5[%c0_20, %c0_21], %16 {strides = array<i32>} : memref<80x128xf32, #tpu.memory_space<vmem>>, vector<80x128xf32>,
    %c0_22 = arith.constant 0 : index
    %c2 = arith.constant 2 : index
    %c0_23 = arith.constant 0 : index
    %18 = vector.load %arg1[%c0_22, %c2, %c0_23] : memref<1x110x64xbf16, #tpu.memory_space<vmem>>, vector<1x80x64xbf16>
    %19 = vector.shape_cast %18 : vector<1x80x64xbf16> to vector<80x64xbf16>
    %c0_24 = arith.constant 0 : index
    %c0_25 = arith.constant 0 : index
    %20 = vector.load %arg5[%c0_24, %c0_25] : memref<80x128xf32, #tpu.memory_space<vmem>>, vector<80x128xf32>
    %c2_26 = arith.constant 2 : index
    %c0_27 = arith.constant 0 : index
    %c0_28 = arith.constant 0 : index
    %21 = vector.load %arg2[%c2_26, %c0_27, %c0_28] : memref<9x64x128xbf16, #tpu.memory_space<vmem>>, vector<1x64x128xbf16>
    %22 = vector.shape_cast %21 : vector<1x64x128xbf16> to vector<64x128xbf16>
    %cst_29 = arith.constant dense<0.000000e+00> : vector<80x128xf32>
    %23 = tpu.matmul %19, %22, %cst_29 {dimension_numbers = #tpu.dot_dimension_numbers<[1], [0], [0], [1], [0, 0, 1, 1], [], []>} : vector<80x64xbf16>, vector<64x128xbf16>, vector<80x128xf32> -> vector<80x128xf32>
    %24 = arith.addf %20, %23 : vector<80x128xf32>
    %c0_30 = arith.constant 0 : index
    %c0_31 = arith.constant 0 : index
    %25 = vector.load %arg5[%c0_30, %c0_31] : memref<80x128xf32, #tpu.memory_space<vmem>>, vector<80x128xf32>
    tpu.vector_store %arg5[%c0_30, %c0_31], %24 {strides = array<i32>} : memref<80x128xf32, #tpu.memory_space<vmem>>, vector<80x128xf32>,
    %c0_32 = arith.constant 0 : index
    %c10 = arith.constant 10 : index
    %c0_33 = arith.constant 0 : index
    %26 = vector.load %arg1[%c0_32, %c10, %c0_33] : memref<1x110x64xbf16, #tpu.memory_space<vmem>>, vector<1x80x64xbf16>
    %27 = vector.shape_cast %26 : vector<1x80x64xbf16> to vector<80x64xbf16>
    %c0_34 = arith.constant 0 : index
    %c0_35 = arith.constant 0 : index
    %28 = vector.load %arg5[%c0_34, %c0_35] : memref<80x128xf32, #tpu.memory_space<vmem>>, vector<80x128xf32>
    %c3 = arith.constant 3 : index
    %c0_36 = arith.constant 0 : index
    %c0_37 = arith.constant 0 : index
    %29 = vector.load %arg2[%c3, %c0_36, %c0_37] : memref<9x64x128xbf16, #tpu.memory_space<vmem>>, vector<1x64x128xbf16>
    %30 = vector.shape_cast %29 : vector<1x64x128xbf16> to vector<64x128xbf16>
    %cst_38 = arith.constant dense<0.000000e+00> : vector<80x128xf32>
    %31 = tpu.matmul %27, %30, %cst_38 {dimension_numbers = #tpu.dot_dimension_numbers<[1], [0], [0], [1], [0, 0, 1, 1], [], []>} : vector<80x64xbf16>, vector<64x128xbf16>, vector<80x128xf32> -> vector<80x128xf32>
    %32 = arith.addf %28, %31 : vector<80x128xf32>
    %c0_39 = arith.constant 0 : index
    %c0_40 = arith.constant 0 : index
    %33 = vector.load %arg5[%c0_39, %c0_40] : memref<80x128xf32, #tpu.memory_space<vmem>>, vector<80x128xf32>
    tpu.vector_store %arg5[%c0_39, %c0_40], %32 {strides = array<i32>} : memref<80x128xf32, #tpu.memory_space<vmem>>, vector<80x128xf32>,
    %c0_41 = arith.constant 0 : index
    %c11 = arith.constant 11 : index
    %c0_42 = arith.constant 0 : index
    %34 = vector.load %arg1[%c0_41, %c11, %c0_42] : memref<1x110x64xbf16, #tpu.memory_space<vmem>>, vector<1x80x64xbf16>
    %35 = vector.shape_cast %34 : vector<1x80x64xbf16> to vector<80x64xbf16>
    %c0_43 = arith.constant 0 : index
    %c0_44 = arith.constant 0 : index
    %36 = vector.load %arg5[%c0_43, %c0_44] : memref<80x128xf32, #tpu.memory_space<vmem>>, vector<80x128xf32>
    %c4 = arith.constant 4 : index
    %c0_45 = arith.constant 0 : index
    %c0_46 = arith.constant 0 : index
    %37 = vector.load %arg2[%c4, %c0_45, %c0_46] : memref<9x64x128xbf16, #tpu.memory_space<vmem>>, vector<1x64x128xbf16>
    %38 = vector.shape_cast %37 : vector<1x64x128xbf16> to vector<64x128xbf16>
    %cst_47 = arith.constant dense<0.000000e+00> : vector<80x128xf32>
    %39 = tpu.matmul %35, %38, %cst_47 {dimension_numbers = #tpu.dot_dimension_numbers<[1], [0], [0], [1], [0, 0, 1, 1], [], []>} : vector<80x64xbf16>, vector<64x128xbf16>, vector<80x128xf32> -> vector<80x128xf32>
    %40 = arith.addf %36, %39 : vector<80x128xf32>
    %c0_48 = arith.constant 0 : index
    %c0_49 = arith.constant 0 : index
    %41 = vector.load %arg5[%c0_48, %c0_49] : memref<80x128xf32, #tpu.memory_space<vmem>>, vector<80x128xf32>
    tpu.vector_store %arg5[%c0_48, %c0_49], %40 {strides = array<i32>} : memref<80x128xf32, #tpu.memory_space<vmem>>, vector<80x128xf32>,
    %c0_50 = arith.constant 0 : index
    %c12 = arith.constant 12 : index
    %c0_51 = arith.constant 0 : index
    %42 = vector.load %arg1[%c0_50, %c12, %c0_51] : memref<1x110x64xbf16, #tpu.memory_space<vmem>>, vector<1x80x64xbf16>
    %43 = vector.shape_cast %42 : vector<1x80x64xbf16> to vector<80x64xbf16>
    %c0_52 = arith.constant 0 : index
    %c0_53 = arith.constant 0 : index
    %44 = vector.load %arg5[%c0_52, %c0_53] : memref<80x128xf32, #tpu.memory_space<vmem>>, vector<80x128xf32>
    %c5 = arith.constant 5 : index
    %c0_54 = arith.constant 0 : index
    %c0_55 = arith.constant 0 : index
    %45 = vector.load %arg2[%c5, %c0_54, %c0_55] : memref<9x64x128xbf16, #tpu.memory_space<vmem>>, vector<1x64x128xbf16>
    %46 = vector.shape_cast %45 : vector<1x64x128xbf16> to vector<64x128xbf16>
    %cst_56 = arith.constant dense<0.000000e+00> : vector<80x128xf32>
    %47 = tpu.matmul %43, %46, %cst_56 {dimension_numbers = #tpu.dot_dimension_numbers<[1], [0], [0], [1], [0, 0, 1, 1], [], []>} : vector<80x64xbf16>, vector<64x128xbf16>, vector<80x128xf32> -> vector<80x128xf32>
    %48 = arith.addf %44, %47 : vector<80x128xf32>
    %c0_57 = arith.constant 0 : index
    %c0_58 = arith.constant 0 : index
    %49 = vector.load %arg5[%c0_57, %c0_58] : memref<80x128xf32, #tpu.memory_space<vmem>>, vector<80x128xf32>
    tpu.vector_store %arg5[%c0_57, %c0_58], %48 {strides = array<i32>} : memref<80x128xf32, #tpu.memory_space<vmem>>, vector<80x128xf32>,
    %c0_59 = arith.constant 0 : index
    %c20 = arith.constant 20 : index
    %c0_60 = arith.constant 0 : index
    %50 = vector.load %arg1[%c0_59, %c20, %c0_60] : memref<1x110x64xbf16, #tpu.memory_space<vmem>>, vector<1x80x64xbf16>
    %51 = vector.shape_cast %50 : vector<1x80x64xbf16> to vector<80x64xbf16>
    %c0_61 = arith.constant 0 : index
    %c0_62 = arith.constant 0 : index
    %52 = vector.load %arg5[%c0_61, %c0_62] : memref<80x128xf32, #tpu.memory_space<vmem>>, vector<80x128xf32>
    %c6 = arith.constant 6 : index
    %c0_63 = arith.constant 0 : index
    %c0_64 = arith.constant 0 : index
    %53 = vector.load %arg2[%c6, %c0_63, %c0_64] : memref<9x64x128xbf16, #tpu.memory_space<vmem>>, vector<1x64x128xbf16>
    %54 = vector.shape_cast %53 : vector<1x64x128xbf16> to vector<64x128xbf16>
    %cst_65 = arith.constant dense<0.000000e+00> : vector<80x128xf32>
    %55 = tpu.matmul %51, %54, %cst_65 {dimension_numbers = #tpu.dot_dimension_numbers<[1], [0], [0], [1], [0, 0, 1, 1], [], []>} : vector<80x64xbf16>, vector<64x128xbf16>, vector<80x128xf32> -> vector<80x128xf32>
    %56 = arith.addf %52, %55 : vector<80x128xf32>
    %c0_66 = arith.constant 0 : index
    %c0_67 = arith.constant 0 : index
    %57 = vector.load %arg5[%c0_66, %c0_67] : memref<80x128xf32, #tpu.memory_space<vmem>>, vector<80x128xf32>
    tpu.vector_store %arg5[%c0_66, %c0_67], %56 {strides = array<i32>} : memref<80x128xf32, #tpu.memory_space<vmem>>, vector<80x128xf32>,
    %c0_68 = arith.constant 0 : index
    %c21 = arith.constant 21 : index
    %c0_69 = arith.constant 0 : index
    %58 = vector.load %arg1[%c0_68, %c21, %c0_69] : memref<1x110x64xbf16, #tpu.memory_space<vmem>>, vector<1x80x64xbf16>
    %59 = vector.shape_cast %58 : vector<1x80x64xbf16> to vector<80x64xbf16>
    %c0_70 = arith.constant 0 : index
    %c0_71 = arith.constant 0 : index
    %60 = vector.load %arg5[%c0_70, %c0_71] : memref<80x128xf32, #tpu.memory_space<vmem>>, vector<80x128xf32>
    %c7 = arith.constant 7 : index
    %c0_72 = arith.constant 0 : index
    %c0_73 = arith.constant 0 : index
    %61 = vector.load %arg2[%c7, %c0_72, %c0_73] : memref<9x64x128xbf16, #tpu.memory_space<vmem>>, vector<1x64x128xbf16>
    %62 = vector.shape_cast %61 : vector<1x64x128xbf16> to vector<64x128xbf16>
    %cst_74 = arith.constant dense<0.000000e+00> : vector<80x128xf32>
    %63 = tpu.matmul %59, %62, %cst_74 {dimension_numbers = #tpu.dot_dimension_numbers<[1], [0], [0], [1], [0, 0, 1, 1], [], []>} : vector<80x64xbf16>, vector<64x128xbf16>, vector<80x128xf32> -> vector<80x128xf32>
    %64 = arith.addf %60, %63 : vector<80x128xf32>
    %c0_75 = arith.constant 0 : index
    %c0_76 = arith.constant 0 : index
    %65 = vector.load %arg5[%c0_75, %c0_76] : memref<80x128xf32, #tpu.memory_space<vmem>>, vector<80x128xf32>
    tpu.vector_store %arg5[%c0_75, %c0_76], %64 {strides = array<i32>} : memref<80x128xf32, #tpu.memory_space<vmem>>, vector<80x128xf32>,
    %c0_77 = arith.constant 0 : index
    %c22 = arith.constant 22 : index
    %c0_78 = arith.constant 0 : index
    %66 = vector.load %arg1[%c0_77, %c22, %c0_78] : memref<1x110x64xbf16, #tpu.memory_space<vmem>>, vector<1x80x64xbf16>
    %67 = vector.shape_cast %66 : vector<1x80x64xbf16> to vector<80x64xbf16>
    %c0_79 = arith.constant 0 : index
    %c0_80 = arith.constant 0 : index
    %68 = vector.load %arg5[%c0_79, %c0_80] : memref<80x128xf32, #tpu.memory_space<vmem>>, vector<80x128xf32>
    %c8 = arith.constant 8 : index
    %c0_81 = arith.constant 0 : index
    %c0_82 = arith.constant 0 : index
    %69 = vector.load %arg2[%c8, %c0_81, %c0_82] : memref<9x64x128xbf16, #tpu.memory_space<vmem>>, vector<1x64x128xbf16>
    %70 = vector.shape_cast %69 : vector<1x64x128xbf16> to vector<64x128xbf16>
    %cst_83 = arith.constant dense<0.000000e+00> : vector<80x128xf32>
    %71 = tpu.matmul %67, %70, %cst_83 {dimension_numbers = #tpu.dot_dimension_numbers<[1], [0], [0], [1], [0, 0, 1, 1], [], []>} : vector<80x64xbf16>, vector<64x128xbf16>, vector<80x128xf32> -> vector<80x128xf32>
    %72 = arith.addf %68, %71 : vector<80x128xf32>
    %c0_84 = arith.constant 0 : index
    %c0_85 = arith.constant 0 : index
    %73 = vector.load %arg5[%c0_84, %c0_85] : memref<80x128xf32, #tpu.memory_space<vmem>>, vector<80x128xf32>
    tpu.vector_store %arg5[%c0_84, %c0_85], %72 {strides = array<i32>} : memref<80x128xf32, #tpu.memory_space<vmem>>, vector<80x128xf32>,
    %c0_86 = arith.constant 0 : index
    %c0_87 = arith.constant 0 : index
    %74 = vector.load %arg5[%c0_86, %c0_87] : memref<80x128xf32, #tpu.memory_space<vmem>>, vector<80x128xf32>
    %c0_88 = arith.constant 0 : index
    %c0_89 = arith.constant 0 : index
    %75 = vector.load %arg3[%c0_88, %c0_89] : memref<1x128xf32, #tpu.memory_space<vmem>>, vector<1x128xf32>
    %76 = vector.broadcast %75 : vector<1x128xf32> to vector<80x128xf32>
    %77 = arith.addf %74, %76 : vector<80x128xf32>
    %cst_90 = arith.constant 0.000000e+00 : f32
    %78 = vector.broadcast %cst_90 : f32 to vector<80x128xf32>
    %79 = arith.maximumf %77, %78 : vector<80x128xf32>
    %80 = vector.shape_cast %79 : vector<80x128xf32> to vector<4x2x5x2x128xf32>
    %cst_91 = arith.constant dense<0xFF800000> : vector<4x2x5x128xf32>
    %81 = vector.multi_reduction <maximumf>, %80, %cst_91 [3] : vector<4x2x5x2x128xf32> to vector<4x2x5x128xf32>
    %cst_92 = arith.constant dense<0xFF800000> : vector<4x5x128xf32>
    %82 = vector.multi_reduction <maximumf>, %81, %cst_92 [1] : vector<4x2x5x128xf32> to vector<4x5x128xf32>
    %83 = vector.extract_strided_slice %82 {offsets = [0, 0, 0], sizes = [4, 4, 128], strides = [1, 1, 1]} : vector<4x5x128xf32> to vector<4x4x128xf32>
    %84 = arith.truncf %83 : vector<4x4x128xf32> to vector<4x4x128xbf16>
    %c0_93 = arith.constant 0 : index
    %c0_94 = arith.constant 0 : index
    %c0_95 = arith.constant 0 : index
    %c0_96 = arith.constant 0 : index
    %85 = vector.load %arg4[%c0_93, %c0_94, %c0_95, %c0_96] : memref<1x4x4x128xbf16, #tpu.memory_space<vmem>>, vector<1x4x4x128xbf16>
    %86 = vector.shape_cast %85 : vector<1x4x4x128xbf16> to vector<4x4x128xbf16>
    %87 = vector.shape_cast %84 : vector<4x4x128xbf16> to vector<1x4x4x128xbf16>
    tpu.vector_store %arg4[%c0_93, %c0_94, %c0_95, %c0_96], %87 {strides = array<i32>} : memref<1x4x4x128xbf16, #tpu.memory_space<vmem>>, vector<1x4x4x128xbf16>,
    return
  }
  func.func @transform_0(%arg0: i32) -> (i32, i32, i32) {
    %c0_i32 = arith.constant 0 : i32
    %c0_i32_0 = arith.constant 0 : i32
    %c0_i32_1 = arith.constant 0 : i32
    return %arg0, %c0_i32, %c0_i32_0 : i32, i32, i32
  }
  func.func @transform_1(%arg0: i32) -> (i32, i32, i32) {
    %c0_i32 = arith.constant 0 : i32
    %c0_i32_0 = arith.constant 0 : i32
    %c0_i32_1 = arith.constant 0 : i32
    %c0_i32_2 = arith.constant 0 : i32
    return %c0_i32, %c0_i32_0, %c0_i32_1 : i32, i32, i32
  }
  func.func @transform_2(%arg0: i32) -> (i32, i32) {
    %c0_i32 = arith.constant 0 : i32
    %c0_i32_0 = arith.constant 0 : i32
    %c0_i32_1 = arith.constant 0 : i32
    return %c0_i32, %c0_i32_0 : i32, i32
  }
  func.func @transform_3(%arg0: i32) -> (i32, i32, i32, i32) {
    %c0_i32 = arith.constant 0 : i32
    %c0_i32_0 = arith.constant 0 : i32
    %c0_i32_1 = arith.constant 0 : i32
    %c0_i32_2 = arith.constant 0 : i32
    return %arg0, %c0_i32, %c0_i32_0, %c0_i32_1 : i32, i32, i32, i32
  }
}

module attributes {stable_mosaic.version = 11 : i64} {
  func.func @_matmul_kernel(%arg0: i32, %arg1: i32, %arg2: i32, %arg3: memref<16x512xbf16, #tpu.memory_space<vmem>>, %arg4: memref<512x128xbf16, #tpu.memory_space<vmem>>, %arg5: memref<1x128xf32, #tpu.memory_space<vmem>>, %arg6: memref<16x128xbf16, #tpu.memory_space<vmem>>, %arg7: memref<16x128xf32, #tpu.memory_space<vmem>>) attributes {dimension_semantics = [#tpu.dimension_semantics<parallel>, #tpu.dimension_semantics<parallel>, #tpu.dimension_semantics<arbitrary>], iteration_bounds = array<i64: 1, 1, 1>, scalar_prefetch = 0 : i64, scratch_operands = 1 : i64, tpu.core_type = #tpu.core_type<tc>, window_params = [{transform_indices = @transform_0, window_bounds = array<i64: 16, 512>}, {transform_indices = @transform_1, window_bounds = array<i64: 512, 128>}, {transform_indices = @transform_2, window_bounds = array<i64: 1, 128>}, {transform_indices = @transform_3, window_bounds = array<i64: 16, 128>}]} {
    %c0_i32 = arith.constant 0 : i32
    %0 = arith.cmpi eq, %arg2, %c0_i32 : i32
    %1 = arith.extui %0 : i1 to i32
    %c0_i32_0 = arith.constant 0 : i32
    %2 = arith.cmpi ne, %1, %c0_i32_0 : i32
    scf.if %2 {
      %cst_10 = arith.constant 0.000000e+00 : f32
      %12 = vector.broadcast %cst_10 : f32 to vector<16x128xf32>
      %c0_11 = arith.constant 0 : index
      %c0_12 = arith.constant 0 : index
      %13 = vector.load %arg7[%c0_11, %c0_12] : memref<16x128xf32, #tpu.memory_space<vmem>>, vector<16x128xf32>
      tpu.vector_store %arg7[%c0_11, %c0_12], %12 {strides = array<i32>} : memref<16x128xf32, #tpu.memory_space<vmem>>, vector<16x128xf32>,
    } else {
    }
    %c0 = arith.constant 0 : index
    %c0_1 = arith.constant 0 : index
    %3 = vector.load %arg7[%c0, %c0_1] : memref<16x128xf32, #tpu.memory_space<vmem>>, vector<16x128xf32>
    %c0_2 = arith.constant 0 : index
    %c0_3 = arith.constant 0 : index
    %4 = vector.load %arg3[%c0_2, %c0_3] : memref<16x512xbf16, #tpu.memory_space<vmem>>, vector<16x512xbf16>
    %c0_4 = arith.constant 0 : index
    %c0_5 = arith.constant 0 : index
    %5 = vector.load %arg4[%c0_4, %c0_5] : memref<512x128xbf16, #tpu.memory_space<vmem>>, vector<512x128xbf16>
    %cst = arith.constant dense<0.000000e+00> : vector<16x128xf32>
    %6 = tpu.matmul %4, %5, %cst {dimension_numbers = #tpu.dot_dimension_numbers<[1], [0], [0], [1], [0, 0, 1, 1], [], []>} : vector<16x512xbf16>, vector<512x128xbf16>, vector<16x128xf32> -> vector<16x128xf32>
    %7 = arith.addf %3, %6 : vector<16x128xf32>
    %c0_6 = arith.constant 0 : index
    %c0_7 = arith.constant 0 : index
    %8 = vector.load %arg7[%c0_6, %c0_7] : memref<16x128xf32, #tpu.memory_space<vmem>>, vector<16x128xf32>
    tpu.vector_store %arg7[%c0_6, %c0_7], %7 {strides = array<i32>} : memref<16x128xf32, #tpu.memory_space<vmem>>, vector<16x128xf32>,
    %c0_i32_8 = arith.constant 0 : i32
    %9 = arith.cmpi eq, %arg2, %c0_i32_8 : i32
    %10 = arith.extui %9 : i1 to i32
    %c0_i32_9 = arith.constant 0 : i32
    %11 = arith.cmpi ne, %10, %c0_i32_9 : i32
    scf.if %11 {
      %c0_10 = arith.constant 0 : index
      %c0_11 = arith.constant 0 : index
      %12 = vector.load %arg7[%c0_10, %c0_11] : memref<16x128xf32, #tpu.memory_space<vmem>>, vector<16x128xf32>
      %c0_12 = arith.constant 0 : index
      %c0_13 = arith.constant 0 : index
      %13 = vector.load %arg5[%c0_12, %c0_13] : memref<1x128xf32, #tpu.memory_space<vmem>>, vector<1x128xf32>
      %14 = vector.broadcast %13 : vector<1x128xf32> to vector<16x128xf32>
      %15 = arith.addf %12, %14 : vector<16x128xf32>
      %cst_14 = arith.constant 0.000000e+00 : f32
      %16 = vector.broadcast %cst_14 : f32 to vector<16x128xf32>
      %17 = arith.maximumf %15, %16 : vector<16x128xf32>
      %18 = arith.truncf %17 : vector<16x128xf32> to vector<16x128xbf16>
      %c0_15 = arith.constant 0 : index
      %c0_16 = arith.constant 0 : index
      %19 = vector.load %arg6[%c0_15, %c0_16] : memref<16x128xbf16, #tpu.memory_space<vmem>>, vector<16x128xbf16>
      tpu.vector_store %arg6[%c0_15, %c0_16], %18 {strides = array<i32>} : memref<16x128xbf16, #tpu.memory_space<vmem>>, vector<16x128xbf16>,
    } else {
    }
    return
  }
  func.func @transform_0(%arg0: i32, %arg1: i32, %arg2: i32) -> (i32, i32) {
    %c0_i32 = arith.constant 0 : i32
    return %arg0, %arg2 : i32, i32
  }
  func.func @transform_1(%arg0: i32, %arg1: i32, %arg2: i32) -> (i32, i32) {
    %c0_i32 = arith.constant 0 : i32
    return %arg2, %arg1 : i32, i32
  }
  func.func @transform_2(%arg0: i32, %arg1: i32, %arg2: i32) -> (i32, i32) {
    %c0_i32 = arith.constant 0 : i32
    %c0_i32_0 = arith.constant 0 : i32
    return %c0_i32, %arg1 : i32, i32
  }
  func.func @transform_3(%arg0: i32, %arg1: i32, %arg2: i32) -> (i32, i32) {
    %c0_i32 = arith.constant 0 : i32
    return %arg0, %arg1 : i32, i32
  }
}

module attributes {stable_mosaic.version = 11 : i64} {
  func.func @_matmul_kernel(%arg0: i32, %arg1: i32, %arg2: i32, %arg3: memref<16x128xbf16, #tpu.memory_space<vmem>>, %arg4: memref<128x128xbf16, #tpu.memory_space<vmem>>, %arg5: memref<1x128xf32, #tpu.memory_space<vmem>>, %arg6: memref<16x128xf32, #tpu.memory_space<vmem>>, %arg7: memref<16x128xf32, #tpu.memory_space<vmem>>) attributes {dimension_semantics = [#tpu.dimension_semantics<parallel>, #tpu.dimension_semantics<parallel>, #tpu.dimension_semantics<arbitrary>], iteration_bounds = array<i64: 1, 1, 1>, scalar_prefetch = 0 : i64, scratch_operands = 1 : i64, tpu.core_type = #tpu.core_type<tc>, window_params = [{transform_indices = @transform_0, window_bounds = array<i64: 16, 128>}, {transform_indices = @transform_1, window_bounds = array<i64: 128, 128>}, {transform_indices = @transform_2, window_bounds = array<i64: 1, 128>}, {transform_indices = @transform_3, window_bounds = array<i64: 16, 128>}]} {
    %c0_i32 = arith.constant 0 : i32
    %0 = arith.cmpi eq, %arg2, %c0_i32 : i32
    %1 = arith.extui %0 : i1 to i32
    %c0_i32_0 = arith.constant 0 : i32
    %2 = arith.cmpi ne, %1, %c0_i32_0 : i32
    scf.if %2 {
      %cst_10 = arith.constant 0.000000e+00 : f32
      %12 = vector.broadcast %cst_10 : f32 to vector<16x128xf32>
      %c0_11 = arith.constant 0 : index
      %c0_12 = arith.constant 0 : index
      %13 = vector.load %arg7[%c0_11, %c0_12] : memref<16x128xf32, #tpu.memory_space<vmem>>, vector<16x128xf32>
      tpu.vector_store %arg7[%c0_11, %c0_12], %12 {strides = array<i32>} : memref<16x128xf32, #tpu.memory_space<vmem>>, vector<16x128xf32>,
    } else {
    }
    %c0 = arith.constant 0 : index
    %c0_1 = arith.constant 0 : index
    %3 = vector.load %arg7[%c0, %c0_1] : memref<16x128xf32, #tpu.memory_space<vmem>>, vector<16x128xf32>
    %c0_2 = arith.constant 0 : index
    %c0_3 = arith.constant 0 : index
    %4 = vector.load %arg3[%c0_2, %c0_3] : memref<16x128xbf16, #tpu.memory_space<vmem>>, vector<16x128xbf16>
    %c0_4 = arith.constant 0 : index
    %c0_5 = arith.constant 0 : index
    %5 = vector.load %arg4[%c0_4, %c0_5] : memref<128x128xbf16, #tpu.memory_space<vmem>>, vector<128x128xbf16>
    %cst = arith.constant dense<0.000000e+00> : vector<16x128xf32>
    %6 = tpu.matmul %4, %5, %cst {dimension_numbers = #tpu.dot_dimension_numbers<[1], [0], [0], [1], [0, 0, 1, 1], [], []>} : vector<16x128xbf16>, vector<128x128xbf16>, vector<16x128xf32> -> vector<16x128xf32>
    %7 = arith.addf %3, %6 : vector<16x128xf32>
    %c0_6 = arith.constant 0 : index
    %c0_7 = arith.constant 0 : index
    %8 = vector.load %arg7[%c0_6, %c0_7] : memref<16x128xf32, #tpu.memory_space<vmem>>, vector<16x128xf32>
    tpu.vector_store %arg7[%c0_6, %c0_7], %7 {strides = array<i32>} : memref<16x128xf32, #tpu.memory_space<vmem>>, vector<16x128xf32>,
    %c0_i32_8 = arith.constant 0 : i32
    %9 = arith.cmpi eq, %arg2, %c0_i32_8 : i32
    %10 = arith.extui %9 : i1 to i32
    %c0_i32_9 = arith.constant 0 : i32
    %11 = arith.cmpi ne, %10, %c0_i32_9 : i32
    scf.if %11 {
      %c0_10 = arith.constant 0 : index
      %c0_11 = arith.constant 0 : index
      %12 = vector.load %arg7[%c0_10, %c0_11] : memref<16x128xf32, #tpu.memory_space<vmem>>, vector<16x128xf32>
      %c0_12 = arith.constant 0 : index
      %c0_13 = arith.constant 0 : index
      %13 = vector.load %arg5[%c0_12, %c0_13] : memref<1x128xf32, #tpu.memory_space<vmem>>, vector<1x128xf32>
      %14 = vector.broadcast %13 : vector<1x128xf32> to vector<16x128xf32>
      %15 = arith.addf %12, %14 : vector<16x128xf32>
      %c0_14 = arith.constant 0 : index
      %c0_15 = arith.constant 0 : index
      %16 = vector.load %arg6[%c0_14, %c0_15] : memref<16x128xf32, #tpu.memory_space<vmem>>, vector<16x128xf32>
      tpu.vector_store %arg6[%c0_14, %c0_15], %15 {strides = array<i32>} : memref<16x128xf32, #tpu.memory_space<vmem>>, vector<16x128xf32>,
    } else {
    }
    return
  }
  func.func @transform_0(%arg0: i32, %arg1: i32, %arg2: i32) -> (i32, i32) {
    %c0_i32 = arith.constant 0 : i32
    return %arg0, %arg2 : i32, i32
  }
  func.func @transform_1(%arg0: i32, %arg1: i32, %arg2: i32) -> (i32, i32) {
    %c0_i32 = arith.constant 0 : i32
    return %arg2, %arg1 : i32, i32
  }
  func.func @transform_2(%arg0: i32, %arg1: i32, %arg2: i32) -> (i32, i32) {
    %c0_i32 = arith.constant 0 : i32
    %c0_i32_0 = arith.constant 0 : i32
    return %c0_i32, %arg1 : i32, i32
  }
  func.func @transform_3(%arg0: i32, %arg1: i32, %arg2: i32) -> (i32, i32) {
    %c0_i32 = arith.constant 0 : i32
    return %arg0, %arg1 : i32, i32
  }
}

module attributes {stable_mosaic.version = 11 : i64} {
  func.func @_lstm_kernel(%arg0: i32, %arg1: memref<4x4x2x32xf32, #tpu.memory_space<vmem>>, %arg2: memref<4x32x32xf32, #tpu.memory_space<vmem>>, %arg3: memref<4x2x32xf32, #tpu.memory_space<vmem>>, %arg4: memref<2x32xf32, #tpu.memory_space<vmem>>, %arg5: memref<2x32xf32, #tpu.memory_space<vmem>>) attributes {dimension_semantics = [#tpu.dimension_semantics<arbitrary>], iteration_bounds = array<i64: 1>, scalar_prefetch = 0 : i64, scratch_operands = 2 : i64, tpu.core_type = #tpu.core_type<tc>, window_params = [{pipeline_mode = #tpu.pipeline_mode<synchronous>, transform_indices = @transform_0, window_bounds = array<i64: 4, 4, 2, 32>}, {pipeline_mode = #tpu.pipeline_mode<synchronous>, transform_indices = @transform_1, window_bounds = array<i64: 4, 32, 32>}, {pipeline_mode = #tpu.pipeline_mode<synchronous>, transform_indices = @transform_2, window_bounds = array<i64: 4, 2, 32>}]} {
    %cst = arith.constant 0.000000e+00 : f32
    %0 = vector.broadcast %cst : f32 to vector<2x32xf32>
    %c0 = arith.constant 0 : index
    %c0_0 = arith.constant 0 : index
    %1 = vector.load %arg4[%c0, %c0_0] : memref<2x32xf32, #tpu.memory_space<vmem>>, vector<2x32xf32>
    tpu.vector_store %arg4[%c0, %c0_0], %0 {strides = array<i32>} : memref<2x32xf32, #tpu.memory_space<vmem>>, vector<2x32xf32>,
    %cst_1 = arith.constant 0.000000e+00 : f32
    %2 = vector.broadcast %cst_1 : f32 to vector<2x32xf32>
    %c0_2 = arith.constant 0 : index
    %c0_3 = arith.constant 0 : index
    %3 = vector.load %arg5[%c0_2, %c0_3] : memref<2x32xf32, #tpu.memory_space<vmem>>, vector<2x32xf32>
    tpu.vector_store %arg5[%c0_2, %c0_3], %2 {strides = array<i32>} : memref<2x32xf32, #tpu.memory_space<vmem>>, vector<2x32xf32>,
    %c0_i32 = arith.constant 0 : i32
    %c4_i32 = arith.constant 4 : i32
    %4 = arith.addi %c0_i32, %c4_i32 : i32
    %c1_i32 = arith.constant 1 : i32
    scf.for %arg6 = %c0_i32 to %4 step %c1_i32  : i32 {
      %c0_5 = arith.constant 0 : index
      %c0_6 = arith.constant 0 : index
      %5 = vector.load %arg4[%c0_5, %c0_6] : memref<2x32xf32, #tpu.memory_space<vmem>>, vector<2x32xf32>
      %6 = arith.index_cast %arg6 : i32 to index
      %c0_7 = arith.constant 0 : index
      %c0_8 = arith.constant 0 : index
      %c0_9 = arith.constant 0 : index
      %7 = vector.load %arg1[%6, %c0_7, %c0_8, %c0_9] : memref<4x4x2x32xf32, #tpu.memory_space<vmem>>, vector<1x4x2x32xf32>
      %8 = vector.shape_cast %7 : vector<1x4x2x32xf32> to vector<4x2x32xf32>
      %9 = vector.extract_strided_slice %8 {offsets = [0, 0, 0], sizes = [1, 2, 32], strides = [1, 1, 1]} : vector<4x2x32xf32> to vector<1x2x32xf32>
      %10 = vector.shape_cast %9 : vector<1x2x32xf32> to vector<2x32xf32>
      %c0_10 = arith.constant 0 : index
      %c0_11 = arith.constant 0 : index
      %c0_12 = arith.constant 0 : index
      %11 = vector.load %arg2[%c0_10, %c0_11, %c0_12] : memref<4x32x32xf32, #tpu.memory_space<vmem>>, vector<1x32x32xf32>
      %12 = vector.shape_cast %11 : vector<1x32x32xf32> to vector<32x32xf32>
      %cst_13 = arith.constant dense<0.000000e+00> : vector<2x32xf32>
      %13 = tpu.matmul %5, %12, %cst_13 {dimension_numbers = #tpu.dot_dimension_numbers<[1], [0], [0], [1], [0, 0, 1, 1], [], []>} : vector<2x32xf32>, vector<32x32xf32>, vector<2x32xf32> -> vector<2x32xf32>
      %14 = arith.addf %10, %13 : vector<2x32xf32>
      %15 = vector.extract_strided_slice %8 {offsets = [1, 0, 0], sizes = [1, 2, 32], strides = [1, 1, 1]} : vector<4x2x32xf32> to vector<1x2x32xf32>
      %16 = vector.shape_cast %15 : vector<1x2x32xf32> to vector<2x32xf32>
      %c1 = arith.constant 1 : index
      %c0_14 = arith.constant 0 : index
      %c0_15 = arith.constant 0 : index
      %17 = vector.load %arg2[%c1, %c0_14, %c0_15] : memref<4x32x32xf32, #tpu.memory_space<vmem>>, vector<1x32x32xf32>
      %18 = vector.shape_cast %17 : vector<1x32x32xf32> to vector<32x32xf32>
      %cst_16 = arith.constant dense<0.000000e+00> : vector<2x32xf32>
      %19 = tpu.matmul %5, %18, %cst_16 {dimension_numbers = #tpu.dot_dimension_numbers<[1], [0], [0], [1], [0, 0, 1, 1], [], []>} : vector<2x32xf32>, vector<32x32xf32>, vector<2x32xf32> -> vector<2x32xf32>
      %20 = arith.addf %16, %19 : vector<2x32xf32>
      %21 = vector.extract_strided_slice %8 {offsets = [2, 0, 0], sizes = [1, 2, 32], strides = [1, 1, 1]} : vector<4x2x32xf32> to vector<1x2x32xf32>
      %22 = vector.shape_cast %21 : vector<1x2x32xf32> to vector<2x32xf32>
      %c2 = arith.constant 2 : index
      %c0_17 = arith.constant 0 : index
      %c0_18 = arith.constant 0 : index
      %23 = vector.load %arg2[%c2, %c0_17, %c0_18] : memref<4x32x32xf32, #tpu.memory_space<vmem>>, vector<1x32x32xf32>
      %24 = vector.shape_cast %23 : vector<1x32x32xf32> to vector<32x32xf32>
      %cst_19 = arith.constant dense<0.000000e+00> : vector<2x32xf32>
      %25 = tpu.matmul %5, %24, %cst_19 {dimension_numbers = #tpu.dot_dimension_numbers<[1], [0], [0], [1], [0, 0, 1, 1], [], []>} : vector<2x32xf32>, vector<32x32xf32>, vector<2x32xf32> -> vector<2x32xf32>
      %26 = arith.addf %22, %25 : vector<2x32xf32>
      %27 = vector.extract_strided_slice %8 {offsets = [3, 0, 0], sizes = [1, 2, 32], strides = [1, 1, 1]} : vector<4x2x32xf32> to vector<1x2x32xf32>
      %28 = vector.shape_cast %27 : vector<1x2x32xf32> to vector<2x32xf32>
      %c3 = arith.constant 3 : index
      %c0_20 = arith.constant 0 : index
      %c0_21 = arith.constant 0 : index
      %29 = vector.load %arg2[%c3, %c0_20, %c0_21] : memref<4x32x32xf32, #tpu.memory_space<vmem>>, vector<1x32x32xf32>
      %30 = vector.shape_cast %29 : vector<1x32x32xf32> to vector<32x32xf32>
      %cst_22 = arith.constant dense<0.000000e+00> : vector<2x32xf32>
      %31 = tpu.matmul %5, %30, %cst_22 {dimension_numbers = #tpu.dot_dimension_numbers<[1], [0], [0], [1], [0, 0, 1, 1], [], []>} : vector<2x32xf32>, vector<32x32xf32>, vector<2x32xf32> -> vector<2x32xf32>
      %32 = arith.addf %28, %31 : vector<2x32xf32>
      %33 = arith.negf %14 : vector<2x32xf32>
      %34 = math.exp %33 : vector<2x32xf32>
      %cst_23 = arith.constant 1.000000e+00 : f32
      %35 = vector.broadcast %cst_23 : f32 to vector<2x32xf32>
      %36 = arith.addf %35, %34 : vector<2x32xf32>
      %37 = arith.divf %35, %36 : vector<2x32xf32>
      %38 = arith.negf %20 : vector<2x32xf32>
      %39 = math.exp %38 : vector<2x32xf32>
      %cst_24 = arith.constant 1.000000e+00 : f32
      %40 = vector.broadcast %cst_24 : f32 to vector<2x32xf32>
      %41 = arith.addf %40, %39 : vector<2x32xf32>
      %42 = arith.divf %40, %41 : vector<2x32xf32>
      %43 = math.tanh %26 : vector<2x32xf32>
      %44 = arith.negf %32 : vector<2x32xf32>
      %45 = math.exp %44 : vector<2x32xf32>
      %cst_25 = arith.constant 1.000000e+00 : f32
      %46 = vector.broadcast %cst_25 : f32 to vector<2x32xf32>
      %47 = arith.addf %46, %45 : vector<2x32xf32>
      %48 = arith.divf %46, %47 : vector<2x32xf32>
      %c0_26 = arith.constant 0 : index
      %c0_27 = arith.constant 0 : index
      %49 = vector.load %arg5[%c0_26, %c0_27] : memref<2x32xf32, #tpu.memory_space<vmem>>, vector<2x32xf32>
      %50 = arith.mulf %42, %49 : vector<2x32xf32>
      %51 = arith.mulf %37, %43 : vector<2x32xf32>
      %52 = arith.addf %50, %51 : vector<2x32xf32>
      %53 = math.tanh %52 : vector<2x32xf32>
      %54 = arith.mulf %48, %53 : vector<2x32xf32>
      %c0_28 = arith.constant 0 : index
      %c0_29 = arith.constant 0 : index
      %55 = vector.load %arg5[%c0_28, %c0_29] : memref<2x32xf32, #tpu.memory_space<vmem>>, vector<2x32xf32>
      tpu.vector_store %arg5[%c0_28, %c0_29], %52 {strides = array<i32>} : memref<2x32xf32, #tpu.memory_space<vmem>>, vector<2x32xf32>,
      %c0_30 = arith.constant 0 : index
      %c0_31 = arith.constant 0 : index
      %56 = vector.load %arg4[%c0_30, %c0_31] : memref<2x32xf32, #tpu.memory_space<vmem>>, vector<2x32xf32>
      tpu.vector_store %arg4[%c0_30, %c0_31], %54 {strides = array<i32>} : memref<2x32xf32, #tpu.memory_space<vmem>>, vector<2x32xf32>,
      %57 = arith.index_cast %arg6 : i32 to index
      %c0_32 = arith.constant 0 : index
      %c0_33 = arith.constant 0 : index
      %58 = vector.load %arg3[%57, %c0_32, %c0_33] : memref<4x2x32xf32, #tpu.memory_space<vmem>>, vector<1x2x32xf32>
      %59 = vector.shape_cast %58 : vector<1x2x32xf32> to vector<2x32xf32>
      %60 = vector.shape_cast %54 : vector<2x32xf32> to vector<1x2x32xf32>
      tpu.vector_store %arg3[%57, %c0_32, %c0_33], %60 {strides = array<i32>} : memref<4x2x32xf32, #tpu.memory_space<vmem>>, vector<1x2x32xf32>,
    }
    %c4_i32_4 = arith.constant 4 : i32
    return
  }
  func.func @transform_0(%arg0: i32) -> (i32, i32, i32, i32) {
    %c0_i32 = arith.constant 0 : i32
    %c0_i32_0 = arith.constant 0 : i32
    %c0_i32_1 = arith.constant 0 : i32
    %c0_i32_2 = arith.constant 0 : i32
    %c0_i32_3 = arith.constant 0 : i32
    return %c0_i32, %c0_i32_0, %c0_i32_1, %c0_i32_2 : i32, i32, i32, i32
  }
  func.func @transform_1(%arg0: i32) -> (i32, i32, i32) {
    %c0_i32 = arith.constant 0 : i32
    %c0_i32_0 = arith.constant 0 : i32
    %c0_i32_1 = arith.constant 0 : i32
    %c0_i32_2 = arith.constant 0 : i32
    return %c0_i32, %c0_i32_0, %c0_i32_1 : i32, i32, i32
  }
  func.func @transform_2(%arg0: i32) -> (i32, i32, i32) {
    %c0_i32 = arith.constant 0 : i32
    %c0_i32_0 = arith.constant 0 : i32
    %c0_i32_1 = arith.constant 0 : i32
    %c0_i32_2 = arith.constant 0 : i32
    return %c0_i32, %c0_i32_0, %c0_i32_1 : i32, i32, i32
  }
}

</mosaic_0001>

<bundles_post_ra>
// kernel: ocr_forward.10
= control target key start
LH: loop header
LB: loop body
LE: loop exit
PB: predicated region body
PF: predicated region fallthrough
CT: control target
= control target key end

     0   :  { %s681_s1 = inlined_call_operand.vmem [shape: bf16[512,128], index: 1, kind: input, shape index: {}]   ;;  %s682_s0 = inlined_call_operand.vmem [shape: bf16[16,512], index: 0, kind: input, shape index: {}]   ;;  %s683_s2 = inlined_call_operand.vmem [shape: f32[1,128], index: 2, kind: input, shape index: {}]   ;;  %s684_s3 = inlined_call_operand.vmem [shape: bf16[16,128], index: 3, kind: output, shape index: {}]  }
   0x1   :  { %v509_v0 = vld [vmem:[%s681_s1 + $0x40] sm:$0xff]   ;;  %v513_v4 = vld [vmem:[%s681_s1 + $0x48] sm:$0xff]   ;;  %v517_v8 = vld [vmem:[%s681_s1 + $0x50] sm:$0xff]  }
   0x2   :  { %v510_v1 = vld [vmem:[%s681_s1 + $0xc0] sm:$0xff]   ;;  %465 = vmatprep.subr.bf16.mxu0 %v509_v0  ;;  %v514_v5 = vld [vmem:[%s681_s1 + $0xc8] sm:$0xff]   ;;  %v518_v9 = vld [vmem:[%s681_s1 + $0xd0] sm:$0xff]  }
   0x3   :  { %v511_v2 = vld [vmem:[%s681_s1] sm:$0xff]   ;;  %487 = vmatprep.subr.bf16.mxu1 %v510_v1  ;;  %v515_v6 = vld [vmem:[%s681_s1 + $0x8] sm:$0xff]   ;;  %v519_v10 = vld [vmem:[%s681_s1 + $0x10] sm:$0xff]  }
   0x4   :  { %v512_v3 = vld [vmem:[%s681_s1 + $0x80] sm:$0xff]   ;;  %466 = vmatpush3.bf16.msra.mxu0 %v511_v2  ;;  %v516_v7 = vld [vmem:[%s681_s1 + $0x88] sm:$0xff]   ;;  %v520_v11 = vld [vmem:[%s681_s1 + $0x90] sm:$0xff]  }
   0x5   :  { %488 = vmatpush3.bf16.msra.mxu1 %v512_v3  ;;  %467 = vmatprep.subr.bf16.mxu0 %v513_v4  ;;  %v521_v12 = vld [vmem:[%s681_s1 + $0x58] sm:$0xff]   ;;  %v525_v16 = vld [vmem:[%s681_s1 + $0x60] sm:$0xff]   ;;  %v529_v20 = vld [vmem:[%s681_s1 + $0x68] sm:$0xff]  }
   0x6   :  { %489 = vmatprep.subr.bf16.mxu1 %v514_v5  ;;  %v522_v13 = vld [vmem:[%s681_s1 + $0xd8] sm:$0xff]   ;;  %v526_v17 = vld [vmem:[%s681_s1 + $0xe0] sm:$0xff]   ;;  %v530_v21 = vld [vmem:[%s681_s1 + $0xe8] sm:$0xff]  }
   0x7   :  { %v523_v14 = vld [vmem:[%s681_s1 + $0x18] sm:$0xff]   ;;  %v527_v18 = vld [vmem:[%s681_s1 + $0x20] sm:$0xff]   ;;  %v531_v22 = vld [vmem:[%s681_s1 + $0x28] sm:$0xff]  }
   0x8   :  { %468 = vmatpush3.bf16.msra.mxu0 %v515_v6  ;;  %v524_v15 = vld [vmem:[%s681_s1 + $0x98] sm:$0xff]   ;;  %v528_v19 = vld [vmem:[%s681_s1 + $0xa0] sm:$0xff]   ;;  %v532_v23 = vld [vmem:[%s681_s1 + $0xa8] sm:$0xff]  }
   0x9   :  { %490 = vmatpush3.bf16.msra.mxu1 %v516_v7  ;;  %469 = vmatprep.subr.bf16.mxu0 %v517_v8  ;;  %v533_v24 = vld [vmem:[%s681_s1 + $0x70] sm:$0xff]   ;;  %v537_v28 = vld [vmem:[%s681_s1 + $0x78] sm:$0xff]   ;;  %v455_v45 = vld [vmem:[%s683_s2] ss:$0 sm:$0xff] }
   0xa   :  { %491 = vmatprep.subr.bf16.mxu1 %v518_v9  ;;  %v534_v25 = vld [vmem:[%s681_s1 + $0xf0] sm:$0xff]   ;;  %v538_v29 = vld [vmem:[%s681_s1 + $0xf8] sm:$0xff]  }
   0xb   :  { %v535_v26 = vld [vmem:[%s681_s1 + $0x30] sm:$0xff]   ;;  %v539_v30 = vld [vmem:[%s681_s1 + $0x38] sm:$0xff]  }
   0xc   :  { %470 = vmatpush3.bf16.msra.mxu0 %v519_v10  ;;  %v536_v27 = vld [vmem:[%s681_s1 + $0xb0] sm:$0xff]   ;;  %v540_v31 = vld [vmem:[%s681_s1 + $0xb8] sm:$0xff]  }
   0xd   :  { %492 = vmatpush3.bf16.msra.mxu1 %v520_v11  ;;  %471 = vmatprep.subr.bf16.mxu0 %v521_v12  ;;  %v541_v32 = vld [vmem:[%s682_s0] ss:$16 sps:$4 sm:$0xff]   ;;  %v543_v33 = vld [vmem:[%s682_s0 + $0x4] ss:$16 sps:$4 sm:$0xff]   ;;  %v544_v34 = vld [vmem:[%s682_s0 + $0x8] ss:$16 sps:$4 sm:$0xff]  }
   0xe   :  { %493 = vmatprep.subr.bf16.mxu1 %v522_v13  ;;  %v546_v35 = vld [vmem:[%s682_s0 + $0xc] ss:$16 sps:$4 sm:$0xff]   ;;  %335 = vmatprep.mubr.bf16.mxu0 %v543_v33 }
   0xf   :  { %376 = vmatprep.mubr.bf16.mxu1 %v546_v35 }
  0x10   :  { %472 = vmatpush3.bf16.msra.mxu0 %v523_v14 }
  0x11   :  { %494 = vmatpush3.bf16.msra.mxu1 %v524_v15  ;;  %473 = vmatprep.subr.bf16.mxu0 %v525_v16 }
  0x12   :  { %495 = vmatprep.subr.bf16.mxu1 %v526_v17 }
  0x14   :  { %474 = vmatpush3.bf16.msra.mxu0 %v527_v18 }
  0x15   :  { %496 = vmatpush3.bf16.msra.mxu1 %v528_v19  ;;  %475 = vmatprep.subr.bf16.mxu0 %v529_v20 }
  0x16   :  { %497 = vmatprep.subr.bf16.mxu1 %v530_v21 }
  0x18   :  { %476 = vmatpush3.bf16.msra.mxu0 %v531_v22 }
  0x19   :  { %498 = vmatpush3.bf16.msra.mxu1 %v532_v23  ;;  %477 = vmatprep.subr.bf16.mxu0 %v533_v24 }
  0x1a   :  { %499 = vmatprep.subr.bf16.mxu1 %v534_v25 }
  0x1c   :  { %478 = vmatpush3.bf16.msra.mxu0 %v535_v26 }
  0x1d   :  { %500 = vmatpush3.bf16.msra.mxu1 %v536_v27  ;;  %479 = vmatprep.subr.bf16.mxu0 %v537_v28 }
  0x1e   :  { %501 = vmatprep.subr.bf16.mxu1 %v538_v29 }
  0x20   :  { %480 = vmatpush3.bf16.msra.mxu0 %v539_v30 }
  0x21   :  { %502 = vmatpush3.bf16.msra.mxu1 %v540_v31 }
  0x23   :  { %336 = vmatmul.mubr.bf16.vlgmr.msra.gmra.mrb[0].mxu0 %v541_v32 }
  0x24   :  { %377 = vmatmul.mubr.bf16.vlgmr.msra.gmra.mrb[0].mxu1 %v544_v34 }
  0xf6   :  { %v481_v36 = vpop.f32.mrb[0].mxu0 }
  0xf7   :  { %v503_v37 = vpop.f32.mrb[0].mxu1  ;;  %v482_v38 = vpop.f32.mrb[1].mxu0 }
  0xf8   :  { %v483_v39 = vadd.f32 %v482_v38, %v481_v36  ;;  %v504_v40 = vpop.f32.mrb[1].mxu1  ;;  %v484_v41 = vpop.f32.mrb[2].mxu0 }
  0xf9   :  { %v505_v42 = vadd.f32 %v504_v40, %v503_v37  ;;  %v506_v43 = vpop.f32.mrb[2].mxu1  ;;  %v485_v44 = vpop.f32.mrb[3].mxu0 }
  0xfa   :  { %v486_v46 = vadd.f32 %v485_v44, %v484_v41  ;;  %v507_v47 = vpop.f32.mrb[3].mxu1 }
  0xfb   :  { %v379_v48 = vadd.f32 %v505_v42, %v483_v39  ;;  %v508_v49 = vadd.f32 %v507_v47, %v506_v43 }
  0xfd   :  { %v401_v50 = vadd.f32 %v455_v45, %v379_v48  ;;  %v382_v51 = vadd.f32 %v508_v49, %v486_v46 }
  0xff   :  { %v402_v52 = vadd.f32 %v455_v45, %v382_v51  ;;  %v403_v53 = vmax.f32 %v401_v50, 0.0 }
 0x101   :  { %v404_v54 = vmax.f32 %v402_v52, 0.0 }
 0x103   :  { %v463_v55 = vpack.c.bf16 %v404_v54, %v403_v53 }
 0x105   :  { %464 = vst [vmem:[%s684_s3] sm:$0xff] %v463_v55  }

// kernel: ocr_forward.9
= control target key start
LH: loop header
LB: loop body
LE: loop exit
PB: predicated region body
PF: predicated region fallthrough
CT: control target
= control target key end

     0   :  { %s3666_s12 = smov 0   ;;  %s4257_s0 = inlined_call_operand.vmem [shape: bf16[2,110,64], index: 0, kind: input, shape index: {}]   ;;  %s4258_s1 = inlined_call_operand.vmem [shape: bf16[9,64,128], index: 1, kind: input, shape index: {}]   ;;  %s4259_s2 = inlined_call_operand.vmem [shape: f32[1,128], index: 2, kind: input, shape index: {}]   ;;  %s4260_s3 = inlined_call_operand.vmem [shape: bf16[2,4,4,128], index: 3, kind: output, shape index: {}]  }
   0x1 LB: > { %s2979_s13 = sadd.s32 4294967295, %s3641_s12   ;;  %p2983_p0 = scmp.ge.s32.totalorder %s3641_s12, 1  ;;  %s3641_s12 = sphi %s3666_s12, %s13_s12  }
   0x2   : > { %p137_p1 = scmp.lt.s32.totalorder %s3641_s12, 3 }
   0x4   : > { %p138_p2 = pnand %p2983_p0, %p137_p1 }
   0x5   : > { %v3546_v0 = vld [vmem:[%s4258_s1] sm:$0xff] (!%p138_p2)   ;;  %v3643_v1 = vmov (!%p138_p2), 0.0   ;;  %v3547_v2 = vld [vmem:[%s4258_s1 + $0x8] sm:$0xff] (!%p138_p2)   ;;  %p161_p3 = scmp.lt.s32.totalorder (!%p138_p2), %s2979_s13, 1  ;;  %vm3644_vm0 = vmmov (!%p138_p2), 0   ;;  %v3548_v3 = vld [vmem:[%s4258_s1 + $0x10] sm:$0xff] (!%p138_p2)  }
   0x6   : > { %141 = sbr.rel (%p138_p2) target bundleno = 504 (0x1f8), region = 32  ;;  %3526 = vmatprep.subr.bf16.mxu1 (!%p138_p2), %v3643_v1  ;;  %3274 = vmatprep.subr.bf16.mxu0 (!%p138_p2), %v3643_v1  ;;  %v3549_v4 = vld [vmem:[%s4258_s1 + $0x18] sm:$0xff] (!%p138_p2)   ;;  %vm259_vm1 = vcmask (!%p138_p2), 523264   ;;  %v3551_v7 = vld [vmem:[%s4258_s1 + $0x20] sm:$0xff] (!%p138_p2)   ;;  %v3552_v9 = vld [vmem:[%s4258_s1 + $0x28] sm:$0xff] (!%p138_p2)   ;;  %vm661_vm2 = vcmask (!%p138_p2), 1046528  }
   0x7   : > { %3530 = vmatpush3.bf16.msra.mxu1 (!%p138_p2), %v3546_v0  ;;  %3275 = vmatpush3.bf16.msra.mxu0 (!%p138_p2), %v3546_v0  ;;  %v3555_v8 = vld [vmem:[%s4258_s1 + $0x40] sm:$0xff] (!%p138_p2)   ;;  %v3557_v10 = vld [vmem:[%s4258_s1 + $0x48] sm:$0xff] (!%p138_p2)   ;;  %v3556_v12 = vld [vmem:[%s4258_s1 + $0x30] sm:$0xff] (!%p138_p2)   ;;  %vm426_vm3 = vsmask.f32 (!%p138_p2), 7424  ;;  %vm1308_vm5 = vcmask (!%p138_p2), 1045504  }
   0x8   : > { %3527 = vmatprep.subr.bf16.mxu1 (!%p138_p2), %v3643_v1  ;;  %3276 = vmatprep.subr.bf16.mxu0 (!%p138_p2), %v3643_v1  ;;  %v3560_v14 = vld [vmem:[%s4258_s1 + $0x50] sm:$0xff] (!%p138_p2)   ;;  %v3561_v18 = vld [vmem:[%s4258_s1 + $0x38] sm:$0xff] (!%p138_p2)   ;;  %v3568_v28 = vld [vmem:[%s4258_s1 + $0x80] sm:$0xff] (!%p138_p2)   ;;  %vm1064_vm4 = vsmask.f32 (!%p138_p2), 6400  ;;  %vm1955_vm6 = vcmask (!%p138_p2), 1044480  }
   0x9   : > { %3290 = vmatprep.mubr.msk.bf16.mxu1 (!%p138_p2), %vm3644_vm0, %v3643_v1  ;;  %3282 = vmatprep.mubr.msk.bf16.mxu0 (!%p138_p2), %vm3644_vm0, %v3643_v1  ;;  %v3562_v19 = vld [vmem:[%s4258_s1 + $0x58] sm:$0xff] (!%p138_p2)   ;;  %v3572_v34 = vld [vmem:[%s4258_s1 + $0x88] sm:$0xff] (!%p138_p2)   ;;  %v3567_v36 = vld [vmem:[%s4258_s1 + $0x60] sm:$0xff] (!%p138_p2)   ;;  %vm1711_vm7 = vsmask.f32 (!%p138_p2), 5376  ;;  %vm2344_vm8 = vcmask (!%p138_p2), 1041408  }
   0xa   : > { %v3576_v42 = vld [vmem:[%s4258_s1 + $0x90] sm:$0xff] (!%p138_p2)   ;;  %v3571_v46 = vld [vmem:[%s4258_s1 + $0x68] sm:$0xff] (!%p138_p2)   ;;  %v3582_v48 = vld [vmem:[%s4258_s1 + $0x98] sm:$0xff] (!%p138_p2)   ;;  %vm2858_vm9 = vcmask (!%p138_p2), 1041409   ;;  %vm2861_vm10 = vcmask (!%p138_p2), 1042434   ;;  %vm2864_vm11 = vcmask (!%p138_p2), 1043459  }
   0xb   : > { %3531 = vmatpush3.bf16.msra.mxu1 (!%p138_p2), %v3547_v2  ;;  %3277 = vmatpush3.bf16.msra.mxu0 (!%p138_p2), %v3547_v2  ;;  %v3575_v51 = vld [vmem:[%s4258_s1 + $0x70] sm:$0xff] (!%p138_p2)   ;;  %v3579_v57 = vld [vmem:[%s4258_s1 + $0x78] sm:$0xff] (!%p138_p2)  }
   0xc   : > { %3528 = vmatprep.subr.bf16.mxu1 (!%p138_p2), %v3643_v1  ;;  %3278 = vmatprep.subr.bf16.mxu0 (!%p138_p2), %v3643_v1 }
   0xd   : > { %s4262_s13 = smov (!%p161_p3, %s2979_s13), 1 }
   0xe   : > { %s3534_s20 = smul.u32 56, %s4262_s13  ;;  %s3192_s18 = sshll.u32 %s4262_s13, 3 }
   0xf   : > { %3532 = vmatpush3.bf16.msra.mxu1 %v3548_v3  ;;  %3279 = vmatpush3.bf16.msra.mxu0 %v3548_v3  ;;  %s4170_s13 = scalar_lea.vmem %s4260_s3, %s3192_s18 }
  0x10   : > { %s3699_s23 = scalar_lea.vmem %s4257_s0, %s3534_s20  ;;  %3529 = vmatprep.subr.bf16.mxu1 %v3643_v1  ;;  %3280 = vmatprep.subr.bf16.mxu0 %v3643_v1 }
  0x11   : > { %v3550_v5 = vld [vmem:[%s3699_s23 + $0x10] sm:$0xff]   ;;  %v3553_v6 = vld [vmem:[%s3699_s23] sm:$0xff]   ;;  %v3554_v11 = vld [vmem:[%s3699_s23 + $0x18] sm:$0xff]  }
  0x12   : > { %v3558_v13 = vld [vmem:[%s3699_s23 + $0x8] sm:$0xff]   ;;  %v3563_v15 = vld [vmem:[%s3699_s23] sm:$0xff]   ;;  %v3570_v30 = vld [vmem:[%s3699_s23 + $0x10] sm:$0xff]  }
  0x13   : > { %3533 = vmatpush3.bf16.msra.mxu1 %v3549_v4  ;;  %3281 = vmatpush3.bf16.msra.mxu0 %v3549_v4  ;;  %v3566_v16 = vld [vmem:[%s3699_s23 + $0x8] sm:$0xff]   ;;  %v3565_v17 = vld [vmem:[%s3699_s23] sm:$0xfe]   ;;  %v430_v21 = vshll.u32 %v3563_v15, 16  ;;  %v428_v25 = vshrl.u32 %v3563_v15, 16  ;;  %v3569_v33 = vld [vmem:[%s3699_s23 + $0x10] sm:$0xff]  }
  0x14   : > { %3302 = vmatprep.subr.bf16.mxu1 %v3643_v1  ;;  %3330 = vmatprep.subr.bf16.mxu0 %v3643_v1  ;;  %v3564_v20 = vld [vmem:[%s3699_s23 + $0x8] sm:$0xff]   ;;  %v662_v22 = vrot.slane %v3565_v17, 1  ;;  %v663_v23 = vrot.slane %v3566_v16, 1  ;;  %v3559_v24 = vld [vmem:[%s3699_s23 + $0x20] sm:$0xff]   ;;  %v665_v35 = vrot.slane %v3570_v30, 1  ;;  %v443_v39 = vshll.u32 %v3569_v33, 16 }
  0x15   : > { %v432_v26 = vrot.slane %v430_v21, 1  ;;  %v435_v27 = vshll.u32 %v3564_v20, 16  ;;  %v439_v38 = vshrl.u32 %v3564_v20, 16  ;;  %v3574_v40 = vld [vmem:[%s3699_s23 + $0x18] sm:$0xff]   ;;  %v447_v49 = vshrl.u32 %v3569_v33, 16  ;;  %v3578_v54 = vld [vmem:[%s3699_s23 + $0x20] sm:$0xff]  }
  0x16   : > { %3291 = vmatmul.mubr.msk.bf16.vlgmr.msra.gmra.mrb[0].mxu1 %vm259_vm1, %v3550_v5  ;;  %3283 = vmatmul.mubr.msk.bf16.vlgmr.msra.gmra.mrb[0].mxu0 %vm259_vm1, %v3553_v6  ;;  %v664_v29 = vsel %vm661_vm2, %v662_v22, %v663_v23  ;;  %v666_v41 = vsel %vm661_vm2, %v663_v23, %v665_v35  ;;  %v3573_v43 = vld [vmem:[%s3699_s23 + $0x18] sm:$0xff]   ;;  %v445_v45 = vrot.slane %v443_v39, 1  ;;  %v667_v47 = vrot.slane %v3574_v40, 1  ;;  %v3577_v56 = vld [vmem:[%s3699_s23 + $0x20] sm:$0xff]   ;;  %v3586_v0 = vld [vmem:[%s3699_s23 + $0xc] sm:$0xff]  }
  0x17   : > { %3303 = vmatpush3.bf16.msra.mxu1 %v3551_v7  ;;  %3294 = vmatprep.mubr.msk.bf16.mxu1 %vm3644_vm0, %v3643_v1  ;;  %v433_v31 = vor.u32 %v432_v26, %v428_v25  ;;  %v437_v32 = vrot.slane %v435_v27, 1  ;;  %v451_v50 = vshll.u32 %v3573_v43, 16  ;;  %v669_v59 = vrot.slane %v3578_v54, 1  ;;  %v3581_v63 = vld [vmem:[%s3699_s23 + $0x28] ss:$0 sps:$4 sm:$0x11]  }
  0x18   : > { %3304 = vmatprep.subr.bf16.mxu1 %v3643_v1  ;;  %3331 = vmatpush3.bf16.msra.mxu0 %v3555_v8  ;;  %v668_v53 = vsel %vm661_vm2, %v665_v35, %v667_v47  ;;  %v449_v58 = vor.u32 %v447_v49, %v445_v45  ;;  %v455_v60 = vshrl.u32 %v3573_v43, 16  ;;  %v459_v61 = vshll.u32 %v3577_v56, 16  ;;  %v3585_v3 = vld [vmem:[%s3699_s23 + $0x4] sm:$0xfe]   ;;  %v3590_v15 = vld [vmem:[%s3699_s23 + $0x14] sm:$0xff]  }
  0x19   : > { %3332 = vmatprep.subr.bf16.mxu0 %v3643_v1  ;;  %3286 = vmatprep.mubr.msk.bf16.mxu0 %vm3644_vm0, %v3643_v1  ;;  %v438_v37 = vsel %vm426_vm3, %v433_v31, %v437_v32  ;;  %v441_v44 = vor.u32 %v439_v38, %v437_v32  ;;  %v453_v55 = vrot.slane %v451_v50, 1  ;;  %v670_v2 = vsel %vm661_vm2, %v667_v47, %v669_v59  ;;  %v3580_v6 = vld [vmem:[%s3699_s23 + $0x28] ss:$0 sps:$4 sm:$0x11]   ;;  %v3588_v30 = vld [vmem:[%s4258_s1 + $0xc0] sm:$0xff]   ;;  %v3589_v43 = vld [vmem:[%s3699_s23 + $0x14] sm:$0xff]  }
  0x1a   : > { %v461_v5 = vrot.slane %v459_v61, 1  ;;  %v671_v7 = vrot.slane %v3581_v63, 1  ;;  %v1066_v8 = vshrl.u32 %v3585_v3, 16  ;;  %v1083_v23 = vshrl.u32 %v3590_v15, 16  ;;  %v3591_v50 = vld [vmem:[%s4258_s1 + $0xa8] sm:$0xff]   ;;  %v3602_v54 = vld [vmem:[%s4258_s1 + $0xd8] sm:$0xff]  }
  0x1b   : > { %3305 = vmatpush3.bf16.msra.mxu1 %v3552_v9  ;;  %v446_v52 = vsel %vm426_vm3, %v441_v44, %v445_v45  ;;  %v454_v62 = vsel %vm426_vm3, %v449_v58, %v453_v55  ;;  %v457_v4 = vor.u32 %v455_v60, %v453_v55  ;;  %v1069_v9 = vshll.u32 %v3585_v3, 16  ;;  %v3596_v44 = vld [vmem:[%s4258_s1 + $0xd0] sm:$0xff]   ;;  %v3598_v45 = vld [vmem:[%s3699_s23 + $0x24] sm:$0xff]   ;;  %v3593_v55 = vld [vmem:[%s3699_s23 + $0x1c] sm:$0xff]  }
  0x1c   : > { %3306 = vmatprep.subr.bf16.mxu1 %v3643_v1  ;;  %3333 = vmatpush3.bf16.msra.mxu0 %v3557_v10  ;;  %v1074_v10 = vshrl.u32 %v3586_v0, 16  ;;  %v672_v16 = vsel %vm661_vm2, %v669_v59, %v671_v7  ;;  %v1068_v17 = vrot.slane %v1066_v8, 1  ;;  %v1086_v27 = vshll.u32 %v3590_v15, 16  ;;  %v3601_v58 = vld [vmem:[%s3699_s23 + $0x2c] ss:$0 sps:$4 sm:$0x33]  }
  0x1d   : > { %3334 = vmatprep.subr.bf16.mxu0 %v3643_v1  ;;  %v1085_v31 = vrot.slane %v1083_v23, 1  ;;  %v866_v49 = vrot.slane %v3589_v43, 1  ;;  %v3599_v63 = vld [vmem:[%s4258_s1 + $0xb8] sm:$0xff]   ;;  %v1113_v3 = vshll.u32 %v3601_v58, 16  ;;  %v3606_v15 = vld [vmem:[%s3699_s23 + $0x10] sm:$0xff]   ;;  %v3608_v23 = vld [vmem:[%s4258_s1 + $0x100] sm:$0xff]  }
  0x1e   : > { %3295 = vmatmul.mubr.msk.bf16.gmra.mrb[4].mxu1 %vm259_vm1, %v3554_v11  ;;  %3287 = vmatmul.mubr.msk.bf16.gmra.mrb[4].mxu0 %vm259_vm1, %v3558_v13  ;;  %v1077_v11 = vshll.u32 %v3586_v0, 16  ;;  %v463_v13 = vshrl.u32 %v3577_v56, 16  ;;  %v1088_v33 = vrot.slane %v1086_v27, 2  ;;  %v3618_v43 = vld [vmem:[%s3699_s23 + $0x28] sm:$0xff]  }
  0x1f   : > { %3307 = vmatpush3.bf16.msra.mxu1 %v3556_v12  ;;  %3298 = vmatprep.mubr.msk.bf16.mxu1 %vm3644_vm0, %v3643_v1  ;;  %v462_v12 = vsel %vm426_vm3, %v457_v4, %v461_v5  ;;  %v1115_v8 = vrot.slane %v1113_v3, 2 }
  0x20   : > { %3335 = vmatpush3.bf16.msra.mxu0 %v3560_v14  ;;  %3308 = vmatprep.subr.bf16.mxu1 %v3643_v1  ;;  %v467_v14 = vshll.u32 %v3580_v6, 16  ;;  %v1079_v20 = vrot.slane %v1077_v11, 2  ;;  %v465_v21 = vor.u32 %v463_v13, %v461_v5  ;;  %v1089_v38 = vor.u32 %v1088_v33, %v1085_v31  ;;  %v3597_v5 = vld [vmem:[%s3699_s23 + $0x24] sm:$0xff]   ;;  %v3609_v31 = vld [vmem:[%s3699_s23 + $0x14] sm:$0xff]  }
  0x21   : > { %3336 = vmatprep.subr.bf16.mxu0 %v3643_v1  ;;  %3338 = vmatprep.mubr.msk.bf16.mxu0 %vm3644_vm0, %v3643_v1  ;;  %v3614_v33 = vld [vmem:[%s3699_s23 + $0x20] sm:$0xff]  }
  0x22   : > { %v469_v22 = vrot.slane %v467_v14, 1  ;;  %v3605_v14 = vld [vmem:[%s3699_s23 + $0x8] sm:$0xfc]  }
  0x23   : > { %3309 = vmatpush3.bf16.msra.mxu1 %v3561_v18  ;;  %v1071_v18 = vrot.slane %v1069_v9, 2  ;;  %v870_v9 = vrot.slane %v3597_v5, 1 }
  0x24   : > { %3337 = vmatpush3.bf16.msra.mxu0 %v3562_v19  ;;  %3358 = vmatprep.subr.bf16.mxu1 %v3643_v1  ;;  %v1076_v19 = vrot.slane %v1074_v10, 1 }
  0x25   : > { %3386 = vmatprep.subr.bf16.mxu0 %v3643_v1  ;;  %v1072_v25 = vor.u32 %v1071_v18, %v1068_v17  ;;  %v1510_v17 = vrot.slane %v3605_v14, 2  ;;  %v1511_v18 = vrot.slane %v3606_v15, 2 }
  0x26   : > { %3299 = vmatmul.mubr.msk.bf16.gmra.mrb[8].mxu1 %vm259_vm1, %v3559_v24  ;;  %v3584_v24 = vld [vmem:[%s3699_s23 + $0xc] sm:$0xff]   ;;  %v1080_v26 = vor.u32 %v1079_v20, %v1076_v19  ;;  %v3603_v20 = vld [vmem:[%s3699_s23 + $0x4] sm:$0xfc]  }
  0x27   : > { %3310 = vmatprep.mubr.msk.bf16.mxu1 %vm3644_vm0, %v3643_v1  ;;  %3339 = vmatmul.mubr.msk.bf16.vlgmr.msra.gmra.mrb[8].mxu0 %vm259_vm1, %v664_v29  ;;  %v3583_v29 = vld [vmem:[%s3699_s23 + $0x4] sm:$0xfe]  }
  0x28   : > { %3387 = vmatpush3.bf16.msra.mxu0 %v3568_v28  ;;  %3342 = vmatprep.mubr.msk.bf16.mxu0 %vm3644_vm0, %v3643_v1  ;;  %v470_v28 = vsel %vm426_vm3, %v465_v21, %v469_v22  ;;  %v1081_v32 = vsel %vm1064_vm4, %v1072_v25, %v1080_v26  ;;  %v863_v35 = vrot.slane %v3583_v29, 1  ;;  %v3604_v21 = vld [vmem:[%s3699_s23 + $0xc] sm:$0xff]   ;;  %v1512_v22 = vsel %vm1308_vm5, %v1510_v17, %v1511_v18 }
  0x29   : > { %3388 = vmatprep.subr.bf16.mxu0 %v3643_v1  ;;  %v1309_v25 = vrot.slane %v3603_v20, 2  ;;  %v3629_v20 = vld [vmem:[%s3699_s23 + $0x20] sm:$0xff]  }
  0x2c   : > { %3389 = vmatpush3.bf16.msra.mxu0 %v3572_v34  ;;  %v3594_v34 = vld [vmem:[%s3699_s23 + $0x1c] sm:$0xff]  }
  0x2d   : > { %3390 = vmatprep.subr.bf16.mxu0 %v3643_v1  ;;  %v1092_v39 = vshrl.u32 %v3594_v34, 16  ;;  %v1095_v40 = vshll.u32 %v3594_v34, 16  ;;  %v3616_v34 = vld [vmem:[%s4258_s1 + $0x110] sm:$0xff]  }
  0x2e   : > { %3311 = vmatmul.mubr.msk.bf16.vlgmr.msra.gmra.mrb[12].mxu1 %vm259_vm1, %v438_v37  ;;  %v3592_v37 = vld [vmem:[%s4258_s1 + $0xc8] sm:$0xff]  }
  0x2f   : > { %3359 = vmatpush3.bf16.msra.mxu1 %v3567_v36  ;;  %3314 = vmatprep.mubr.msk.bf16.mxu1 %vm3644_vm0, %v3643_v1  ;;  %v864_v36 = vrot.slane %v3584_v24, 1  ;;  %v1094_v47 = vrot.slane %v1092_v39, 1  ;;  %v3610_v24 = vld [vmem:[%s3699_s23 + $0x18] sm:$0xff]  }
  0x30   : > { %3343 = vmatmul.mubr.msk.bf16.gmra.mrb[12].mxu0 %vm259_vm1, %v666_v41  ;;  %3360 = vmatprep.subr.bf16.mxu1 %v3643_v1  ;;  %v1513_v27 = vrot.slane %v3610_v24, 2  ;;  %v1739_v24 = vshrl.u32 %v3629_v20, 16 }
  0x31   : > { %3346 = vmatprep.mubr.msk.bf16.mxu0 %vm3644_vm0, %v3643_v1  ;;  %3391 = vmatpush3.bf16.msra.mxu0 %v3576_v42  ;;  %v865_v41 = vsel %vm661_vm2, %v863_v35, %v864_v36  ;;  %v3587_v42 = vld [vmem:[%s4258_s1 + $0xa0] sm:$0xff]   ;;  %v867_v56 = vsel %vm661_vm2, %v864_v36, %v866_v49  ;;  %v1312_v35 = vrot.slane %v3609_v31, 2  ;;  %v3611_v36 = vld [vmem:[%s4258_s1 + $0xe8] sm:$0xff]  }
  0x32   : > { %3392 = vmatprep.subr.bf16.mxu0 %v3643_v1 }
  0x33   : > { %3361 = vmatpush3.bf16.msra.mxu1 %v3571_v46  ;;  %v1090_v46 = vsel %vm1064_vm4, %v1080_v26, %v1089_v38  ;;  %v1310_v26 = vrot.slane %v3604_v21, 2 }
  0x34   : > { %3362 = vmatprep.subr.bf16.mxu1 %v3643_v1 }
  0x35   : > { %3393 = vmatpush3.bf16.msra.mxu0 %v3582_v48  ;;  %v1097_v48 = vrot.slane %v1095_v40, 2  ;;  %v1311_v29 = vsel %vm1308_vm5, %v1309_v25, %v1310_v26  ;;  %v1313_v39 = vsel %vm1308_vm5, %v1310_v26, %v1312_v35  ;;  %v3613_v40 = vld [vmem:[%s3699_s23 + $0x1c] sm:$0xff]   ;;  %v1742_v25 = vshll.u32 %v3629_v20, 16 }
  0x36   : > { %3315 = vmatmul.mubr.msk.bf16.gmra.mrb[16].mxu1 %vm259_vm1, %v446_v52  ;;  %3442 = vmatprep.subr.bf16.mxu0 %v3643_v1 }
  0x37   : > { %3318 = vmatprep.mubr.msk.bf16.mxu1 %vm3644_vm0, %v3643_v1  ;;  %3363 = vmatpush3.bf16.msra.mxu1 %v3575_v51  ;;  %v1101_v51 = vshrl.u32 %v3598_v45, 16  ;;  %v1098_v52 = vor.u32 %v1097_v48, %v1094_v47  ;;  %v3617_v48 = vld [vmem:[%s3699_s23 + $0x24] sm:$0xff]  }
  0x38   : > { %3347 = vmatmul.mubr.msk.bf16.gmra.mrb[16].mxu0 %vm259_vm1, %v668_v53  ;;  %3364 = vmatprep.subr.bf16.mxu1 %v3643_v1  ;;  %v1104_v53 = vshll.u32 %v3598_v45, 16  ;;  %v3619_v45 = vld [vmem:[%s4258_s1 + $0xf8] sm:$0xff]  }
  0x39   : > { %3350 = vmatprep.mubr.msk.bf16.mxu0 %vm3644_vm0, %v3643_v1  ;;  %v1099_v59 = vsel %vm1064_vm4, %v1089_v38, %v1098_v52  ;;  %v1103_v60 = vrot.slane %v1101_v51, 1  ;;  %v3622_v38 = vld [vmem:[%s4258_s1 + $0x118] sm:$0xff]   ;;  %v1316_v51 = vrot.slane %v3617_v48, 2 }
  0x3a   : > { %v1106_v61 = vrot.slane %v1104_v53, 2  ;;  %v3620_v53 = vld [vmem:[%s3699_s23 + $0x2c] ss:$0 sps:$4 sm:$0x33]  }
  0x3b   : > { %3365 = vmatpush3.bf16.msra.mxu1 %v3579_v57  ;;  %v3595_v57 = vld [vmem:[%s4258_s1 + $0xb0] sm:$0xff]  }
  0x3c   : > { %3414 = vmatprep.subr.bf16.mxu1 %v3643_v1  ;;  %v1107_v0 = vor.u32 %v1106_v61, %v1103_v60  ;;  %v1318_v60 = vrot.slane %v3620_v53, 2 }
  0x3e   : > { %3319 = vmatmul.mubr.msk.bf16.gmra.mrb[20].mxu1 %vm259_vm1, %v454_v62  ;;  %v868_v62 = vrot.slane %v3593_v55, 1  ;;  %v1108_v6 = vsel %vm1064_vm4, %v1098_v52, %v1107_v0  ;;  %v3623_v55 = vld [vmem:[%s3699_s23 + $0x8] sm:$0xfc]  }
  0x3f   : > { %3322 = vmatprep.mubr.msk.bf16.mxu1 %vm3644_vm0, %v3643_v1  ;;  %v1713_v61 = vshrl.u32 %v3623_v55, 16 }
  0x40   : > { %3351 = vmatmul.mubr.msk.bf16.gmra.mrb[20].mxu0 %vm259_vm1, %v670_v2  ;;  %v1110_v2 = vshrl.u32 %v3601_v58, 16  ;;  %v869_v4 = vsel %vm661_vm2, %v866_v49, %v868_v62  ;;  %v871_v11 = vsel %vm661_vm2, %v868_v62, %v870_v9  ;;  %v3625_v58 = vld [vmem:[%s3699_s23 + $0x8] sm:$0xf8]   ;;  %v1716_v62 = vshll.u32 %v3623_v55, 16 }
  0x41   : > { %3354 = vmatprep.mubr.msk.bf16.mxu0 %vm3644_vm0, %v3643_v1  ;;  %v1715_v5 = vrot.slane %v1713_v61, 2 }
  0x42   : > { %v1112_v7 = vrot.slane %v1110_v2, 1  ;;  %v1956_v2 = vrot.slane %v3625_v58, 3 }
  0x44   : > { %v1116_v10 = vor.u32 %v1115_v8, %v1112_v7 }
  0x46   : > { %3323 = vmatmul.mubr.msk.bf16.gmra.mrb[24].mxu1 %vm259_vm1, %v462_v12  ;;  %v3600_v12 = vld [vmem:[%s3699_s23 + $0x2c] ss:$0 sps:$4 sm:$0x11]   ;;  %v1117_v13 = vsel %vm1064_vm4, %v1107_v0, %v1116_v10 }
  0x47   : > { %3326 = vmatprep.mubr.msk.bf16.mxu1 %vm3644_vm0, %v3643_v1 }
  0x48   : > { %3355 = vmatmul.mubr.msk.bf16.gmra.mrb[24].mxu0 %vm259_vm1, %v672_v16  ;;  %v872_v16 = vrot.slane %v3600_v12, 1 }
  0x49   : > { %3394 = vmatprep.mubr.msk.bf16.mxu0 %vm3644_vm0, %v3643_v1 }
  0x4a   : > { %v873_v19 = vsel %vm661_vm2, %v870_v9, %v872_v16  ;;  %v3627_v9 = vld [vmem:[%s3699_s23 + $0x18] sm:$0xff]  }
  0x4b   : > { %v1730_v14 = vshrl.u32 %v3627_v9, 16  ;;  %v1733_v15 = vshll.u32 %v3627_v9, 16 }
  0x4e   : > { %3327 = vmatmul.mubr.msk.bf16.gmra.mrb[28].mxu1 %vm259_vm1, %v470_v28  ;;  %v3612_v28 = vld [vmem:[%s4258_s1 + $0x108] sm:$0xff]  }
  0x4f   : > { %3366 = vmatprep.mubr.msk.bf16.mxu1 %vm3644_vm0, %v3643_v1 }
  0x50   : > { %3395 = vmatmul.mubr.msk.bf16.vlgmr.msra.gmra.mrb[28].mxu0 %vm259_vm1, %v1081_v32  ;;  %v1514_v32 = vsel %vm1308_vm5, %v1511_v18, %v1513_v27  ;;  %v1732_v18 = vrot.slane %v1730_v14, 2 }
  0x51   : > { %3443 = vmatpush3.bf16.msra.mxu0 %v3588_v30  ;;  %3398 = vmatprep.mubr.msk.bf16.mxu0 %vm3644_vm0, %v3643_v1  ;;  %v3607_v30 = vld [vmem:[%s4258_s1 + $0xe0] sm:$0xff]  }
  0x52   : > { %3444 = vmatprep.subr.bf16.mxu0 %v3643_v1 }
  0x55   : > { %3445 = vmatpush3.bf16.msra.mxu0 %v3592_v37  ;;  %v1515_v37 = vrot.slane %v3614_v33, 2 }
  0x56   : > { %3367 = vmatmul.mubr.msk.bf16.vlgmr.msra.gmra.mrb[32].mxu1 %vm259_vm1, %v865_v41  ;;  %3446 = vmatprep.subr.bf16.mxu0 %v3643_v1  ;;  %v3615_v41 = vld [vmem:[%s4258_s1 + $0xf0] sm:$0xff]  }
  0x57   : > { %3415 = vmatpush3.bf16.msra.mxu1 %v3587_v42  ;;  %3370 = vmatprep.mubr.msk.bf16.mxu1 %vm3644_vm0, %v3643_v1  ;;  %v1516_v42 = vsel %vm1308_vm5, %v1513_v27, %v1515_v37 }
  0x58   : > { %3399 = vmatmul.mubr.msk.bf16.gmra.mrb[32].mxu0 %vm259_vm1, %v1090_v46  ;;  %3416 = vmatprep.subr.bf16.mxu1 %v3643_v1  ;;  %v1517_v46 = vrot.slane %v3618_v43, 2 }
  0x59   : > { %3402 = vmatprep.mubr.msk.bf16.mxu0 %vm3644_vm0, %v3643_v1  ;;  %3447 = vmatpush3.bf16.msra.mxu0 %v3596_v44  ;;  %v1314_v44 = vrot.slane %v3613_v40, 2  ;;  %v3633_v40 = vld [vmem:[%s3699_s23 + $0x30] ss:$0 sps:$4 sm:$0x77]  }
  0x5a   : > { %3448 = vmatprep.subr.bf16.mxu0 %v3643_v1  ;;  %v1518_v49 = vsel %vm1308_vm5, %v1515_v37, %v1517_v46 }
  0x5b   : > { %3417 = vmatpush3.bf16.msra.mxu1 %v3591_v50  ;;  %v1315_v47 = vsel %vm1308_vm5, %v1312_v35, %v1314_v44  ;;  %v3621_v50 = vld [vmem:[%s3699_s23 + $0x30] ss:$0 sps:$4 sm:$0x33]  }
  0x5c   : > { %3418 = vmatprep.subr.bf16.mxu1 %v3643_v1  ;;  %v1519_v52 = vrot.slane %v3621_v50, 2 }
  0x5d   : > { %3449 = vmatpush3.bf16.msra.mxu0 %v3602_v54  ;;  %v1317_v54 = vsel %vm1308_vm5, %v1314_v44, %v1316_v51  ;;  %v1757_v44 = vshrl.u32 %v3633_v40, 16 }
  0x5e   : > { %3371 = vmatmul.mubr.msk.bf16.gmra.mrb[36].mxu1 %vm259_vm1, %v867_v56  ;;  %3498 = vmatprep.subr.bf16.mxu0 %v3643_v1  ;;  %v3624_v56 = vld [vmem:[%s3699_s23 + $0x10] sm:$0xff]  }
  0x5f   : > { %3374 = vmatprep.mubr.msk.bf16.mxu1 %vm3644_vm0, %v3643_v1  ;;  %3419 = vmatpush3.bf16.msra.mxu1 %v3595_v57  ;;  %v1520_v57 = vsel %vm1308_vm5, %v1517_v46, %v1519_v52  ;;  %v1724_v0 = vshll.u32 %v3624_v56, 16  ;;  %v1759_v48 = vrot.slane %v1757_v44, 2 }
  0x60   : > { %3403 = vmatmul.mubr.msk.bf16.gmra.mrb[36].mxu0 %vm259_vm1, %v1099_v59  ;;  %3420 = vmatprep.subr.bf16.mxu1 %v3643_v1  ;;  %v3626_v59 = vld [vmem:[%s3699_s23 + $0x10] sm:$0xff]  }
  0x61   : > { %3406 = vmatprep.mubr.msk.bf16.mxu0 %vm3644_vm0, %v3643_v1  ;;  %v1957_v3 = vrot.slane %v3626_v59, 3  ;;  %v1726_v8 = vrot.slane %v1724_v0, 3 }
  0x63   : > { %3421 = vmatpush3.bf16.msra.mxu1 %v3599_v63  ;;  %v1721_v63 = vshrl.u32 %v3624_v56, 16  ;;  %v1958_v10 = vsel %vm1955_vm6, %v1956_v2, %v1957_v3 }
  0x64   : > { %3470 = vmatprep.subr.bf16.mxu1 %v3643_v1 }
  0x65   : > { %v1723_v7 = vrot.slane %v1721_v63, 2 }
  0x66   : > { %3375 = vmatmul.mubr.msk.bf16.gmra.mrb[40].mxu1 %vm259_vm1, %v869_v4  ;;  %v1319_v4 = vsel %vm1308_vm5, %v1316_v51, %v1318_v60 }
  0x67   : > { %3378 = vmatprep.mubr.msk.bf16.mxu1 %vm3644_vm0, %v3643_v1 }
  0x68   : > { %3407 = vmatmul.mubr.msk.bf16.gmra.mrb[40].mxu0 %vm259_vm1, %v1108_v6  ;;  %v1718_v6 = vrot.slane %v1716_v62, 3 }
  0x69   : > { %3410 = vmatprep.mubr.msk.bf16.mxu0 %vm3644_vm0, %v3643_v1 }
  0x6a   : > { %v1719_v12 = vor.u32 %v1718_v6, %v1715_v5 }
  0x6e   : > { %3379 = vmatmul.mubr.msk.bf16.gmra.mrb[44].mxu1 %vm259_vm1, %v871_v11  ;;  %v3628_v11 = vld [vmem:[%s3699_s23 + $0x18] sm:$0xff]  }
  0x6f   : > { %3382 = vmatprep.mubr.msk.bf16.mxu1 %vm3644_vm0, %v3643_v1  ;;  %v1959_v16 = vrot.slane %v3628_v11, 3 }
  0x70   : > { %3411 = vmatmul.mubr.msk.bf16.gmra.mrb[44].mxu0 %vm259_vm1, %v1117_v13  ;;  %v1727_v13 = vor.u32 %v1726_v8, %v1723_v7 }
  0x71   : > { %3450 = vmatprep.mubr.msk.bf16.mxu0 %vm3644_vm0, %v3643_v1  ;;  %v1960_v21 = vsel %vm1955_vm6, %v1957_v3, %v1959_v16 }
  0x72   : > { %v1728_v17 = vsel %vm1711_vm7, %v1719_v12, %v1727_v13 }
  0x76   : > { %3383 = vmatmul.mubr.msk.bf16.gmra.mrb[48].mxu1 %vm259_vm1, %v873_v19  ;;  %v1735_v19 = vrot.slane %v1733_v15, 3 }
  0x77   : > { %3422 = vmatprep.mubr.msk.bf16.mxu1 %vm3644_vm0, %v3643_v1 }
  0x78   : > { %3451 = vmatmul.mubr.msk.bf16.vlgmr.msra.gmra.mrb[48].mxu0 %vm259_vm1, %v1512_v22  ;;  %v3630_v22 = vld [vmem:[%s3699_s23 + $0x20] sm:$0xff]  }
  0x79   : > { %3499 = vmatpush3.bf16.msra.mxu0 %v3608_v23  ;;  %3454 = vmatprep.mubr.msk.bf16.mxu0 %vm3644_vm0, %v3643_v1  ;;  %v1736_v23 = vor.u32 %v1735_v19, %v1732_v18  ;;  %v1961_v26 = vrot.slane %v3630_v22, 3 }
  0x7a   : > { %3500 = vmatprep.subr.bf16.mxu0 %v3643_v1 }
  0x7b   : > { %v1737_v27 = vsel %vm1711_vm7, %v1727_v13, %v1736_v23  ;;  %v1962_v31 = vsel %vm1955_vm6, %v1959_v16, %v1961_v26 }
  0x7d   : > { %3501 = vmatpush3.bf16.msra.mxu0 %v3612_v28  ;;  %v1741_v28 = vrot.slane %v1739_v24, 2 }
  0x7e   : > { %3423 = vmatmul.mubr.msk.bf16.vlgmr.msra.gmra.mrb[52].mxu1 %vm259_vm1, %v1311_v29  ;;  %3502 = vmatprep.subr.bf16.mxu0 %v3643_v1  ;;  %v1744_v29 = vrot.slane %v1742_v25, 3 }
  0x7f   : > { %3471 = vmatpush3.bf16.msra.mxu1 %v3607_v30  ;;  %3426 = vmatprep.mubr.msk.bf16.mxu1 %vm3644_vm0, %v3643_v1  ;;  %v3631_v30 = vld [vmem:[%s3699_s23 + $0x28] sm:$0xff]  }
  0x80   : > { %3455 = vmatmul.mubr.msk.bf16.gmra.mrb[52].mxu0 %vm259_vm1, %v1514_v32  ;;  %3472 = vmatprep.subr.bf16.mxu1 %v3643_v1  ;;  %v3632_v32 = vld [vmem:[%s3699_s23 + $0x28] sm:$0xff]   ;;  %v1745_v33 = vor.u32 %v1744_v29, %v1741_v28  ;;  %v1751_v35 = vshll.u32 %v3631_v30, 16 }
  0x81   : > { %3458 = vmatprep.mubr.msk.bf16.mxu0 %vm3644_vm0, %v3643_v1  ;;  %3503 = vmatpush3.bf16.msra.mxu0 %v3616_v34  ;;  %v1748_v34 = vshrl.u32 %v3631_v30, 16 }
  0x82   : > { %3504 = vmatprep.subr.bf16.mxu0 %v3643_v1  ;;  %v1746_v37 = vsel %vm1711_vm7, %v1736_v23, %v1745_v33 }
  0x83   : > { %3473 = vmatpush3.bf16.msra.mxu1 %v3611_v36  ;;  %v1963_v36 = vrot.slane %v3632_v32, 3 }
  0x84   : > { %3474 = vmatprep.subr.bf16.mxu1 %v3643_v1 }
  0x85   : > { %3505 = vmatpush3.bf16.msra.mxu0 %v3622_v38  ;;  %v1750_v38 = vrot.slane %v1748_v34, 2 }
  0x86   : > { %3427 = vmatmul.mubr.msk.bf16.gmra.mrb[56].mxu1 %vm259_vm1, %v1313_v39  ;;  %v1753_v39 = vrot.slane %v1751_v35, 3 }
  0x87   : > { %3430 = vmatprep.mubr.msk.bf16.mxu1 %vm3644_vm0, %v3643_v1  ;;  %3475 = vmatpush3.bf16.msra.mxu1 %v3615_v41  ;;  %v1964_v41 = vsel %vm1955_vm6, %v1961_v26, %v1963_v36 }
  0x88   : > { %3459 = vmatmul.mubr.msk.bf16.gmra.mrb[56].mxu0 %vm259_vm1, %v1516_v42  ;;  %3476 = vmatprep.subr.bf16.mxu1 %v3643_v1  ;;  %v3634_v42 = vld [vmem:[%s3699_s23 + $0x30] ss:$0 sps:$4 sm:$0x77]   ;;  %v1754_v43 = vor.u32 %v1753_v39, %v1750_v38 }
  0x89   : > { %3462 = vmatprep.mubr.msk.bf16.mxu0 %vm3644_vm0, %v3643_v1  ;;  %v1965_v46 = vrot.slane %v3634_v42, 3 }
  0x8b   : > { %3477 = vmatpush3.bf16.msra.mxu1 %v3619_v45  ;;  %v1760_v45 = vshll.u32 %v3633_v40, 16  ;;  %v1966_v50 = vsel %vm1955_vm6, %v1963_v36, %v1965_v46 }
  0x8e   : > { %3431 = vmatmul.mubr.msk.bf16.gmra.mrb[60].mxu1 %vm259_vm1, %v1315_v47  ;;  %v1755_v47 = vsel %vm1711_vm7, %v1745_v33, %v1754_v43 }
  0x8f   : > { %3434 = vmatprep.mubr.msk.bf16.mxu1 %vm3644_vm0, %v3643_v1 }
  0x90   : > { %3463 = vmatmul.mubr.msk.bf16.gmra.mrb[60].mxu0 %vm259_vm1, %v1518_v49  ;;  %v1762_v49 = vrot.slane %v1760_v45, 3 }
  0x91   : > { %3466 = vmatprep.mubr.msk.bf16.mxu0 %vm3644_vm0, %v3643_v1 }
  0x92   : > { %v1763_v51 = vor.u32 %v1762_v49, %v1759_v48 }
  0x94   : > { %v1764_v52 = vsel %vm1711_vm7, %v1754_v43, %v1763_v51 }
  0x96   : > { %3435 = vmatmul.mubr.msk.bf16.gmra.mrb[64].mxu1 %vm259_vm1, %v1317_v54 }
  0x97   : > { %3438 = vmatprep.mubr.msk.bf16.mxu1 %vm3644_vm0, %v3643_v1 }
  0x98   : > { %3467 = vmatmul.mubr.msk.bf16.gmra.mrb[64].mxu0 %vm259_vm1, %v1520_v57 }
  0x99   : > { %3506 = vmatprep.mubr.msk.bf16.mxu0 %vm3644_vm0, %v3643_v1 }
  0x9e   : > { %3439 = vmatmul.mubr.msk.bf16.gmra.mrb[68].mxu1 %vm259_vm1, %v1319_v4 }
  0x9f   : > { %3478 = vmatprep.mubr.msk.bf16.mxu1 %vm3644_vm0, %v3643_v1 }
  0xa0   : > { %3507 = vmatmul.mubr.msk.bf16.vlgmr.msra.gmra.mrb[68].mxu0 %vm259_vm1, %v1958_v10 }
  0xa1   : > { %3510 = vmatprep.mubr.msk.bf16.mxu0 %vm3644_vm0, %v3643_v1 }
  0xa6   : > { %3479 = vmatmul.mubr.msk.bf16.vlgmr.msra.gmra.mrb[72].mxu1 %vm259_vm1, %v1728_v17 }
  0xa7   : > { %3482 = vmatprep.mubr.msk.bf16.mxu1 %vm3644_vm0, %v3643_v1 }
  0xa8   : > { %3511 = vmatmul.mubr.msk.bf16.gmra.mrb[72].mxu0 %vm259_vm1, %v1960_v21 }
  0xa9   : > { %3514 = vmatprep.mubr.msk.bf16.mxu0 %vm3644_vm0, %v3643_v1 }
  0xae   : > { %3483 = vmatmul.mubr.msk.bf16.gmra.mrb[76].mxu1 %vm259_vm1, %v1737_v27 }
  0xaf   : > { %3486 = vmatprep.mubr.msk.bf16.mxu1 %vm3644_vm0, %v3643_v1 }
  0xb0   : > { %3515 = vmatmul.mubr.msk.bf16.gmra.mrb[76].mxu0 %vm259_vm1, %v1962_v31 }
  0xb1   : > { %3518 = vmatprep.mubr.msk.bf16.mxu0 %vm3644_vm0, %v3643_v1 }
  0xb6   : > { %3487 = vmatmul.mubr.msk.bf16.gmra.mrb[80].mxu1 %vm259_vm1, %v1746_v37 }
  0xb7   : > { %3490 = vmatprep.mubr.msk.bf16.mxu1 %vm3644_vm0, %v3643_v1 }
  0xb8   : > { %3519 = vmatmul.mubr.msk.bf16.gmra.mrb[80].mxu0 %vm259_vm1, %v1964_v41 }
  0xb9   : > { %3522 = vmatprep.mubr.msk.bf16.mxu0 %vm3644_vm0, %v3643_v1 }
  0xbe   : > { %3491 = vmatmul.mubr.msk.bf16.gmra.mrb[84].mxu1 %vm259_vm1, %v1755_v47 }
  0xbf   : > { %3494 = vmatprep.mubr.msk.bf16.mxu1 %vm3644_vm0, %v3643_v1 }
  0xc0   : > { %3523 = vmatmul.mubr.msk.bf16.gmra.mrb[84].mxu0 %vm259_vm1, %v1966_v50 }
  0xc6   : > { %3495 = vmatmul.mubr.msk.bf16.gmra.mrb[88].mxu1 %vm259_vm1, %v1764_v52 }
  0xe9   : > { %v325_v53 = vpop.f32.mrb[0].mxu1  ;;  %v309_v54 = vpop.f32.mrb[0].mxu0 }
  0xea   : > { %v3292_v55 = vpop.f32.mrb[1].mxu1  ;;  %v3284_v56 = vpop.f32.mrb[1].mxu0 }
  0xeb   : > { %v328_v57 = vpop.f32.mrb[2].mxu1  ;;  %v312_v58 = vpop.f32.mrb[2].mxu0 }
  0xec   : > { %v3293_v59 = vpop.f32.mrb[3].mxu1  ;;  %v3285_v60 = vpop.f32.mrb[3].mxu0 }
  0xf1   : > { %v333_v61 = vpop.f32.mrb[4].mxu1  ;;  %v317_v62 = vpop.f32.mrb[4].mxu0 }
  0xf2   : > { %v3296_v63 = vpop.f32.mrb[5].mxu1  ;;  %v3288_v0 = vpop.f32.mrb[5].mxu0 }
  0xf3   : > { %v336_v1 = vpop.f32.mrb[6].mxu1  ;;  %v320_v2 = vpop.f32.mrb[6].mxu0 }
  0xf4   : > { %v3297_v3 = vpop.f32.mrb[7].mxu1  ;;  %v3289_v4 = vpop.f32.mrb[7].mxu0 }
  0xf9   : > { %v341_v5 = vpop.f32.mrb[8].mxu1 }
  0xfa   : > { %v3300_v6 = vpop.f32.mrb[9].mxu1  ;;  %v746_v7 = vpop.f32.mrb[8].mxu0 }
  0xfb   : > { %v344_v8 = vpop.f32.mrb[10].mxu1  ;;  %v3340_v9 = vpop.f32.mrb[9].mxu0 }
  0xfc   : > { %v3301_v10 = vpop.f32.mrb[11].mxu1  ;;  %v749_v11 = vpop.f32.mrb[10].mxu0 }
  0xfd   : > { %v3341_v12 = vpop.f32.mrb[11].mxu0 }
 0x101   : > { %v544_v13 = vpop.f32.mrb[12].mxu1 }
 0x102   : > { %v583_v14 = vadd.f32 %v544_v13, %v309_v54  ;;  %v3312_v15 = vpop.f32.mrb[13].mxu1 }
 0x103   : > { %v547_v16 = vpop.f32.mrb[14].mxu1  ;;  %v754_v17 = vpop.f32.mrb[12].mxu0 }
 0x104   : > { %v785_v18 = vadd.f32 %v746_v7, %v583_v14  ;;  %v584_v19 = vadd.f32 %v547_v16, %v312_v58  ;;  %v3313_v20 = vpop.f32.mrb[15].mxu1  ;;  %v3344_v21 = vpop.f32.mrb[13].mxu0 }
 0x105   : > { %v757_v22 = vpop.f32.mrb[14].mxu0 }
 0x106   : > { %v786_v23 = vadd.f32 %v749_v11, %v584_v19  ;;  %v3345_v24 = vpop.f32.mrb[15].mxu0 }
 0x109   : > { %v552_v25 = vpop.f32.mrb[16].mxu1 }
 0x10a   : > { %v585_v26 = vadd.f32 %v552_v25, %v317_v62  ;;  %v3316_v27 = vpop.f32.mrb[17].mxu1 }
 0x10b   : > { %v555_v28 = vpop.f32.mrb[18].mxu1  ;;  %v762_v29 = vpop.f32.mrb[16].mxu0 }
 0x10c   : > { %v787_v30 = vadd.f32 %v754_v17, %v585_v26  ;;  %v586_v31 = vadd.f32 %v555_v28, %v320_v2  ;;  %v3317_v32 = vpop.f32.mrb[19].mxu1  ;;  %v3348_v33 = vpop.f32.mrb[17].mxu0 }
 0x10d   : > { %v765_v34 = vpop.f32.mrb[18].mxu0 }
 0x10e   : > { %v788_v35 = vadd.f32 %v757_v22, %v586_v31  ;;  %v3349_v36 = vpop.f32.mrb[19].mxu0 }
 0x111   : > { %v560_v37 = vpop.f32.mrb[20].mxu1 }
 0x112   : > { %v587_v38 = vadd.f32 %v560_v37, %v325_v53  ;;  %v3320_v39 = vpop.f32.mrb[21].mxu1 }
 0x113   : > { %v563_v40 = vpop.f32.mrb[22].mxu1  ;;  %v770_v41 = vpop.f32.mrb[20].mxu0 }
 0x114   : > { %v789_v42 = vadd.f32 %v762_v29, %v587_v38  ;;  %v588_v43 = vadd.f32 %v563_v40, %v328_v57  ;;  %v3321_v44 = vpop.f32.mrb[23].mxu1  ;;  %v3352_v45 = vpop.f32.mrb[21].mxu0 }
 0x115   : > { %v773_v46 = vpop.f32.mrb[22].mxu0 }
 0x116   : > { %v790_v47 = vadd.f32 %v765_v34, %v588_v43  ;;  %v3353_v48 = vpop.f32.mrb[23].mxu0 }
 0x119   : > { %v568_v49 = vpop.f32.mrb[24].mxu1 }
 0x11a   : > { %v589_v50 = vadd.f32 %v568_v49, %v333_v61  ;;  %v3324_v51 = vpop.f32.mrb[25].mxu1 }
 0x11b   : > { %v571_v52 = vpop.f32.mrb[26].mxu1  ;;  %v778_v54 = vpop.f32.mrb[24].mxu0 }
 0x11c   : > { %v791_v55 = vadd.f32 %v770_v41, %v589_v50  ;;  %v590_v56 = vadd.f32 %v571_v52, %v336_v1  ;;  %v3325_v58 = vpop.f32.mrb[27].mxu1  ;;  %v3356_v59 = vpop.f32.mrb[25].mxu0 }
 0x11d   : > { %v781_v53 = vpop.f32.mrb[26].mxu0 }
 0x11e   : > { %v792_v60 = vadd.f32 %v773_v46, %v590_v56  ;;  %v3357_v62 = vpop.f32.mrb[27].mxu0 }
 0x121   : > { %v576_v63 = vpop.f32.mrb[28].mxu1 }
 0x122   : > { %v591_v0 = vadd.f32 %v576_v63, %v341_v5  ;;  %v3328_v57 = vpop.f32.mrb[29].mxu1 }
 0x123   : > { %v579_v2 = vpop.f32.mrb[30].mxu1  ;;  %v1191_v3 = vpop.f32.mrb[28].mxu0 }
 0x124   : > { %v793_v4 = vadd.f32 %v778_v54, %v591_v0  ;;  %v592_v6 = vadd.f32 %v579_v2, %v344_v8  ;;  %v3329_v7 = vpop.f32.mrb[31].mxu1  ;;  %v3396_v9 = vpop.f32.mrb[29].mxu0 }
 0x125   : > { %v1194_v61 = vpop.f32.mrb[30].mxu0 }
 0x126   : > { %v794_v10 = vadd.f32 %v781_v53, %v592_v6  ;;  %v3397_v11 = vpop.f32.mrb[31].mxu0 }
 0x129   : > { %v947_v12 = vpop.f32.mrb[32].mxu1 }
 0x12a   : > { %v986_v13 = vadd.f32 %v947_v12, %v785_v18  ;;  %v3368_v1 = vpop.f32.mrb[33].mxu1 }
 0x12b   : > { %v950_v14 = vpop.f32.mrb[34].mxu1  ;;  %v1199_v15 = vpop.f32.mrb[32].mxu0 }
 0x12c   : > { %v1230_v16 = vadd.f32 %v1191_v3, %v986_v13  ;;  %v987_v17 = vadd.f32 %v950_v14, %v786_v23  ;;  %v3369_v19 = vpop.f32.mrb[35].mxu1  ;;  %v3400_v20 = vpop.f32.mrb[33].mxu0 }
 0x12d   : > { %v1202_v5 = vpop.f32.mrb[34].mxu0 }
 0x12e   : > { %v1231_v21 = vadd.f32 %v1194_v61, %v987_v17  ;;  %v3401_v22 = vpop.f32.mrb[35].mxu0 }
 0x131   : > { %v955_v24 = vpop.f32.mrb[36].mxu1 }
 0x132   : > { %v988_v25 = vadd.f32 %v955_v24, %v787_v30  ;;  %v3372_v8 = vpop.f32.mrb[37].mxu1 }
 0x133   : > { %v958_v26 = vpop.f32.mrb[38].mxu1  ;;  %v1207_v27 = vpop.f32.mrb[36].mxu0 }
 0x134   : > { %v1232_v28 = vadd.f32 %v1199_v15, %v988_v25  ;;  %v989_v29 = vadd.f32 %v958_v26, %v788_v35  ;;  %v3373_v31 = vpop.f32.mrb[39].mxu1  ;;  %v3404_v32 = vpop.f32.mrb[37].mxu0 }
 0x135   : > { %v1210_v18 = vpop.f32.mrb[38].mxu0 }
 0x136   : > { %v1233_v33 = vadd.f32 %v1202_v5, %v989_v29  ;;  %v3405_v34 = vpop.f32.mrb[39].mxu0 }
 0x139   : > { %v963_v36 = vpop.f32.mrb[40].mxu1 }
 0x13a   : > { %v990_v37 = vadd.f32 %v963_v36, %v789_v42  ;;  %v3376_v23 = vpop.f32.mrb[41].mxu1 }
 0x13b   : > { %v966_v38 = vpop.f32.mrb[42].mxu1  ;;  %v1215_v39 = vpop.f32.mrb[40].mxu0 }
 0x13c   : > { %v1234_v40 = vadd.f32 %v1207_v27, %v990_v37  ;;  %v991_v41 = vadd.f32 %v966_v38, %v790_v47  ;;  %v3377_v43 = vpop.f32.mrb[43].mxu1  ;;  %v3408_v44 = vpop.f32.mrb[41].mxu0 }
 0x13d   : > { %v1218_v30 = vpop.f32.mrb[42].mxu0 }
 0x13e   : > { %v1235_v45 = vadd.f32 %v1210_v18, %v991_v41  ;;  %v3409_v46 = vpop.f32.mrb[43].mxu0 }
 0x141   : > { %v971_v48 = vpop.f32.mrb[44].mxu1 }
 0x142   : > { %v992_v49 = vadd.f32 %v971_v48, %v791_v55  ;;  %v3380_v35 = vpop.f32.mrb[45].mxu1 }
 0x143   : > { %v974_v50 = vpop.f32.mrb[46].mxu1  ;;  %v1223_v51 = vpop.f32.mrb[44].mxu0 }
 0x144   : > { %v1236_v52 = vadd.f32 %v1215_v39, %v992_v49  ;;  %v993_v54 = vadd.f32 %v974_v50, %v792_v60  ;;  %v3381_v56 = vpop.f32.mrb[47].mxu1  ;;  %v3412_v58 = vpop.f32.mrb[45].mxu0 }
 0x145   : > { %v1226_v42 = vpop.f32.mrb[46].mxu0 }
 0x146   : > { %v1237_v59 = vadd.f32 %v1218_v30, %v993_v54  ;;  %v3413_v53 = vpop.f32.mrb[47].mxu0 }
 0x149   : > { %v979_v62 = vpop.f32.mrb[48].mxu1 }
 0x14a   : > { %v994_v63 = vadd.f32 %v979_v62, %v793_v4  ;;  %v3384_v47 = vpop.f32.mrb[49].mxu1 }
 0x14b   : > { %v982_v0 = vpop.f32.mrb[50].mxu1  ;;  %v1594_v57 = vpop.f32.mrb[48].mxu0 }
 0x14c   : > { %v1238_v2 = vadd.f32 %v1223_v51, %v994_v63  ;;  %v995_v3 = vadd.f32 %v982_v0, %v794_v10  ;;  %v3385_v6 = vpop.f32.mrb[51].mxu1  ;;  %v3452_v7 = vpop.f32.mrb[49].mxu0 }
 0x14d   : > { %v1597_v55 = vpop.f32.mrb[50].mxu0 }
 0x14e   : > { %v1239_v9 = vadd.f32 %v1226_v42, %v995_v3  ;;  %v3453_v61 = vpop.f32.mrb[51].mxu0 }
 0x14f   : > { %v2150_v61 = vlaneseq }
 0x151   : > { %v1393_v11 = vpop.f32.mrb[52].mxu1 }
 0x152   : > { %v1432_v12 = vadd.f32 %v1393_v11, %v1230_v16  ;;  %v3424_v60 = vpop.f32.mrb[53].mxu1 }
 0x153   : > { %v1396_v13 = vpop.f32.mrb[54].mxu1  ;;  %v1602_v1 = vpop.f32.mrb[52].mxu0 }
 0x154   : > { %v1633_v14 = vadd.f32 %v1594_v57, %v1432_v12  ;;  %v1433_v15 = vadd.f32 %v1396_v13, %v1231_v21  ;;  %v3425_v17 = vpop.f32.mrb[55].mxu1  ;;  %v3456_v19 = vpop.f32.mrb[53].mxu0 }
 0x155   : > { %v1605_v4 = vpop.f32.mrb[54].mxu0 }
 0x156   : > { %v1634_v20 = vadd.f32 %v1597_v55, %v1433_v15  ;;  %v3457_v5 = vpop.f32.mrb[55].mxu0  ;;  %v4077_v15 = vld [vmem:[%s4259_s2] ss:$0 sm:$0xff] }
 0x159   : > { %v1401_v22 = vpop.f32.mrb[56].mxu1 }
 0x15a   : > { %v1434_v24 = vadd.f32 %v1401_v22, %v1232_v28  ;;  %v3428_v10 = vpop.f32.mrb[57].mxu1 }
 0x15b   : > { %v1404_v25 = vpop.f32.mrb[58].mxu1  ;;  %v1610_v8 = vpop.f32.mrb[56].mxu0 }
 0x15c   : > { %v4058_v26 = vadd.f32 %v1602_v1, %v1434_v24  ;;  %v1435_v27 = vadd.f32 %v1404_v25, %v1233_v33  ;;  %v3429_v29 = vpop.f32.mrb[59].mxu1  ;;  %v3460_v16 = vpop.f32.mrb[57].mxu0  ;;  %v2151_v1 = vshrl.u32 %v2150_v61, 7 }
 0x15d   : > { %v1613_v31 = vpop.f32.mrb[58].mxu0 }
 0x15e   : > { %v4060_v32 = vadd.f32 %v1605_v4, %v1435_v27  ;;  %v3461_v18 = vpop.f32.mrb[59].mxu0 }
 0x161   : > { %v1409_v21 = vpop.f32.mrb[60].mxu1 }
 0x162   : > { %v1436_v34 = vadd.f32 %v1409_v21, %v1234_v40  ;;  %v3432_v36 = vpop.f32.mrb[61].mxu1 }
 0x163   : > { %v1412_v37 = vpop.f32.mrb[62].mxu1  ;;  %v1618_v23 = vpop.f32.mrb[60].mxu0 }
 0x164   : > { %v4062_v38 = vadd.f32 %v1610_v8, %v1436_v34  ;;  %v1437_v28 = vadd.f32 %v1412_v37, %v1235_v45  ;;  %v3433_v39 = vpop.f32.mrb[63].mxu1  ;;  %v3464_v41 = vpop.f32.mrb[61].mxu0 }
 0x165   : > { %v1621_v43 = vpop.f32.mrb[62].mxu0 }
 0x166   : > { %v4064_v44 = vadd.f32 %v1613_v31, %v1437_v28  ;;  %v3465_v33 = vpop.f32.mrb[63].mxu0 }
 0x169   : > { %v1417_v30 = vpop.f32.mrb[64].mxu1 }
 0x16a   : > { %v1438_v46 = vadd.f32 %v1417_v30, %v1236_v52  ;;  %v3436_v48 = vpop.f32.mrb[65].mxu1 }
 0x16b   : > { %v1420_v49 = vpop.f32.mrb[66].mxu1  ;;  %v1626_v35 = vpop.f32.mrb[64].mxu0 }
 0x16c   : > { %v4066_v50 = vadd.f32 %v1618_v23, %v1438_v46  ;;  %v1439_v40 = vadd.f32 %v1420_v49, %v1237_v59  ;;  %v3437_v51 = vpop.f32.mrb[67].mxu1  ;;  %v3468_v54 = vpop.f32.mrb[65].mxu0  ;;  %v3645_v59 = vmov 1983009808  }
 0x16d   : > { %v1629_v56 = vpop.f32.mrb[66].mxu0  ;;  %v2148_v55 = vunpack.c.l.s4 %v3645_v59 }
 0x16e   : > { %v4068_v58 = vadd.f32 %v1621_v43, %v1439_v40  ;;  %v3469_v45 = vpop.f32.mrb[67].mxu0 }
 0x16f   : > { %v2149_v13 = vunpack.c.0.s8 %v2148_v55 }
 0x171   : > { %v1425_v42 = vpop.f32.mrb[68].mxu1  ;;  %v4082_v25 = vsub.s32 %v2149_v13, %v2151_v1 }
 0x172   : > { %v1440_v53 = vadd.f32 %v1425_v42, %v1238_v2  ;;  %v3440_v62 = vpop.f32.mrb[69].mxu1 }
 0x173   : > { %v1428_v63 = vpop.f32.mrb[70].mxu1  ;;  %v2040_v47 = vpop.f32.mrb[68].mxu0 }
 0x174   : > { %v4070_v0 = vadd.f32 %v1626_v35, %v1440_v53  ;;  %v1441_v52 = vadd.f32 %v1428_v63, %v1239_v9  ;;  %v3441_v57 = vpop.f32.mrb[71].mxu1  ;;  %v3508_v3 = vpop.f32.mrb[69].mxu0 }
 0x175   : > { %v2043_v6 = vpop.f32.mrb[70].mxu0 }
 0x176   : > { %v4072_v7 = vadd.f32 %v1629_v56, %v1441_v52  ;;  %v3509_v11 = vpop.f32.mrb[71].mxu0 }
 0x179   : > { %v1838_v12 = vpop.f32.mrb[72].mxu1 }
 0x17a   : > { %v1877_v60 = vadd.f32 %v1838_v12, %v1633_v14  ;;  %v3480_v2 = vpop.f32.mrb[73].mxu1 }
 0x17b   : > { %v1841_v9 = vpop.f32.mrb[74].mxu1  ;;  %v2048_v17 = vpop.f32.mrb[72].mxu0 }
 0x17c   : > { %v2079_v19 = vadd.f32 %v2040_v47, %v1877_v60  ;;  %v1878_v4 = vadd.f32 %v1841_v9, %v1634_v20  ;;  %v3481_v5 = vpop.f32.mrb[75].mxu1  ;;  %v3512_v22 = vpop.f32.mrb[73].mxu0 }
 0x17d   : > { %v4079_v24 = vpop.f32.mrb[74].mxu0 }
 0x17e   : > { %v2116_v10 = vadd.f32 %v4077_v15, %v2079_v19  ;;  %v2080_v14 = vadd.f32 %v2043_v6, %v1878_v4  ;;  %v3513_v8 = vpop.f32.mrb[75].mxu0 }
 0x180   : > { %v2126_v27 = vmax.f32 %v2116_v10, 0.0  ;;  %v2117_v29 = vadd.f32 %v4077_v15, %v2080_v14 }
 0x181   : > { %v1846_v16 = vpop.f32.mrb[76].mxu1 }
 0x182   : > { %v2146_v31 = vcombine.high %v2126_v27, %v2126_v27  ;;  %v2153_v18 = vrot.slane %v2126_v27, %v4082_v25  ;;  %v2127_v21 = vmax.f32 %v2117_v29, 0.0  ;;  %v1879_v20 = vadd.f32 %v1846_v16, %v4058_v26  ;;  %v3484_v34 = vpop.f32.mrb[77].mxu1 }
 0x183   : > { %v1849_v36 = vpop.f32.mrb[78].mxu1  ;;  %v4087_v37 = vpop.f32.mrb[76].mxu0 }
 0x184   : > { %v2160_v23 = vrot.slane %v2146_v31, %v4082_v25  ;;  %v2161_v28 = vcombine.high %v2153_v18, %v2153_v18  ;;  %v2345_v39 = vsel %vm2344_vm8, %v2153_v18, -inf  ;;  %v2163_v41 = vcombine.high %v2127_v21, %v2127_v21  ;;  %v3485_v43 = vpop.f32.mrb[79].mxu1  ;;  %v3516_v33 = vpop.f32.mrb[77].mxu0 }
 0x185   : > { %v2346_v30 = vrot.slane %v2345_v39, 4  ;;  %v2170_v46 = vrot.slane %v2127_v21, %v4082_v25  ;;  %v2081_v48 = vadd.f32 %v2048_v17, %v1879_v20  ;;  %v4093_v49 = vadd.f32 %v1849_v36, %v4060_v32  ;;  %v4095_v26 = vpop.f32.mrb[78].mxu0 }
 0x186   : > { %v2162_v35 = vcombine.high %v2160_v23, %v2160_v23  ;;  %v2352_v40 = vsel %vm2344_vm8, %v2161_v28, -inf  ;;  %v2359_v51 = vsel %vm2344_vm8, %v2160_v23, -inf  ;;  %v2177_v54 = vrot.slane %v2163_v41, %v4082_v25  ;;  %v3517_v56 = vpop.f32.mrb[79].mxu0 }
 0x187   : > { %v2347_v45 = vmax.f32 %v2345_v39, %v2346_v30  ;;  %v2353_v42 = vrot.slane %v2352_v40, 4  ;;  %v2360_v53 = vrot.slane %v2359_v51, 4  ;;  %v2178_v62 = vcombine.high %v2170_v46, %v2170_v46 }
 0x188   : > { %v2366_v63 = vsel %vm2344_vm8, %v2162_v35, -inf  ;;  %v2179_v47 = vcombine.high %v2177_v54, %v2177_v54  ;;  %v2380_v32 = vsel %vm2344_vm8, %v2177_v54, -inf  ;;  %v2118_v52 = vadd.f32 %v4077_v15, %v2081_v48 }
 0x189   : > { %v2348_v57 = vrot.slane %v2347_v45, 2  ;;  %v2354_v3 = vmax.f32 %v2352_v40, %v2353_v42  ;;  %v2361_v6 = vmax.f32 %v2359_v51, %v2360_v53  ;;  %v2367_v59 = vrot.slane %v2366_v63, 4  ;;  %v1854_v55 = vpop.f32.mrb[80].mxu1 }
 0x18a   : > { %v2373_v61 = vsel %vm2344_vm8, %v2178_v62, -inf  ;;  %v2381_v11 = vrot.slane %v2380_v32, 4  ;;  %v2387_v12 = vsel %vm2344_vm8, %v2179_v47, -inf  ;;  %v2128_v60 = vmax.f32 %v2118_v52, 0.0  ;;  %v3488_v13 = vpop.f32.mrb[81].mxu1 }
 0x18b   : > { %v2349_v1 = vmax.f32 %v2347_v45, %v2348_v57  ;;  %v2355_v2 = vrot.slane %v2354_v3, 2  ;;  %v2362_v9 = vrot.slane %v2361_v6, 2  ;;  %v2368_v17 = vmax.f32 %v2366_v63, %v2367_v59  ;;  %v4105_v19 = vpop.f32.mrb[82].mxu1  ;;  %v4107_v4 = vpop.f32.mrb[80].mxu0 }
 0x18c   : > { %v2374_v5 = vrot.slane %v2373_v61, 4  ;;  %v2382_v22 = vmax.f32 %v2380_v32, %v2381_v11  ;;  %v2388_v10 = vrot.slane %v2387_v12, 4  ;;  %v2180_v14 = vcombine.high %v2128_v60, %v2128_v60  ;;  %v3489_v8 = vpop.f32.mrb[83].mxu1  ;;  %v3520_v27 = vpop.f32.mrb[81].mxu0 }
 0x18d   : > { %v2350_v29 = vrot.slane %v2349_v1, 1  ;;  %v2356_v16 = vmax.f32 %v2354_v3, %v2355_v2  ;;  %v2363_v31 = vmax.f32 %v2361_v6, %v2362_v9  ;;  %v2369_v18 = vrot.slane %v2368_v17, 2  ;;  %v4109_v21 = vpop.f32.mrb[82].mxu0 }
 0x18e   : > { %v2375_v20 = vmax.f32 %v2373_v61, %v2374_v5  ;;  %v2383_v34 = vrot.slane %v2382_v22, 2  ;;  %v2389_v36 = vmax.f32 %v2387_v12, %v2388_v10  ;;  %v2187_v23 = vrot.slane %v2128_v60, %v4082_v25  ;;  %v3521_v28 = vpop.f32.mrb[83].mxu0 }
 0x18f   : > { %v2357_v39 = vrot.slane %v2356_v16, 1  ;;  %v2364_v41 = vrot.slane %v2363_v31, 1  ;;  %v4112_v43 = vmax.f32 %v2368_v17, %v2369_v18  ;;  %v2194_v48 = vrot.slane %v2180_v14, %v4082_v25 }
 0x190   : > { %v2376_v33 = vrot.slane %v2375_v20, 2  ;;  %v2384_v30 = vmax.f32 %v2382_v22, %v2383_v34  ;;  %v2390_v46 = vrot.slane %v2389_v36, 2  ;;  %v2351_v35 = vmax.f32 %v2349_v1, %v2350_v29 }
 0x191   : > { %v2358_v40 = vmax.f32 %v2356_v16, %v2357_v39  ;;  %v2365_v51 = vmax.f32 %v2363_v31, %v2364_v41  ;;  %v2394_v54 = vsel %vm2344_vm8, %v2187_v23, -inf  ;;  %v4116_v56 = vpop.f32.mrb[84].mxu1  ;;  %v2195_v62 = vcombine.high %v2194_v48, %v2194_v48 }
 0x192   : > { %v2377_v45 = vmax.f32 %v2375_v20, %v2376_v33  ;;  %v2385_v42 = vrot.slane %v2384_v30, 1  ;;  %v2391_v53 = vmax.f32 %v2389_v36, %v2390_v46  ;;  %v3492_v63 = vpop.f32.mrb[85].mxu1  ;;  %v2371_v47 = vrot.slane %v4112_v43, 1 }
 0x193   : > { %v2395_v32 = vrot.slane %v2394_v54, 4  ;;  %v2401_v52 = vsel %vm2344_vm8, %v2194_v48, -inf  ;;  %v2082_v57 = vadd.f32 %v4079_v24, %v4093_v49  ;;  %v4122_v3 = vpop.f32.mrb[86].mxu1  ;;  %v4124_v6 = vpop.f32.mrb[84].mxu0  ;;  %v2408_v2 = vsel %vm2344_vm8, %v2195_v62, -inf }
 0x194   : > { %v2378_v59 = vrot.slane %v2377_v45, 1  ;;  %v2386_v61 = vmax.f32 %v2384_v30, %v2385_v42  ;;  %v2392_v11 = vrot.slane %v2391_v53, 1  ;;  %v2402_v12 = vrot.slane %v2401_v52, 4  ;;  %v3493_v60 = vpop.f32.mrb[87].mxu1  ;;  %v3524_v13 = vpop.f32.mrb[85].mxu0 }
 0x195   : > { %v2396_v1 = vmax.f32 %v2394_v54, %v2395_v32  ;;  %v2119_v9 = vadd.f32 %v4077_v15, %v2082_v57  ;;  %v1881_v17 = vadd.f32 %v1854_v55, %v4062_v38  ;;  %v4129_v5 = vpop.f32.mrb[86].mxu0  ;;  %v2409_v27 = vrot.slane %v2408_v2, 4 }
 0x196   : > { %v2379_v24 = vmax.f32 %v2377_v45, %v2378_v59  ;;  %v2393_v49 = vmax.f32 %v2391_v53, %v2392_v11  ;;  %v2570_v22 = vmax.f32 %v2358_v40, %v2386_v61  ;;  %v2403_v10 = vmax.f32 %v2401_v52, %v2402_v12  ;;  %v3525_v14 = vpop.f32.mrb[87].mxu0 }
 0x197   : > { %v2397_v8 = vrot.slane %v2396_v1, 2  ;;  %v2129_v29 = vmax.f32 %v2119_v9, 0.0  ;;  %v2083_v16 = vadd.f32 %v4087_v37, %v1881_v17  ;;  %v2410_v23 = vmax.f32 %v2408_v2, %v2409_v27 }
 0x198   : > { %v2569_v31 = vmax.f32 %v2351_v35, %v2379_v24  ;;  %v2571_v18 = vmax.f32 %v2365_v51, %v2393_v49  ;;  %v2586_v20 = vpack.c.bf16 %v2570_v22, %v2570_v22  ;;  %v2404_v34 = vrot.slane %v2403_v10, 2 }
 0x199   : > { %v2398_v36 = vmax.f32 %v2396_v1, %v2397_v8  ;;  %v2196_v38 = vcombine.high %v2129_v29, %v2129_v29  ;;  %v2203_v55 = vrot.slane %v2129_v29, %v4082_v25  ;;  %v4133_v28 = vpop.f32.mrb[88].mxu1  ;;  %v2411_v37 = vrot.slane %v2410_v23, 2 }
 0x19a   : > { %v2585_v39 = vpack.c.bf16 %v2569_v31, %v2569_v31  ;;  %v2587_v41 = vpack.c.bf16 %v2571_v18, %v2571_v18  ;;  %v2630_v33 = vrot.slane %v2586_v20, %v4082_v25  ;;  %v2405_v30 = vmax.f32 %v2403_v10, %v2404_v34  ;;  %v3496_v46 = vpop.f32.mrb[89].mxu1 }
 0x19b   : > { %v2399_v48 = vrot.slane %v2398_v36, 1  ;;  %v2210_v35 = vrot.slane %v2196_v38, %v4082_v25  ;;  %v2211_v40 = vcombine.high %v2203_v55, %v2203_v55  ;;  %v4137_v51 = vpop.f32.mrb[90].mxu1  ;;  %v2372_v63 = vmax.f32 %v4112_v43, %v2371_v47 }
 0x19c   : > { %v2623_v54 = vrot.slane %v2585_v39, %v4082_v25  ;;  %v2637_v45 = vrot.slane %v2587_v41, %v4082_v25  ;;  %v2742_v42 = vrot.slane %v2630_v33, %v4082_v25  ;;  %v2406_v53 = vrot.slane %v2405_v30, 1  ;;  %v3497_v62 = vpop.f32.mrb[91].mxu1 }
 0x19d   : > { %v2400_v32 = vmax.f32 %v2398_v36, %v2399_v48  ;;  %v2212_v52 = vcombine.high %v2210_v35, %v2210_v35  ;;  %v2415_v57 = vsel %vm2344_vm8, %v2203_v55, -inf  ;;  %v2412_v12 = vmax.f32 %v2410_v23, %v2411_v37 }
 0x19e   : > { %v2735_v59 = vrot.slane %v2623_v54, %v4082_v25  ;;  %v2749_v61 = vrot.slane %v2637_v45, %v4082_v25  ;;  %v2842_v11 = vunpack.c.l.b16 %v2742_v42  ;;  %v4146_v60 = vmax.f32 %v2405_v30, %v2406_v53 }
 0x19f   : > { %v2572_v13 = vmax.f32 %v2372_v63, %v2400_v32  ;;  %v2416_v1 = vrot.slane %v2415_v57, 4  ;;  %v2422_v2 = vsel %vm2344_vm8, %v2211_v40, -inf  ;;  %v2429_v22 = vsel %vm2344_vm8, %v2212_v52, -inf }
 0x1a0   : > { %v2841_v9 = vunpack.c.l.b16 %v2735_v59  ;;  %v2843_v17 = vunpack.c.l.b16 %v2749_v61  ;;  %v2857_v24 = vrot.slane %v2842_v11, 7  ;;  %v2423_v43 = vrot.slane %v2422_v2, 4 }
 0x1a1   : > { %v2588_v47 = vpack.c.bf16 %v2572_v13, %v2572_v13  ;;  %v2417_v49 = vmax.f32 %v2415_v57, %v2416_v1  ;;  %v2120_v10 = vadd.f32 %v4077_v15, %v2083_v16  ;;  %v2430_v29 = vrot.slane %v2429_v22, 4 }
 0x1a2   : > { %v2859_v14 = vsel %vm2858_vm9, %v2857_v24, %v2841_v9  ;;  %v2860_v8 = vrot.slane %v2843_v17, 6  ;;  %v2424_v27 = vmax.f32 %v2422_v2, %v2423_v43  ;;  %v2413_v31 = vrot.slane %v2412_v12, 1 }
 0x1a3   : > { %v2644_v18 = vrot.slane %v2588_v47, %v4082_v25  ;;  %v2418_v20 = vrot.slane %v2417_v49, 2  ;;  %v2130_v34 = vmax.f32 %v2120_v10, 0.0  ;;  %v2431_v38 = vmax.f32 %v2429_v22, %v2430_v29 }
 0x1a4   : > { %v2862_v36 = vsel %vm2861_vm10, %v2860_v8, %v2859_v14  ;;  %v2425_v23 = vrot.slane %v2424_v27, 2  ;;  %v1882_v55 = vadd.f32 %v4105_v19, %v4064_v44  ;;  %v1883_v37 = vadd.f32 %v4116_v56, %v4066_v50 }
 0x1a5   : > { %v2756_v16 = vrot.slane %v2644_v18, %v4082_v25  ;;  %v2419_v39 = vmax.f32 %v2417_v49, %v2418_v20  ;;  %v2213_v41 = vcombine.high %v2130_v34, %v2130_v34  ;;  %v2220_v33 = vrot.slane %v2130_v34, %v4082_v25 }
 0x1a6   : > { %v2426_v30 = vmax.f32 %v2424_v27, %v2425_v23  ;;  %v2432_v46 = vrot.slane %v2431_v38, 2  ;;  %v2084_v48 = vadd.f32 %v4095_v26, %v1882_v55  ;;  %v2414_v19 = vmax.f32 %v2412_v12, %v2413_v31 }
 0x1a7   : > { %v2844_v35 = vunpack.c.l.b16 %v2756_v16  ;;  %v2420_v40 = vrot.slane %v2419_v39, 1  ;;  %v2227_v54 = vrot.slane %v2213_v41, %v4082_v25  ;;  %v2228_v45 = vcombine.high %v2220_v33, %v2220_v33 }
 0x1a8   : > { %v2433_v44 = vmax.f32 %v2431_v38, %v2432_v46  ;;  %v2436_v42 = vsel %vm2344_vm8, %v2220_v33, -inf  ;;  %v2121_v53 = vadd.f32 %v4077_v15, %v2084_v48  ;;  %v2427_v63 = vrot.slane %v2426_v30, 1 }
 0x1a9   : > { %v2863_v62 = vrot.slane %v2844_v35, 5  ;;  %v2437_v32 = vrot.slane %v2436_v42, 4  ;;  %v2443_v26 = vsel %vm2344_vm8, %v2228_v45, -inf  ;;  %v2421_v52 = vmax.f32 %v2419_v39, %v2420_v40 }
 0x1aa   : > { %v2434_v57 = vrot.slane %v2433_v44, 1  ;;  %v2444_v50 = vrot.slane %v2443_v26, 4  ;;  %v2450_v56 = vsel %vm2344_vm8, %v2227_v54, -inf  ;;  %v2131_v12 = vmax.f32 %v2121_v53, 0.0 }
 0x1ab   : > { %v2865_v59 = vsel %vm2864_vm11, %v2863_v62, %v2862_v36  ;;  %v2438_v61 = vmax.f32 %v2436_v42, %v2437_v32  ;;  %v2451_v11 = vrot.slane %v2450_v56, 4  ;;  %v2085_v9 = vadd.f32 %v4107_v4, %v1883_v37 }
 0x1ac   : > { %v2884_v13 = vpack.c.b16 %v2865_v59, %v2865_v59  ;;  %v2435_v1 = vmax.f32 %v2433_v44, %v2434_v57  ;;  %v2445_v2 = vmax.f32 %v2443_v26, %v2444_v50  ;;  %v2229_v43 = vcombine.high %v2131_v12, %v2131_v12 }
 0x1ad   : > { %v2439_v17 = vrot.slane %v2438_v61, 2  ;;  %v2452_v24 = vmax.f32 %v2450_v56, %v2451_v11  ;;  %v2236_v47 = vrot.slane %v2131_v12, %v4082_v25  ;;  %v2122_v10 = vadd.f32 %v4077_v15, %v2085_v9 }
 0x1ae   : > { %3186 = vst.sshfl [vmem:[%s4170_s13] sm:$0x3 pattern:$0x76325410] %v2884_v13  ;;  %v2573_v49 = vmax.f32 %v4146_v60, %v2435_v1  ;;  %v2446_v22 = vrot.slane %v2445_v2, 2  ;;  %v4180_v14 = vadd.f32 %v4122_v3, %v4068_v58  ;;  %v2243_v29 = vrot.slane %v2229_v43, %v4082_v25 }
 0x1af   : > { %v2440_v8 = vmax.f32 %v2438_v61, %v2439_v17  ;;  %v2453_v27 = vrot.slane %v2452_v24, 2  ;;  %v2244_v4 = vcombine.high %v2236_v47, %v2236_v47  ;;  %v2428_v31 = vmax.f32 %v2426_v30, %v2427_v63 }
 0x1b0   : > { %v2589_v18 = vpack.c.bf16 %v2573_v49, %v2573_v49  ;;  %v2447_v20 = vmax.f32 %v2445_v2, %v2446_v22  ;;  %v2457_v34 = vsel %vm2344_vm8, %v2236_v47, -inf  ;;  %v2245_v60 = vcombine.high %v2243_v29, %v2243_v29 }
 0x1b1   : > { %v2441_v36 = vrot.slane %v2440_v8, 1  ;;  %v2454_v23 = vmax.f32 %v2452_v24, %v2453_v27  ;;  %v2458_v38 = vrot.slane %v2457_v34, 4  ;;  %v2464_v16 = vsel %vm2344_vm8, %v2244_v4, -inf }
 0x1b2   : > { %v2448_v55 = vrot.slane %v2447_v20, 1  ;;  %v2471_v58 = vsel %vm2344_vm8, %v2243_v29, -inf  ;;  %v2132_v3 = vmax.f32 %v2122_v10, 0.0  ;;  %v2465_v46 = vrot.slane %v2464_v16, 4 }
 0x1b3   : > { %v2442_v39 = vmax.f32 %v2440_v8, %v2441_v36  ;;  %v2455_v41 = vrot.slane %v2454_v23, 1  ;;  %v2459_v33 = vmax.f32 %v2457_v34, %v2458_v38  ;;  %v2651_v30 = vrot.slane %v2589_v18, %v4082_v25 }
 0x1b4   : > { %v2449_v48 = vmax.f32 %v2447_v20, %v2448_v55  ;;  %v2472_v37 = vrot.slane %v2471_v58, 4  ;;  %v2478_v35 = vsel %vm2344_vm8, %v2245_v60, -inf  ;;  %v2466_v44 = vmax.f32 %v2464_v16, %v2465_v46 }
 0x1b5   : > { %v2456_v40 = vmax.f32 %v2454_v23, %v2455_v41  ;;  %v2574_v54 = vmax.f32 %v2414_v19, %v2442_v39  ;;  %v2460_v45 = vrot.slane %v2459_v33, 2  ;;  %v2479_v62 = vrot.slane %v2478_v35, 4 }
 0x1b6   : > { %v2575_v42 = vmax.f32 %v2421_v52, %v2449_v48  ;;  %v2473_v53 = vmax.f32 %v2471_v58, %v2472_v37  ;;  %v2763_v26 = vrot.slane %v2651_v30, %v4082_v25  ;;  %v2246_v56 = vcombine.high %v2132_v3, %v2132_v3 }
 0x1b7   : > { %v2576_v63 = vmax.f32 %v2428_v31, %v2456_v40  ;;  %v2590_v32 = vpack.c.bf16 %v2574_v54, %v2574_v54  ;;  %v2461_v50 = vmax.f32 %v2459_v33, %v2460_v45  ;;  %v2467_v11 = vrot.slane %v2466_v44, 2 }
 0x1b8   : > { %v2591_v57 = vpack.c.bf16 %v2575_v42, %v2575_v42  ;;  %v2474_v13 = vrot.slane %v2473_v53, 2  ;;  %v2480_v19 = vmax.f32 %v2478_v35, %v2479_v62  ;;  %v2253_v1 = vrot.slane %v2132_v3, %v4082_v25 }
 0x1b9   : > { %v2592_v59 = vpack.c.bf16 %v2576_v63, %v2576_v63  ;;  %v2658_v61 = vrot.slane %v2590_v32, %v4082_v25  ;;  %v2845_v9 = vunpack.c.l.b16 %v2763_v26  ;;  %v2462_v24 = vrot.slane %v2461_v50, 1 }
 0x1ba   : > { %v2665_v12 = vrot.slane %v2591_v57, %v4082_v25  ;;  %v2260_v43 = vrot.slane %v2246_v56, %v4082_v25  ;;  %v2468_v22 = vmax.f32 %v2466_v44, %v2467_v11  ;;  %v2261_v10 = vcombine.high %v2253_v1, %v2253_v1 }
 0x1bb   : > { %v2672_v52 = vrot.slane %v2592_v59, %v4082_v25  ;;  %v2770_v2 = vrot.slane %v2658_v61, %v4082_v25  ;;  %v2475_v27 = vmax.f32 %v2473_v53, %v2474_v13  ;;  %v2481_v29 = vrot.slane %v2480_v19, 2 }
 0x1bc   : > { %v2777_v17 = vrot.slane %v2665_v12, %v4082_v25  ;;  %v2262_v4 = vcombine.high %v2260_v43, %v2260_v43  ;;  %v2485_v20 = vsel %vm2344_vm8, %v2261_v10, -inf  ;;  %v2492_v34 = vsel %vm2344_vm8, %v2260_v43, -inf }
 0x1bd   : > { %v2784_v47 = vrot.slane %v2672_v52, %v4082_v25  ;;  %v2846_v49 = vunpack.c.l.b16 %v2770_v2  ;;  %v2486_v23 = vrot.slane %v2485_v20, 4  ;;  %v2493_v60 = vrot.slane %v2492_v34, 4 }
 0x1be   : > { %v2847_v8 = vunpack.c.l.b16 %v2777_v17  ;;  %v2499_v38 = vsel %vm2344_vm8, %v2262_v4, -inf  ;;  %v2086_v3 = vadd.f32 %v4109_v21, %v4180_v14  ;;  %v2469_v41 = vrot.slane %v2468_v22, 1 }
 0x1bf   : > { %v2848_v31 = vunpack.c.l.b16 %v2784_v47  ;;  %v2866_v18 = vrot.slane %v2846_v49, 7  ;;  %v2500_v58 = vrot.slane %v2499_v38, 4  ;;  %v2487_v33 = vmax.f32 %v2485_v20, %v2486_v23 }
 0x1c0   : > { %v2868_v36 = vrot.slane %v2847_v8, 6  ;;  %v2494_v46 = vmax.f32 %v2492_v34, %v2493_v60  ;;  %v2123_v37 = vadd.f32 %v4077_v15, %v2086_v3  ;;  %v1885_v35 = vadd.f32 %v4133_v28, %v4070_v0 }
 0x1c1   : > { %v2867_v55 = vsel %vm2858_vm9, %v2866_v18, %v2845_v9  ;;  %v2870_v16 = vrot.slane %v2848_v31, 5  ;;  %v2501_v48 = vmax.f32 %v2499_v38, %v2500_v58  ;;  %v2488_v54 = vrot.slane %v2487_v33, 2 }
 0x1c2   : > { %v2869_v39 = vsel %vm2861_vm10, %v2868_v36, %v2867_v55  ;;  %v2495_v45 = vrot.slane %v2494_v46, 2  ;;  %v1886_v21 = vadd.f32 %v4137_v51, %v4072_v7  ;;  %v2463_v14 = vmax.f32 %v2461_v50, %v2462_v24 }
 0x1c3   : > { %v2871_v30 = vsel %vm2864_vm11, %v2870_v16, %v2869_v39  ;;  %v2502_v44 = vrot.slane %v2501_v48, 2  ;;  %v2133_v42 = vmax.f32 %v2123_v37, 0.0  ;;  %v2087_v53 = vadd.f32 %v4124_v6, %v1885_v35 }
 0x1c4   : > { %v2885_v40 = vpack.c.b16 %v2871_v30, %v2871_v30  ;;  %v2476_v62 = vrot.slane %v2475_v27, 1  ;;  %v2489_v63 = vmax.f32 %v2487_v33, %v2488_v54  ;;  %v2496_v32 = vmax.f32 %v2494_v46, %v2495_v45 }
 0x1c5   : > { %v2088_v26 = vadd.f32 %v4129_v5, %v1886_v21  ;;  %v2503_v57 = vmax.f32 %v2501_v48, %v2502_v44  ;;  %v2263_v56 = vcombine.high %v2133_v42, %v2133_v42  ;;  %v2270_v0 = vrot.slane %v2133_v42, %v4082_v25 }
 0x1c6   : > { %3187 = vst.sshfl [vmem:[%s4170_s13 + $0x2] sm:$0x3 pattern:$0x76325410] %v2885_v40  ;;  %v2124_v28 = vadd.f32 %v4077_v15, %v2087_v53  ;;  %v2470_v59 = vmax.f32 %v2468_v22, %v2469_v41  ;;  %v2482_v61 = vmax.f32 %v2480_v19, %v2481_v29  ;;  %v2490_v7 = vrot.slane %v2489_v63, 1 }
 0x1c7   : > { %v2497_v51 = vrot.slane %v2496_v32, 1  ;;  %v2504_v50 = vrot.slane %v2503_v57, 1  ;;  %v2277_v11 = vrot.slane %v2263_v56, %v4082_v25  ;;  %v2506_v6 = vsel %vm2344_vm8, %v2270_v0, -inf }
 0x1c8   : > { %v2134_v12 = vmax.f32 %v2124_v28, 0.0  ;;  %v2477_v13 = vmax.f32 %v2475_v27, %v2476_v62  ;;  %v2491_v1 = vmax.f32 %v2489_v63, %v2490_v7  ;;  %v2507_v5 = vrot.slane %v2506_v6, 4 }
 0x1c9   : > { %v2498_v52 = vmax.f32 %v2496_v32, %v2497_v51  ;;  %v2505_v2 = vmax.f32 %v2503_v57, %v2504_v50  ;;  %v2278_v9 = vcombine.high %v2277_v11, %v2277_v11  ;;  %v2513_v17 = vsel %vm2344_vm8, %v2277_v11, -inf }
 0x1ca   : > { %v2279_v24 = vcombine.high %v2134_v12, %v2134_v12  ;;  %v2577_v43 = vmax.f32 %v2463_v14, %v2491_v1  ;;  %v2508_v19 = vmax.f32 %v2506_v6, %v2507_v5  ;;  %v2514_v49 = vrot.slane %v2513_v17, 4 }
 0x1cb   : > { %v2578_v47 = vmax.f32 %v2470_v59, %v2498_v52  ;;  %v2579_v22 = vmax.f32 %v2477_v13, %v2505_v2  ;;  %v2520_v10 = vsel %vm2344_vm8, %v2278_v9, -inf  ;;  %v2286_v8 = vrot.slane %v2134_v12, %v4082_v25 }
 0x1cc   : > { %v2593_v29 = vpack.c.bf16 %v2577_v43, %v2577_v43  ;;  %v2509_v27 = vrot.slane %v2508_v19, 2  ;;  %v2293_v31 = vrot.slane %v2279_v24, %v4082_v25  ;;  %v2483_v18 = vrot.slane %v2482_v61, 1 }
 0x1cd   : > { %v2594_v4 = vpack.c.bf16 %v2578_v47, %v2578_v47  ;;  %v2595_v20 = vpack.c.bf16 %v2579_v22, %v2579_v22  ;;  %v2294_v34 = vcombine.high %v2286_v8, %v2286_v8  ;;  %v2125_v36 = vadd.f32 %v4077_v15, %v2088_v26 }
 0x1ce   : > { %v2679_v23 = vrot.slane %v2593_v29, %v4082_v25  ;;  %v2510_v38 = vmax.f32 %v2508_v19, %v2509_v27  ;;  %v2515_v55 = vmax.f32 %v2513_v17, %v2514_v49  ;;  %v2521_v58 = vrot.slane %v2520_v10, 4 }
 0x1cf   : > { %v2686_v60 = vrot.slane %v2594_v4, %v4082_v25  ;;  %v2693_v16 = vrot.slane %v2595_v20, %v4082_v25  ;;  %v2527_v3 = vsel %vm2344_vm8, %v2286_v8, -inf  ;;  %v2534_v39 = vsel %vm2344_vm8, %v2294_v34, -inf }
 0x1d0   : > { %v2791_v41 = vrot.slane %v2679_v23, %v4082_v25  ;;  %v2511_v46 = vrot.slane %v2510_v38, 1  ;;  %v2295_v30 = vcombine.high %v2293_v31, %v2293_v31  ;;  %v2528_v48 = vrot.slane %v2527_v3, 4 }
 0x1d1   : > { %v2798_v33 = vrot.slane %v2686_v60, %v4082_v25  ;;  %v2805_v15 = vrot.slane %v2693_v16, %v4082_v25  ;;  %v2535_v37 = vrot.slane %v2534_v39, 4  ;;  %v2484_v40 = vmax.f32 %v2482_v61, %v2483_v18 }
 0x1d2   : > { %v2512_v54 = vmax.f32 %v2510_v38, %v2511_v46  ;;  %v2135_v45 = vmax.f32 %v2125_v36, 0.0  ;;  %v2516_v14 = vrot.slane %v2515_v55, 2  ;;  %v2522_v44 = vmax.f32 %v2520_v10, %v2521_v58 }
 0x1d3   : > { %v2850_v35 = vunpack.c.l.b16 %v2798_v33  ;;  %v2851_v21 = vunpack.c.l.b16 %v2805_v15  ;;  %v2849_v42 = vunpack.c.l.b16 %v2791_v41  ;;  %v2541_v63 = vsel %vm2344_vm8, %v2295_v30, -inf }
 0x1d4   : > { %v2580_v62 = vmax.f32 %v2484_v40, %v2512_v54  ;;  %v2529_v26 = vmax.f32 %v2527_v3, %v2528_v48  ;;  %v2536_v57 = vmax.f32 %v2534_v39, %v2535_v37  ;;  %v2542_v28 = vrot.slane %v2541_v63, 4 }
 0x1d5   : > { %v2872_v53 = vrot.slane %v2850_v35, 7  ;;  %v2874_v32 = vrot.slane %v2851_v21, 6  ;;  %v2296_v59 = vcombine.high %v2135_v45, %v2135_v45  ;;  %v2517_v7 = vmax.f32 %v2515_v55, %v2516_v14 }
 0x1d6   : > { %v2596_v0 = vpack.c.bf16 %v2580_v62, %v2580_v62  ;;  %v2523_v61 = vrot.slane %v2522_v44, 2  ;;  %v2303_v50 = vrot.slane %v2135_v45, %v4082_v25  ;;  %v2543_v6 = vmax.f32 %v2541_v63, %v2542_v28 }
 0x1d7   : > { %v2873_v56 = vsel %vm2858_vm9, %v2872_v53, %v2849_v42  ;;  %v2310_v12 = vrot.slane %v2296_v59, %v4082_v25  ;;  %v2530_v13 = vrot.slane %v2529_v26, 2  ;;  %v2537_v1 = vrot.slane %v2536_v57, 2 }
 0x1d8   : > { %v2875_v51 = vsel %vm2861_vm10, %v2874_v32, %v2873_v56  ;;  %v2700_v11 = vrot.slane %v2596_v0, %v4082_v25  ;;  %v2311_v52 = vcombine.high %v2303_v50, %v2303_v50  ;;  %v2548_v5 = vsel %vm2344_vm8, %v2303_v50, -inf }
 0x1d9   : > { %v2544_v9 = vrot.slane %v2543_v6, 2  ;;  %v2549_v17 = vrot.slane %v2548_v5, 4  ;;  %v2562_v24 = vsel %vm2344_vm8, %v2310_v12, -inf  ;;  %v2518_v43 = vrot.slane %v2517_v7, 1 }
 0x1da   : > { %v2812_v2 = vrot.slane %v2700_v11, %v4082_v25  ;;  %v2524_v47 = vmax.f32 %v2522_v44, %v2523_v61  ;;  %v2555_v19 = vsel %vm2344_vm8, %v2311_v52, -inf  ;;  %v2563_v49 = vrot.slane %v2562_v24, 4 }
 0x1db   : > { %v2545_v10 = vmax.f32 %v2543_v6, %v2544_v9  ;;  %v2550_v8 = vmax.f32 %v2548_v5, %v2549_v17  ;;  %v2556_v29 = vrot.slane %v2555_v19, 4  ;;  %v2531_v4 = vmax.f32 %v2529_v26, %v2530_v13 }
 0x1dc   : > { %v2852_v22 = vunpack.c.l.b16 %v2812_v2  ;;  %v2538_v27 = vmax.f32 %v2536_v57, %v2537_v1  ;;  %v2564_v31 = vmax.f32 %v2562_v24, %v2563_v49  ;;  %v2519_v23 = vmax.f32 %v2517_v7, %v2518_v43 }
 0x1dd   : > { %v2546_v20 = vrot.slane %v2545_v10, 1  ;;  %v2551_v34 = vrot.slane %v2550_v8, 2  ;;  %v2557_v36 = vmax.f32 %v2555_v19, %v2556_v29  ;;  %v2525_v60 = vrot.slane %v2524_v47, 1 }
 0x1de   : > { %v2876_v18 = vrot.slane %v2852_v22, 5  ;;  %v2565_v38 = vrot.slane %v2564_v31, 2  ;;  %v2539_v41 = vrot.slane %v2538_v27, 1  ;;  %v2532_v46 = vrot.slane %v2531_v4, 1 }
 0x1df   : > { %v2547_v16 = vmax.f32 %v2545_v10, %v2546_v20  ;;  %v2552_v58 = vmax.f32 %v2550_v8, %v2551_v34  ;;  %v2558_v3 = vrot.slane %v2557_v36, 2  ;;  %v2526_v40 = vmax.f32 %v2524_v47, %v2525_v60 }
 0x1e0   : > { %v2877_v55 = vsel %vm2864_vm11, %v2876_v18, %v2875_v51  ;;  %v2566_v33 = vmax.f32 %v2564_v31, %v2565_v38  ;;  %v2540_v21 = vmax.f32 %v2538_v27, %v2539_v41  ;;  %v2533_v44 = vmax.f32 %v2531_v4, %v2532_v46 }
 0x1e1   : > { %v2886_v39 = vpack.c.b16 %v2877_v55, %v2877_v55  ;;  %v2581_v30 = vmax.f32 %v2519_v23, %v2547_v16  ;;  %v2553_v15 = vrot.slane %v2552_v58, 1  ;;  %v2559_v48 = vmax.f32 %v2557_v36, %v2558_v3 }
 0x1e2   : > { %v2567_v37 = vrot.slane %v2566_v33, 1 }
 0x1e3   : > { %3188 = vst.sshfl [vmem:[%s4170_s13 + $0x4] sm:$0x3 pattern:$0x76325410] %v2886_v39  ;;  %v2597_v35 = vpack.c.bf16 %v2581_v30, %v2581_v30  ;;  %v2554_v54 = vmax.f32 %v2552_v58, %v2553_v15  ;;  %v2560_v45 = vrot.slane %v2559_v48, 1 }
 0x1e4   : > { %v2568_v14 = vmax.f32 %v2566_v33, %v2567_v37 }
 0x1e5   : > { %v2707_v42 = vrot.slane %v2597_v35, %v4082_v25  ;;  %v2561_v53 = vmax.f32 %v2559_v48, %v2560_v45  ;;  %v2582_v62 = vmax.f32 %v2526_v40, %v2554_v54 }
 0x1e6   : > { %v2584_v63 = vmax.f32 %v2540_v21, %v2568_v14 }
 0x1e7   : > { %v2583_v32 = vmax.f32 %v2533_v44, %v2561_v53  ;;  %v2598_v26 = vpack.c.bf16 %v2582_v62, %v2582_v62  ;;  %v2819_v56 = vrot.slane %v2707_v42, %v4082_v25 }
 0x1e8   : > { %v2600_v57 = vpack.c.bf16 %v2584_v63, %v2584_v63 }
 0x1e9   : > { %v2599_v0 = vpack.c.bf16 %v2583_v32, %v2583_v32  ;;  %v2714_v28 = vrot.slane %v2598_v26, %v4082_v25  ;;  %v2853_v50 = vunpack.c.l.b16 %v2819_v56 }
 0x1ea   : > { %v2728_v59 = vrot.slane %v2600_v57, %v4082_v25 }
 0x1eb   : > { %v2721_v7 = vrot.slane %v2599_v0, %v4082_v25  ;;  %v2826_v61 = vrot.slane %v2714_v28, %v4082_v25 }
 0x1ec   : > { %v2840_v51 = vrot.slane %v2728_v59, %v4082_v25 }
 0x1ed   : > { %v2833_v11 = vrot.slane %v2721_v7, %v4082_v25  ;;  %v2854_v6 = vunpack.c.l.b16 %v2826_v61 }
 0x1ee   : > { %v2856_v12 = vunpack.c.l.b16 %v2840_v51 }
 0x1ef   : > { %v2855_v13 = vunpack.c.l.b16 %v2833_v11  ;;  %v2878_v1 = vrot.slane %v2854_v6, 7 }
 0x1f0   : > { %v2882_v52 = vrot.slane %v2856_v12, 5 }
 0x1f1   : > { %v2879_v5 = vsel %vm2858_vm9, %v2878_v1, %v2853_v50  ;;  %v2880_v2 = vrot.slane %v2855_v13, 6 }
 0x1f3   : > { %v2881_v9 = vsel %vm2861_vm10, %v2880_v2, %v2879_v5 }
 0x1f4   : > { %v2883_v17 = vsel %vm2864_vm11, %v2882_v52, %v2881_v9 }
 0x1f5   : > { %v2887_v24 = vpack.c.b16 %v2883_v17, %v2883_v17 }
 0x1f7   : > { %3189 = vst.sshfl [vmem:[%s4170_s13 + $0x6] sm:$0x3 pattern:$0x76325410] %v2887_v24 }
 0x1f8 PF: > { %s13_s12 = sadd.s32 1, %s3641_s12  }
 0x1f9   : > { %p10_p4 = scmp.ge.s32.totalorder %s13_s12, 4  }
 0x1fb   :  { %12 = sbr.rel (!%p10_p4) target bundleno = 1 (0x1), region = 70 }

// kernel: ocr_forward.11
= control target key start
LH: loop header
LB: loop body
LE: loop exit
PB: predicated region body
PF: predicated region fallthrough
CT: control target
= control target key end

     0   :  { %v210_v0 = vmov 0.0   ;;  %vm211_vm0 = vmmov 0   ;;  %s268_s1 = inlined_call_operand.vmem [shape: bf16[128,128], index: 1, kind: input, shape index: {}]   ;;  %s269_s0 = inlined_call_operand.vmem [shape: bf16[16,128], index: 0, kind: input, shape index: {}]   ;;  %s270_s2 = inlined_call_operand.vmem [shape: f32[1,128], index: 2, kind: input, shape index: {}]   ;;  %s271_s3 = inlined_call_operand.vmem [shape: f32[16,128], index: 3, kind: output, shape index: {}]  }
   0x1   :  { %179 = vmatprep.subr.bf16.mxu0 %v210_v0  ;;  %v201_v1 = vld [vmem:[%s268_s1] sm:$0xff]   ;;  %195 = vmatprep.mubr.msk.bf16.mxu0 %vm211_vm0, %v210_v0  ;;  %v202_v2 = vld [vmem:[%s268_s1 + $0x8] sm:$0xff]   ;;  %v203_v3 = vld [vmem:[%s268_s1 + $0x10] sm:$0xff]  }
   0x2   :  { %180 = vmatpush3.bf16.msra.mxu0 %v201_v1  ;;  %v204_v4 = vld [vmem:[%s268_s1 + $0x18] sm:$0xff]   ;;  %v205_v5 = vld [vmem:[%s268_s1 + $0x20] sm:$0xff]   ;;  %v206_v6 = vld [vmem:[%s268_s1 + $0x28] sm:$0xff]  }
   0x3   :  { %181 = vmatprep.subr.bf16.mxu0 %v210_v0  ;;  %v207_v7 = vld [vmem:[%s268_s1 + $0x30] sm:$0xff]   ;;  %v208_v8 = vld [vmem:[%s268_s1 + $0x38] sm:$0xff]   ;;  %v209_v9 = vld [vmem:[%s269_s0] sm:$0xff]  }
   0x4   :  { %v169_v10 = vld [vmem:[%s270_s2] ss:$0 sm:$0xff] }
   0x6   :  { %182 = vmatpush3.bf16.msra.mxu0 %v202_v2 }
   0x7   :  { %183 = vmatprep.subr.bf16.mxu0 %v210_v0 }
   0xa   :  { %184 = vmatpush3.bf16.msra.mxu0 %v203_v3 }
   0xb   :  { %185 = vmatprep.subr.bf16.mxu0 %v210_v0 }
   0xe   :  { %186 = vmatpush3.bf16.msra.mxu0 %v204_v4 }
   0xf   :  { %187 = vmatprep.subr.bf16.mxu0 %v210_v0 }
  0x12   :  { %188 = vmatpush3.bf16.msra.mxu0 %v205_v5 }
  0x13   :  { %189 = vmatprep.subr.bf16.mxu0 %v210_v0 }
  0x16   :  { %190 = vmatpush3.bf16.msra.mxu0 %v206_v6 }
  0x17   :  { %191 = vmatprep.subr.bf16.mxu0 %v210_v0 }
  0x1a   :  { %192 = vmatpush3.bf16.msra.mxu0 %v207_v7 }
  0x1b   :  { %193 = vmatprep.subr.bf16.mxu0 %v210_v0 }
  0x1e   :  { %194 = vmatpush3.bf16.msra.mxu0 %v208_v8 }
  0x21   :  { %196 = vmatmul.mubr.bf16.vlgmr.msra.gmra.mrb[0].mxu0 %v209_v9 }
  0xf4   :  { %v129_v11 = vpop.f32.mrb[0].mxu0 }
  0xf5   :  { %v152_v12 = vadd.f32 %v169_v10, %v129_v11  ;;  %v197_v13 = vpop.f32.mrb[1].mxu0 }
  0xf6   :  { %v132_v14 = vpop.f32.mrb[2].mxu0 }
  0xf7   :  { %154 = vst [vmem:[%s271_s3] sm:$0xff] %v152_v12  ;;  %v153_v15 = vadd.f32 %v169_v10, %v132_v14  ;;  %v198_v16 = vpop.f32.mrb[3].mxu0 }
  0xf9   :  { %155 = vst [vmem:[%s271_s3 + $0x8] sm:$0xff] %v153_v15 }

// kernel: ocr_forward.12
= control target key start
LH: loop header
LB: loop body
LE: loop exit
PB: predicated region body
PF: predicated region fallthrough
CT: control target
= control target key end

     0   :  { %vm11_vm0 = vcmask 254976   ;;  %v522_v0 = vmov 0.0   ;;  %s543_s9 = smov 0   ;;  %s618_s0 = inlined_call_operand.vmem [shape: f32[4,4,2,32], index: 0, kind: input, shape index: {}]   ;;  %s619_s1 = inlined_call_operand.vmem [shape: f32[4,32,32], index: 1, kind: input, shape index: {}]   ;;  %s620_s2 = inlined_call_operand.vmem [shape: f32[4,2,32], index: 2, kind: output, shape index: {}]  }
   0x1   :  { %12 = vst.msk [vmem:[#allocation2] sm:$0x3] %vm11_vm0, %v522_v0  ;;  %13 = vst.msk [vmem:[#allocation3] sm:$0x3] %vm11_vm0, %v522_v0 }
   0x2 LB: > { %v27_v1 = vld [vmem:[%s619_s1] sm:$0xff]  ;;  %v28_v2 = vld [vmem:[%s619_s1 + $0x8] sm:$0xff]  ;;  %v523_v4 = vmov 0.0|0.0   ;;  %v29_v7 = vld [vmem:[%s619_s1 + $0x10] sm:$0xff]  ;;  %vm524_vm1 = vmmov 0   ;;  %v525_v12 = vmov 0.0   ;;  %s520_s9 = sphi %s543_s9, %s19_s9  }
   0x3   : > { %v379_v3 = vld [vmem:[%s619_s1 + $0x20] sm:$0xff]  ;;  %462 = vmatprep.subr.bf16.mxu0 %v523_v4  ;;  %468 = vmatprep.subr.bf16.mxu1 %v523_v4  ;;  %v463_v5 = vpack.c.bf16 %v28_v2, %v27_v1  ;;  %v380_v6 = vld [vmem:[%s619_s1 + $0x28] sm:$0xff]  ;;  %v30_v8 = vld [vmem:[%s619_s1 + $0x18] sm:$0xff]  ;;  %vm31_vm2 = vcmask 261120   ;;  %s377_s15 = sshll.u32 %s520_s9, 3  ;;  %s397_s19 = sshll.u32 %s520_s9, 1 }
   0x4   : > { %v469_v9 = vpack.c.bf16 %v380_v6, %v379_v3  ;;  %v381_v10 = vld [vmem:[%s619_s1 + $0x30] sm:$0xff]  ;;  %v382_v11 = vld [vmem:[%s619_s1 + $0x38] sm:$0xff]  ;;  %426 = vmatprep.mubr.msk.f32.mxu0 %vm524_vm1, %v525_v12  ;;  %437 = vmatprep.mubr.msk.f32.mxu1 %vm524_vm1, %v525_v12  ;;  %v466_v13 = vpack.c.bf16 %v30_v8, %v29_v7  ;;  %v384_v15 = vld [vmem:[%s619_s1 + $0x40] sm:$0xff]  ;;  %s22_s18 = scalar_lea.vmem %s618_s0, %s377_s15  ;;  %s362_s22 = scalar_lea.vmem %s620_s2, %s397_s19 }
   0x5   : > { %464 = vmatpush3.bf16.msra.mxu0 %v463_v5  ;;  %v472_v14 = vpack.c.bf16 %v382_v11, %v381_v10  ;;  %v385_v16 = vld [vmem:[%s619_s1 + $0x48] sm:$0xff]  ;;  %v389_v17 = vld [vmem:[%s619_s1 + $0x60] sm:$0xff]  ;;  %v386_v22 = vld [vmem:[%s619_s1 + $0x50] sm:$0xff]  ;;  %s19_s9 = sadd.s32 1, %s520_s9  }
   0x6   : > { %470 = vmatpush3.bf16.msra.mxu1 %v469_v9  ;;  %465 = vmatprep.subr.bf16.mxu0 %v523_v4  ;;  %v390_v18 = vld [vmem:[%s619_s1 + $0x68] sm:$0xff]  ;;  %v475_v20 = vpack.c.bf16 %v385_v16, %v384_v15  ;;  %v387_v23 = vld [vmem:[%s619_s1 + $0x58] sm:$0xff]  ;;  %v391_v24 = vld [vmem:[%s619_s1 + $0x70] sm:$0xff]  ;;  %p16_p0 = scmp.ge.s32.totalorder %s19_s9, 4  }
   0x7   : > { %471 = vmatprep.subr.bf16.mxu1 %v523_v4  ;;  %v481_v21 = vpack.c.bf16 %v390_v18, %v389_v17  ;;  %v392_v25 = vld [vmem:[%s619_s1 + $0x78] sm:$0xff]  ;;  %v478_v26 = vpack.c.bf16 %v387_v23, %v386_v22  ;;  %v23_v28 = vld [vmem:[%s22_s18] sm:$0x3]  ;;  %v24_v29 = vld [vmem:[%s22_s18 + $0x2] sm:$0x3] }
   0x8   : > { %v20_v19 = vld [vmem:[#allocation2] sm:$0x3]  ;;  %v484_v27 = vpack.c.bf16 %v392_v25, %v391_v24  ;;  %v26_v38 = vld [vmem:[%s22_s18 + $0x6] sm:$0x3]  ;;  %v25_v40 = vld [vmem:[%s22_s18 + $0x4] sm:$0x3] }
   0x9   : > { %467 = vmatpush3.bf16.msra.mxu0 %v466_v13  ;;  %v353_v53 = vld [vmem:[#allocation3] sm:$0x3] }
   0xa   : > { %473 = vmatpush3.bf16.msra.mxu1 %v472_v14  ;;  %474 = vmatprep.subr.bf16.mxu0 %v523_v4 }
   0xb   : > { %480 = vmatprep.subr.bf16.mxu1 %v523_v4 }
   0xc   : > { %427 = vmatmul.mubr.msk.f32.vlgmr.msra.gmra.mrb[0].mxu0 %vm31_vm2, %v20_v19 }
   0xd   : > { %438 = vmatmul.mubr.msk.f32.vlgmr.msra.gmra.mrb[0].mxu1 %vm31_vm2, %v20_v19  ;;  %476 = vmatpush3.bf16.msra.mxu0 %v475_v20 }
   0xe   : > { %482 = vmatpush3.bf16.msra.mxu1 %v481_v21  ;;  %477 = vmatprep.subr.bf16.mxu0 %v523_v4 }
   0xf   : > { %483 = vmatprep.subr.bf16.mxu1 %v523_v4  ;;  %448 = vmatprep.mubr.msk.f32.mxu0 %vm524_vm1, %v525_v12 }
  0x10   : > { %459 = vmatprep.mubr.msk.f32.mxu1 %vm524_vm1, %v525_v12 }
  0x11   : > { %479 = vmatpush3.bf16.msra.mxu0 %v478_v26 }
  0x12   : > { %485 = vmatpush3.bf16.msra.mxu1 %v484_v27 }
  0x14   : > { %449 = vmatmul.mubr.msk.f32.vlgmr.msra.gmra.mrb[2].mxu0 %vm31_vm2, %v20_v19 }
  0x15   : > { %460 = vmatmul.mubr.msk.f32.vlgmr.msra.gmra.mrb[2].mxu1 %vm31_vm2, %v20_v19 }
  0xdf   : > { %v101_v30 = vpop.f32.mrb[0].mxu0 }
  0xe0   : > { %v105_v31 = vadd.f32 %v101_v30, %v23_v28  ;;  %v177_v32 = vpop.f32.mrb[0].mxu1  ;;  %v428_v33 = vpop.f32.mrb[1].mxu0 }
  0xe1   : > { %v181_v34 = vadd.f32 %v177_v32, %v24_v29  ;;  %v439_v35 = vpop.f32.mrb[1].mxu1 }
  0xe2   : > { %v394_v36 = vmul.f32 -1.442695, %v105_v31 }
  0xe3   : > { %v395_v37 = vmul.f32 -1.442695, %v181_v34 }
  0xe4   : > { %498 = vpow2.f32 %v394_v36 }
  0xe5   : > { %500 = vpow2.f32 %v395_v37 }
  0xe7   : > { %v253_v39 = vpop.f32.mrb[2].mxu0 }
  0xe8   : > { %v329_v41 = vpop.f32.mrb[2].mxu1  ;;  %v450_v42 = vpop.f32.mrb[3].mxu0  ;;  %v257_v45 = vadd.f32 %v253_v39, %v25_v40 }
  0xe9   : > { %v333_v43 = vadd.f32 %v329_v41, %v26_v38  ;;  %v461_v44 = vpop.f32.mrb[3].mxu1 }
  0xeb   : > { %v396_v46 = vmul.f32 -1.442695, %v333_v43 }
  0xed   : > { %502 = vpow2.f32 %v396_v46 }
  0xee   : > { %v499_v47 = vpop.eup %498  ;;  %504 = vtanh.f32 %v257_v45 }
  0xef   : > { %v501_v48 = vpop.eup %500  ;;  %v337_v49 = vadd.f32 1.0, %v499_v47 }
  0xf0   : > { %v343_v50 = vadd.f32 1.0, %v501_v48 }
  0xf1   : > { %506 = vrcp.f32 %v337_v49 }
  0xf2   : > { %508 = vrcp.f32 %v343_v50 }
  0xf7   : > { %v503_v51 = vpop.eup %502 }
  0xf8   : > { %v505_v52 = vpop.eup %504  ;;  %v350_v55 = vadd.f32 1.0, %v503_v51 }
  0xfa   : > { %510 = vrcp.f32 %v350_v55 }
  0xfb   : > { %v507_v54 = vpop.eup %506 }
  0xfc   : > { %v509_v56 = vpop.eup %508  ;;  %v355_v57 = vmul.f32 %v507_v54, %v505_v52 }
  0xfd   : > { %v354_v58 = vmul.f32 %v509_v56, %v353_v53 }
  0xff   : > { %v356_v59 = vadd.f32 %v355_v57, %v354_v58 }
 0x101   : > { %512 = vtanh.f32 %v356_v59  ;;  %359 = vst.msk [vmem:[#allocation3] sm:$0x3] %vm11_vm0, %v356_v59 }
 0x104   : > { %v511_v60 = vpop.eup %510 }
 0x108   :  { %18 = sbr.rel (!%p16_p0) target bundleno = 2 (0x2), region = 40 }
 0x10b   : > { %v513_v61 = vpop.eup %512 }
 0x10c   : > { %v358_v62 = vmul.f32 %v513_v61, %v511_v60 }
 0x10e   : > { %360 = vst.msk [vmem:[#allocation2] sm:$0x3] %vm11_vm0, %v358_v62  ;;  %363 = vst.msk [vmem:[%s362_s22] sm:$0x3] %vm11_vm0, %v358_v62 }

// kernel: ocr_forward.8
= control target key start
LH: loop header
LB: loop body
LE: loop exit
PB: predicated region body
PF: predicated region fallthrough
CT: control target
= control target key end

     0   :  { %s8805_s12 = smov 0   ;;  %s10821_s0 = inlined_call_operand.vmem [shape: bf16[2,342,8], index: 0, kind: input, shape index: {}]   ;;  %s10822_s1 = inlined_call_operand.vmem [shape: bf16[9,8,64], index: 1, kind: input, shape index: {}]   ;;  %s10823_s2 = inlined_call_operand.vmem [shape: f32[1,64], index: 2, kind: input, shape index: {}]   ;;  %s10824_s3 = inlined_call_operand.vmem [shape: bf16[2,8,8,64], index: 3, kind: output, shape index: {}]  }
   0x1 LB: > { %s7586_s13 = sadd.s32 4294967295, %s8781_s12   ;;  %p7590_p0 = scmp.ge.s32.totalorder %s8781_s12, 1  ;;  %s8781_s12 = sphi %s8805_s12, %s13_s12  }
   0x2   : > { %p137_p1 = scmp.lt.s32.totalorder %s8781_s12, 3 }
   0x4   : > { %p138_p2 = pnand %p7590_p0, %p137_p1 }
   0x5   : > { %v281_v0 = vld [vmem:[%s10822_s1] sm:$0xf] (!%p138_p2)  ;;  %vm427_vm0 = vcmask (!%p138_p2), 1043456   ;;  %p161_p3 = scmp.lt.s32.totalorder (!%p138_p2), %s7586_s13, 1  ;;  %v7630_v2 = vld [vmem:[%s10822_s1 + $0x4] sm:$0xf] (!%p138_p2) }
   0x6   : > { %141 = sbr.rel (%p138_p2) target bundleno = 905 (0x389), region = 32  ;;  %8582 = vmatprep.subr.msk.bf16.mxu1 (!%p138_p2), %vm427_vm0, %v281_v0  ;;  %8581 = vmatprep.subr.msk.bf16.mxu0 (!%p138_p2), %vm427_vm0, %v281_v0  ;;  %v429_v1 = vsel (!%p138_p2), %vm427_vm0, %v281_v0, 0  ;;  %v7668_v3 = vld [vmem:[%s10822_s1 + $0x8] sm:$0xf] (!%p138_p2)  ;;  %vm372_vm1 = vcmask (!%p138_p2), 64512   ;;  %v1052_v10 = vsel (!%p138_p2), %vm427_vm0, %v7630_v2, 0 }
   0x7   : > { %8580 = vmatpush3.bf16.msra.mxu1 (!%p138_p2), %v429_v1  ;;  %8238 = vmatpush3.bf16.msra.mxu0 (!%p138_p2), %v429_v1  ;;  %v1564_v7 = vsel (!%p138_p2), %vm427_vm0, %v7668_v3, 0  ;;  %v8843_v8 = vld [vmem:[%s10822_s1 + $0xc] sm:$0xf] (!%p138_p2)  ;;  %v8851_v11 = vld [vmem:[%s10822_s1 + $0x10] sm:$0xf] (!%p138_p2)  ;;  %vm1471_vm3 = vcmask (!%p138_p2), 1046528  }
   0x8   : > { %8583 = vmatprep.subr.msk.bf16.mxu1 (!%p138_p2), %vm427_vm0, %v7630_v2  ;;  %8584 = vmatprep.subr.msk.bf16.mxu0 (!%p138_p2), %vm427_vm0, %v7668_v3  ;;  %vm848_vm2 = vsmask.f32 (!%p138_p2), 7424  ;;  %v8903_v57 = vld [vmem:[%s10822_s1 + $0x14] sm:$0xf] (!%p138_p2)  ;;  %v2075_v58 = vsel (!%p138_p2), %vm427_vm0, %v8843_v8, 0  ;;  %vm172_vm4 = vcmask (!%p138_p2), 523264  }
   0x9   : > { %vm2494_vm5 = vsmask.f32 (!%p138_p2), 6400  ;;  %vm3139_vm6 = vcmask (!%p138_p2), 1045504   ;;  %vm4162_vm7 = vsmask.f32 (!%p138_p2), 5376  ;;  %vm4807_vm8 = vcmask (!%p138_p2), 1044480  }
   0xa   : > { %vm6034_vm9 = vcmask (!%p138_p2), 517120   ;;  %vm7443_vm10 = vcmask (!%p138_p2), 1041409   ;;  %vm7445_vm11 = vcmask (!%p138_p2), 1042434   ;;  %vm7447_vm12 = vcmask (!%p138_p2), 1043459  }
   0xb   : > { %vm7449_vm13 = vcmask (!%p138_p2), 1044484   ;;  %vm7451_vm14 = vcmask (!%p138_p2), 1045509   ;;  %vm7453_vm15 = vcmask (!%p138_p2), 1046534  }
   0xd   : > { %s10829_s13 = smov (!%p161_p3, %s7586_s13), 1 }
   0xe   : > { %s8591_s20 = smul.u32 172, %s10829_s13  ;;  %s8001_s11 = sshll.u32 %s10829_s13, 5 }
   0xf   : > { %s10022_s13 = scalar_lea.vmem %s10824_s3, %s8001_s11 }
  0x10   : > { %s8833_s23 = scalar_lea.vmem %s10821_s0, %s8591_s20 }
  0x11   : > { %v8602_v4 = vld [vmem:[%s8833_s23] sm:$0xff]   ;;  %v8603_v5 = vld [vmem:[%s8833_s23 + $0x50] sm:$0xff]   ;;  %v8604_v6 = vld [vmem:[%s8833_s23 + $0x8] sm:$0xff]  }
  0x12   : > { %8239 = vmatprep.mubr.msk.bf16.mxu0 %vm372_vm1, %v8602_v4  ;;  %8259 = vmatprep.mubr.msk.bf16.mxu1 %vm372_vm1, %v8603_v5  ;;  %v8605_v9 = vld [vmem:[%s8833_s23 + $0x58] sm:$0xff]   ;;  %v8606_v12 = vld [vmem:[%s8833_s23 + $0x10] sm:$0xff]   ;;  %v8607_v13 = vld [vmem:[%s8833_s23 + $0x60] sm:$0xff]  }
  0x13   : > { %8240 = vmatmul.mubr.msk.bf16.vlgmr.msra.gmra.mrb[0].mxu0 %vm372_vm1, %v8604_v6  ;;  %8260 = vmatmul.mubr.msk.bf16.vlgmr.msra.gmra.mrb[0].mxu1 %vm372_vm1, %v8605_v9  ;;  %v8608_v14 = vld [vmem:[%s8833_s23 + $0x18] sm:$0xff]   ;;  %v8609_v15 = vld [vmem:[%s8833_s23 + $0x68] sm:$0xff]   ;;  %v8610_v16 = vld [vmem:[%s8833_s23 + $0x20] sm:$0xff]  }
  0x14   : > { %8314 = vmatpush3.bf16.msra.mxu0 %v1564_v7  ;;  %8276 = vmatpush3.bf16.msra.mxu1 %v1052_v10  ;;  %v8611_v17 = vld [vmem:[%s8833_s23 + $0x70] sm:$0xff]   ;;  %v8612_v18 = vld [vmem:[%s8833_s23 + $0x28] sm:$0xff]   ;;  %v8613_v19 = vld [vmem:[%s8833_s23 + $0x78] sm:$0xff]  }
  0x15   : > { %8243 = vmatprep.mubr.msk.bf16.mxu0 %vm372_vm1, %v8606_v12  ;;  %8263 = vmatprep.mubr.msk.bf16.mxu1 %vm372_vm1, %v8607_v13  ;;  %v8614_v20 = vld [vmem:[%s8833_s23 + $0x30] sm:$0xff]   ;;  %v8615_v21 = vld [vmem:[%s8833_s23 + $0x80] sm:$0xff]   ;;  %v8620_v23 = vld [vmem:[%s8833_s23 + $0x8] sm:$0xff]  }
  0x16   : > { %8585 = vmatprep.subr.msk.bf16.mxu1 %vm427_vm0, %v8843_v8  ;;  %8586 = vmatprep.subr.msk.bf16.mxu0 %vm427_vm0, %v8851_v11  ;;  %v8619_v22 = vld [vmem:[%s8833_s23] sm:$0xff]   ;;  %v857_v26 = vshll.u32 %v8620_v23, 16  ;;  %v8622_v27 = vld [vmem:[%s8833_s23 + $0x10] sm:$0xff]   ;;  %v8616_v28 = vld [vmem:[%s8833_s23 + $0x38] sm:$0xff]   ;;  %v861_v35 = vshrl.u32 %v8620_v23, 16  ;;  %v2720_v8 = vsel %vm427_vm0, %v8851_v11, 0 }
  0x17   : > { %v850_v24 = vshrl.u32 %v8619_v22, 16  ;;  %v852_v25 = vshll.u32 %v8619_v22, 16  ;;  %v8623_v31 = vld [vmem:[%s8833_s23 + $0x18] sm:$0xff]   ;;  %v8617_v32 = vld [vmem:[%s8833_s23 + $0x88] sm:$0xff]   ;;  %v8618_v34 = vld [vmem:[%s8833_s23 + $0x40] sm:$0xff]   ;;  %v865_v36 = vshll.u32 %v8622_v27, 16 }
  0x18   : > { %v859_v30 = vrot.slane %v857_v26, 1  ;;  %v8625_v37 = vld [vmem:[%s8833_s23 + $0x8] sm:$0xff]   ;;  %v8624_v38 = vld [vmem:[%s8833_s23] sm:$0xfe]   ;;  %v869_v40 = vshrl.u32 %v8622_v27, 16  ;;  %v873_v41 = vshll.u32 %v8623_v31, 16 }
  0x19   : > { %v854_v29 = vrot.slane %v852_v25, 1  ;;  %v8626_v42 = vld [vmem:[%s8833_s23 + $0x20] sm:$0xff]   ;;  %v867_v43 = vrot.slane %v865_v36, 1  ;;  %v1472_v45 = vrot.slane %v8624_v38, 1  ;;  %v1473_v46 = vrot.slane %v8625_v37, 1  ;;  %v8628_v49 = vld [vmem:[%s8833_s23 + $0x28] sm:$0xff]  }
  0x1a   : > { %v863_v44 = vor.u32 %v861_v35, %v859_v30  ;;  %v875_v48 = vrot.slane %v873_v41, 1  ;;  %v8621_v50 = vld [vmem:[%s8833_s23 + $0x48] sm:$0xff]   ;;  %v881_v51 = vshll.u32 %v8626_v42, 16  ;;  %v8627_v52 = vld [vmem:[%s8833_s23 + $0x10] sm:$0xff]   ;;  %v877_v55 = vshrl.u32 %v8623_v31, 16  ;;  %v8629_v56 = vld [vmem:[%s8833_s23 + $0x18] sm:$0xff]  }
  0x1b   : > { %8244 = vmatmul.mubr.msk.bf16.gmra.mrb[4].mxu0 %vm372_vm1, %v8608_v14  ;;  %8264 = vmatmul.mubr.msk.bf16.gmra.mrb[4].mxu1 %vm372_vm1, %v8609_v15  ;;  %v855_v33 = vor.u32 %v854_v29, %v850_v24  ;;  %v871_v47 = vor.u32 %v869_v40, %v867_v43  ;;  %v1474_v54 = vsel %vm1471_vm3, %v1472_v45, %v1473_v46  ;;  %v885_v60 = vshrl.u32 %v8626_v42, 16  ;;  %v8630_v0 = vld [vmem:[%s8833_s23 + $0x30] sm:$0xff]   ;;  %v8632_v5 = vld [vmem:[%s8833_s23 + $0x38] sm:$0xff]   ;;  %v8631_v6 = vld [vmem:[%s8833_s23 + $0x20] sm:$0xff]  }
  0x1c   : > { %8247 = vmatprep.mubr.msk.bf16.mxu0 %vm372_vm1, %v8610_v16  ;;  %8267 = vmatprep.mubr.msk.bf16.mxu1 %vm372_vm1, %v8611_v17  ;;  %v868_v53 = vsel %vm848_vm2, %v863_v44, %v867_v43  ;;  %v889_v61 = vshll.u32 %v8628_v49, 16  ;;  %v883_v62 = vrot.slane %v881_v51, 1  ;;  %v1475_v63 = vrot.slane %v8627_v52, 1  ;;  %v8633_v13 = vld [vmem:[%s8833_s23 + $0x28] sm:$0xff]   ;;  %v8925_v14 = vld [vmem:[%s10822_s1 + $0x18] sm:$0xf] }
  0x1d   : > { %v860_v39 = vsel %vm848_vm2, %v855_v33, %v859_v30  ;;  %v876_v59 = vsel %vm848_vm2, %v871_v47, %v875_v48  ;;  %v879_v1 = vor.u32 %v877_v55, %v875_v48  ;;  %v1477_v2 = vrot.slane %v8629_v56, 1  ;;  %v8636_v25 = vld [vmem:[%s8833_s23 + $0x48] sm:$0xff]   ;;  %v8635_v29 = vld [vmem:[%s8833_s23 + $0x30] sm:$0xff]   ;;  %v8637_v33 = vld [vmem:[%s8833_s23 + $0x38] sm:$0xff]  }
  0x1e   : > { %v887_v3 = vor.u32 %v885_v60, %v883_v62  ;;  %v891_v4 = vrot.slane %v889_v61, 1  ;;  %v1476_v7 = vsel %vm1471_vm3, %v1473_v46, %v1475_v63  ;;  %v897_v9 = vshll.u32 %v8630_v0, 16  ;;  %v8638_v36 = vld [vmem:[%s8833_s23 + $0x50] sm:$0xff]   ;;  %v8640_v44 = vld [vmem:[%s8833_s23 + $0x58] sm:$0xff]   ;;  %v8639_v45 = vld [vmem:[%s8833_s23 + $0x40] sm:$0xff]  }
  0x1f   : > { %v884_v10 = vsel %vm848_vm2, %v879_v1, %v883_v62  ;;  %v893_v12 = vshrl.u32 %v8628_v49, 16  ;;  %v1478_v16 = vsel %vm1471_vm3, %v1475_v63, %v1477_v2  ;;  %v901_v17 = vshrl.u32 %v8630_v0, 16  ;;  %v8641_v48 = vld [vmem:[%s8833_s23 + $0x48] sm:$0xff]   ;;  %v8642_v56 = vld [vmem:[%s8833_s23 + $0x60] sm:$0xff]   ;;  %v8643_v63 = vld [vmem:[%s8833_s23 + $0x50] sm:$0xff]  }
  0x20   : > { %v892_v15 = vsel %vm848_vm2, %v887_v3, %v891_v4  ;;  %v1479_v11 = vrot.slane %v8631_v6, 1  ;;  %v1481_v22 = vrot.slane %v8633_v13, 1  ;;  %v909_v27 = vshrl.u32 %v8632_v5, 16  ;;  %v8644_v60 = vld [vmem:[%s8833_s23 + $0x68] sm:$0xff]  }
  0x21   : > { %v921_v35 = vshll.u32 %v8636_v25, 16  ;;  %v1483_v38 = vrot.slane %v8635_v29, 1  ;;  %v1485_v40 = vrot.slane %v8637_v33, 1  ;;  %v929_v43 = vshll.u32 %v8638_v36, 16 }
  0x22   : > { %v1480_v26 = vsel %vm1471_vm3, %v1477_v2, %v1479_v11  ;;  %v1482_v31 = vsel %vm1471_vm3, %v1479_v11, %v1481_v22  ;;  %v925_v47 = vshrl.u32 %v8636_v25, 16  ;;  %v1487_v55 = vrot.slane %v8639_v45, 1 }
  0x23   : > { %8248 = vmatmul.mubr.msk.bf16.gmra.mrb[8].mxu0 %vm372_vm1, %v8612_v18  ;;  %8268 = vmatmul.mubr.msk.bf16.gmra.mrb[8].mxu1 %vm372_vm1, %v8613_v19  ;;  %v905_v18 = vshll.u32 %v8632_v5, 16  ;;  %v899_v19 = vrot.slane %v897_v9, 1  ;;  %v923_v42 = vrot.slane %v921_v35, 1  ;;  %v1484_v46 = vsel %vm1471_vm3, %v1481_v22, %v1483_v38  ;;  %v8652_v35 = vld [vmem:[%s8833_s23 + $0x88] sm:$0xff]  }
  0x24   : > { %8251 = vmatprep.mubr.msk.bf16.mxu0 %vm372_vm1, %v8614_v20  ;;  %8271 = vmatprep.mubr.msk.bf16.mxu1 %vm372_vm1, %v8615_v21  ;;  %v8634_v20 = vld [vmem:[%s8833_s23 + $0x40] sm:$0xff]   ;;  %v895_v21 = vor.u32 %v893_v12, %v891_v4  ;;  %v931_v52 = vrot.slane %v929_v43, 1  ;;  %v1488_v1 = vsel %vm1471_vm3, %v1485_v40, %v1487_v55  ;;  %v945_v2 = vshll.u32 %v8642_v56, 16  ;;  %v8646_v12 = vld [vmem:[%s8833_s23 + $0x70] sm:$0xff]  }
  0x25   : > { %v903_v23 = vor.u32 %v901_v17, %v899_v19  ;;  %v907_v24 = vrot.slane %v905_v18, 1  ;;  %v941_v4 = vshrl.u32 %v8640_v44, 16  ;;  %v949_v5 = vshrl.u32 %v8642_v56, 16  ;;  %v8648_v18 = vld [vmem:[%s8833_s23 + $0x78] sm:$0xff]  }
  0x26   : > { %v900_v30 = vsel %vm848_vm2, %v895_v21, %v899_v19  ;;  %v953_v6 = vshll.u32 %v8644_v60, 16  ;;  %v1491_v9 = vrot.slane %v8643_v63, 1  ;;  %v961_v19 = vshll.u32 %v8646_v12, 16  ;;  %v8657_v63 = vld [vmem:[%s8833_s23 + $0x8] sm:$0xfe]  }
  0x27   : > { %v985_v45 = vshll.u32 %v8652_v35, 16 }
  0x28   : > { %v955_v17 = vrot.slane %v953_v6, 1 }
  0x2b   : > { %8252 = vmatmul.mubr.msk.bf16.gmra.mrb[12].mxu0 %vm372_vm1, %v8616_v28  ;;  %8272 = vmatmul.mubr.msk.bf16.gmra.mrb[12].mxu1 %vm372_vm1, %v8617_v32  ;;  %v913_v28 = vshll.u32 %v8634_v20, 16  ;;  %v917_v32 = vshrl.u32 %v8634_v20, 16  ;;  %v8647_v20 = vld [vmem:[%s8833_s23 + $0x60] sm:$0xff]  }
  0x2c   : > { %8255 = vmatprep.mubr.msk.bf16.mxu0 %vm372_vm1, %v8618_v34  ;;  %8277 = vmatprep.mubr.msk.bf16.mxu1 %vm372_vm1, %v860_v39  ;;  %v908_v34 = vsel %vm848_vm2, %v903_v23, %v907_v24  ;;  %v911_v39 = vor.u32 %v909_v27, %v907_v24  ;;  %v957_v23 = vshrl.u32 %v8644_v60, 16  ;;  %v8649_v24 = vld [vmem:[%s8833_s23 + $0x68] sm:$0xff]   ;;  %v969_v27 = vshll.u32 %v8648_v18, 16 }
  0x2d   : > { %v915_v37 = vrot.slane %v913_v28, 1  ;;  %v963_v28 = vrot.slane %v961_v19, 1  ;;  %v1495_v29 = vrot.slane %v8647_v20, 1  ;;  %v8662_v60 = vld [vmem:[%s8833_s23 + $0x8] sm:$0xfe]   ;;  %v9031_v19 = vld [vmem:[%s8833_s23 + $0x18] sm:$0xff]  }
  0x2e   : > { %v2496_v6 = vshrl.u32 %v8662_v60, 16 }
  0x2f   : > { %v919_v41 = vor.u32 %v917_v32, %v915_v37  ;;  %v916_v49 = vsel %vm848_vm2, %v911_v39, %v915_v37  ;;  %v1497_v32 = vrot.slane %v8649_v24, 1 }
  0x30   : > { %v9033_v20 = vrot.slane %v2496_v6, 1 }
  0x31   : > { %v924_v51 = vsel %vm848_vm2, %v919_v41, %v923_v42  ;;  %v973_v41 = vshrl.u32 %v8648_v18, 16 }
  0x33   : > { %8256 = vmatmul.mubr.msk.bf16.gmra.mrb[16].mxu0 %vm372_vm1, %v8621_v50  ;;  %8278 = vmatmul.mubr.msk.bf16.vlgmr.msra.gmra.mrb[16].mxu1 %vm372_vm1, %v868_v53  ;;  %v1486_v50 = vsel %vm1471_vm3, %v1483_v38, %v1485_v40  ;;  %v933_v53 = vshrl.u32 %v8638_v36, 16  ;;  %v8651_v38 = vld [vmem:[%s8833_s23 + $0x70] sm:$0xff]   ;;  %v1498_v40 = vsel %vm1471_vm3, %v1495_v29, %v1497_v32 }
  0x34   : > { %8315 = vmatprep.mubr.msk.bf16.mxu0 %vm372_vm1, %v1474_v54  ;;  %8352 = vmatpush3.bf16.msra.mxu1 %v2075_v58  ;;  %v937_v54 = vshll.u32 %v8640_v44, 16  ;;  %v927_v58 = vor.u32 %v925_v47, %v923_v42  ;;  %v8653_v42 = vld [vmem:[%s8833_s23 + $0x78] sm:$0xff]  }
  0x35   : > { %8281 = vmatprep.mubr.msk.bf16.mxu1 %vm372_vm1, %v876_v59  ;;  %8587 = vmatprep.subr.msk.bf16.mxu1 %vm427_vm0, %v8903_v57  ;;  %v1489_v59 = vrot.slane %v8641_v48, 1  ;;  %v935_v61 = vor.u32 %v933_v53, %v931_v52  ;;  %v1499_v48 = vrot.slane %v8651_v38, 1  ;;  %v989_v53 = vshrl.u32 %v8652_v35, 16  ;;  %v8664_v38 = vld [vmem:[%s8833_s23 + $0x28] sm:$0xff]  }
  0x36   : > { %v939_v62 = vrot.slane %v937_v54, 1  ;;  %v932_v0 = vsel %vm848_vm2, %v927_v58, %v931_v52  ;;  %v987_v52 = vrot.slane %v985_v45, 1  ;;  %v8655_v54 = vld [vmem:[%s8833_s23 + $0x80] sm:$0xff]   ;;  %v8663_v58 = vld [vmem:[%s8833_s23 + $0x10] sm:$0xff]  }
  0x37   : > { %v1490_v3 = vsel %vm1471_vm3, %v1487_v55, %v1489_v59  ;;  %v1492_v11 = vsel %vm1471_vm3, %v1489_v59, %v1491_v9  ;;  %v8998_v55 = vld [vmem:[%s8833_s23 + $0x88] sm:$0xff]   ;;  %v1500_v59 = vsel %vm1471_vm3, %v1497_v32, %v1499_v48  ;;  %v8671_v45 = vld [vmem:[%s8833_s23 + $0x30] sm:$0xff]  }
  0x38   : > { %v943_v13 = vor.u32 %v941_v4, %v939_v62 }
  0x3b   : > { %8316 = vmatmul.mubr.msk.bf16.vlgmr.msra.gmra.mrb[20].mxu0 %vm372_vm1, %v1476_v7  ;;  %8282 = vmatmul.mubr.msk.bf16.gmra.mrb[20].mxu1 %vm372_vm1, %v884_v10  ;;  %v8645_v7 = vld [vmem:[%s8833_s23 + $0x58] sm:$0xff]   ;;  %v947_v10 = vrot.slane %v945_v2, 1  ;;  %v9008_v2 = vld [vmem:[%s8833_s23 + $0x10] sm:$0xff]  }
  0x3c   : > { %8390 = vmatpush3.bf16.msra.mxu0 %v2720_v8  ;;  %8285 = vmatprep.mubr.msk.bf16.mxu1 %vm372_vm1, %v892_v15  ;;  %v940_v8 = vsel %vm848_vm2, %v935_v61, %v939_v62  ;;  %v1493_v15 = vrot.slane %v8645_v7, 1  ;;  %v2499_v7 = vshll.u32 %v8662_v60, 16  ;;  %v8673_v60 = vld [vmem:[%s8833_s23 + $0x38] sm:$0xff]  }
  0x3d   : > { %8319 = vmatprep.mubr.msk.bf16.mxu0 %vm372_vm1, %v1478_v16  ;;  %8588 = vmatprep.subr.msk.bf16.mxu0 %vm427_vm0, %v8925_v14  ;;  %v951_v16 = vor.u32 %v949_v5, %v947_v10  ;;  %v948_v21 = vsel %vm848_vm2, %v943_v13, %v947_v10  ;;  %v1505_v5 = vrot.slane %v8998_v55, 1  ;;  %v1983_v10 = vrot.slane %v8657_v63, 1  ;;  %v9017_v13 = vld [vmem:[%s8833_s23 + $0x90] ss:$0 sps:$4 sm:$0x11]   ;;  %v8675_v63 = vld [vmem:[%s8833_s23 + $0x40] sm:$0xff]  }
  0x3e   : > { %v1494_v22 = vsel %vm1471_vm3, %v1491_v9, %v1493_v15  ;;  %v1496_v36 = vsel %vm1471_vm3, %v1493_v15, %v1495_v29  ;;  %v2507_v9 = vshll.u32 %v8663_v58, 16  ;;  %v9020_v15 = vld [vmem:[%s8833_s23 + $0x18] sm:$0xff]   ;;  %v2516_v29 = vshll.u32 %v9031_v19, 16 }
  0x3f   : > { %v956_v25 = vsel %vm848_vm2, %v951_v16, %v955_v17  ;;  %v2549_v6 = vshrl.u32 %v8673_v60, 16 }
  0x43   : > { %8320 = vmatmul.mubr.msk.bf16.gmra.mrb[24].mxu0 %vm372_vm1, %v1480_v26  ;;  %8286 = vmatmul.mubr.msk.bf16.gmra.mrb[24].mxu1 %vm372_vm1, %v900_v30  ;;  %v965_v26 = vshrl.u32 %v8646_v12, 16  ;;  %v8650_v30 = vld [vmem:[%s8833_s23 + $0x80] sm:$0xff]   ;;  %v1984_v12 = vrot.slane %v9008_v2, 1 }
  0x44   : > { %8323 = vmatprep.mubr.msk.bf16.mxu0 %vm372_vm1, %v1482_v31  ;;  %8289 = vmatprep.mubr.msk.bf16.mxu1 %vm372_vm1, %v908_v34  ;;  %v959_v31 = vor.u32 %v957_v23, %v955_v17  ;;  %v971_v34 = vrot.slane %v969_v27, 1  ;;  %v977_v37 = vshll.u32 %v8650_v30, 16  ;;  %v981_v44 = vshrl.u32 %v8650_v30, 16  ;;  %v8670_v2 = vld [vmem:[%s8833_s23 + $0x40] sm:$0xff]  }
  0x45   : > { %v967_v33 = vor.u32 %v965_v26, %v963_v28  ;;  %v2509_v23 = vrot.slane %v2507_v9, 2  ;;  %v1985_v24 = vsel %vm1471_vm3, %v1983_v10, %v1984_v12  ;;  %v1507_v26 = vrot.slane %v9017_v13, 1 }
  0x46   : > { %v964_v39 = vsel %vm848_vm2, %v959_v31, %v963_v28  ;;  %v979_v47 = vrot.slane %v977_v37, 1  ;;  %v8783_v27 = vmov 0.0   ;;  %v2513_v28 = vshrl.u32 %v9031_v19, 16 }
  0x47   : > { %v972_v43 = vsel %vm848_vm2, %v967_v33, %v971_v34  ;;  %175 = vst.msk [vmem:[#allocation2 + $0x10] sm:$0xff] %vm172_vm4, %v8783_v27  ;;  %173 = vst.msk [vmem:[#allocation2] sm:$0xff] %vm172_vm4, %v8783_v27  ;;  %v1986_v30 = vrot.slane %v9020_v15, 1  ;;  %v1508_v37 = vsel %vm1471_vm3, %v1505_v5, %v1507_v26  ;;  %v2558_v9 = vshrl.u32 %v8675_v63, 16 }
  0x48   : > { %174 = vst.msk [vmem:[#allocation2 + $0x8] sm:$0xff] %vm172_vm4, %v8783_v27  ;;  %176 = vst.msk [vmem:[#allocation2 + $0x18] sm:$0xff] %vm172_vm4, %v8783_v27  ;;  %v2561_v13 = vshll.u32 %v8675_v63, 16  ;;  %v1996_v15 = vrot.slane %v8670_v2, 1  ;;  %v8687_v2 = vld [vmem:[%s8833_s23 + $0x70] sm:$0xff]  }
  0x49   : > { %177 = vst.msk [vmem:[#allocation2 + $0x20] sm:$0xff] %vm172_vm4, %v8783_v27  ;;  %178 = vst.msk [vmem:[#allocation2 + $0x28] sm:$0xff] %vm172_vm4, %v8783_v27 }
  0x4a   : > { %179 = vst.msk [vmem:[#allocation2 + $0x30] sm:$0xff] %vm172_vm4, %v8783_v27  ;;  %180 = vst.msk [vmem:[#allocation2 + $0x38] sm:$0xff] %vm172_vm4, %v8783_v27 }
  0x4b   : > { %8324 = vmatmul.mubr.msk.bf16.gmra.mrb[28].mxu0 %vm372_vm1, %v1484_v46  ;;  %8290 = vmatmul.mubr.msk.bf16.gmra.mrb[28].mxu1 %vm372_vm1, %v916_v49  ;;  %v8654_v46 = vld [vmem:[%s8833_s23 + $0x90] ss:$0 sps:$4 sm:$0x11]   ;;  %v975_v49 = vor.u32 %v973_v41, %v971_v34  ;;  %181 = vst.msk [vmem:[#allocation2 + $0x40] sm:$0xff] %vm172_vm4, %v8783_v27  ;;  %182 = vst.msk [vmem:[#allocation2 + $0x48] sm:$0xff] %vm172_vm4, %v8783_v27 }
  0x4c   : > { %8327 = vmatprep.mubr.msk.bf16.mxu0 %vm372_vm1, %v1486_v50  ;;  %8293 = vmatprep.mubr.msk.bf16.mxu1 %vm372_vm1, %v924_v51  ;;  %v1501_v50 = vrot.slane %v8653_v42, 1  ;;  %v983_v51 = vor.u32 %v981_v44, %v979_v47  ;;  %v993_v56 = vshll.u32 %v8654_v46, 16  ;;  %183 = vst.msk [vmem:[#allocation2 + $0x50] sm:$0xff] %vm172_vm4, %v8783_v27  ;;  %184 = vst.msk [vmem:[#allocation2 + $0x58] sm:$0xff] %vm172_vm4, %v8783_v27  ;;  %v8666_v41 = vld [vmem:[%s8833_s23 + $0x30] sm:$0xff]  }
  0x4d   : > { %v980_v61 = vsel %vm848_vm2, %v975_v49, %v979_v47  ;;  %185 = vst.msk [vmem:[#allocation2 + $0x60] sm:$0xff] %vm172_vm4, %v8783_v27  ;;  %186 = vst.msk [vmem:[#allocation2 + $0x68] sm:$0xff] %vm172_vm4, %v8783_v27  ;;  %v1987_v42 = vsel %vm1471_vm3, %v1984_v12, %v1986_v30 }
  0x4e   : > { %v1502_v62 = vsel %vm1471_vm3, %v1499_v48, %v1501_v50  ;;  %v995_v4 = vrot.slane %v993_v56, 1  ;;  %187 = vst.msk [vmem:[#allocation2 + $0x70] sm:$0xff] %vm172_vm4, %v8783_v27  ;;  %188 = vst.msk [vmem:[#allocation2 + $0x78] sm:$0xff] %vm172_vm4, %v8783_v27  ;;  %v9113_v56 = vld [vmem:[%s10822_s1 + $0x1c] sm:$0xf] }
  0x4f   : > { %189 = vst.msk [vmem:[#allocation2 + $0x80] sm:$0xff] %vm172_vm4, %v8783_v27  ;;  %190 = vst.msk [vmem:[#allocation2 + $0x88] sm:$0xff] %vm172_vm4, %v8783_v27 }
  0x50   : > { %191 = vst.msk [vmem:[#allocation2 + $0x90] sm:$0xff] %vm172_vm4, %v8783_v27  ;;  %192 = vst.msk [vmem:[#allocation2 + $0x98] sm:$0xff] %vm172_vm4, %v8783_v27 }
  0x51   : > { %193 = vst.msk [vmem:[#allocation2 + $0xa0] sm:$0xff] %vm172_vm4, %v8783_v27  ;;  %194 = vst.msk [vmem:[#allocation2 + $0xa8] sm:$0xff] %vm172_vm4, %v8783_v27 }
  0x52   : > { %195 = vst.msk [vmem:[#allocation2 + $0xb0] sm:$0xff] %vm172_vm4, %v8783_v27  ;;  %196 = vst.msk [vmem:[#allocation2 + $0xb8] sm:$0xff] %vm172_vm4, %v8783_v27 }
  0x53   : > { %8328 = vmatmul.mubr.msk.bf16.gmra.mrb[32].mxu0 %vm372_vm1, %v1488_v1  ;;  %8294 = vmatmul.mubr.msk.bf16.gmra.mrb[32].mxu1 %vm372_vm1, %v932_v0  ;;  %v988_v0 = vsel %vm848_vm2, %v983_v51, %v987_v52  ;;  %v1503_v1 = vrot.slane %v8655_v54, 1  ;;  %197 = vst.msk [vmem:[#allocation2 + $0xc0] sm:$0xff] %vm172_vm4, %v8783_v27  ;;  %198 = vst.msk [vmem:[#allocation2 + $0xc8] sm:$0xff] %vm172_vm4, %v8783_v27  ;;  %v1992_v54 = vrot.slane %v8666_v41, 1  ;;  %v8683_v41 = vld [vmem:[%s8833_s23 + $0x60] sm:$0xff]  }
  0x54   : > { %8331 = vmatprep.mubr.msk.bf16.mxu0 %vm372_vm1, %v1490_v3  ;;  %8297 = vmatprep.mubr.msk.bf16.mxu1 %vm372_vm1, %v940_v8  ;;  %v991_v3 = vor.u32 %v989_v53, %v987_v52  ;;  %v2504_v8 = vshrl.u32 %v8663_v58, 16  ;;  %199 = vst.msk [vmem:[#allocation2 + $0xd0] sm:$0xff] %vm172_vm4, %v8783_v27  ;;  %200 = vst.msk [vmem:[#allocation2 + $0xd8] sm:$0xff] %vm172_vm4, %v8783_v27  ;;  %v2540_v52 = vshrl.u32 %v8671_v45, 16  ;;  %v2543_v53 = vshll.u32 %v8671_v45, 16 }
  0x55   : > { %v1504_v17 = vsel %vm1471_vm3, %v1501_v50, %v1503_v1  ;;  %v1506_v18 = vsel %vm1471_vm3, %v1503_v1, %v1505_v5  ;;  %201 = vst.msk [vmem:[#allocation2 + $0xe0] sm:$0xff] %vm172_vm4, %v8783_v27  ;;  %202 = vst.msk [vmem:[#allocation2 + $0xe8] sm:$0xff] %vm172_vm4, %v8783_v27  ;;  %v3743_v58 = vsel %vm427_vm0, %v8925_v14, 0  ;;  %v8668_v1 = vld [vmem:[%s8833_s23 + $0x38] sm:$0xff]  }
  0x56   : > { %v996_v16 = vsel %vm848_vm2, %v991_v3, %v995_v4  ;;  %203 = vst.msk [vmem:[#allocation2 + $0xf0] sm:$0xff] %vm172_vm4, %v8783_v27  ;;  %204 = vst.msk [vmem:[#allocation2 + $0xf8] sm:$0xff] %vm172_vm4, %v8783_v27  ;;  %v2542_v3 = vrot.slane %v2540_v52, 1  ;;  %v2545_v4 = vrot.slane %v2543_v53, 2  ;;  %v1994_v10 = vrot.slane %v8668_v1, 1 }
  0x57   : > { %205 = vst.msk [vmem:[#allocation2 + $0x100] sm:$0xff] %vm172_vm4, %v8783_v27  ;;  %206 = vst.msk [vmem:[#allocation2 + $0x108] sm:$0xff] %vm172_vm4, %v8783_v27  ;;  %v2597_v53 = vshll.u32 %v8683_v41, 16 }
  0x58   : > { %207 = vst.msk [vmem:[#allocation2 + $0x110] sm:$0xff] %vm172_vm4, %v8783_v27  ;;  %208 = vst.msk [vmem:[#allocation2 + $0x118] sm:$0xff] %vm172_vm4, %v8783_v27  ;;  %v2546_v12 = vor.u32 %v2545_v4, %v2542_v3  ;;  %v1997_v26 = vsel %vm1471_vm3, %v1994_v10, %v1996_v15  ;;  %v8674_v27 = vld [vmem:[%s8833_s23 + $0x50] sm:$0xff]  }
  0x59   : > { %v2599_v1 = vrot.slane %v2597_v53, 2  ;;  %v8682_v4 = vld [vmem:[%s8833_s23 + $0x70] sm:$0xff]   ;;  %v8697_v53 = vld [vmem:[%s8833_s23 + $0x98] ss:$0 sps:$4 sm:$0x33]  }
  0x5b   : > { %8332 = vmatmul.mubr.msk.bf16.gmra.mrb[36].mxu0 %vm372_vm1, %v1492_v11  ;;  %8298 = vmatmul.mubr.msk.bf16.gmra.mrb[36].mxu1 %vm372_vm1, %v948_v21  ;;  %v9028_v11 = vld [vmem:[%s8833_s23 + $0x20] sm:$0xff]   ;;  %v9035_v21 = vrot.slane %v2499_v7, 2 }
  0x5c   : > { %8335 = vmatprep.mubr.msk.bf16.mxu0 %vm372_vm1, %v1494_v22  ;;  %8301 = vmatprep.mubr.msk.bf16.mxu1 %vm372_vm1, %v956_v25  ;;  %v2506_v22 = vrot.slane %v2504_v8, 1  ;;  %v9041_v25 = vld [vmem:[%s8833_s23 + $0x20] sm:$0xff]   ;;  %v1988_v33 = vrot.slane %v9028_v11, 1  ;;  %v2552_v8 = vshll.u32 %v8673_v60, 16  ;;  %v8677_v11 = vld [vmem:[%s8833_s23 + $0x48] sm:$0xff]  }
  0x5d   : > { %v2502_v31 = vor.u32 %v9035_v21, %v9033_v20  ;;  %v2522_v34 = vshrl.u32 %v9041_v25, 16  ;;  %v2525_v35 = vshll.u32 %v9041_v25, 16  ;;  %v2560_v21 = vrot.slane %v2558_v9, 1  ;;  %v8679_v25 = vld [vmem:[%s8833_s23 + $0x50] sm:$0xff]  }
  0x5e   : > { %v2510_v32 = vor.u32 %v2509_v23, %v2506_v22  ;;  %v1989_v46 = vsel %vm1471_vm3, %v1986_v30, %v1988_v33  ;;  %v2554_v20 = vrot.slane %v2552_v8, 2  ;;  %v1995_v22 = vsel %vm1471_vm3, %v1992_v54, %v1994_v10 }
  0x5f   : > { %v2524_v47 = vrot.slane %v2522_v34, 1  ;;  %v2527_v48 = vrot.slane %v2525_v35, 2  ;;  %v2579_v34 = vshll.u32 %v8679_v25, 16  ;;  %v2000_v35 = vrot.slane %v8674_v27, 1 }
  0x60   : > { %v2511_v44 = vsel %vm2494_vm5, %v2502_v31, %v2510_v32  ;;  %v2570_v31 = vshll.u32 %v8677_v11, 16  ;;  %v2612_v9 = vshrl.u32 %v8687_v2, 16  ;;  %v2615_v10 = vshll.u32 %v8687_v2, 16  ;;  %v8696_v2 = vld [vmem:[%s8833_s23 + $0x10] sm:$0xff]  }
  0x61   : > { %v2528_v55 = vor.u32 %v2527_v48, %v2524_v47  ;;  %v2581_v45 = vrot.slane %v2579_v34, 2  ;;  %v8678_v47 = vld [vmem:[%s8833_s23 + $0x60] sm:$0xff]   ;;  %v8693_v34 = vld [vmem:[%s8833_s23 + $0x88] sm:$0xff]  }
  0x63   : > { %8336 = vmatmul.mubr.msk.bf16.gmra.mrb[40].mxu0 %vm372_vm1, %v1496_v36  ;;  %8302 = vmatmul.mubr.msk.bf16.gmra.mrb[40].mxu1 %vm372_vm1, %v964_v39  ;;  %v8669_v36 = vld [vmem:[%s8833_s23 + $0x28] sm:$0xff]   ;;  %v2515_v39 = vrot.slane %v2513_v28, 1  ;;  %v2567_v28 = vshrl.u32 %v8677_v11, 16  ;;  %v8689_v11 = vld [vmem:[%s8833_s23 + $0x78] sm:$0xff]  }
  0x64   : > { %8339 = vmatprep.mubr.msk.bf16.mxu0 %vm372_vm1, %v1498_v40  ;;  %8305 = vmatprep.mubr.msk.bf16.mxu1 %vm372_vm1, %v972_v43  ;;  %v2518_v40 = vrot.slane %v2516_v29, 2  ;;  %v3232_v43 = vsel %vm427_vm0, %v8903_v57, 0  ;;  %v2531_v49 = vshrl.u32 %v8669_v36, 16  ;;  %v2534_v51 = vshll.u32 %v8669_v36, 16  ;;  %v8676_v36 = vld [vmem:[%s8833_s23 + $0x58] sm:$0xff]  }
  0x65   : > { %v1990_v57 = vrot.slane %v8664_v38, 1  ;;  %v8681_v38 = vld [vmem:[%s8833_s23 + $0x58] sm:$0xff]  }
  0x66   : > { %v2519_v50 = vor.u32 %v2518_v40, %v2515_v39  ;;  %v2572_v40 = vrot.slane %v2570_v31, 2  ;;  %v2585_v48 = vshrl.u32 %v8681_v38, 16 }
  0x67   : > { %v1993_v5 = vsel %vm1471_vm3, %v1990_v57, %v1992_v54  ;;  %v2004_v54 = vrot.slane %v8678_v47, 1  ;;  %v2642_v47 = vshll.u32 %v8693_v34, 16 }
  0x68   : > { %v2529_v14 = vsel %vm2494_vm5, %v2519_v50, %v2528_v55 }
  0x6b   : > { %8340 = vmatmul.mubr.msk.bf16.gmra.mrb[44].mxu0 %vm372_vm1, %v1500_v59  ;;  %8306 = vmatmul.mubr.msk.bf16.gmra.mrb[44].mxu1 %vm372_vm1, %v980_v61  ;;  %v2533_v59 = vrot.slane %v2531_v49, 1  ;;  %v2520_v61 = vsel %vm2494_vm5, %v2510_v32, %v2519_v50  ;;  %v2588_v49 = vshll.u32 %v8681_v38, 16 }
  0x6c   : > { %8343 = vmatprep.mubr.msk.bf16.mxu0 %vm372_vm1, %v1502_v62  ;;  %8309 = vmatprep.mubr.msk.bf16.mxu1 %vm372_vm1, %v988_v0  ;;  %v2536_v62 = vrot.slane %v2534_v51, 2  ;;  %v1991_v0 = vsel %vm1471_vm3, %v1988_v33, %v1990_v57  ;;  %v2576_v33 = vshrl.u32 %v8679_v25, 16  ;;  %v2594_v51 = vshrl.u32 %v8683_v41, 16  ;;  %v8686_v25 = vld [vmem:[%s8833_s23 + $0x80] sm:$0xff]  }
  0x6d   : > { %v2002_v57 = vrot.slane %v8676_v36, 1  ;;  %v8688_v36 = vld [vmem:[%s8833_s23 + $0x88] sm:$0xff]  }
  0x6e   : > { %v2537_v7 = vor.u32 %v2536_v62, %v2533_v59  ;;  %v2590_v59 = vrot.slane %v2588_v49, 2  ;;  %v8685_v62 = vld [vmem:[%s8833_s23 + $0x68] sm:$0xff]  }
  0x6f   : > { %v2003_v63 = vsel %vm1471_vm3, %v2000_v35, %v2002_v57  ;;  %v2005_v3 = vsel %vm1471_vm3, %v2002_v57, %v2004_v54 }
  0x70   : > { %v2538_v19 = vsel %vm2494_vm5, %v2528_v55, %v2537_v7  ;;  %v2547_v23 = vsel %vm2494_vm5, %v2537_v7, %v2546_v12  ;;  %v8680_v55 = vld [vmem:[%s8833_s23 + $0x68] sm:$0xff]   ;;  %v2606_v7 = vshll.u32 %v8685_v62, 16 }
  0x73   : > { %8344 = vmatmul.mubr.msk.bf16.gmra.mrb[48].mxu0 %vm372_vm1, %v1504_v17  ;;  %8310 = vmatmul.mubr.msk.bf16.gmra.mrb[48].mxu1 %vm372_vm1, %v996_v16  ;;  %v8672_v16 = vld [vmem:[%s8833_s23 + $0x48] sm:$0xff]   ;;  %v9135_v17 = vld [vmem:[%s10822_s1 + $0x20] sm:$0xf] }
  0x74   : > { %8347 = vmatprep.mubr.msk.bf16.mxu0 %vm372_vm1, %v1506_v18  ;;  %8353 = vmatprep.mubr.msk.bf16.mxu1 %vm372_vm1, %v1985_v24  ;;  %v2551_v18 = vrot.slane %v2549_v6, 1  ;;  %v2563_v24 = vrot.slane %v2561_v13, 2  ;;  %v1998_v29 = vrot.slane %v8672_v16, 1  ;;  %v2603_v6 = vshrl.u32 %v8685_v62, 16  ;;  %v8684_v13 = vld [vmem:[%s8833_s23 + $0x78] sm:$0xff]  }
  0x76   : > { %v2555_v30 = vor.u32 %v2554_v20, %v2551_v18  ;;  %v2564_v32 = vor.u32 %v2563_v24, %v2560_v21  ;;  %v2605_v16 = vrot.slane %v2603_v6, 1  ;;  %v2608_v18 = vrot.slane %v2606_v7, 2 }
  0x77   : > { %v2614_v21 = vrot.slane %v2612_v9, 1 }
  0x78   : > { %v2556_v39 = vsel %vm2494_vm5, %v2546_v12, %v2555_v30  ;;  %v2008_v12 = vrot.slane %v8682_v4, 1  ;;  %v2609_v27 = vor.u32 %v2608_v18, %v2605_v16  ;;  %v2657_v4 = vshrl.u32 %v8697_v53, 16  ;;  %v8700_v18 = vld [vmem:[%s8833_s23 + $0x10] sm:$0xfc]  }
  0x7b   : > { %8348 = vmatmul.mubr.msk.bf16.gmra.mrb[52].mxu0 %vm372_vm1, %v1508_v37  ;;  %8354 = vmatmul.mubr.msk.bf16.vlgmr.msra.gmra.mrb[52].mxu1 %vm372_vm1, %v1987_v42  ;;  %v2569_v37 = vrot.slane %v2567_v28, 1  ;;  %v1999_v42 = vsel %vm1471_vm3, %v1996_v15, %v1998_v29  ;;  %v2621_v28 = vshrl.u32 %v8689_v11, 16 }
  0x7c   : > { %8391 = vmatprep.mubr.msk.bf16.mxu0 %vm372_vm1, %v2511_v44  ;;  %8428 = vmatpush3.bf16.msra.mxu1 %v3232_v43  ;;  %v2565_v43 = vsel %vm2494_vm5, %v2555_v30, %v2564_v32  ;;  %v2578_v44 = vrot.slane %v2576_v33, 1  ;;  %v2012_v33 = vrot.slane %v8686_v25, 1 }
  0x7d   : > { %8357 = vmatprep.mubr.msk.bf16.mxu1 %vm372_vm1, %v1989_v46  ;;  %8589 = vmatprep.subr.msk.bf16.mxu1 %vm427_vm0, %v9113_v56  ;;  %v2001_v46 = vsel %vm1471_vm3, %v1998_v29, %v2000_v35  ;;  %v2573_v50 = vor.u32 %v2572_v40, %v2569_v37  ;;  %v2624_v29 = vshll.u32 %v8689_v11, 16  ;;  %v2623_v37 = vrot.slane %v2621_v28, 1  ;;  %v8701_v11 = vld [vmem:[%s8833_s23 + $0x18] sm:$0xff]   ;;  %v8703_v28 = vld [vmem:[%s8833_s23 + $0x20] sm:$0xff]  }
  0x7e   : > { %v2582_v52 = vor.u32 %v2581_v45, %v2578_v44  ;;  %v8690_v45 = vld [vmem:[%s8833_s23 + $0x90] sm:$0xff]  }
  0x7f   : > { %v2574_v60 = vsel %vm2494_vm5, %v2564_v32, %v2573_v50  ;;  %v2626_v38 = vrot.slane %v2624_v29, 2 }
  0x81   : > { %v2627_v49 = vor.u32 %v2626_v38, %v2623_v37 }
  0x83   : > { %8392 = vmatmul.mubr.msk.bf16.vlgmr.msra.gmra.mrb[56].mxu0 %vm372_vm1, %v2520_v61  ;;  %8358 = vmatmul.mubr.msk.bf16.gmra.mrb[56].mxu1 %vm372_vm1, %v1991_v0  ;;  %v2596_v61 = vrot.slane %v2594_v51, 1  ;;  %v2583_v0 = vsel %vm2494_vm5, %v2573_v50, %v2582_v52 }
  0x84   : > { %8466 = vmatpush3.bf16.msra.mxu0 %v3743_v58  ;;  %8361 = vmatprep.mubr.msk.bf16.mxu1 %vm372_vm1, %v1993_v5  ;;  %v2587_v58 = vrot.slane %v2585_v48, 1  ;;  %v2006_v5 = vrot.slane %v8680_v55, 1  ;;  %v2014_v48 = vrot.slane %v8688_v36, 1 }
  0x85   : > { %8395 = vmatprep.mubr.msk.bf16.mxu0 %vm372_vm1, %v2529_v14  ;;  %8590 = vmatprep.subr.msk.bf16.mxu0 %vm427_vm0, %v9135_v17  ;;  %v2600_v8 = vor.u32 %v2599_v1, %v2596_v61 }
  0x86   : > { %v2591_v14 = vor.u32 %v2590_v59, %v2587_v58  ;;  %v2009_v24 = vsel %vm1471_vm3, %v2006_v5, %v2008_v12  ;;  %v2644_v58 = vrot.slane %v2642_v47, 2  ;;  %v2015_v61 = vsel %vm1471_vm3, %v2012_v33, %v2014_v48 }
  0x87   : > { %v2610_v35 = vsel %vm2494_vm5, %v2600_v8, %v2609_v27 }
  0x88   : > { %v2592_v15 = vsel %vm2494_vm5, %v2582_v52, %v2591_v14  ;;  %v2601_v20 = vsel %vm2494_vm5, %v2591_v14, %v2600_v8  ;;  %v2016_v52 = vrot.slane %v8690_v45, 1  ;;  %v3141_v8 = vrot.slane %v8696_v2, 2 }
  0x8a   : > { %v2017_v1 = vsel %vm1471_vm3, %v2014_v48, %v2016_v52 }
  0x8b   : > { %8396 = vmatmul.mubr.msk.bf16.gmra.mrb[60].mxu0 %vm372_vm1, %v2538_v19  ;;  %8362 = vmatmul.mubr.msk.bf16.gmra.mrb[60].mxu1 %vm372_vm1, %v1995_v22  ;;  %v2007_v19 = vsel %vm1471_vm3, %v2004_v54, %v2006_v5  ;;  %v2617_v22 = vrot.slane %v2615_v10, 2  ;;  %v8692_v54 = vld [vmem:[%s8833_s23 + $0x98] ss:$0 sps:$4 sm:$0x11]   ;;  %v2660_v5 = vshll.u32 %v8697_v53, 16  ;;  %v2659_v10 = vrot.slane %v2657_v4, 1 }
  0x8c   : > { %8399 = vmatprep.mubr.msk.bf16.mxu0 %vm372_vm1, %v2547_v23  ;;  %8365 = vmatprep.mubr.msk.bf16.mxu1 %vm372_vm1, %v1997_v26  ;;  %v8691_v23 = vld [vmem:[%s8833_s23 + $0x80] sm:$0xff]   ;;  %v2010_v26 = vrot.slane %v8684_v13, 1  ;;  %v2018_v14 = vrot.slane %v8692_v54, 1  ;;  %v8698_v13 = vld [vmem:[%s8833_s23 + $0x18] sm:$0xff]   ;;  %v8713_v54 = vld [vmem:[%s8833_s23 + $0x48] sm:$0xff]  }
  0x8d   : > { %v2618_v30 = vor.u32 %v2617_v22, %v2614_v21  ;;  %v2630_v31 = vshrl.u32 %v8691_v23, 16  ;;  %v2633_v32 = vshll.u32 %v8691_v23, 16  ;;  %v3143_v22 = vrot.slane %v8698_v13, 2  ;;  %v8717_v4 = vld [vmem:[%s8833_s23 + $0x58] sm:$0xff]  }
  0x8e   : > { %v2013_v44 = vsel %vm1471_vm3, %v2010_v26, %v2012_v33  ;;  %v3651_v23 = vrot.slane %v8700_v18, 2  ;;  %v9280_v18 = vld [vmem:[%s8833_s23 + $0x68] sm:$0xff]  }
  0x8f   : > { %v2619_v40 = vsel %vm2494_vm5, %v2609_v27, %v2618_v30  ;;  %v2632_v41 = vrot.slane %v2630_v31, 1  ;;  %v2628_v59 = vsel %vm2494_vm5, %v2618_v30, %v2627_v49  ;;  %v8702_v27 = vld [vmem:[%s8833_s23 + $0x28] sm:$0xff]   ;;  %v3144_v29 = vsel %vm3139_vm6, %v3141_v8, %v3143_v22  ;;  %v8704_v31 = vld [vmem:[%s8833_s23 + $0x30] sm:$0xff]  }
  0x90   : > { %v3147_v36 = vrot.slane %v8702_v27, 2  ;;  %v3149_v37 = vrot.slane %v8704_v31, 2  ;;  %v265_v27 = vld [vmem:[#allocation2 + $0xa0] sm:$0xff] }
  0x93   : > { %8400 = vmatmul.mubr.msk.bf16.gmra.mrb[64].mxu0 %vm372_vm1, %v2556_v39  ;;  %8366 = vmatmul.mubr.msk.bf16.gmra.mrb[64].mxu1 %vm372_vm1, %v1999_v42  ;;  %v2011_v39 = vsel %vm1471_vm3, %v2008_v12, %v2010_v26  ;;  %v2635_v42 = vrot.slane %v2633_v32, 2  ;;  %v2662_v12 = vrot.slane %v2660_v5, 2  ;;  %v4388_v32 = vsel %vm427_vm0, %v9113_v56, 0 }
  0x94   : > { %8403 = vmatprep.mubr.msk.bf16.mxu0 %vm372_vm1, %v2565_v43  ;;  %8369 = vmatprep.mubr.msk.bf16.mxu1 %vm372_vm1, %v2001_v46  ;;  %v8694_v43 = vld [vmem:[%s8833_s23 + $0x90] sm:$0xff]   ;;  %v2639_v46 = vshrl.u32 %v8693_v34, 16  ;;  %v8705_v34 = vld [vmem:[%s8833_s23 + $0x28] sm:$0xff]  }
  0x95   : > { %v2636_v50 = vor.u32 %v2635_v42, %v2632_v41  ;;  %v2648_v51 = vshrl.u32 %v8694_v43, 16  ;;  %v2651_v57 = vshll.u32 %v8694_v43, 16  ;;  %v2663_v21 = vor.u32 %v2662_v12, %v2659_v10  ;;  %v8709_v43 = vld [vmem:[%s8833_s23 + $0x38] sm:$0xff]   ;;  %v8719_v12 = vld [vmem:[%s8833_s23 + $0x60] sm:$0xff]  }
  0x96   : > { %v2641_v55 = vrot.slane %v2639_v46, 1  ;;  %v3656_v38 = vrot.slane %v8705_v34, 2  ;;  %v4900_v42 = vsel %vm427_vm0, %v9135_v17, 0  ;;  %v8708_v46 = vld [vmem:[%s8833_s23 + $0x40] sm:$0xff]   ;;  %v3660_v48 = vrot.slane %v8709_v43, 2  ;;  %v246_v34 = vld [vmem:[#allocation2 + $0x8] sm:$0xff] }
  0x97   : > { %v2637_v62 = vsel %vm2494_vm5, %v2627_v49, %v2636_v50  ;;  %v3153_v49 = vrot.slane %v8708_v46, 2  ;;  %vm7455_vm0 = vcmask 1047559  }
  0x9b   : > { %8404 = vmatmul.mubr.msk.bf16.gmra.mrb[68].mxu0 %vm372_vm1, %v2574_v60  ;;  %8370 = vmatmul.mubr.msk.bf16.gmra.mrb[68].mxu1 %vm372_vm1, %v2003_v63  ;;  %v8695_v60 = vld [vmem:[%s8833_s23 + $0x8] sm:$0xfc]   ;;  %v2650_v63 = vrot.slane %v2648_v51, 1 }
  0x9c   : > { %8407 = vmatprep.mubr.msk.bf16.mxu0 %vm372_vm1, %v2583_v0  ;;  %8373 = vmatprep.mubr.msk.bf16.mxu1 %vm372_vm1, %v2005_v3  ;;  %v2653_v0 = vrot.slane %v2651_v57, 2  ;;  %v2645_v3 = vor.u32 %v2644_v58, %v2641_v55  ;;  %v3140_v7 = vrot.slane %v8695_v60, 2  ;;  %v8711_v57 = vld [vmem:[%s8833_s23 + $0x40] sm:$0xff]   ;;  %v8712_v58 = vld [vmem:[%s8833_s23 + $0x50] sm:$0xff]  }
  0x9e   : > { %v2654_v6 = vor.u32 %v2653_v0, %v2650_v63  ;;  %v2646_v9 = vsel %vm2494_vm5, %v2636_v50, %v2645_v3  ;;  %v8710_v50 = vld [vmem:[%s8833_s23 + $0x48] sm:$0xff]   ;;  %v8715_v0 = vld [vmem:[%s8833_s23 + $0x50] sm:$0xff]  }
  0x9f   : > { %v3155_v60 = vrot.slane %v8710_v50, 2 }
  0xa0   : > { %v2655_v16 = vsel %vm2494_vm5, %v2645_v3, %v2654_v6  ;;  %v2664_v26 = vsel %vm2494_vm5, %v2654_v6, %v2663_v21  ;;  %v8714_v3 = vld [vmem:[%s8833_s23 + $0x58] sm:$0xff]   ;;  %v3666_v6 = vrot.slane %v8715_v0, 2  ;;  %v3670_v21 = vrot.slane %v8719_v12, 2  ;;  %v270_v12 = vld [vmem:[#allocation2 + $0xc8] sm:$0xff] }
  0xa1   : > { %v272_v0 = vld [vmem:[#allocation2 + $0xd8] sm:$0xff] }
  0xa3   : > { %8408 = vmatmul.mubr.msk.bf16.gmra.mrb[72].mxu0 %vm372_vm1, %v2592_v15  ;;  %8374 = vmatmul.mubr.msk.bf16.gmra.mrb[72].mxu1 %vm372_vm1, %v2007_v19  ;;  %v2019_v15 = vsel %vm1471_vm3, %v2016_v52, %v2018_v14  ;;  %v3142_v19 = vsel %vm3139_vm6, %v3140_v7, %v3141_v8  ;;  %v8716_v14 = vld [vmem:[%s8833_s23 + $0x60] sm:$0xff]   ;;  %v3159_v7 = vrot.slane %v8714_v3, 2  ;;  %v3668_v8 = vrot.slane %v8717_v4, 2 }
  0xa4   : > { %8411 = vmatprep.mubr.msk.bf16.mxu0 %vm372_vm1, %v2601_v20  ;;  %8377 = vmatprep.mubr.msk.bf16.mxu1 %vm372_vm1, %v2009_v24  ;;  %v8699_v20 = vld [vmem:[%s8833_s23 + $0x20] sm:$0xff]   ;;  %v3652_v24 = vrot.slane %v8701_v11, 2 }
  0xa5   : > { %v3145_v25 = vrot.slane %v8699_v20, 2  ;;  %v247_v20 = vld [vmem:[#allocation2 + $0x10] sm:$0xff] }
  0xa6   : > { %v3653_v30 = vsel %vm3139_vm6, %v3651_v23, %v3652_v24  ;;  %v245_v23 = vld [vmem:[#allocation2] sm:$0xff] }
  0xa7   : > { %v3146_v33 = vsel %vm3139_vm6, %v3143_v22, %v3145_v25  ;;  %v3148_v41 = vsel %vm3139_vm6, %v3145_v25, %v3147_v36  ;;  %v267_v22 = vld [vmem:[#allocation2 + $0xb0] sm:$0xff]  ;;  %v3672_v25 = vrot.slane %v9280_v18, 2 }
  0xa9   : > { %v3673_v46 = vsel %vm3139_vm6, %v3670_v21, %v3672_v25 }
  0xab   : > { %8412 = vmatmul.mubr.msk.bf16.gmra.mrb[76].mxu0 %vm372_vm1, %v2610_v35  ;;  %8378 = vmatmul.mubr.msk.bf16.gmra.mrb[76].mxu1 %vm372_vm1, %v2011_v39  ;;  %v3654_v35 = vrot.slane %v8703_v28, 2  ;;  %v8706_v39 = vld [vmem:[%s8833_s23 + $0x38] sm:$0xff]  }
  0xac   : > { %8415 = vmatprep.mubr.msk.bf16.mxu0 %vm372_vm1, %v2619_v40  ;;  %8381 = vmatprep.mubr.msk.bf16.mxu1 %vm372_vm1, %v2013_v44  ;;  %v8707_v40 = vld [vmem:[%s8833_s23 + $0x30] sm:$0xff]   ;;  %v3150_v44 = vsel %vm3139_vm6, %v3147_v36, %v3149_v37  ;;  %v3151_v17 = vrot.slane %v8706_v39, 2  ;;  %v248_v28 = vld [vmem:[#allocation2 + $0x18] sm:$0xff]  ;;  %v3671_v39 = vsel %vm3139_vm6, %v3668_v8, %v3670_v21 }
  0xad   : > { %v3655_v56 = vsel %vm3139_vm6, %v3652_v24, %v3654_v35  ;;  %v3657_v45 = vsel %vm3139_vm6, %v3654_v35, %v3656_v38  ;;  %v3658_v47 = vrot.slane %v8707_v40, 2  ;;  %v8723_v40 = vld [vmem:[%s8833_s23 + $0x70] sm:$0xff]  }
  0xae   : > { %v3152_v52 = vsel %vm3139_vm6, %v3149_v37, %v3151_v17  ;;  %v3154_v55 = vsel %vm3139_vm6, %v3151_v17, %v3153_v49  ;;  %v9301_v17 = vld [vmem:[%s8833_s23 + $0x78] sm:$0xff]  }
  0xaf   : > { %v3659_v51 = vsel %vm3139_vm6, %v3656_v38, %v3658_v47  ;;  %v3661_v53 = vsel %vm3139_vm6, %v3658_v47, %v3660_v48  ;;  %v8722_v47 = vld [vmem:[%s8833_s23 + $0x78] sm:$0xff]  }
  0xb3   : > { %8416 = vmatmul.mubr.msk.bf16.gmra.mrb[80].mxu0 %vm372_vm1, %v2628_v59  ;;  %8382 = vmatmul.mubr.msk.bf16.gmra.mrb[80].mxu1 %vm372_vm1, %v2015_v61  ;;  %v3662_v59 = vrot.slane %v8711_v57, 2  ;;  %v3664_v61 = vrot.slane %v8713_v54, 2  ;;  %v9309_v57 = vld [vmem:[%s8833_s23 + $0x80] sm:$0xff]   ;;  %v3674_v54 = vrot.slane %v8723_v40, 2  ;;  %v256_v40 = vld [vmem:[#allocation2 + $0x58] sm:$0xff] }
  0xb4   : > { %8419 = vmatprep.mubr.msk.bf16.mxu0 %vm372_vm1, %v2637_v62  ;;  %8385 = vmatprep.mubr.msk.bf16.mxu1 %vm372_vm1, %v2017_v1  ;;  %v3157_v62 = vrot.slane %v8712_v58, 2  ;;  %v3156_v1 = vsel %vm3139_vm6, %v3153_v49, %v3155_v60  ;;  %v249_v58 = vld [vmem:[#allocation2 + $0x20] sm:$0xff] }
  0xb5   : > { %v3663_v63 = vsel %vm3139_vm6, %v3660_v48, %v3662_v59  ;;  %v3665_v2 = vsel %vm3139_vm6, %v3662_v59, %v3664_v61  ;;  %v3667_v10 = vsel %vm3139_vm6, %v3664_v61, %v3666_v6  ;;  %v3167_v59 = vrot.slane %v8722_v47, 2 }
  0xb6   : > { %v3158_v5 = vsel %vm3139_vm6, %v3155_v60, %v3157_v62  ;;  %v3160_v13 = vsel %vm3139_vm6, %v3157_v62, %v3159_v7  ;;  %v3676_v60 = vrot.slane %v9301_v17, 2  ;;  %v269_v62 = vld [vmem:[#allocation2 + $0xc0] sm:$0xff]  ;;  %v9376_v17 = vld [vmem:[%s8833_s23 + $0x98] sm:$0xff]  }
  0xb8   : > { %v3677_v18 = vsel %vm3139_vm6, %v3674_v54, %v3676_v60 }
  0xbb   : > { %8420 = vmatmul.mubr.msk.bf16.gmra.mrb[84].mxu0 %vm372_vm1, %v2646_v9  ;;  %8386 = vmatmul.mubr.msk.bf16.gmra.mrb[84].mxu1 %vm372_vm1, %v2019_v15  ;;  %v3161_v9 = vrot.slane %v8716_v14, 2  ;;  %v3669_v15 = vsel %vm3139_vm6, %v3666_v6, %v3668_v8  ;;  %v9323_v14 = vld [vmem:[%s8833_s23 + $0x88] sm:$0xff]   ;;  %v9326_v6 = vld [vmem:[%s8833_s23 + $0x80] sm:$0xff]  }
  0xbc   : > { %8423 = vmatprep.mubr.msk.bf16.mxu0 %vm372_vm1, %v2655_v16  ;;  %8429 = vmatprep.mubr.msk.bf16.mxu1 %vm372_vm1, %v3142_v19  ;;  %v8718_v16 = vld [vmem:[%s8833_s23 + $0x68] sm:$0xff]   ;;  %v9284_v19 = vld [vmem:[%s8833_s23 + $0x70] sm:$0xff]  }
  0xbd   : > { %v3162_v11 = vsel %vm3139_vm6, %v3159_v7, %v3161_v9  ;;  %v3163_v24 = vrot.slane %v8718_v16, 2  ;;  %v9335_v16 = vld [vmem:[%s8833_s23 + $0x88] sm:$0xff]  }
  0xc3   : > { %8424 = vmatmul.mubr.msk.bf16.gmra.mrb[88].mxu0 %vm372_vm1, %v2664_v26  ;;  %8430 = vmatmul.mubr.msk.bf16.vlgmr.msra.gmra.mrb[88].mxu1 %vm372_vm1, %v3144_v29  ;;  %v3165_v29 = vrot.slane %v9284_v19, 2 }
  0xc4   : > { %8467 = vmatprep.mubr.msk.bf16.mxu0 %vm372_vm1, %v3653_v30  ;;  %8504 = vmatpush3.bf16.msra.mxu1 %v4388_v32 }
  0xc5   : > { %8433 = vmatprep.mubr.msk.bf16.mxu1 %vm372_vm1, %v3146_v33  ;;  %v268_v33 = vld [vmem:[#allocation2 + $0xb8] sm:$0xff] }
  0xcb   : > { %8468 = vmatmul.mubr.msk.bf16.vlgmr.msra.gmra.mrb[92].mxu0 %vm372_vm1, %v3655_v56  ;;  %8434 = vmatmul.mubr.msk.bf16.gmra.mrb[92].mxu1 %vm372_vm1, %v3148_v41  ;;  %v266_v56 = vld [vmem:[#allocation2 + $0xa8] sm:$0xff] }
  0xcc   : > { %8542 = vmatpush3.bf16.msra.mxu0 %v4900_v42  ;;  %8437 = vmatprep.mubr.msk.bf16.mxu1 %vm372_vm1, %v3150_v44 }
  0xcd   : > { %8471 = vmatprep.mubr.msk.bf16.mxu0 %vm372_vm1, %v3657_v45  ;;  %v3164_v45 = vsel %vm3139_vm6, %v3161_v9, %v3163_v24 }
  0xd3   : > { %8472 = vmatmul.mubr.msk.bf16.gmra.mrb[96].mxu0 %vm372_vm1, %v3659_v51  ;;  %8438 = vmatmul.mubr.msk.bf16.gmra.mrb[96].mxu1 %vm372_vm1, %v3152_v52  ;;  %v3166_v51 = vsel %vm3139_vm6, %v3163_v24, %v3165_v29  ;;  %v8733_v24 = vld [vmem:[%s8833_s23 + $0x10] sm:$0xfc]  }
  0xd4   : > { %8475 = vmatprep.mubr.msk.bf16.mxu0 %vm372_vm1, %v3661_v53  ;;  %8441 = vmatprep.mubr.msk.bf16.mxu1 %vm372_vm1, %v3154_v55  ;;  %v251_v53 = vld [vmem:[#allocation2 + $0x30] sm:$0xff] }
  0xd5   : > { %v271_v55 = vld [vmem:[#allocation2 + $0xd0] sm:$0xff] }
  0xdb   : > { %8476 = vmatmul.mubr.msk.bf16.gmra.mrb[100].mxu0 %vm372_vm1, %v3663_v63  ;;  %8442 = vmatmul.mubr.msk.bf16.gmra.mrb[100].mxu1 %vm372_vm1, %v3156_v1  ;;  %v252_v63 = vld [vmem:[#allocation2 + $0x38] sm:$0xff]  ;;  %v3169_v1 = vrot.slane %v9309_v57, 2 }
  0xdc   : > { %8479 = vmatprep.mubr.msk.bf16.mxu0 %vm372_vm1, %v3665_v2  ;;  %8445 = vmatprep.mubr.msk.bf16.mxu1 %vm372_vm1, %v3158_v5  ;;  %v250_v5 = vld [vmem:[#allocation2 + $0x28] sm:$0xff] }
  0xe3   : > { %8480 = vmatmul.mubr.msk.bf16.gmra.mrb[104].mxu0 %vm372_vm1, %v3667_v10  ;;  %8446 = vmatmul.mubr.msk.bf16.gmra.mrb[104].mxu1 %vm372_vm1, %v3160_v13  ;;  %v3675_v13 = vsel %vm3139_vm6, %v3672_v25, %v3674_v54 }
  0xe4   : > { %8483 = vmatprep.mubr.msk.bf16.mxu0 %vm372_vm1, %v3669_v15  ;;  %8449 = vmatprep.mubr.msk.bf16.mxu1 %vm372_vm1, %v3162_v11  ;;  %v9332_v15 = vld [vmem:[%s8833_s23 + $0x90] sm:$0xff]  }
  0xe6   : > { %v8241_v26 = vpop.f32.mrb[0].mxu0  ;;  %v8261_v31 = vpop.f32.mrb[0].mxu1 }
  0xe7   : > { %v610_v30 = vadd.f32 %v8241_v26, %v247_v20  ;;  %v465_v32 = vpop.f32.mrb[1].mxu0  ;;  %v630_v35 = vadd.f32 %v8261_v31, %v267_v22  ;;  %v545_v37 = vpop.f32.mrb[1].mxu1  ;;  %v3678_v31 = vrot.slane %v9326_v6, 2 }
  0xe8   : > { %v608_v36 = vadd.f32 %v465_v32, %v245_v23  ;;  %v8242_v38 = vpop.f32.mrb[2].mxu0  ;;  %v628_v41 = vadd.f32 %v545_v37, %v265_v27  ;;  %v8262_v43 = vpop.f32.mrb[2].mxu1  ;;  %v3168_v23 = vsel %vm3139_vm6, %v3165_v29, %v3167_v59  ;;  %v3171_v29 = vrot.slane %v9323_v14, 2  ;;  %v255_v32 = vld [vmem:[#allocation2 + $0x50] sm:$0xff]  ;;  %v273_v37 = vld [vmem:[#allocation2 + $0xe0] sm:$0xff] }
  0xe9   : > { %646 = vst.msk [vmem:[#allocation2 + $0x10] sm:$0xff] %vm172_vm4, %v610_v30  ;;  %v611_v42 = vadd.f32 %v8242_v38, %v248_v28  ;;  %v468_v44 = vpop.f32.mrb[3].mxu0  ;;  %666 = vst.msk [vmem:[#allocation2 + $0xb0] sm:$0xff] %vm172_vm4, %v630_v35  ;;  %v631_v48 = vadd.f32 %v8262_v43, %v268_v33  ;;  %v548_v50 = vpop.f32.mrb[3].mxu1  ;;  %v3170_v28 = vsel %vm3139_vm6, %v3167_v59, %v3169_v1  ;;  %v8734_v30 = vld [vmem:[%s8833_s23 + $0x18] sm:$0xff]   ;;  %v3173_v33 = vrot.slane %v9332_v15, 2 }
  0xea   : > { %644 = vst.msk [vmem:[#allocation2] sm:$0xff] %vm172_vm4, %v608_v36  ;;  %v609_v49 = vadd.f32 %v468_v44, %v246_v34  ;;  %664 = vst.msk [vmem:[#allocation2 + $0xa0] sm:$0xff] %vm172_vm4, %v628_v41  ;;  %v629_v52 = vadd.f32 %v548_v50, %v266_v56  ;;  %v3680_v34 = vrot.slane %v9335_v16, 2  ;;  %v275_v35 = vld [vmem:[#allocation2 + $0xf0] sm:$0xff]  ;;  %v253_v36 = vld [vmem:[#allocation2 + $0x40] sm:$0xff]  ;;  %v4164_v38 = vshrl.u32 %v8733_v24, 16 }
  0xeb   : > { %647 = vst.msk [vmem:[#allocation2 + $0x18] sm:$0xff] %vm172_vm4, %v611_v42  ;;  %8484 = vmatmul.mubr.msk.bf16.gmra.mrb[108].mxu0 %vm372_vm1, %v3671_v39  ;;  %667 = vst.msk [vmem:[#allocation2 + $0xb8] sm:$0xff] %vm172_vm4, %v631_v48  ;;  %8450 = vmatmul.mubr.msk.bf16.gmra.mrb[108].mxu1 %vm372_vm1, %v3164_v45  ;;  %v4167_v56 = vshll.u32 %v8733_v24, 16  ;;  %v276_v41 = vld [vmem:[#allocation2 + $0xf8] sm:$0xff]  ;;  %v254_v42 = vld [vmem:[#allocation2 + $0x48] sm:$0xff]  ;;  %v4172_v43 = vshrl.u32 %v8734_v30, 16  ;;  %v3172_v48 = vsel %vm3139_vm6, %v3169_v1, %v3171_v29 }
  0xec   : > { %645 = vst.msk [vmem:[#allocation2 + $0x8] sm:$0xff] %vm172_vm4, %v609_v49  ;;  %8487 = vmatprep.mubr.msk.bf16.mxu0 %vm372_vm1, %v3673_v46  ;;  %665 = vst.msk [vmem:[#allocation2 + $0xa8] sm:$0xff] %vm172_vm4, %v629_v52  ;;  %8453 = vmatprep.mubr.msk.bf16.mxu1 %vm372_vm1, %v3166_v51  ;;  %v4175_v44 = vshll.u32 %v8734_v30, 16  ;;  %v3679_v49 = vsel %vm3139_vm6, %v3676_v60, %v3678_v31  ;;  %v8730_v50 = vld [vmem:[%s8833_s23 + $0x98] ss:$0 sps:$4 sm:$0x33]   ;;  %v3681_v59 = vsel %vm3139_vm6, %v3678_v31, %v3680_v34 }
  0xed   : > { %v8736_v51 = vld [vmem:[%s8833_s23 + $0x20] sm:$0xff]   ;;  %v9379_v1 = vrot.slane %v4164_v38, 2  ;;  %v4174_v6 = vrot.slane %v4172_v43, 2  ;;  %v8740_v15 = vld [vmem:[%s8833_s23 + $0x30] sm:$0xff]  }
  0xee   : > { %v8245_v61 = vpop.f32.mrb[4].mxu0  ;;  %v8265_v3 = vpop.f32.mrb[4].mxu1  ;;  %v9401_v30 = vld [vmem:[%s8833_s23 + $0xa0] ss:$0 sps:$4 sm:$0x33]  }
  0xef   : > { %v614_v2 = vadd.f32 %v8245_v61, %v251_v53  ;;  %v481_v4 = vpop.f32.mrb[5].mxu0  ;;  %v634_v7 = vadd.f32 %v8265_v3, %v271_v55  ;;  %v561_v9 = vpop.f32.mrb[5].mxu1  ;;  %v274_v55 = vld [vmem:[#allocation2 + $0xe8] sm:$0xff]  ;;  %v8731_v61 = vld [vmem:[%s8833_s23 + $0x90] sm:$0xff]  }
  0xf0   : > { %v612_v8 = vadd.f32 %v481_v4, %v249_v58  ;;  %v8246_v10 = vpop.f32.mrb[6].mxu0  ;;  %v632_v11 = vadd.f32 %v561_v9, %v269_v62  ;;  %v8266_v21 = vpop.f32.mrb[6].mxu1  ;;  %v3174_v58 = vsel %vm3139_vm6, %v3171_v29, %v3173_v33  ;;  %v8737_v3 = vld [vmem:[%s8833_s23 + $0x28] sm:$0xff]   ;;  %v3175_v9 = vrot.slane %v8730_v50, 2 }
  0xf1   : > { %650 = vst.msk [vmem:[#allocation2 + $0x30] sm:$0xff] %vm172_vm4, %v614_v2  ;;  %v615_v20 = vadd.f32 %v8246_v10, %v252_v63  ;;  %v484_v22 = vpop.f32.mrb[7].mxu0  ;;  %670 = vst.msk [vmem:[#allocation2 + $0xd0] sm:$0xff] %vm172_vm4, %v634_v7  ;;  %v635_v25 = vadd.f32 %v8266_v21, %v272_v0  ;;  %v564_v27 = vpop.f32.mrb[7].mxu1  ;;  %v9381_v2 = vrot.slane %v4167_v56, 3  ;;  %v4177_v7 = vrot.slane %v4175_v44, 3 }
  0xf2   : > { %648 = vst.msk [vmem:[#allocation2 + $0x20] sm:$0xff] %vm172_vm4, %v612_v8  ;;  %v613_v26 = vadd.f32 %v484_v22, %v250_v5  ;;  %668 = vst.msk [vmem:[#allocation2 + $0xc0] sm:$0xff] %vm172_vm4, %v632_v11  ;;  %v633_v19 = vadd.f32 %v564_v27, %v270_v12  ;;  %v4181_v10 = vshrl.u32 %v8736_v51, 16  ;;  %v4184_v12 = vshll.u32 %v8736_v51, 16  ;;  %v279_v21 = vld [vmem:[#allocation2 + $0x110] sm:$0xff]  ;;  %v257_v22 = vld [vmem:[#allocation2 + $0x60] sm:$0xff] }
  0xf3   : > { %651 = vst.msk [vmem:[#allocation2 + $0x38] sm:$0xff] %vm172_vm4, %v615_v20  ;;  %8488 = vmatmul.mubr.msk.bf16.gmra.mrb[112].mxu0 %vm372_vm1, %v3675_v13  ;;  %671 = vst.msk [vmem:[#allocation2 + $0xd8] sm:$0xff] %vm172_vm4, %v635_v25  ;;  %8454 = vmatmul.mubr.msk.bf16.gmra.mrb[112].mxu1 %vm372_vm1, %v3168_v23  ;;  %v259_v13 = vld [vmem:[#allocation2 + $0x70] sm:$0xff]  ;;  %v3682_v11 = vrot.slane %v8731_v61, 2  ;;  %v3684_v20 = vrot.slane %v9376_v17, 2  ;;  %v4190_v23 = vshrl.u32 %v8737_v3, 16  ;;  %v4170_v27 = vor.u32 %v9381_v2, %v9379_v1 }
  0xf4   : > { %649 = vst.msk [vmem:[#allocation2 + $0x28] sm:$0xff] %vm172_vm4, %v613_v26  ;;  %8491 = vmatprep.mubr.msk.bf16.mxu0 %vm372_vm1, %v3677_v18  ;;  %669 = vst.msk [vmem:[#allocation2 + $0xc8] sm:$0xff] %vm172_vm4, %v633_v19  ;;  %8457 = vmatprep.mubr.msk.bf16.mxu1 %vm372_vm1, %v3170_v28  ;;  %v4193_v18 = vshll.u32 %v8737_v3, 16  ;;  %v277_v25 = vld [vmem:[#allocation2 + $0x100] sm:$0xff]  ;;  %v260_v26 = vld [vmem:[#allocation2 + $0x78] sm:$0xff]  ;;  %v9398_v28 = vor.u32 %v4177_v7, %v4174_v6  ;;  %v4186_v38 = vrot.slane %v4184_v12, 3 }
  0xf5   : > { %v3683_v43 = vsel %vm3139_vm6, %v3680_v34, %v3682_v11  ;;  %v3685_v44 = vsel %vm3139_vm6, %v3682_v11, %v3684_v20  ;;  %v8738_v51 = vld [vmem:[%s8833_s23 + $0x10] sm:$0xf8]   ;;  %v4199_v61 = vshrl.u32 %v8740_v15, 16  ;;  %v264_v3 = vld [vmem:[#allocation2 + $0x98] sm:$0xff] }
  0xf6   : > { %v8249_v39 = vpop.f32.mrb[8].mxu0  ;;  %v8269_v46 = vpop.f32.mrb[8].mxu1  ;;  %v4195_v50 = vrot.slane %v4193_v18, 3  ;;  %v719_v6 = vld [vmem:[#allocation2 + $0x10] sm:$0xff] }
  0xf7   : > { %v618_v45 = vadd.f32 %v8249_v39, %v255_v32  ;;  %v497_v47 = vpop.f32.mrb[9].mxu0  ;;  %v638_v57 = vadd.f32 %v8269_v46, %v275_v35  ;;  %v577_v53 = vpop.f32.mrb[9].mxu1  ;;  %v280_v32 = vld [vmem:[#allocation2 + $0x118] sm:$0xff]  ;;  %v258_v35 = vld [vmem:[#allocation2 + $0x68] sm:$0xff] }
  0xf8   : > { %v616_v52 = vadd.f32 %v497_v47, %v253_v36  ;;  %v8250_v54 = vpop.f32.mrb[10].mxu0  ;;  %v636_v60 = vadd.f32 %v577_v53, %v273_v37  ;;  %v8270_v63 = vpop.f32.mrb[10].mxu1  ;;  %v3176_v36 = vsel %vm3139_vm6, %v3173_v33, %v3175_v9  ;;  %v4183_v37 = vrot.slane %v4181_v10, 2  ;;  %v8742_v53 = vld [vmem:[%s8833_s23 + $0x38] sm:$0xff]   ;;  %v262_v9 = vld [vmem:[#allocation2 + $0x88] sm:$0xff] }
  0xf9   : > { %654 = vst.msk [vmem:[#allocation2 + $0x50] sm:$0xff] %vm172_vm4, %v618_v45  ;;  %v619_v62 = vadd.f32 %v8250_v54, %v256_v40  ;;  %v500_v0 = vpop.f32.mrb[11].mxu0  ;;  %674 = vst.msk [vmem:[#allocation2 + $0xf0] sm:$0xff] %vm172_vm4, %v638_v57  ;;  %v639_v4 = vadd.f32 %v8270_v63, %v276_v41  ;;  %v580_v14 = vpop.f32.mrb[11].mxu1  ;;  %v9413_v45 = vld [vmem:[%s8833_s23 + $0x18] sm:$0xff]  }
  0xfa   : > { %652 = vst.msk [vmem:[#allocation2 + $0x40] sm:$0xff] %vm172_vm4, %v616_v52  ;;  %v617_v5 = vadd.f32 %v500_v0, %v254_v42  ;;  %672 = vst.msk [vmem:[#allocation2 + $0xe0] sm:$0xff] %vm172_vm4, %v636_v60  ;;  %v637_v8 = vadd.f32 %v580_v14, %v274_v55  ;;  %v278_v42 = vld [vmem:[#allocation2 + $0x108] sm:$0xff]  ;;  %v4179_v52 = vsel %vm4162_vm7, %v4170_v27, %v9398_v28  ;;  %v3686_v55 = vrot.slane %v9401_v30, 2 }
  0xfb   : > { %655 = vst.msk [vmem:[#allocation2 + $0x58] sm:$0xff] %vm172_vm4, %v619_v62  ;;  %8492 = vmatmul.mubr.msk.bf16.gmra.mrb[116].mxu0 %vm372_vm1, %v3679_v49  ;;  %675 = vst.msk [vmem:[#allocation2 + $0xf8] sm:$0xff] %vm172_vm4, %v639_v4  ;;  %8458 = vmatmul.mubr.msk.bf16.gmra.mrb[116].mxu1 %vm372_vm1, %v3172_v48  ;;  %v4192_v49 = vrot.slane %v4190_v23, 2  ;;  %v4202_v60 = vshll.u32 %v8740_v15, 16  ;;  %v261_v62 = vld [vmem:[#allocation2 + $0x80] sm:$0xff]  ;;  %v4808_v0 = vrot.slane %v8738_v51, 3 }
  0xfc   : > { %653 = vst.msk [vmem:[#allocation2 + $0x48] sm:$0xff] %vm172_vm4, %v617_v5  ;;  %8495 = vmatprep.mubr.msk.bf16.mxu0 %vm372_vm1, %v3681_v59  ;;  %673 = vst.msk [vmem:[#allocation2 + $0xe8] sm:$0xff] %vm172_vm4, %v637_v8  ;;  %8461 = vmatprep.mubr.msk.bf16.mxu1 %vm372_vm1, %v3174_v58  ;;  %v4187_v58 = vor.u32 %v4186_v38, %v4183_v37  ;;  %v263_v59 = vld [vmem:[#allocation2 + $0x90] sm:$0xff]  ;;  %v4809_v1 = vrot.slane %v9413_v45, 3  ;;  %v4208_v4 = vshrl.u32 %v8742_v53, 16  ;;  %v4211_v5 = vshll.u32 %v8742_v53, 16 }
  0xfd   : > { %v9433_v63 = vor.u32 %v4195_v50, %v4192_v49  ;;  %v3687_v10 = vsel %vm3139_vm6, %v3684_v20, %v3686_v55  ;;  %v720_v20 = vld [vmem:[#allocation2 + $0x18] sm:$0xff]  ;;  %v718_v37 = vld [vmem:[#allocation2 + $0x8] sm:$0xff]  ;;  %v723_v49 = vld [vmem:[#allocation2 + $0x30] sm:$0xff] }
  0xfe   : > { %v8253_v24 = vpop.f32.mrb[12].mxu0  ;;  %v8273_v29 = vpop.f32.mrb[12].mxu1  ;;  %v4188_v12 = vsel %vm4162_vm7, %v9398_v28, %v4187_v58  ;;  %v721_v53 = vld [vmem:[#allocation2 + $0x20] sm:$0xff]  ;;  %v724_v45 = vld [vmem:[#allocation2 + $0x38] sm:$0xff] }
  0xff   : > { %v622_v19 = vadd.f32 %v8253_v24, %v259_v13  ;;  %v513_v31 = vpop.f32.mrb[13].mxu0  ;;  %v642_v56 = vadd.f32 %v8273_v29, %v279_v21  ;;  %v593_v40 = vpop.f32.mrb[13].mxu1  ;;  %v9442_v13 = vld [vmem:[%s8833_s23 + $0x20] sm:$0xff]   ;;  %v4201_v24 = vrot.slane %v4199_v61, 2  ;;  %v4197_v28 = vsel %vm4162_vm7, %v4187_v58, %v9433_v63 }
 0x100   : > { %v620_v39 = vadd.f32 %v513_v31, %v257_v22  ;;  %v8254_v41 = vpop.f32.mrb[14].mxu0  ;;  %v640_v33 = vadd.f32 %v593_v40, %v277_v25  ;;  %v8274_v47 = vpop.f32.mrb[14].mxu1  ;;  %v717_v22 = vld [vmem:[#allocation2] sm:$0xff]  ;;  %v4204_v25 = vrot.slane %v4202_v60, 3  ;;  %v4810_v29 = vsel %vm4807_vm8, %v4808_v0, %v4809_v1  ;;  %v9452_v31 = vld [vmem:[%s8833_s23 + $0x28] sm:$0xff]   ;;  %v9480_v60 = vld [vmem:[%s8833_s23 + $0x38] sm:$0xff]  }
 0x101   : > { %658 = vst.msk [vmem:[#allocation2 + $0x70] sm:$0xff] %vm172_vm4, %v622_v19  ;;  %v623_v46 = vadd.f32 %v8254_v41, %v260_v26  ;;  %v516_v48 = vpop.f32.mrb[15].mxu0  ;;  %678 = vst.msk [vmem:[#allocation2 + $0x110] sm:$0xff] %vm172_vm4, %v642_v56  ;;  %v643_v16 = vadd.f32 %v8274_v47, %v280_v32  ;;  %v596_v57 = vpop.f32.mrb[15].mxu1  ;;  %v8744_v26 = vld [vmem:[%s8833_s23 + $0x40] sm:$0xff]   ;;  %v8746_v32 = vld [vmem:[%s8833_s23 + $0x48] sm:$0xff]  }
 0x102   : > { %656 = vst.msk [vmem:[#allocation2 + $0x60] sm:$0xff] %vm172_vm4, %v620_v39  ;;  %v621_v34 = vadd.f32 %v516_v48, %v258_v35  ;;  %676 = vst.msk [vmem:[#allocation2 + $0x100] sm:$0xff] %vm172_vm4, %v640_v33  ;;  %v641_v54 = vadd.f32 %v596_v57, %v278_v42  ;;  %v4210_v56 = vrot.slane %v4208_v4, 2  ;;  %v4213_v39 = vrot.slane %v4211_v5, 3  ;;  %v8748_v57 = vld [vmem:[%s8833_s23 + $0x50] sm:$0xff]  }
 0x103   : > { %659 = vst.msk [vmem:[#allocation2 + $0x78] sm:$0xff] %vm172_vm4, %v623_v46  ;;  %8496 = vmatmul.mubr.msk.bf16.gmra.mrb[120].mxu0 %vm372_vm1, %v3683_v43  ;;  %679 = vst.msk [vmem:[#allocation2 + $0x118] sm:$0xff] %vm172_vm4, %v643_v16  ;;  %8462 = vmatmul.mubr.msk.bf16.gmra.mrb[120].mxu1 %vm372_vm1, %v3176_v36  ;;  %v4811_v41 = vrot.slane %v9442_v13, 3  ;;  %v4205_v42 = vor.u32 %v4204_v25, %v4201_v24  ;;  %v4217_v43 = vshrl.u32 %v8744_v26, 16  ;;  %v4813_v15 = vrot.slane %v9452_v31, 3 }
 0x104   : > { %657 = vst.msk [vmem:[#allocation2 + $0x68] sm:$0xff] %vm172_vm4, %v621_v34  ;;  %8499 = vmatprep.mubr.msk.bf16.mxu0 %vm372_vm1, %v3685_v44  ;;  %677 = vst.msk [vmem:[#allocation2 + $0x108] sm:$0xff] %vm172_vm4, %v641_v54  ;;  %8505 = vmatprep.mubr.msk.bf16.mxu1 %vm372_vm1, %v4179_v52  ;;  %v4220_v44 = vshll.u32 %v8744_v26, 16  ;;  %v4226_v33 = vshrl.u32 %v8746_v32, 16  ;;  %v4229_v46 = vshll.u32 %v8746_v32, 16  ;;  %v9468_v48 = vor.u32 %v4213_v39, %v4210_v56  ;;  %v9474_v34 = vld [vmem:[%s8833_s23 + $0x30] sm:$0xff]  }
 0x105   : > { %v4812_v16 = vsel %vm4807_vm8, %v4809_v1, %v4811_v41  ;;  %v4206_v58 = vsel %vm4162_vm7, %v9433_v63, %v4205_v42  ;;  %v4238_v24 = vshll.u32 %v8748_v57, 16 }
 0x106   : > { %v8257_v2 = vpop.f32.mrb[16].mxu0  ;;  %v8279_v7 = vpop.f32.mrb[16].mxu1  ;;  %v4222_v61 = vrot.slane %v4220_v44, 3  ;;  %v4228_v4 = vrot.slane %v4226_v33, 2  ;;  %v4231_v5 = vrot.slane %v4229_v46, 3  ;;  %v728_v46 = vld [vmem:[#allocation2 + $0x58] sm:$0xff] }
 0x107   : > { %v626_v14 = vadd.f32 %v8257_v2, %v263_v59  ;;  %v529_v8 = vpop.f32.mrb[17].mxu0  ;;  %v1233_v11 = vadd.f32 %v8279_v7, %v719_v6  ;;  %v1088_v23 = vpop.f32.mrb[17].mxu1  ;;  %v4219_v59 = vrot.slane %v4217_v43, 2  ;;  %v722_v7 = vld [vmem:[#allocation2 + $0x28] sm:$0xff]  ;;  %v8752_v43 = vld [vmem:[%s8833_s23 + $0x60] sm:$0xff]  }
 0x108   : > { %v624_v21 = vadd.f32 %v529_v8, %v261_v62  ;;  %v8258_v18 = vpop.f32.mrb[18].mxu0  ;;  %v1231_v17 = vadd.f32 %v1088_v23, %v717_v22  ;;  %v8280_v30 = vpop.f32.mrb[18].mxu1 }
 0x109   : > { %662 = vst.msk [vmem:[#allocation2 + $0x90] sm:$0xff] %vm172_vm4, %v626_v14  ;;  %v627_v27 = vadd.f32 %v8258_v18, %v264_v3  ;;  %v532_v19 = vpop.f32.mrb[19].mxu0  ;;  %1269 = vst.msk [vmem:[#allocation2 + $0x10] sm:$0xff] %vm172_vm4, %v1233_v11  ;;  %v1234_v35 = vadd.f32 %v8280_v30, %v720_v20  ;;  %v1091_v38 = vpop.f32.mrb[19].mxu1  ;;  %v4814_v3 = vsel %vm4807_vm8, %v4811_v41, %v4813_v15  ;;  %v4815_v18 = vrot.slane %v9474_v34, 3 }
 0x10a   : > { %660 = vst.msk [vmem:[#allocation2 + $0x80] sm:$0xff] %vm172_vm4, %v624_v21  ;;  %v625_v36 = vadd.f32 %v532_v19, %v262_v9  ;;  %1267 = vst.msk [vmem:[#allocation2] sm:$0xff] %vm172_vm4, %v1231_v17  ;;  %v1232_v40 = vadd.f32 %v1091_v38, %v718_v37  ;;  %v4215_v9 = vsel %vm4162_vm7, %v4205_v42, %v9468_v48  ;;  %v4235_v21 = vshrl.u32 %v8748_v57, 16  ;;  %v725_v38 = vld [vmem:[#allocation2 + $0x40] sm:$0xff]  ;;  %v9511_v42 = vld [vmem:[%s8833_s23 + $0x48] sm:$0xff]  }
 0x10b   : > { %663 = vst.msk [vmem:[#allocation2 + $0x98] sm:$0xff] %vm172_vm4, %v627_v27  ;;  %8500 = vmatmul.mubr.msk.bf16.gmra.mrb[124].mxu0 %vm372_vm1, %v3687_v10  ;;  %1270 = vst.msk [vmem:[#allocation2 + $0x18] sm:$0xff] %vm172_vm4, %v1234_v35  ;;  %8506 = vmatmul.mubr.msk.bf16.vlgmr.msra.gmra.mrb[124].mxu1 %vm372_vm1, %v4188_v12  ;;  %v8750_v10 = vld [vmem:[%s8833_s23 + $0x58] sm:$0xff]   ;;  %v4223_v26 = vor.u32 %v4222_v61, %v4219_v59  ;;  %v9499_v17 = vor.u32 %v4231_v5, %v4228_v4  ;;  %v4817_v27 = vrot.slane %v9480_v60, 3 }
 0x10c   : > { %661 = vst.msk [vmem:[#allocation2 + $0x88] sm:$0xff] %vm172_vm4, %v625_v36  ;;  %8543 = vmatprep.mubr.msk.bf16.mxu0 %vm372_vm1, %v4810_v29  ;;  %1268 = vst.msk [vmem:[#allocation2 + $0x8] sm:$0xff] %vm172_vm4, %v1232_v40  ;;  %8509 = vmatprep.mubr.msk.bf16.mxu1 %vm372_vm1, %v4197_v28  ;;  %v4244_v30 = vshrl.u32 %v8750_v10, 16  ;;  %v4247_v19 = vshll.u32 %v8750_v10, 16  ;;  %v727_v28 = vld [vmem:[#allocation2 + $0x50] sm:$0xff]  ;;  %v4237_v35 = vrot.slane %v4235_v21, 2  ;;  %v4816_v40 = vsel %vm4807_vm8, %v4813_v15, %v4815_v18 }
 0x10d   : > { %v9505_v36 = vld [vmem:[%s8833_s23 + $0x40] sm:$0xff]   ;;  %v4240_v41 = vrot.slane %v4238_v24, 3  ;;  %v4818_v31 = vsel %vm4807_vm8, %v4815_v18, %v4817_v27  ;;  %v8754_v15 = vld [vmem:[%s8833_s23 + $0x68] sm:$0xff]   ;;  %v4821_v4 = vrot.slane %v9511_v42, 3  ;;  %v732_v60 = vld [vmem:[#allocation2 + $0x78] sm:$0xff] }
 0x10e   : > { %v8317_v47 = vpop.f32.mrb[20].mxu0  ;;  %v8283_v50 = vpop.f32.mrb[20].mxu1  ;;  %v4819_v61 = vrot.slane %v9505_v36, 3  ;;  %v4262_v5 = vshrl.u32 %v8754_v15, 16  ;;  %v729_v21 = vld [vmem:[#allocation2 + $0x60] sm:$0xff] }
 0x10f   : > { %v1600_v51 = vpop.f32.mrb[21].mxu0  ;;  %v1237_v52 = vadd.f32 %v8283_v50, %v723_v49  ;;  %v1104_v54 = vpop.f32.mrb[21].mxu1  ;;  %v4224_v50 = vsel %vm4162_vm7, %v9468_v48, %v4223_v26 }
 0x110   : > { %v8318_v55 = vpop.f32.mrb[22].mxu0  ;;  %v1342_v62 = vld [vmem:[#allocation2 + $0x10] sm:$0xff]  ;;  %v1235_v0 = vadd.f32 %v1104_v54, %v721_v53  ;;  %v8284_v2 = vpop.f32.mrb[22].mxu1  ;;  %v4246_v54 = vrot.slane %v4244_v30, 2  ;;  %v4820_v10 = vsel %vm4807_vm8, %v4817_v27, %v4819_v61 }
 0x111   : > { %v1603_v1 = vpop.f32.mrb[23].mxu0  ;;  %1273 = vst.msk [vmem:[#allocation2 + $0x30] sm:$0xff] %vm172_vm4, %v1237_v52  ;;  %v1745_v14 = vadd.f32 %v8317_v47, %v1342_v62  ;;  %v1340_v63 = vld [vmem:[#allocation2] sm:$0xff]  ;;  %v1238_v6 = vadd.f32 %v8284_v2, %v724_v45  ;;  %v1107_v8 = vpop.f32.mrb[23].mxu1  ;;  %v726_v52 = vld [vmem:[#allocation2 + $0x48] sm:$0xff]  ;;  %v4241_v45 = vor.u32 %v4240_v41, %v4237_v35  ;;  %v4253_v2 = vshrl.u32 %v8752_v43, 16 }
 0x112   : > { %1271 = vst.msk [vmem:[#allocation2 + $0x20] sm:$0xff] %vm172_vm4, %v1235_v0  ;;  %v1743_v12 = vadd.f32 %v1600_v51, %v1340_v63  ;;  %v1343_v13 = vld [vmem:[#allocation2 + $0x18] sm:$0xff]  ;;  %v1236_v11 = vadd.f32 %v1107_v8, %v722_v7  ;;  %v4233_v51 = vsel %vm4162_vm7, %v4223_v26, %v9499_v17  ;;  %v731_v7 = vld [vmem:[#allocation2 + $0x70] sm:$0xff] }
 0x113   : > { %8544 = vmatmul.mubr.msk.bf16.vlgmr.msra.gmra.mrb[128].mxu0 %vm372_vm1, %v4812_v16  ;;  %1781 = vst.msk [vmem:[#allocation2 + $0x10] sm:$0xff] %vm172_vm4, %v1745_v14  ;;  %1274 = vst.msk [vmem:[#allocation2 + $0x38] sm:$0xff] %vm172_vm4, %v1238_v6  ;;  %v1746_v22 = vadd.f32 %v8318_v55, %v1343_v13  ;;  %v1341_v23 = vld [vmem:[#allocation2 + $0x8] sm:$0xff]  ;;  %8510 = vmatmul.mubr.msk.bf16.gmra.mrb[128].mxu1 %vm372_vm1, %v4206_v58  ;;  %v4249_v55 = vrot.slane %v4247_v19, 3  ;;  %v4265_v14 = vshll.u32 %v8754_v15, 16  ;;  %v8756_v13 = vld [vmem:[%s8833_s23 + $0x70] sm:$0xff]  }
 0x114   : > { %8547 = vmatprep.mubr.msk.bf16.mxu0 %vm372_vm1, %v4814_v3  ;;  %1779 = vst.msk [vmem:[#allocation2] sm:$0xff] %vm172_vm4, %v1743_v12  ;;  %1272 = vst.msk [vmem:[#allocation2 + $0x28] sm:$0xff] %vm172_vm4, %v1236_v11  ;;  %v1744_v25 = vadd.f32 %v1603_v1, %v1341_v23  ;;  %8513 = vmatprep.mubr.msk.bf16.mxu1 %vm372_vm1, %v4215_v9  ;;  %v4256_v1 = vshll.u32 %v8752_v43, 16  ;;  %v9542_v12 = vld [vmem:[%s8833_s23 + $0x50] sm:$0xff]   ;;  %v4242_v18 = vsel %vm4162_vm7, %v9499_v17, %v4241_v45  ;;  %v9548_v26 = vld [vmem:[%s8833_s23 + $0x58] sm:$0xff]  }
 0x115   : > { %1782 = vst.msk [vmem:[#allocation2 + $0x18] sm:$0xff] %vm172_vm4, %v1746_v22  ;;  %v9535_v6 = vor.u32 %v4249_v55, %v4246_v54  ;;  %v4255_v24 = vrot.slane %v4253_v2, 2  ;;  %v4825_v15 = vrot.slane %v9548_v26, 3  ;;  %v9579_v2 = vld [vmem:[%s8833_s23 + $0x68] sm:$0xff]   ;;  %v740_v26 = vld [vmem:[#allocation2 + $0xb8] sm:$0xff] }
 0x116   : > { %v8321_v20 = vpop.f32.mrb[24].mxu0  ;;  %1780 = vst.msk [vmem:[#allocation2 + $0x8] sm:$0xff] %vm172_vm4, %v1744_v25  ;;  %v8287_v29 = vpop.f32.mrb[24].mxu1  ;;  %v4258_v25 = vrot.slane %v4256_v1, 3  ;;  %v8760_v1 = vld [vmem:[%s8833_s23 + $0x80] sm:$0xff]  }
 0x117   : > { %v1616_v32 = vpop.f32.mrb[25].mxu0  ;;  %v1241_v37 = vadd.f32 %v8287_v29, %v727_v28  ;;  %v1120_v56 = vpop.f32.mrb[25].mxu1  ;;  %v4822_v28 = vsel %vm4807_vm8, %v4819_v61, %v4821_v4  ;;  %v4264_v29 = vrot.slane %v4262_v5, 2 }
 0x118   : > { %v8322_v39 = vpop.f32.mrb[26].mxu0  ;;  %v1346_v44 = vld [vmem:[#allocation2 + $0x30] sm:$0xff]  ;;  %v1239_v33 = vadd.f32 %v1120_v56, %v725_v38  ;;  %v8288_v47 = vpop.f32.mrb[26].mxu1  ;;  %v4251_v56 = vsel %vm4162_vm7, %v4241_v45, %v9535_v6 }
 0x119   : > { %v1619_v49 = vpop.f32.mrb[27].mxu0  ;;  %1277 = vst.msk [vmem:[#allocation2 + $0x50] sm:$0xff] %vm172_vm4, %v1241_v37  ;;  %v1749_v16 = vadd.f32 %v8321_v20, %v1346_v44  ;;  %v1344_v34 = vld [vmem:[#allocation2 + $0x20] sm:$0xff]  ;;  %v1242_v57 = vadd.f32 %v8288_v47, %v728_v46  ;;  %v1123_v53 = vpop.f32.mrb[27].mxu1  ;;  %v730_v37 = vld [vmem:[#allocation2 + $0x68] sm:$0xff]  ;;  %v4271_v44 = vshrl.u32 %v8756_v13, 16 }
 0x11a   : > { %1275 = vst.msk [vmem:[#allocation2 + $0x40] sm:$0xff] %vm172_vm4, %v1239_v33  ;;  %v1747_v48 = vadd.f32 %v1616_v32, %v1344_v34  ;;  %v1347_v58 = vld [vmem:[#allocation2 + $0x38] sm:$0xff]  ;;  %v1240_v59 = vadd.f32 %v1123_v53, %v726_v52  ;;  %v4267_v32 = vrot.slane %v4265_v14, 3  ;;  %v4823_v47 = vrot.slane %v9542_v12, 3  ;;  %v735_v52 = vld [vmem:[#allocation2 + $0x90] sm:$0xff] }
 0x11b   : > { %8548 = vmatmul.mubr.msk.bf16.gmra.mrb[132].mxu0 %vm372_vm1, %v4816_v40  ;;  %1785 = vst.msk [vmem:[#allocation2 + $0x30] sm:$0xff] %vm172_vm4, %v1749_v16  ;;  %1278 = vst.msk [vmem:[#allocation2 + $0x58] sm:$0xff] %vm172_vm4, %v1242_v57  ;;  %v1750_v62 = vadd.f32 %v8322_v39, %v1347_v58  ;;  %v1345_v0 = vld [vmem:[#allocation2 + $0x28] sm:$0xff]  ;;  %8514 = vmatmul.mubr.msk.bf16.gmra.mrb[132].mxu1 %vm372_vm1, %v4224_v50  ;;  %v8758_v39 = vld [vmem:[%s8833_s23 + $0x78] sm:$0xff]   ;;  %v4273_v55 = vrot.slane %v4271_v44, 2 }
 0x11c   : > { %8551 = vmatprep.mubr.msk.bf16.mxu0 %vm372_vm1, %v4818_v31  ;;  %1783 = vst.msk [vmem:[#allocation2 + $0x20] sm:$0xff] %vm172_vm4, %v1747_v48  ;;  %1276 = vst.msk [vmem:[#allocation2 + $0x48] sm:$0xff] %vm172_vm4, %v1240_v59  ;;  %v1748_v3 = vadd.f32 %v1619_v49, %v1345_v0  ;;  %8517 = vmatprep.mubr.msk.bf16.mxu1 %vm372_vm1, %v4233_v51  ;;  %v4274_v49 = vshll.u32 %v8756_v13, 16  ;;  %v4259_v51 = vor.u32 %v4258_v25, %v4255_v24  ;;  %v9573_v48 = vld [vmem:[%s8833_s23 + $0x60] sm:$0xff]   ;;  %v736_v14 = vld [vmem:[#allocation2 + $0x98] sm:$0xff] }
 0x11d   : > { %1786 = vst.msk [vmem:[#allocation2 + $0x38] sm:$0xff] %vm172_vm4, %v1750_v62  ;;  %v9567_v31 = vor.u32 %v4267_v32, %v4264_v29  ;;  %v4280_v34 = vshrl.u32 %v8758_v39, 16  ;;  %v4283_v57 = vshll.u32 %v8758_v39, 16  ;;  %v733_v59 = vld [vmem:[#allocation2 + $0x80] sm:$0xff]  ;;  %v4824_v0 = vsel %vm4807_vm8, %v4821_v4, %v4823_v47  ;;  %v8762_v4 = vld [vmem:[%s8833_s23 + $0x88] sm:$0xff]  }
 0x11e   : > { %v8325_v63 = vpop.f32.mrb[28].mxu0  ;;  %1784 = vst.msk [vmem:[#allocation2 + $0x28] sm:$0xff] %vm172_vm4, %v1748_v3  ;;  %v8291_v8 = vpop.f32.mrb[28].mxu1  ;;  %v4276_v45 = vrot.slane %v4274_v49, 3  ;;  %v4826_v42 = vsel %vm4807_vm8, %v4823_v47, %v4825_v15  ;;  %v4827_v25 = vrot.slane %v9573_v48, 3  ;;  %v4829_v29 = vrot.slane %v9579_v2, 3 }
 0x11f   : > { %v1632_v9 = vpop.f32.mrb[29].mxu0  ;;  %v1245_v11 = vadd.f32 %v8291_v8, %v731_v7  ;;  %v1136_v22 = vpop.f32.mrb[29].mxu1  ;;  %v4260_v8 = vsel %vm4162_vm7, %v9535_v6, %v4259_v51  ;;  %v4298_v32 = vshrl.u32 %v8762_v4, 16  ;;  %v737_v44 = vld [vmem:[#allocation2 + $0xa0] sm:$0xff] }
 0x120   : > { %v8326_v23 = vpop.f32.mrb[30].mxu0  ;;  %v1350_v20 = vld [vmem:[#allocation2 + $0x50] sm:$0xff]  ;;  %v1243_v30 = vadd.f32 %v1136_v22, %v729_v21  ;;  %v8292_v19 = vpop.f32.mrb[30].mxu1  ;;  %v4282_v22 = vrot.slane %v4280_v34, 2  ;;  %v4828_v39 = vsel %vm4807_vm8, %v4825_v15, %v4827_v25 }
 0x121   : > { %v1635_v27 = vpop.f32.mrb[31].mxu0  ;;  %1281 = vst.msk [vmem:[#allocation2 + $0x70] sm:$0xff] %vm172_vm4, %v1245_v11  ;;  %v1753_v35 = vadd.f32 %v8325_v63, %v1350_v20  ;;  %v1348_v17 = vld [vmem:[#allocation2 + $0x40] sm:$0xff]  ;;  %v1246_v36 = vadd.f32 %v8292_v19, %v732_v60  ;;  %v1139_v38 = vpop.f32.mrb[31].mxu1  ;;  %v734_v11 = vld [vmem:[#allocation2 + $0x88] sm:$0xff]  ;;  %v4277_v60 = vor.u32 %v4276_v45, %v4273_v55  ;;  %v4289_v19 = vshrl.u32 %v8760_v1, 16 }
 0x122   : > { %1279 = vst.msk [vmem:[#allocation2 + $0x60] sm:$0xff] %vm172_vm4, %v1243_v30  ;;  %v1751_v40 = vadd.f32 %v1632_v9, %v1348_v17  ;;  %v1351_v41 = vld [vmem:[#allocation2 + $0x58] sm:$0xff]  ;;  %v1244_v43 = vadd.f32 %v1139_v38, %v730_v37  ;;  %v4269_v9 = vsel %vm4162_vm7, %v4259_v51, %v9567_v31  ;;  %v739_v37 = vld [vmem:[#allocation2 + $0xb0] sm:$0xff] }
 0x123   : > { %8552 = vmatmul.mubr.msk.bf16.gmra.mrb[136].mxu0 %vm372_vm1, %v4820_v10  ;;  %1789 = vst.msk [vmem:[#allocation2 + $0x50] sm:$0xff] %vm172_vm4, %v1753_v35  ;;  %1282 = vst.msk [vmem:[#allocation2 + $0x78] sm:$0xff] %vm172_vm4, %v1246_v36  ;;  %v1754_v33 = vadd.f32 %v8326_v23, %v1351_v41  ;;  %v1349_v46 = vld [vmem:[#allocation2 + $0x48] sm:$0xff]  ;;  %8518 = vmatmul.mubr.msk.bf16.gmra.mrb[136].mxu1 %vm372_vm1, %v4242_v18  ;;  %v4285_v23 = vrot.slane %v4283_v57, 3  ;;  %v4301_v35 = vshll.u32 %v8762_v4, 16  ;;  %v8764_v41 = vld [vmem:[%s8833_s23 + $0x90] sm:$0xff]  }
 0x124   : > { %8555 = vmatprep.mubr.msk.bf16.mxu0 %vm372_vm1, %v4822_v28  ;;  %1787 = vst.msk [vmem:[#allocation2 + $0x40] sm:$0xff] %vm172_vm4, %v1751_v40  ;;  %1280 = vst.msk [vmem:[#allocation2 + $0x68] sm:$0xff] %vm172_vm4, %v1244_v43  ;;  %v1752_v50 = vadd.f32 %v1635_v27, %v1349_v46  ;;  %8521 = vmatprep.mubr.msk.bf16.mxu1 %vm372_vm1, %v4251_v56  ;;  %v4292_v27 = vshll.u32 %v8760_v1, 16  ;;  %v9610_v40 = vld [vmem:[%s8833_s23 + $0x70] sm:$0xff]   ;;  %v4278_v47 = vsel %vm4162_vm7, %v9567_v31, %v4277_v60  ;;  %v9616_v51 = vld [vmem:[%s8833_s23 + $0x78] sm:$0xff]  }
 0x125   : > { %1790 = vst.msk [vmem:[#allocation2 + $0x58] sm:$0xff] %vm172_vm4, %v1754_v33  ;;  %v9603_v36 = vor.u32 %v4285_v23, %v4282_v22  ;;  %v4291_v49 = vrot.slane %v4289_v19, 2  ;;  %v4833_v4 = vrot.slane %v9616_v51, 3  ;;  %v8768_v19 = vld [vmem:[%s8833_s23 + $0xa0] ss:$0 sps:$4 sm:$0x77]  }
 0x126   : > { %v8329_v16 = vpop.f32.mrb[32].mxu0  ;;  %1788 = vst.msk [vmem:[#allocation2 + $0x48] sm:$0xff] %vm172_vm4, %v1752_v50  ;;  %v8295_v53 = vpop.f32.mrb[32].mxu1  ;;  %v4294_v50 = vrot.slane %v4292_v27, 3  ;;  %v746_v51 = vld [vmem:[#allocation2 + $0xe8] sm:$0xff] }
 0x127   : > { %v1648_v54 = vpop.f32.mrb[33].mxu0  ;;  %v1249_v58 = vadd.f32 %v8295_v53, %v735_v52  ;;  %v1152_v61 = vpop.f32.mrb[33].mxu1  ;;  %v4830_v52 = vsel %vm4807_vm8, %v4827_v25, %v4829_v29  ;;  %v4300_v53 = vrot.slane %v4298_v32, 2  ;;  %v741_v25 = vld [vmem:[#allocation2 + $0xc0] sm:$0xff]  ;;  %v744_v32 = vld [vmem:[#allocation2 + $0xd8] sm:$0xff] }
 0x128   : > { %v8330_v62 = vpop.f32.mrb[34].mxu0  ;;  %v1354_v3 = vld [vmem:[#allocation2 + $0x70] sm:$0xff]  ;;  %v1247_v5 = vadd.f32 %v1152_v61, %v733_v59  ;;  %v8296_v63 = vpop.f32.mrb[34].mxu1  ;;  %v4287_v61 = vsel %vm4162_vm7, %v4277_v60, %v9603_v36 }
 0x129   : > { %v1651_v7 = vpop.f32.mrb[35].mxu0  ;;  %1285 = vst.msk [vmem:[#allocation2 + $0x90] sm:$0xff] %vm172_vm4, %v1249_v58  ;;  %v1757_v10 = vadd.f32 %v8329_v16, %v1354_v3  ;;  %v1352_v12 = vld [vmem:[#allocation2 + $0x60] sm:$0xff]  ;;  %v1250_v13 = vadd.f32 %v8296_v63, %v736_v14  ;;  %v1155_v21 = vpop.f32.mrb[35].mxu1  ;;  %v738_v58 = vld [vmem:[#allocation2 + $0xa8] sm:$0xff]  ;;  %v4307_v3 = vshrl.u32 %v8764_v41, 16 }
 0x12a   : > { %1283 = vst.msk [vmem:[#allocation2 + $0x80] sm:$0xff] %vm172_vm4, %v1247_v5  ;;  %v1755_v6 = vadd.f32 %v1648_v54, %v1352_v12  ;;  %v1355_v18 = vld [vmem:[#allocation2 + $0x78] sm:$0xff]  ;;  %v1248_v24 = vadd.f32 %v1155_v21, %v734_v11  ;;  %v4303_v54 = vrot.slane %v4301_v35, 3  ;;  %v4310_v5 = vshll.u32 %v8764_v41, 16  ;;  %v743_v11 = vld [vmem:[#allocation2 + $0xd0] sm:$0xff]  ;;  %v742_v41 = vld [vmem:[#allocation2 + $0xc8] sm:$0xff] }
 0x12b   : > { %8556 = vmatmul.mubr.msk.bf16.gmra.mrb[140].mxu0 %vm372_vm1, %v4824_v0  ;;  %1793 = vst.msk [vmem:[#allocation2 + $0x70] sm:$0xff] %vm172_vm4, %v1757_v10  ;;  %1286 = vst.msk [vmem:[#allocation2 + $0x98] sm:$0xff] %vm172_vm4, %v1250_v13  ;;  %v1758_v20 = vadd.f32 %v8330_v62, %v1355_v18  ;;  %v1353_v30 = vld [vmem:[#allocation2 + $0x68] sm:$0xff]  ;;  %8522 = vmatmul.mubr.msk.bf16.gmra.mrb[140].mxu1 %vm372_vm1, %v4260_v8  ;;  %v8766_v62 = vld [vmem:[%s8833_s23 + $0x98] sm:$0xff]   ;;  %v4309_v23 = vrot.slane %v4307_v3, 2 }
 0x12c   : > { %8559 = vmatprep.mubr.msk.bf16.mxu0 %vm372_vm1, %v4826_v42  ;;  %1791 = vst.msk [vmem:[#allocation2 + $0x60] sm:$0xff] %vm172_vm4, %v1755_v6  ;;  %1284 = vst.msk [vmem:[#allocation2 + $0x88] sm:$0xff] %vm172_vm4, %v1248_v24  ;;  %v1756_v28 = vadd.f32 %v1651_v7, %v1353_v30  ;;  %8525 = vmatprep.mubr.msk.bf16.mxu1 %vm372_vm1, %v4269_v9  ;;  %v4831_v7 = vrot.slane %v9610_v40, 3  ;;  %v4295_v9 = vor.u32 %v4294_v50, %v4291_v49  ;;  %v9641_v18 = vld [vmem:[%s8833_s23 + $0x80] sm:$0xff]   ;;  %v9680_v3 = vld [vmem:[%s8833_s23 + $0x98] sm:$0xff]  }
 0x12d   : > { %1794 = vst.msk [vmem:[#allocation2 + $0x78] sm:$0xff] %vm172_vm4, %v1758_v20  ;;  %v9635_v42 = vor.u32 %v4303_v54, %v4300_v53  ;;  %v4316_v12 = vshrl.u32 %v8766_v62, 16  ;;  %v4319_v13 = vshll.u32 %v8766_v62, 16  ;;  %v4312_v6 = vrot.slane %v4310_v5, 3 }
 0x12e   : > { %v8333_v17 = vpop.f32.mrb[36].mxu0  ;;  %1792 = vst.msk [vmem:[#allocation2 + $0x68] sm:$0xff] %vm172_vm4, %v1756_v28  ;;  %v8299_v38 = vpop.f32.mrb[36].mxu1  ;;  %v4832_v60 = vsel %vm4807_vm8, %v4829_v29, %v4831_v7 }
 0x12f   : > { %v1664_v56 = vpop.f32.mrb[37].mxu0  ;;  %v1253_v43 = vadd.f32 %v8299_v38, %v739_v37  ;;  %v1168_v33 = vpop.f32.mrb[37].mxu1  ;;  %v4296_v37 = vsel %vm4162_vm7, %v9603_v36, %v4295_v9  ;;  %v4305_v38 = vsel %vm4162_vm7, %v4295_v9, %v9635_v42 }
 0x130   : > { %v8334_v46 = vpop.f32.mrb[38].mxu0  ;;  %v1358_v16 = vld [vmem:[#allocation2 + $0x90] sm:$0xff]  ;;  %v1251_v34 = vadd.f32 %v1168_v33, %v737_v44  ;;  %v8300_v57 = vpop.f32.mrb[38].mxu1  ;;  %v4318_v44 = vrot.slane %v4316_v12, 2  ;;  %v4321_v33 = vrot.slane %v4319_v13, 3 }
 0x131   : > { %v1667_v15 = vpop.f32.mrb[39].mxu0  ;;  %1289 = vst.msk [vmem:[#allocation2 + $0xb0] sm:$0xff] %vm172_vm4, %v1253_v43  ;;  %v1761_v55 = vadd.f32 %v8333_v17, %v1358_v16  ;;  %v1356_v31 = vld [vmem:[#allocation2 + $0x80] sm:$0xff]  ;;  %v1254_v48 = vadd.f32 %v8300_v57, %v740_v26  ;;  %v1171_v59 = vpop.f32.mrb[39].mxu1  ;;  %v4313_v16 = vor.u32 %v4312_v6, %v4309_v23 }
 0x132   : > { %1287 = vst.msk [vmem:[#allocation2 + $0xa0] sm:$0xff] %vm172_vm4, %v1251_v34  ;;  %v1759_v0 = vadd.f32 %v1664_v56, %v1356_v31  ;;  %v1359_v45 = vld [vmem:[#allocation2 + $0x98] sm:$0xff]  ;;  %v1252_v1 = vadd.f32 %v1171_v59, %v738_v58  ;;  %v4834_v56 = vsel %vm4807_vm8, %v4831_v7, %v4833_v4  ;;  %v4835_v34 = vrot.slane %v9641_v18, 3  ;;  %v745_v59 = vld [vmem:[#allocation2 + $0xe0] sm:$0xff] }
 0x133   : > { %8560 = vmatmul.mubr.msk.bf16.gmra.mrb[144].mxu0 %vm372_vm1, %v4828_v39  ;;  %1797 = vst.msk [vmem:[#allocation2 + $0x90] sm:$0xff] %vm172_vm4, %v1761_v55  ;;  %1290 = vst.msk [vmem:[#allocation2 + $0xb8] sm:$0xff] %vm172_vm4, %v1254_v48  ;;  %v1762_v14 = vadd.f32 %v8334_v46, %v1359_v45  ;;  %v1357_v63 = vld [vmem:[#allocation2 + $0x88] sm:$0xff]  ;;  %8526 = vmatmul.mubr.msk.bf16.gmra.mrb[144].mxu1 %vm372_vm1, %v4278_v47  ;;  %v9670_v54 = vor.u32 %v4321_v33, %v4318_v44  ;;  %v747_v55 = vld [vmem:[#allocation2 + $0xf0] sm:$0xff] }
 0x134   : > { %8563 = vmatprep.mubr.msk.bf16.mxu0 %vm372_vm1, %v4830_v52  ;;  %1795 = vst.msk [vmem:[#allocation2 + $0x80] sm:$0xff] %vm172_vm4, %v1759_v0  ;;  %1288 = vst.msk [vmem:[#allocation2 + $0xa8] sm:$0xff] %vm172_vm4, %v1252_v1  ;;  %v1760_v8 = vadd.f32 %v1667_v15, %v1357_v63  ;;  %8529 = vmatprep.mubr.msk.bf16.mxu1 %vm372_vm1, %v4287_v61  ;;  %v9655_v39 = vld [vmem:[%s8833_s23 + $0x88] sm:$0xff]   ;;  %v4325_v15 = vshrl.u32 %v8768_v19, 16  ;;  %v4328_v52 = vshll.u32 %v8768_v19, 16  ;;  %v8769_v1 = vld [vmem:[%s8833_s23 + $0x90] sm:$0xff]  }
 0x135   : > { %1798 = vst.msk [vmem:[#allocation2 + $0x98] sm:$0xff] %vm172_vm4, %v1762_v14  ;;  %v4837_v57 = vrot.slane %v9655_v39, 3  ;;  %v4314_v0 = vsel %vm4162_vm7, %v9635_v42, %v4313_v16  ;;  %v4836_v45 = vsel %vm4807_vm8, %v4833_v4, %v4835_v34  ;;  %v748_v63 = vld [vmem:[#allocation2 + $0xf8] sm:$0xff]  ;;  %v4323_v4 = vsel %vm4162_vm7, %v4313_v16, %v9670_v54  ;;  %v8771_v39 = vld [vmem:[%s8833_s23 + $0xa0] ss:$0 sps:$4 sm:$0x77]  }
 0x136   : > { %v8337_v10 = vpop.f32.mrb[40].mxu0  ;;  %1796 = vst.msk [vmem:[#allocation2 + $0x88] sm:$0xff] %vm172_vm4, %v1760_v8  ;;  %v8303_v21 = vpop.f32.mrb[40].mxu1  ;;  %v4330_v12 = vrot.slane %v4328_v52, 3  ;;  %v4843_v52 = vrot.slane %v8771_v39, 3 }
 0x137   : > { %v1680_v22 = vpop.f32.mrb[41].mxu0  ;;  %v1257_v24 = vadd.f32 %v8303_v21, %v743_v11  ;;  %v1184_v20 = vpop.f32.mrb[41].mxu1  ;;  %v4838_v9 = vsel %vm4807_vm8, %v4835_v34, %v4837_v57 }
 0x138   : > { %v8338_v30 = vpop.f32.mrb[42].mxu0  ;;  %v1362_v27 = vld [vmem:[#allocation2 + $0xb0] sm:$0xff]  ;;  %v1255_v28 = vadd.f32 %v1184_v20, %v741_v25  ;;  %v8304_v35 = vpop.f32.mrb[42].mxu1  ;;  %v4839_v25 = vrot.slane %v8769_v1, 3 }
 0x139   : > { %v1683_v17 = vpop.f32.mrb[43].mxu0  ;;  %1293 = vst.msk [vmem:[#allocation2 + $0xd0] sm:$0xff] %vm172_vm4, %v1257_v24  ;;  %v1765_v2 = vadd.f32 %v8337_v10, %v1362_v27  ;;  %v1360_v29 = vld [vmem:[#allocation2 + $0xa0] sm:$0xff]  ;;  %v1258_v40 = vadd.f32 %v8304_v35, %v744_v32  ;;  %v1187_v43 = vpop.f32.mrb[43].mxu1  ;;  %v4327_v10 = vrot.slane %v4325_v15, 2  ;;  %v751_v27 = vld [vmem:[#allocation2 + $0x110] sm:$0xff] }
 0x13a   : > { %1291 = vst.msk [vmem:[#allocation2 + $0xc0] sm:$0xff] %vm172_vm4, %v1255_v28  ;;  %v1763_v36 = vadd.f32 %v1680_v22, %v1360_v29  ;;  %v1363_v46 = vld [vmem:[#allocation2 + $0xb8] sm:$0xff]  ;;  %v1256_v47 = vadd.f32 %v1187_v43, %v742_v41 }
 0x13b   : > { %8564 = vmatmul.mubr.msk.bf16.gmra.mrb[148].mxu0 %vm372_vm1, %v4832_v60  ;;  %1801 = vst.msk [vmem:[#allocation2 + $0xb0] sm:$0xff] %vm172_vm4, %v1765_v2  ;;  %1294 = vst.msk [vmem:[#allocation2 + $0xd8] sm:$0xff] %vm172_vm4, %v1258_v40  ;;  %v1766_v49 = vadd.f32 %v8338_v30, %v1363_v46  ;;  %v1361_v50 = vld [vmem:[#allocation2 + $0xa8] sm:$0xff]  ;;  %8530 = vmatmul.mubr.msk.bf16.gmra.mrb[148].mxu1 %vm372_vm1, %v4296_v37  ;;  %v4331_v30 = vor.u32 %v4330_v12, %v4327_v10  ;;  %v4841_v60 = vrot.slane %v9680_v3, 3  ;;  %v752_v40 = vld [vmem:[#allocation2 + $0x118] sm:$0xff] }
 0x13c   : > { %8567 = vmatprep.mubr.msk.bf16.mxu0 %vm372_vm1, %v4834_v56  ;;  %1799 = vst.msk [vmem:[#allocation2 + $0xa0] sm:$0xff] %vm172_vm4, %v1763_v36  ;;  %1292 = vst.msk [vmem:[#allocation2 + $0xc8] sm:$0xff] %vm172_vm4, %v1256_v47  ;;  %v1764_v26 = vadd.f32 %v1683_v17, %v1361_v50  ;;  %8533 = vmatprep.mubr.msk.bf16.mxu1 %vm372_vm1, %v4305_v38  ;;  %v749_v17 = vld [vmem:[#allocation2 + $0x100] sm:$0xff]  ;;  %v4840_v56 = vsel %vm4807_vm8, %v4837_v57, %v4839_v25  ;;  %v1855_v3 = vld [vmem:[#allocation2 + $0x18] sm:$0xff] }
 0x13d   : > { %1802 = vst.msk [vmem:[#allocation2 + $0xb8] sm:$0xff] %vm172_vm4, %v1766_v49  ;;  %v4332_v44 = vsel %vm4162_vm7, %v9670_v54, %v4331_v30  ;;  %v4842_v33 = vsel %vm4807_vm8, %v4839_v25, %v4841_v60  ;;  %v750_v49 = vld [vmem:[#allocation2 + $0x108] sm:$0xff] }
 0x13e   : > { %v8341_v53 = vpop.f32.mrb[44].mxu0  ;;  %1800 = vst.msk [vmem:[#allocation2 + $0xa8] sm:$0xff] %vm172_vm4, %v1764_v26  ;;  %v8307_v31 = vpop.f32.mrb[44].mxu1 }
 0x13f   : > { %v1696_v48 = vpop.f32.mrb[45].mxu0  ;;  %v1261_v58 = vadd.f32 %v8307_v31, %v747_v55  ;;  %v1200_v61 = vpop.f32.mrb[45].mxu1  ;;  %v1854_v55 = vld [vmem:[#allocation2 + $0x10] sm:$0xff] }
 0x140   : > { %v8342_v62 = vpop.f32.mrb[46].mxu0  ;;  %v1366_v5 = vld [vmem:[#allocation2 + $0xd0] sm:$0xff]  ;;  %v1259_v14 = vadd.f32 %v1200_v61, %v745_v59  ;;  %v8308_v7 = vpop.f32.mrb[46].mxu1  ;;  %v1852_v59 = vld [vmem:[#allocation2] sm:$0xff] }
 0x141   : > { %v1699_v8 = vpop.f32.mrb[47].mxu0  ;;  %1297 = vst.msk [vmem:[#allocation2 + $0xf0] sm:$0xff] %vm172_vm4, %v1261_v58  ;;  %v1769_v13 = vadd.f32 %v8341_v53, %v1366_v5  ;;  %v1364_v42 = vld [vmem:[#allocation2 + $0xc0] sm:$0xff]  ;;  %v1262_v11 = vadd.f32 %v8308_v7, %v748_v63  ;;  %v1203_v21 = vpop.f32.mrb[47].mxu1 }
 0x142   : > { %1295 = vst.msk [vmem:[#allocation2 + $0xe0] sm:$0xff] %vm172_vm4, %v1259_v14  ;;  %v1767_v22 = vadd.f32 %v1696_v48, %v1364_v42  ;;  %v1367_v23 = vld [vmem:[#allocation2 + $0xd8] sm:$0xff]  ;;  %v1260_v6 = vadd.f32 %v1203_v21, %v746_v51 }
 0x143   : > { %8568 = vmatmul.mubr.msk.bf16.gmra.mrb[152].mxu0 %vm372_vm1, %v4836_v45  ;;  %1805 = vst.msk [vmem:[#allocation2 + $0xd0] sm:$0xff] %vm172_vm4, %v1769_v13  ;;  %1298 = vst.msk [vmem:[#allocation2 + $0xf8] sm:$0xff] %vm172_vm4, %v1262_v11  ;;  %v1770_v18 = vadd.f32 %v8342_v62, %v1367_v23  ;;  %v1365_v24 = vld [vmem:[#allocation2 + $0xc8] sm:$0xff]  ;;  %8534 = vmatmul.mubr.msk.bf16.gmra.mrb[152].mxu1 %vm372_vm1, %v4314_v0  ;;  %v4844_v0 = vsel %vm4807_vm8, %v4841_v60, %v4843_v52 }
 0x144   : > { %8571 = vmatprep.mubr.msk.bf16.mxu0 %vm372_vm1, %v4838_v9  ;;  %1803 = vst.msk [vmem:[#allocation2 + $0xc0] sm:$0xff] %vm172_vm4, %v1767_v22  ;;  %1296 = vst.msk [vmem:[#allocation2 + $0xe8] sm:$0xff] %vm172_vm4, %v1260_v6  ;;  %v1768_v20 = vadd.f32 %v1699_v8, %v1365_v24  ;;  %8537 = vmatprep.mubr.msk.bf16.mxu1 %vm372_vm1, %v4323_v4  ;;  %v1853_v9 = vld [vmem:[#allocation2 + $0x8] sm:$0xff]  ;;  %v1858_v22 = vld [vmem:[#allocation2 + $0x30] sm:$0xff] }
 0x145   : > { %1806 = vst.msk [vmem:[#allocation2 + $0xd8] sm:$0xff] %vm172_vm4, %v1770_v18  ;;  %v1856_v24 = vld [vmem:[#allocation2 + $0x20] sm:$0xff] }
 0x146   : > { %v8345_v19 = vpop.f32.mrb[48].mxu0  ;;  %1804 = vst.msk [vmem:[#allocation2 + $0xc8] sm:$0xff] %vm172_vm4, %v1768_v20  ;;  %v8311_v28 = vpop.f32.mrb[48].mxu1 }
 0x147   : > { %v1712_v32 = vpop.f32.mrb[49].mxu0  ;;  %v1265_v35 = vadd.f32 %v8311_v28, %v751_v27  ;;  %v1216_v37 = vpop.f32.mrb[49].mxu1 }
 0x148   : > { %v8346_v38 = vpop.f32.mrb[50].mxu0  ;;  %v1370_v2 = vld [vmem:[#allocation2 + $0xf0] sm:$0xff]  ;;  %v1263_v29 = vadd.f32 %v1216_v37, %v749_v17  ;;  %v8312_v41 = vpop.f32.mrb[50].mxu1  ;;  %v1857_v37 = vld [vmem:[#allocation2 + $0x28] sm:$0xff] }
 0x149   : > { %v1715_v43 = vpop.f32.mrb[51].mxu0  ;;  %1301 = vst.msk [vmem:[#allocation2 + $0x110] sm:$0xff] %vm172_vm4, %v1265_v35  ;;  %v1773_v36 = vadd.f32 %v8345_v19, %v1370_v2  ;;  %v1368_v46 = vld [vmem:[#allocation2 + $0xe0] sm:$0xff]  ;;  %v1266_v47 = vadd.f32 %v8312_v41, %v752_v40  ;;  %v1219_v50 = vpop.f32.mrb[51].mxu1  ;;  %v1859_v19 = vld [vmem:[#allocation2 + $0x38] sm:$0xff] }
 0x14a   : > { %1299 = vst.msk [vmem:[#allocation2 + $0x100] sm:$0xff] %vm172_vm4, %v1263_v29  ;;  %v1771_v16 = vadd.f32 %v1712_v32, %v1368_v46  ;;  %v1371_v34 = vld [vmem:[#allocation2 + $0xf8] sm:$0xff]  ;;  %v1264_v26 = vadd.f32 %v1219_v50, %v750_v49 }
 0x14b   : > { %8572 = vmatmul.mubr.msk.bf16.gmra.mrb[156].mxu0 %vm372_vm1, %v4840_v56  ;;  %1809 = vst.msk [vmem:[#allocation2 + $0xf0] sm:$0xff] %vm172_vm4, %v1773_v36  ;;  %1302 = vst.msk [vmem:[#allocation2 + $0x118] sm:$0xff] %vm172_vm4, %v1266_v47  ;;  %v1774_v57 = vadd.f32 %v8346_v38, %v1371_v34  ;;  %v1369_v15 = vld [vmem:[#allocation2 + $0xe8] sm:$0xff]  ;;  %8538 = vmatmul.mubr.msk.bf16.gmra.mrb[156].mxu1 %vm372_vm1, %v4332_v44  ;;  %v1862_v44 = vld [vmem:[#allocation2 + $0x50] sm:$0xff] }
 0x14c   : > { %8575 = vmatprep.mubr.msk.bf16.mxu0 %vm372_vm1, %v4842_v33  ;;  %1807 = vst.msk [vmem:[#allocation2 + $0xe0] sm:$0xff] %vm172_vm4, %v1771_v16  ;;  %1300 = vst.msk [vmem:[#allocation2 + $0x108] sm:$0xff] %vm172_vm4, %v1264_v26  ;;  %v1772_v53 = vadd.f32 %v1715_v43, %v1369_v15  ;;  %v1860_v47 = vld [vmem:[#allocation2 + $0x40] sm:$0xff]  ;;  %v1863_v26 = vld [vmem:[#allocation2 + $0x58] sm:$0xff] }
 0x14d   : > { %1810 = vst.msk [vmem:[#allocation2 + $0xf8] sm:$0xff] %vm172_vm4, %v1774_v57 }
 0x14e   : > { %v8349_v54 = vpop.f32.mrb[52].mxu0  ;;  %1808 = vst.msk [vmem:[#allocation2 + $0xe8] sm:$0xff] %vm172_vm4, %v1772_v53  ;;  %v8355_v31 = vpop.f32.mrb[52].mxu1 }
 0x14f   : > { %v1728_v48 = vpop.f32.mrb[53].mxu0  ;;  %v2256_v58 = vadd.f32 %v8355_v31, %v1854_v55  ;;  %v2111_v61 = vpop.f32.mrb[53].mxu1  ;;  %v1861_v55 = vld [vmem:[#allocation2 + $0x48] sm:$0xff] }
 0x150   : > { %v8350_v62 = vpop.f32.mrb[54].mxu0  ;;  %v1374_v45 = vld [vmem:[#allocation2 + $0x110] sm:$0xff]  ;;  %v2254_v1 = vadd.f32 %v2111_v61, %v1852_v59  ;;  %v8356_v5 = vpop.f32.mrb[54].mxu1 }
 0x151   : > { %v1731_v14 = vpop.f32.mrb[55].mxu0  ;;  %v1777_v63 = vadd.f32 %v8349_v54, %v1374_v45  ;;  %2292 = vst.msk [vmem:[#allocation2 + $0x10] sm:$0xff] %vm172_vm4, %v2256_v58  ;;  %v1372_v7 = vld [vmem:[#allocation2 + $0x100] sm:$0xff]  ;;  %v2257_v8 = vadd.f32 %v8356_v5, %v1855_v3  ;;  %v2114_v10 = vpop.f32.mrb[55].mxu1 }
 0x152   : > { %v1775_v12 = vadd.f32 %v1728_v48, %v1372_v7  ;;  %2290 = vst.msk [vmem:[#allocation2] sm:$0xff] %vm172_vm4, %v2254_v1  ;;  %v1375_v13 = vld [vmem:[#allocation2 + $0x118] sm:$0xff]  ;;  %v2255_v42 = vadd.f32 %v2114_v10, %v1853_v9  ;;  %v1866_v1 = vld [vmem:[#allocation2 + $0x70] sm:$0xff] }
 0x153   : > { %8576 = vmatmul.mubr.msk.bf16.gmra.mrb[160].mxu0 %vm372_vm1, %v4844_v0  ;;  %1813 = vst.msk [vmem:[#allocation2 + $0x110] sm:$0xff] %vm172_vm4, %v1777_v63  ;;  %v1778_v11 = vadd.f32 %v8350_v62, %v1375_v13  ;;  %2293 = vst.msk [vmem:[#allocation2 + $0x18] sm:$0xff] %vm172_vm4, %v2257_v8  ;;  %v1373_v51 = vld [vmem:[#allocation2 + $0x108] sm:$0xff]  ;;  %v1864_v63 = vld [vmem:[#allocation2 + $0x60] sm:$0xff]  ;;  %vm7522_vm1 = vcmask 519168  }
 0x154   : > { %1811 = vst.msk [vmem:[#allocation2 + $0x100] sm:$0xff] %vm172_vm4, %v1775_v12  ;;  %v1776_v21 = vadd.f32 %v1731_v14, %v1373_v51  ;;  %2291 = vst.msk [vmem:[#allocation2 + $0x8] sm:$0xff] %vm172_vm4, %v2255_v42  ;;  %v1867_v12 = vld [vmem:[#allocation2 + $0x78] sm:$0xff] }
 0x155   : > { %1814 = vst.msk [vmem:[#allocation2 + $0x118] sm:$0xff] %vm172_vm4, %v1778_v11 }
 0x156   : > { %v8393_v4 = vpop.f32.mrb[56].mxu0  ;;  %1812 = vst.msk [vmem:[#allocation2 + $0x108] sm:$0xff] %vm172_vm4, %v1776_v21  ;;  %v8359_v23 = vpop.f32.mrb[56].mxu1 }
 0x157   : > { %v2756_v6 = vpop.f32.mrb[57].mxu0  ;;  %v2260_v18 = vadd.f32 %v8359_v23, %v1858_v22  ;;  %v2127_v25 = vpop.f32.mrb[57].mxu1 }
 0x158   : > { %v8394_v20 = vpop.f32.mrb[58].mxu0  ;;  %v2365_v30 = vld [vmem:[#allocation2 + $0x10] sm:$0xff]  ;;  %v2258_v60 = vadd.f32 %v2127_v25, %v1856_v24  ;;  %v8360_v27 = vpop.f32.mrb[58].mxu1 }
 0x159   : > { %v2759_v28 = vpop.f32.mrb[59].mxu0  ;;  %2296 = vst.msk [vmem:[#allocation2 + $0x30] sm:$0xff] %vm172_vm4, %v2260_v18  ;;  %v2901_v32 = vadd.f32 %v8393_v4, %v2365_v30  ;;  %v2363_v35 = vld [vmem:[#allocation2] sm:$0xff]  ;;  %v2261_v17 = vadd.f32 %v8360_v27, %v1859_v19  ;;  %v2130_v38 = vpop.f32.mrb[59].mxu1  ;;  %v1865_v4 = vld [vmem:[#allocation2 + $0x68] sm:$0xff] }
 0x15a   : > { %2294 = vst.msk [vmem:[#allocation2 + $0x20] sm:$0xff] %vm172_vm4, %v2258_v60  ;;  %v2899_v56 = vadd.f32 %v2756_v6, %v2363_v35  ;;  %v2366_v39 = vld [vmem:[#allocation2 + $0x18] sm:$0xff]  ;;  %v2259_v2 = vadd.f32 %v2130_v38, %v1857_v37  ;;  %v1870_v60 = vld [vmem:[#allocation2 + $0x90] sm:$0xff] }
 0x15b   : > { %2937 = vst.msk [vmem:[#allocation2 + $0x10] sm:$0xff] %vm172_vm4, %v2901_v32  ;;  %2297 = vst.msk [vmem:[#allocation2 + $0x38] sm:$0xff] %vm172_vm4, %v2261_v17  ;;  %v2902_v29 = vadd.f32 %v8394_v20, %v2366_v39  ;;  %v2364_v40 = vld [vmem:[#allocation2 + $0x8] sm:$0xff]  ;;  %v1868_v32 = vld [vmem:[#allocation2 + $0x80] sm:$0xff] }
 0x15c   : > { %2935 = vst.msk [vmem:[#allocation2] sm:$0xff] %vm172_vm4, %v2899_v56  ;;  %2295 = vst.msk [vmem:[#allocation2 + $0x28] sm:$0xff] %vm172_vm4, %v2259_v2  ;;  %v2900_v41 = vadd.f32 %v2759_v28, %v2364_v40  ;;  %v1871_v56 = vld [vmem:[#allocation2 + $0x98] sm:$0xff] }
 0x15d   : > { %2938 = vst.msk [vmem:[#allocation2 + $0x18] sm:$0xff] %vm172_vm4, %v2902_v29 }
 0x15e   : > { %v8397_v43 = vpop.f32.mrb[60].mxu0  ;;  %2936 = vst.msk [vmem:[#allocation2 + $0x8] sm:$0xff] %vm172_vm4, %v2900_v41  ;;  %v8363_v33 = vpop.f32.mrb[60].mxu1 }
 0x15f   : > { %v2772_v36 = vpop.f32.mrb[61].mxu0  ;;  %v2264_v46 = vadd.f32 %v8363_v33, %v1862_v44  ;;  %v2143_v49 = vpop.f32.mrb[61].mxu1 }
 0x160   : > { %v8398_v50 = vpop.f32.mrb[62].mxu0  ;;  %v2369_v16 = vld [vmem:[#allocation2 + $0x30] sm:$0xff]  ;;  %v2262_v34 = vadd.f32 %v2143_v49, %v1860_v47  ;;  %v8364_v57 = vpop.f32.mrb[62].mxu1 }
 0x161   : > { %v2775_v15 = vpop.f32.mrb[63].mxu0  ;;  %2300 = vst.msk [vmem:[#allocation2 + $0x50] sm:$0xff] %vm172_vm4, %v2264_v46  ;;  %v2905_v52 = vadd.f32 %v8397_v43, %v2369_v16  ;;  %v2367_v53 = vld [vmem:[#allocation2 + $0x20] sm:$0xff]  ;;  %v2265_v54 = vadd.f32 %v8364_v57, %v1863_v26  ;;  %v2146_v31 = vpop.f32.mrb[63].mxu1  ;;  %v1869_v43 = vld [vmem:[#allocation2 + $0x88] sm:$0xff] }
 0x162   : > { %2298 = vst.msk [vmem:[#allocation2 + $0x40] sm:$0xff] %vm172_vm4, %v2262_v34  ;;  %v2903_v48 = vadd.f32 %v2772_v36, %v2367_v53  ;;  %v2370_v58 = vld [vmem:[#allocation2 + $0x38] sm:$0xff]  ;;  %v2263_v59 = vadd.f32 %v2146_v31, %v1861_v55  ;;  %v1874_v34 = vld [vmem:[#allocation2 + $0xb0] sm:$0xff] }
 0x163   : > { %2941 = vst.msk [vmem:[#allocation2 + $0x30] sm:$0xff] %vm172_vm4, %v2905_v52  ;;  %2301 = vst.msk [vmem:[#allocation2 + $0x58] sm:$0xff] %vm172_vm4, %v2265_v54  ;;  %v2906_v61 = vadd.f32 %v8398_v50, %v2370_v58  ;;  %v2368_v62 = vld [vmem:[#allocation2 + $0x28] sm:$0xff]  ;;  %v1872_v52 = vld [vmem:[#allocation2 + $0xa0] sm:$0xff] }
 0x164   : > { %2939 = vst.msk [vmem:[#allocation2 + $0x20] sm:$0xff] %vm172_vm4, %v2903_v48  ;;  %2299 = vst.msk [vmem:[#allocation2 + $0x48] sm:$0xff] %vm172_vm4, %v2263_v59  ;;  %v2904_v0 = vadd.f32 %v2775_v15, %v2368_v62  ;;  %v1875_v48 = vld [vmem:[#allocation2 + $0xb8] sm:$0xff] }
 0x165   : > { %2942 = vst.msk [vmem:[#allocation2 + $0x38] sm:$0xff] %vm172_vm4, %v2906_v61 }
 0x166   : > { %v8401_v45 = vpop.f32.mrb[64].mxu0  ;;  %2940 = vst.msk [vmem:[#allocation2 + $0x28] sm:$0xff] %vm172_vm4, %v2904_v0  ;;  %v8367_v3 = vpop.f32.mrb[64].mxu1 }
 0x167   : > { %v2788_v5 = vpop.f32.mrb[65].mxu0  ;;  %v2268_v14 = vadd.f32 %v8367_v3, %v1866_v1  ;;  %v2159_v7 = vpop.f32.mrb[65].mxu1 }
 0x168   : > { %v8402_v8 = vpop.f32.mrb[66].mxu0  ;;  %v2373_v9 = vld [vmem:[#allocation2 + $0x50] sm:$0xff]  ;;  %v2266_v10 = vadd.f32 %v2159_v7, %v1864_v63  ;;  %v8368_v13 = vpop.f32.mrb[66].mxu1 }
 0x169   : > { %v2791_v42 = vpop.f32.mrb[67].mxu0  ;;  %2304 = vst.msk [vmem:[#allocation2 + $0x70] sm:$0xff] %vm172_vm4, %v2268_v14  ;;  %v2909_v11 = vadd.f32 %v8401_v45, %v2373_v9  ;;  %v2371_v51 = vld [vmem:[#allocation2 + $0x40] sm:$0xff]  ;;  %v2269_v21 = vadd.f32 %v8368_v13, %v1867_v12  ;;  %v2162_v22 = vpop.f32.mrb[67].mxu1  ;;  %v1873_v45 = vld [vmem:[#allocation2 + $0xa8] sm:$0xff] }
 0x16a   : > { %2302 = vst.msk [vmem:[#allocation2 + $0x60] sm:$0xff] %vm172_vm4, %v2266_v10  ;;  %v2907_v23 = vadd.f32 %v2788_v5, %v2371_v51  ;;  %v2374_v6 = vld [vmem:[#allocation2 + $0x58] sm:$0xff]  ;;  %v2267_v18 = vadd.f32 %v2162_v22, %v1865_v4  ;;  %v1878_v10 = vld [vmem:[#allocation2 + $0xd0] sm:$0xff] }
 0x16b   : > { %2945 = vst.msk [vmem:[#allocation2 + $0x50] sm:$0xff] %vm172_vm4, %v2909_v11  ;;  %2305 = vst.msk [vmem:[#allocation2 + $0x78] sm:$0xff] %vm172_vm4, %v2269_v21  ;;  %v2910_v24 = vadd.f32 %v8402_v8, %v2374_v6  ;;  %v2372_v25 = vld [vmem:[#allocation2 + $0x48] sm:$0xff]  ;;  %v1876_v11 = vld [vmem:[#allocation2 + $0xc0] sm:$0xff] }
 0x16c   : > { %2943 = vst.msk [vmem:[#allocation2 + $0x40] sm:$0xff] %vm172_vm4, %v2907_v23  ;;  %2303 = vst.msk [vmem:[#allocation2 + $0x68] sm:$0xff] %vm172_vm4, %v2267_v18  ;;  %v2908_v20 = vadd.f32 %v2791_v42, %v2372_v25  ;;  %v1879_v23 = vld [vmem:[#allocation2 + $0xd8] sm:$0xff] }
 0x16d   : > { %2946 = vst.msk [vmem:[#allocation2 + $0x58] sm:$0xff] %vm172_vm4, %v2910_v24 }
 0x16e   : > { %v8405_v30 = vpop.f32.mrb[68].mxu0  ;;  %2944 = vst.msk [vmem:[#allocation2 + $0x48] sm:$0xff] %vm172_vm4, %v2908_v20  ;;  %v8371_v19 = vpop.f32.mrb[68].mxu1 }
 0x16f   : > { %v2804_v27 = vpop.f32.mrb[69].mxu0  ;;  %v2272_v28 = vadd.f32 %v8371_v19, %v1870_v60  ;;  %v2175_v35 = vpop.f32.mrb[69].mxu1 }
 0x170   : > { %v8406_v17 = vpop.f32.mrb[70].mxu0  ;;  %v2377_v37 = vld [vmem:[#allocation2 + $0x70] sm:$0xff]  ;;  %v2270_v38 = vadd.f32 %v2175_v35, %v1868_v32  ;;  %v8372_v39 = vpop.f32.mrb[70].mxu1 }
 0x171   : > { %v2807_v2 = vpop.f32.mrb[71].mxu0  ;;  %2308 = vst.msk [vmem:[#allocation2 + $0x90] sm:$0xff] %vm172_vm4, %v2272_v28  ;;  %v2913_v29 = vadd.f32 %v8405_v30, %v2377_v37  ;;  %v2375_v40 = vld [vmem:[#allocation2 + $0x60] sm:$0xff]  ;;  %v2273_v41 = vadd.f32 %v8372_v39, %v1871_v56  ;;  %v2178_v44 = vpop.f32.mrb[71].mxu1  ;;  %v1877_v30 = vld [vmem:[#allocation2 + $0xc8] sm:$0xff] }
 0x172   : > { %2306 = vst.msk [vmem:[#allocation2 + $0x80] sm:$0xff] %vm172_vm4, %v2270_v38  ;;  %v2911_v33 = vadd.f32 %v2804_v27, %v2375_v40  ;;  %v2378_v36 = vld [vmem:[#allocation2 + $0x78] sm:$0xff]  ;;  %v2271_v46 = vadd.f32 %v2178_v44, %v1869_v43  ;;  %v1882_v38 = vld [vmem:[#allocation2 + $0xf0] sm:$0xff] }
 0x173   : > { %2949 = vst.msk [vmem:[#allocation2 + $0x70] sm:$0xff] %vm172_vm4, %v2913_v29  ;;  %2309 = vst.msk [vmem:[#allocation2 + $0x98] sm:$0xff] %vm172_vm4, %v2273_v41  ;;  %v2914_v47 = vadd.f32 %v8406_v17, %v2378_v36  ;;  %v2376_v49 = vld [vmem:[#allocation2 + $0x68] sm:$0xff]  ;;  %v1880_v29 = vld [vmem:[#allocation2 + $0xe0] sm:$0xff] }
 0x174   : > { %2947 = vst.msk [vmem:[#allocation2 + $0x60] sm:$0xff] %vm172_vm4, %v2911_v33  ;;  %2307 = vst.msk [vmem:[#allocation2 + $0x88] sm:$0xff] %vm172_vm4, %v2271_v46  ;;  %v2912_v50 = vadd.f32 %v2807_v2, %v2376_v49  ;;  %v1883_v33 = vld [vmem:[#allocation2 + $0xf8] sm:$0xff] }
 0x175   : > { %2950 = vst.msk [vmem:[#allocation2 + $0x78] sm:$0xff] %vm172_vm4, %v2914_v47 }
 0x176   : > { %v8409_v16 = vpop.f32.mrb[72].mxu0  ;;  %2948 = vst.msk [vmem:[#allocation2 + $0x68] sm:$0xff] %vm172_vm4, %v2912_v50  ;;  %v8375_v26 = vpop.f32.mrb[72].mxu1 }
 0x177   : > { %v2820_v57 = vpop.f32.mrb[73].mxu0  ;;  %v2276_v15 = vadd.f32 %v8375_v26, %v1874_v34  ;;  %v2191_v53 = vpop.f32.mrb[73].mxu1 }
 0x178   : > { %v8410_v54 = vpop.f32.mrb[74].mxu0  ;;  %v2381_v55 = vld [vmem:[#allocation2 + $0x90] sm:$0xff]  ;;  %v2274_v31 = vadd.f32 %v2191_v53, %v1872_v52  ;;  %v8376_v58 = vpop.f32.mrb[74].mxu1 }
 0x179   : > { %v2823_v59 = vpop.f32.mrb[75].mxu0  ;;  %2312 = vst.msk [vmem:[#allocation2 + $0xb0] sm:$0xff] %vm172_vm4, %v2276_v15  ;;  %v2917_v61 = vadd.f32 %v8409_v16, %v2381_v55  ;;  %v2379_v62 = vld [vmem:[#allocation2 + $0x80] sm:$0xff]  ;;  %v2277_v0 = vadd.f32 %v8376_v58, %v1875_v48  ;;  %v2194_v1 = vpop.f32.mrb[75].mxu1  ;;  %v1881_v16 = vld [vmem:[#allocation2 + $0xe8] sm:$0xff] }
 0x17a   : > { %2310 = vst.msk [vmem:[#allocation2 + $0xa0] sm:$0xff] %vm172_vm4, %v2274_v31  ;;  %v2915_v3 = vadd.f32 %v2820_v57, %v2379_v62  ;;  %v2382_v5 = vld [vmem:[#allocation2 + $0x98] sm:$0xff]  ;;  %v2275_v14 = vadd.f32 %v2194_v1, %v1873_v45  ;;  %v1886_v31 = vld [vmem:[#allocation2 + $0x110] sm:$0xff] }
 0x17b   : > { %2953 = vst.msk [vmem:[#allocation2 + $0x90] sm:$0xff] %vm172_vm4, %v2917_v61  ;;  %2313 = vst.msk [vmem:[#allocation2 + $0xb8] sm:$0xff] %vm172_vm4, %v2277_v0  ;;  %v2918_v63 = vadd.f32 %v8410_v54, %v2382_v5  ;;  %v2380_v7 = vld [vmem:[#allocation2 + $0x88] sm:$0xff]  ;;  %v1884_v61 = vld [vmem:[#allocation2 + $0x100] sm:$0xff] }
 0x17c   : > { %2951 = vst.msk [vmem:[#allocation2 + $0x80] sm:$0xff] %vm172_vm4, %v2915_v3  ;;  %2311 = vst.msk [vmem:[#allocation2 + $0xa8] sm:$0xff] %vm172_vm4, %v2275_v14  ;;  %v2916_v8 = vadd.f32 %v2823_v59, %v2380_v7  ;;  %v1887_v3 = vld [vmem:[#allocation2 + $0x118] sm:$0xff] }
 0x17d   : > { %2954 = vst.msk [vmem:[#allocation2 + $0x98] sm:$0xff] %vm172_vm4, %v2918_v63 }
 0x17e   : > { %v8413_v9 = vpop.f32.mrb[76].mxu0  ;;  %2952 = vst.msk [vmem:[#allocation2 + $0x88] sm:$0xff] %vm172_vm4, %v2916_v8  ;;  %v8379_v12 = vpop.f32.mrb[76].mxu1 }
 0x17f   : > { %v2836_v13 = vpop.f32.mrb[77].mxu0  ;;  %v2280_v42 = vadd.f32 %v8379_v12, %v1878_v10  ;;  %v2207_v51 = vpop.f32.mrb[77].mxu1 }
 0x180   : > { %v8414_v21 = vpop.f32.mrb[78].mxu0  ;;  %v2385_v4 = vld [vmem:[#allocation2 + $0xb0] sm:$0xff]  ;;  %v2278_v22 = vadd.f32 %v2207_v51, %v1876_v11  ;;  %v8380_v6 = vpop.f32.mrb[78].mxu1 }
 0x181   : > { %v2839_v18 = vpop.f32.mrb[79].mxu0  ;;  %2316 = vst.msk [vmem:[#allocation2 + $0xd0] sm:$0xff] %vm172_vm4, %v2280_v42  ;;  %v2921_v24 = vadd.f32 %v8413_v9, %v2385_v4  ;;  %v2383_v25 = vld [vmem:[#allocation2 + $0xa0] sm:$0xff]  ;;  %v2281_v20 = vadd.f32 %v8380_v6, %v1879_v23  ;;  %v2210_v60 = vpop.f32.mrb[79].mxu1  ;;  %v1885_v9 = vld [vmem:[#allocation2 + $0x108] sm:$0xff] }
 0x182   : > { %2314 = vst.msk [vmem:[#allocation2 + $0xc0] sm:$0xff] %vm172_vm4, %v2278_v22  ;;  %v2919_v19 = vadd.f32 %v2836_v13, %v2383_v25  ;;  %v2386_v27 = vld [vmem:[#allocation2 + $0xb8] sm:$0xff]  ;;  %v2279_v28 = vadd.f32 %v2210_v60, %v1877_v30  ;;  %v3010_v22 = vld [vmem:[#allocation2 + $0x10] sm:$0xff] }
 0x183   : > { %2957 = vst.msk [vmem:[#allocation2 + $0xb0] sm:$0xff] %vm172_vm4, %v2921_v24  ;;  %2317 = vst.msk [vmem:[#allocation2 + $0xd8] sm:$0xff] %vm172_vm4, %v2281_v20  ;;  %v2922_v32 = vadd.f32 %v8414_v21, %v2386_v27  ;;  %v2384_v35 = vld [vmem:[#allocation2 + $0xa8] sm:$0xff]  ;;  %v3008_v24 = vld [vmem:[#allocation2] sm:$0xff] }
 0x184   : > { %2955 = vst.msk [vmem:[#allocation2 + $0xa0] sm:$0xff] %vm172_vm4, %v2919_v19  ;;  %2315 = vst.msk [vmem:[#allocation2 + $0xc8] sm:$0xff] %vm172_vm4, %v2279_v28  ;;  %v2920_v17 = vadd.f32 %v2839_v18, %v2384_v35  ;;  %v3011_v19 = vld [vmem:[#allocation2 + $0x18] sm:$0xff] }
 0x185   : > { %2958 = vst.msk [vmem:[#allocation2 + $0xb8] sm:$0xff] %vm172_vm4, %v2922_v32 }
 0x186   : > { %v8417_v37 = vpop.f32.mrb[80].mxu0  ;;  %2956 = vst.msk [vmem:[#allocation2 + $0xa8] sm:$0xff] %vm172_vm4, %v2920_v17  ;;  %v8383_v56 = vpop.f32.mrb[80].mxu1 }
 0x187   : > { %v2852_v39 = vpop.f32.mrb[81].mxu0  ;;  %v2284_v2 = vadd.f32 %v8383_v56, %v1882_v38  ;;  %v2223_v40 = vpop.f32.mrb[81].mxu1 }
 0x188   : > { %v8418_v41 = vpop.f32.mrb[82].mxu0  ;;  %v2389_v43 = vld [vmem:[#allocation2 + $0xd0] sm:$0xff]  ;;  %v2282_v44 = vadd.f32 %v2223_v40, %v1880_v29  ;;  %v8384_v36 = vpop.f32.mrb[82].mxu1 }
 0x189   : > { %v2855_v46 = vpop.f32.mrb[83].mxu0  ;;  %2320 = vst.msk [vmem:[#allocation2 + $0xf0] sm:$0xff] %vm172_vm4, %v2284_v2  ;;  %v2925_v47 = vadd.f32 %v8417_v37, %v2389_v43  ;;  %v2387_v49 = vld [vmem:[#allocation2 + $0xc0] sm:$0xff]  ;;  %v2285_v50 = vadd.f32 %v8384_v36, %v1883_v33  ;;  %v2226_v34 = vpop.f32.mrb[83].mxu1  ;;  %v3009_v37 = vld [vmem:[#allocation2 + $0x8] sm:$0xff] }
 0x18a   : > { %2318 = vst.msk [vmem:[#allocation2 + $0xe0] sm:$0xff] %vm172_vm4, %v2282_v44  ;;  %v2923_v26 = vadd.f32 %v2852_v39, %v2387_v49  ;;  %v2390_v57 = vld [vmem:[#allocation2 + $0xd8] sm:$0xff]  ;;  %v2283_v15 = vadd.f32 %v2226_v34, %v1881_v16  ;;  %v3014_v44 = vld [vmem:[#allocation2 + $0x30] sm:$0xff] }
 0x18b   : > { %2961 = vst.msk [vmem:[#allocation2 + $0xd0] sm:$0xff] %vm172_vm4, %v2925_v47  ;;  %2321 = vst.msk [vmem:[#allocation2 + $0xf8] sm:$0xff] %vm172_vm4, %v2285_v50  ;;  %v2926_v52 = vadd.f32 %v8418_v41, %v2390_v57  ;;  %v2388_v53 = vld [vmem:[#allocation2 + $0xc8] sm:$0xff]  ;;  %v3012_v47 = vld [vmem:[#allocation2 + $0x20] sm:$0xff] }
 0x18c   : > { %2959 = vst.msk [vmem:[#allocation2 + $0xc0] sm:$0xff] %vm172_vm4, %v2923_v26  ;;  %2319 = vst.msk [vmem:[#allocation2 + $0xe8] sm:$0xff] %vm172_vm4, %v2283_v15  ;;  %v2924_v54 = vadd.f32 %v2855_v46, %v2388_v53  ;;  %v3015_v26 = vld [vmem:[#allocation2 + $0x38] sm:$0xff] }
 0x18d   : > { %2962 = vst.msk [vmem:[#allocation2 + $0xd8] sm:$0xff] %vm172_vm4, %v2926_v52 }
 0x18e   : > { %v8421_v55 = vpop.f32.mrb[84].mxu0  ;;  %2960 = vst.msk [vmem:[#allocation2 + $0xc8] sm:$0xff] %vm172_vm4, %v2924_v54  ;;  %v8387_v48 = vpop.f32.mrb[84].mxu1 }
 0x18f   : > { %v2868_v58 = vpop.f32.mrb[85].mxu0  ;;  %v2288_v59 = vadd.f32 %v8387_v48, %v1886_v31  ;;  %v2239_v62 = vpop.f32.mrb[85].mxu1 }
 0x190   : > { %v8422_v0 = vpop.f32.mrb[86].mxu0  ;;  %v2393_v45 = vld [vmem:[#allocation2 + $0xf0] sm:$0xff]  ;;  %v2286_v1 = vadd.f32 %v2239_v62, %v1884_v61  ;;  %v8388_v5 = vpop.f32.mrb[86].mxu1 }
 0x191   : > { %v2871_v14 = vpop.f32.mrb[87].mxu0  ;;  %2324 = vst.msk [vmem:[#allocation2 + $0x110] sm:$0xff] %vm172_vm4, %v2288_v59  ;;  %v2929_v63 = vadd.f32 %v8421_v55, %v2393_v45  ;;  %v2391_v7 = vld [vmem:[#allocation2 + $0xe0] sm:$0xff]  ;;  %v2289_v8 = vadd.f32 %v8388_v5, %v1887_v3  ;;  %v2242_v10 = vpop.f32.mrb[87].mxu1  ;;  %v3013_v55 = vld [vmem:[#allocation2 + $0x28] sm:$0xff] }
 0x192   : > { %2322 = vst.msk [vmem:[#allocation2 + $0x100] sm:$0xff] %vm172_vm4, %v2286_v1  ;;  %v2927_v12 = vadd.f32 %v2868_v58, %v2391_v7  ;;  %v2394_v13 = vld [vmem:[#allocation2 + $0xf8] sm:$0xff]  ;;  %v2287_v42 = vadd.f32 %v2242_v10, %v1885_v9  ;;  %v3018_v1 = vld [vmem:[#allocation2 + $0x50] sm:$0xff] }
 0x193   : > { %2965 = vst.msk [vmem:[#allocation2 + $0xf0] sm:$0xff] %vm172_vm4, %v2929_v63  ;;  %2325 = vst.msk [vmem:[#allocation2 + $0x118] sm:$0xff] %vm172_vm4, %v2289_v8  ;;  %v2930_v11 = vadd.f32 %v8422_v0, %v2394_v13  ;;  %v2392_v51 = vld [vmem:[#allocation2 + $0xe8] sm:$0xff]  ;;  %v3016_v63 = vld [vmem:[#allocation2 + $0x40] sm:$0xff] }
 0x194   : > { %2963 = vst.msk [vmem:[#allocation2 + $0xe0] sm:$0xff] %vm172_vm4, %v2927_v12  ;;  %2323 = vst.msk [vmem:[#allocation2 + $0x108] sm:$0xff] %vm172_vm4, %v2287_v42  ;;  %v2928_v21 = vadd.f32 %v2871_v14, %v2392_v51  ;;  %v3019_v12 = vld [vmem:[#allocation2 + $0x58] sm:$0xff] }
 0x195   : > { %2966 = vst.msk [vmem:[#allocation2 + $0xf8] sm:$0xff] %vm172_vm4, %v2930_v11 }
 0x196   : > { %v8425_v4 = vpop.f32.mrb[88].mxu0  ;;  %2964 = vst.msk [vmem:[#allocation2 + $0xe8] sm:$0xff] %vm172_vm4, %v2928_v21  ;;  %v8431_v23 = vpop.f32.mrb[88].mxu1 }
 0x197   : > { %v2884_v6 = vpop.f32.mrb[89].mxu0  ;;  %v3413_v18 = vadd.f32 %v8431_v23, %v3010_v22  ;;  %v3268_v25 = vpop.f32.mrb[89].mxu1 }
 0x198   : > { %v8426_v20 = vpop.f32.mrb[90].mxu0  ;;  %v2397_v30 = vld [vmem:[#allocation2 + $0x110] sm:$0xff]  ;;  %v3411_v60 = vadd.f32 %v3268_v25, %v3008_v24  ;;  %v8432_v27 = vpop.f32.mrb[90].mxu1 }
 0x199   : > { %v2887_v28 = vpop.f32.mrb[91].mxu0  ;;  %v2933_v32 = vadd.f32 %v8425_v4, %v2397_v30  ;;  %3449 = vst.msk [vmem:[#allocation2 + $0x10] sm:$0xff] %vm172_vm4, %v3413_v18  ;;  %v2395_v35 = vld [vmem:[#allocation2 + $0x100] sm:$0xff]  ;;  %v3414_v17 = vadd.f32 %v8432_v27, %v3011_v19  ;;  %v3271_v38 = vpop.f32.mrb[91].mxu1  ;;  %v3017_v4 = vld [vmem:[#allocation2 + $0x48] sm:$0xff] }
 0x19a   : > { %v2931_v56 = vadd.f32 %v2884_v6, %v2395_v35  ;;  %3447 = vst.msk [vmem:[#allocation2] sm:$0xff] %vm172_vm4, %v3411_v60  ;;  %v2398_v39 = vld [vmem:[#allocation2 + $0x118] sm:$0xff]  ;;  %v3412_v2 = vadd.f32 %v3271_v38, %v3009_v37  ;;  %v3022_v60 = vld [vmem:[#allocation2 + $0x70] sm:$0xff] }
 0x19b   : > { %2969 = vst.msk [vmem:[#allocation2 + $0x110] sm:$0xff] %vm172_vm4, %v2933_v32  ;;  %v2934_v29 = vadd.f32 %v8426_v20, %v2398_v39  ;;  %3450 = vst.msk [vmem:[#allocation2 + $0x18] sm:$0xff] %vm172_vm4, %v3414_v17  ;;  %v2396_v40 = vld [vmem:[#allocation2 + $0x108] sm:$0xff]  ;;  %v3020_v32 = vld [vmem:[#allocation2 + $0x60] sm:$0xff] }
 0x19c   : > { %2967 = vst.msk [vmem:[#allocation2 + $0x100] sm:$0xff] %vm172_vm4, %v2931_v56  ;;  %v2932_v41 = vadd.f32 %v2887_v28, %v2396_v40  ;;  %3448 = vst.msk [vmem:[#allocation2 + $0x8] sm:$0xff] %vm172_vm4, %v3412_v2  ;;  %v3023_v56 = vld [vmem:[#allocation2 + $0x78] sm:$0xff] }
 0x19d   : > { %2970 = vst.msk [vmem:[#allocation2 + $0x118] sm:$0xff] %vm172_vm4, %v2934_v29 }
 0x19e   : > { %v8469_v43 = vpop.f32.mrb[92].mxu0  ;;  %2968 = vst.msk [vmem:[#allocation2 + $0x108] sm:$0xff] %vm172_vm4, %v2932_v41  ;;  %v8435_v33 = vpop.f32.mrb[92].mxu1 }
 0x19f   : > { %v3779_v36 = vpop.f32.mrb[93].mxu0  ;;  %v3417_v46 = vadd.f32 %v8435_v33, %v3014_v44  ;;  %v3284_v49 = vpop.f32.mrb[93].mxu1 }
 0x1a0   : > { %v8470_v50 = vpop.f32.mrb[94].mxu0  ;;  %v3522_v16 = vld [vmem:[#allocation2 + $0x10] sm:$0xff]  ;;  %v3415_v34 = vadd.f32 %v3284_v49, %v3012_v47  ;;  %v8436_v57 = vpop.f32.mrb[94].mxu1 }
 0x1a1   : > { %v3782_v15 = vpop.f32.mrb[95].mxu0  ;;  %3453 = vst.msk [vmem:[#allocation2 + $0x30] sm:$0xff] %vm172_vm4, %v3417_v46  ;;  %v3924_v52 = vadd.f32 %v8469_v43, %v3522_v16  ;;  %v3520_v53 = vld [vmem:[#allocation2] sm:$0xff]  ;;  %v3418_v54 = vadd.f32 %v8436_v57, %v3015_v26  ;;  %v3287_v31 = vpop.f32.mrb[95].mxu1  ;;  %v3021_v43 = vld [vmem:[#allocation2 + $0x68] sm:$0xff] }
 0x1a2   : > { %3451 = vst.msk [vmem:[#allocation2 + $0x20] sm:$0xff] %vm172_vm4, %v3415_v34  ;;  %v3922_v48 = vadd.f32 %v3779_v36, %v3520_v53  ;;  %v3523_v58 = vld [vmem:[#allocation2 + $0x18] sm:$0xff]  ;;  %v3416_v59 = vadd.f32 %v3287_v31, %v3013_v55  ;;  %v3026_v34 = vld [vmem:[#allocation2 + $0x90] sm:$0xff] }
 0x1a3   : > { %3960 = vst.msk [vmem:[#allocation2 + $0x10] sm:$0xff] %vm172_vm4, %v3924_v52  ;;  %3454 = vst.msk [vmem:[#allocation2 + $0x38] sm:$0xff] %vm172_vm4, %v3418_v54  ;;  %v3925_v61 = vadd.f32 %v8470_v50, %v3523_v58  ;;  %v3521_v62 = vld [vmem:[#allocation2 + $0x8] sm:$0xff]  ;;  %v3024_v52 = vld [vmem:[#allocation2 + $0x80] sm:$0xff] }
 0x1a4   : > { %3958 = vst.msk [vmem:[#allocation2] sm:$0xff] %vm172_vm4, %v3922_v48  ;;  %3452 = vst.msk [vmem:[#allocation2 + $0x28] sm:$0xff] %vm172_vm4, %v3416_v59  ;;  %v3923_v0 = vadd.f32 %v3782_v15, %v3521_v62  ;;  %v3027_v48 = vld [vmem:[#allocation2 + $0x98] sm:$0xff] }
 0x1a5   : > { %3961 = vst.msk [vmem:[#allocation2 + $0x18] sm:$0xff] %vm172_vm4, %v3925_v61 }
 0x1a6   : > { %v8473_v45 = vpop.f32.mrb[96].mxu0  ;;  %3959 = vst.msk [vmem:[#allocation2 + $0x8] sm:$0xff] %vm172_vm4, %v3923_v0  ;;  %v8439_v3 = vpop.f32.mrb[96].mxu1 }
 0x1a7   : > { %v3795_v5 = vpop.f32.mrb[97].mxu0  ;;  %v3421_v14 = vadd.f32 %v8439_v3, %v3018_v1  ;;  %v3300_v7 = vpop.f32.mrb[97].mxu1 }
 0x1a8   : > { %v8474_v8 = vpop.f32.mrb[98].mxu0  ;;  %v3526_v9 = vld [vmem:[#allocation2 + $0x30] sm:$0xff]  ;;  %v3419_v10 = vadd.f32 %v3300_v7, %v3016_v63  ;;  %v8440_v13 = vpop.f32.mrb[98].mxu1 }
 0x1a9   : > { %v3798_v42 = vpop.f32.mrb[99].mxu0  ;;  %3457 = vst.msk [vmem:[#allocation2 + $0x50] sm:$0xff] %vm172_vm4, %v3421_v14  ;;  %v3928_v11 = vadd.f32 %v8473_v45, %v3526_v9  ;;  %v3524_v51 = vld [vmem:[#allocation2 + $0x20] sm:$0xff]  ;;  %v3422_v21 = vadd.f32 %v8440_v13, %v3019_v12  ;;  %v3303_v22 = vpop.f32.mrb[99].mxu1  ;;  %v3025_v45 = vld [vmem:[#allocation2 + $0x88] sm:$0xff] }
 0x1aa   : > { %3455 = vst.msk [vmem:[#allocation2 + $0x40] sm:$0xff] %vm172_vm4, %v3419_v10  ;;  %v3926_v23 = vadd.f32 %v3795_v5, %v3524_v51  ;;  %v3527_v6 = vld [vmem:[#allocation2 + $0x38] sm:$0xff]  ;;  %v3420_v18 = vadd.f32 %v3303_v22, %v3017_v4  ;;  %v3030_v10 = vld [vmem:[#allocation2 + $0xb0] sm:$0xff] }
 0x1ab   : > { %3964 = vst.msk [vmem:[#allocation2 + $0x30] sm:$0xff] %vm172_vm4, %v3928_v11  ;;  %3458 = vst.msk [vmem:[#allocation2 + $0x58] sm:$0xff] %vm172_vm4, %v3422_v21  ;;  %v3929_v24 = vadd.f32 %v8474_v8, %v3527_v6  ;;  %v3525_v25 = vld [vmem:[#allocation2 + $0x28] sm:$0xff]  ;;  %v3028_v11 = vld [vmem:[#allocation2 + $0xa0] sm:$0xff] }
 0x1ac   : > { %3962 = vst.msk [vmem:[#allocation2 + $0x20] sm:$0xff] %vm172_vm4, %v3926_v23  ;;  %3456 = vst.msk [vmem:[#allocation2 + $0x48] sm:$0xff] %vm172_vm4, %v3420_v18  ;;  %v3927_v20 = vadd.f32 %v3798_v42, %v3525_v25  ;;  %v3031_v23 = vld [vmem:[#allocation2 + $0xb8] sm:$0xff] }
 0x1ad   : > { %3965 = vst.msk [vmem:[#allocation2 + $0x38] sm:$0xff] %vm172_vm4, %v3929_v24 }
 0x1ae   : > { %v8477_v30 = vpop.f32.mrb[100].mxu0  ;;  %3963 = vst.msk [vmem:[#allocation2 + $0x28] sm:$0xff] %vm172_vm4, %v3927_v20  ;;  %v8443_v19 = vpop.f32.mrb[100].mxu1 }
 0x1af   : > { %v3811_v27 = vpop.f32.mrb[101].mxu0  ;;  %v3425_v28 = vadd.f32 %v8443_v19, %v3022_v60  ;;  %v3316_v35 = vpop.f32.mrb[101].mxu1 }
 0x1b0   : > { %v8478_v17 = vpop.f32.mrb[102].mxu0  ;;  %v3530_v37 = vld [vmem:[#allocation2 + $0x50] sm:$0xff]  ;;  %v3423_v38 = vadd.f32 %v3316_v35, %v3020_v32  ;;  %v8444_v39 = vpop.f32.mrb[102].mxu1 }
 0x1b1   : > { %v3814_v2 = vpop.f32.mrb[103].mxu0  ;;  %3461 = vst.msk [vmem:[#allocation2 + $0x70] sm:$0xff] %vm172_vm4, %v3425_v28  ;;  %v3932_v29 = vadd.f32 %v8477_v30, %v3530_v37  ;;  %v3528_v40 = vld [vmem:[#allocation2 + $0x40] sm:$0xff]  ;;  %v3426_v41 = vadd.f32 %v8444_v39, %v3023_v56  ;;  %v3319_v44 = vpop.f32.mrb[103].mxu1  ;;  %v3029_v30 = vld [vmem:[#allocation2 + $0xa8] sm:$0xff] }
 0x1b2   : > { %3459 = vst.msk [vmem:[#allocation2 + $0x60] sm:$0xff] %vm172_vm4, %v3423_v38  ;;  %v3930_v33 = vadd.f32 %v3811_v27, %v3528_v40  ;;  %v3531_v36 = vld [vmem:[#allocation2 + $0x58] sm:$0xff]  ;;  %v3424_v46 = vadd.f32 %v3319_v44, %v3021_v43  ;;  %v3034_v38 = vld [vmem:[#allocation2 + $0xd0] sm:$0xff] }
 0x1b3   : > { %3968 = vst.msk [vmem:[#allocation2 + $0x50] sm:$0xff] %vm172_vm4, %v3932_v29  ;;  %3462 = vst.msk [vmem:[#allocation2 + $0x78] sm:$0xff] %vm172_vm4, %v3426_v41  ;;  %v3933_v47 = vadd.f32 %v8478_v17, %v3531_v36  ;;  %v3529_v49 = vld [vmem:[#allocation2 + $0x48] sm:$0xff]  ;;  %v3032_v29 = vld [vmem:[#allocation2 + $0xc0] sm:$0xff] }
 0x1b4   : > { %3966 = vst.msk [vmem:[#allocation2 + $0x40] sm:$0xff] %vm172_vm4, %v3930_v33  ;;  %3460 = vst.msk [vmem:[#allocation2 + $0x68] sm:$0xff] %vm172_vm4, %v3424_v46  ;;  %v3931_v50 = vadd.f32 %v3814_v2, %v3529_v49  ;;  %v3035_v33 = vld [vmem:[#allocation2 + $0xd8] sm:$0xff] }
 0x1b5   : > { %3969 = vst.msk [vmem:[#allocation2 + $0x58] sm:$0xff] %vm172_vm4, %v3933_v47 }
 0x1b6   : > { %v8481_v16 = vpop.f32.mrb[104].mxu0  ;;  %3967 = vst.msk [vmem:[#allocation2 + $0x48] sm:$0xff] %vm172_vm4, %v3931_v50  ;;  %v8447_v26 = vpop.f32.mrb[104].mxu1 }
 0x1b7   : > { %v3827_v57 = vpop.f32.mrb[105].mxu0  ;;  %v3429_v15 = vadd.f32 %v8447_v26, %v3026_v34  ;;  %v3332_v53 = vpop.f32.mrb[105].mxu1 }
 0x1b8   : > { %v8482_v54 = vpop.f32.mrb[106].mxu0  ;;  %v3534_v55 = vld [vmem:[#allocation2 + $0x70] sm:$0xff]  ;;  %v3427_v31 = vadd.f32 %v3332_v53, %v3024_v52  ;;  %v8448_v58 = vpop.f32.mrb[106].mxu1 }
 0x1b9   : > { %v3830_v59 = vpop.f32.mrb[107].mxu0  ;;  %3465 = vst.msk [vmem:[#allocation2 + $0x90] sm:$0xff] %vm172_vm4, %v3429_v15  ;;  %v3936_v61 = vadd.f32 %v8481_v16, %v3534_v55  ;;  %v3532_v62 = vld [vmem:[#allocation2 + $0x60] sm:$0xff]  ;;  %v3430_v0 = vadd.f32 %v8448_v58, %v3027_v48  ;;  %v3335_v1 = vpop.f32.mrb[107].mxu1  ;;  %v3033_v16 = vld [vmem:[#allocation2 + $0xc8] sm:$0xff] }
 0x1ba   : > { %3463 = vst.msk [vmem:[#allocation2 + $0x80] sm:$0xff] %vm172_vm4, %v3427_v31  ;;  %v3934_v3 = vadd.f32 %v3827_v57, %v3532_v62  ;;  %v3535_v5 = vld [vmem:[#allocation2 + $0x78] sm:$0xff]  ;;  %v3428_v14 = vadd.f32 %v3335_v1, %v3025_v45  ;;  %v3038_v31 = vld [vmem:[#allocation2 + $0xf0] sm:$0xff] }
 0x1bb   : > { %3972 = vst.msk [vmem:[#allocation2 + $0x70] sm:$0xff] %vm172_vm4, %v3936_v61  ;;  %3466 = vst.msk [vmem:[#allocation2 + $0x98] sm:$0xff] %vm172_vm4, %v3430_v0  ;;  %v3937_v63 = vadd.f32 %v8482_v54, %v3535_v5  ;;  %v3533_v7 = vld [vmem:[#allocation2 + $0x68] sm:$0xff]  ;;  %v3036_v61 = vld [vmem:[#allocation2 + $0xe0] sm:$0xff] }
 0x1bc   : > { %3970 = vst.msk [vmem:[#allocation2 + $0x60] sm:$0xff] %vm172_vm4, %v3934_v3  ;;  %3464 = vst.msk [vmem:[#allocation2 + $0x88] sm:$0xff] %vm172_vm4, %v3428_v14  ;;  %v3935_v8 = vadd.f32 %v3830_v59, %v3533_v7  ;;  %v3039_v3 = vld [vmem:[#allocation2 + $0xf8] sm:$0xff] }
 0x1bd   : > { %3973 = vst.msk [vmem:[#allocation2 + $0x78] sm:$0xff] %vm172_vm4, %v3937_v63 }
 0x1be   : > { %v8485_v9 = vpop.f32.mrb[108].mxu0  ;;  %3971 = vst.msk [vmem:[#allocation2 + $0x68] sm:$0xff] %vm172_vm4, %v3935_v8  ;;  %v8451_v12 = vpop.f32.mrb[108].mxu1 }
 0x1bf   : > { %v3843_v13 = vpop.f32.mrb[109].mxu0  ;;  %v3433_v42 = vadd.f32 %v8451_v12, %v3030_v10  ;;  %v3348_v51 = vpop.f32.mrb[109].mxu1 }
 0x1c0   : > { %v8486_v21 = vpop.f32.mrb[110].mxu0  ;;  %v3538_v4 = vld [vmem:[#allocation2 + $0x90] sm:$0xff]  ;;  %v3431_v22 = vadd.f32 %v3348_v51, %v3028_v11  ;;  %v8452_v6 = vpop.f32.mrb[110].mxu1 }
 0x1c1   : > { %v3846_v18 = vpop.f32.mrb[111].mxu0  ;;  %3469 = vst.msk [vmem:[#allocation2 + $0xb0] sm:$0xff] %vm172_vm4, %v3433_v42  ;;  %v3940_v24 = vadd.f32 %v8485_v9, %v3538_v4  ;;  %v3536_v25 = vld [vmem:[#allocation2 + $0x80] sm:$0xff]  ;;  %v3434_v20 = vadd.f32 %v8452_v6, %v3031_v23  ;;  %v3351_v60 = vpop.f32.mrb[111].mxu1  ;;  %v3037_v9 = vld [vmem:[#allocation2 + $0xe8] sm:$0xff] }
 0x1c2   : > { %3467 = vst.msk [vmem:[#allocation2 + $0xa0] sm:$0xff] %vm172_vm4, %v3431_v22  ;;  %v3938_v19 = vadd.f32 %v3843_v13, %v3536_v25  ;;  %v3539_v27 = vld [vmem:[#allocation2 + $0x98] sm:$0xff]  ;;  %v3432_v28 = vadd.f32 %v3351_v60, %v3029_v30  ;;  %v3042_v22 = vld [vmem:[#allocation2 + $0x110] sm:$0xff] }
 0x1c3   : > { %3976 = vst.msk [vmem:[#allocation2 + $0x90] sm:$0xff] %vm172_vm4, %v3940_v24  ;;  %3470 = vst.msk [vmem:[#allocation2 + $0xb8] sm:$0xff] %vm172_vm4, %v3434_v20  ;;  %v3941_v32 = vadd.f32 %v8486_v21, %v3539_v27  ;;  %v3537_v35 = vld [vmem:[#allocation2 + $0x88] sm:$0xff]  ;;  %v3040_v24 = vld [vmem:[#allocation2 + $0x100] sm:$0xff] }
 0x1c4   : > { %3974 = vst.msk [vmem:[#allocation2 + $0x80] sm:$0xff] %vm172_vm4, %v3938_v19  ;;  %3468 = vst.msk [vmem:[#allocation2 + $0xa8] sm:$0xff] %vm172_vm4, %v3432_v28  ;;  %v3939_v17 = vadd.f32 %v3846_v18, %v3537_v35  ;;  %v3043_v19 = vld [vmem:[#allocation2 + $0x118] sm:$0xff] }
 0x1c5   : > { %3977 = vst.msk [vmem:[#allocation2 + $0x98] sm:$0xff] %vm172_vm4, %v3941_v32 }
 0x1c6   : > { %v8489_v37 = vpop.f32.mrb[112].mxu0  ;;  %3975 = vst.msk [vmem:[#allocation2 + $0x88] sm:$0xff] %vm172_vm4, %v3939_v17  ;;  %v8455_v56 = vpop.f32.mrb[112].mxu1 }
 0x1c7   : > { %v3859_v39 = vpop.f32.mrb[113].mxu0  ;;  %v3437_v2 = vadd.f32 %v8455_v56, %v3034_v38  ;;  %v3364_v40 = vpop.f32.mrb[113].mxu1 }
 0x1c8   : > { %v8490_v41 = vpop.f32.mrb[114].mxu0  ;;  %v3542_v43 = vld [vmem:[#allocation2 + $0xb0] sm:$0xff]  ;;  %v3435_v44 = vadd.f32 %v3364_v40, %v3032_v29  ;;  %v8456_v36 = vpop.f32.mrb[114].mxu1 }
 0x1c9   : > { %v3862_v46 = vpop.f32.mrb[115].mxu0  ;;  %3473 = vst.msk [vmem:[#allocation2 + $0xd0] sm:$0xff] %vm172_vm4, %v3437_v2  ;;  %v3944_v47 = vadd.f32 %v8489_v37, %v3542_v43  ;;  %v3540_v49 = vld [vmem:[#allocation2 + $0xa0] sm:$0xff]  ;;  %v3438_v50 = vadd.f32 %v8456_v36, %v3035_v33  ;;  %v3367_v34 = vpop.f32.mrb[115].mxu1  ;;  %v3041_v37 = vld [vmem:[#allocation2 + $0x108] sm:$0xff] }
 0x1ca   : > { %3471 = vst.msk [vmem:[#allocation2 + $0xc0] sm:$0xff] %vm172_vm4, %v3435_v44  ;;  %v3942_v26 = vadd.f32 %v3859_v39, %v3540_v49  ;;  %v3543_v57 = vld [vmem:[#allocation2 + $0xb8] sm:$0xff]  ;;  %v3436_v15 = vadd.f32 %v3367_v34, %v3033_v16  ;;  %v4033_v44 = vld [vmem:[#allocation2 + $0x10] sm:$0xff] }
 0x1cb   : > { %3980 = vst.msk [vmem:[#allocation2 + $0xb0] sm:$0xff] %vm172_vm4, %v3944_v47  ;;  %3474 = vst.msk [vmem:[#allocation2 + $0xd8] sm:$0xff] %vm172_vm4, %v3438_v50  ;;  %v3945_v52 = vadd.f32 %v8490_v41, %v3543_v57  ;;  %v3541_v53 = vld [vmem:[#allocation2 + $0xa8] sm:$0xff]  ;;  %v4031_v47 = vld [vmem:[#allocation2] sm:$0xff] }
 0x1cc   : > { %3978 = vst.msk [vmem:[#allocation2 + $0xa0] sm:$0xff] %vm172_vm4, %v3942_v26  ;;  %3472 = vst.msk [vmem:[#allocation2 + $0xc8] sm:$0xff] %vm172_vm4, %v3436_v15  ;;  %v3943_v54 = vadd.f32 %v3862_v46, %v3541_v53  ;;  %v4034_v26 = vld [vmem:[#allocation2 + $0x18] sm:$0xff] }
 0x1cd   : > { %3981 = vst.msk [vmem:[#allocation2 + $0xb8] sm:$0xff] %vm172_vm4, %v3945_v52 }
 0x1ce   : > { %v8493_v55 = vpop.f32.mrb[116].mxu0  ;;  %3979 = vst.msk [vmem:[#allocation2 + $0xa8] sm:$0xff] %vm172_vm4, %v3943_v54  ;;  %v8459_v48 = vpop.f32.mrb[116].mxu1 }
 0x1cf   : > { %v3875_v58 = vpop.f32.mrb[117].mxu0  ;;  %v3441_v59 = vadd.f32 %v8459_v48, %v3038_v31  ;;  %v3380_v62 = vpop.f32.mrb[117].mxu1 }
 0x1d0   : > { %v8494_v0 = vpop.f32.mrb[118].mxu0  ;;  %v3546_v45 = vld [vmem:[#allocation2 + $0xd0] sm:$0xff]  ;;  %v3439_v1 = vadd.f32 %v3380_v62, %v3036_v61  ;;  %v8460_v5 = vpop.f32.mrb[118].mxu1 }
 0x1d1   : > { %v3878_v14 = vpop.f32.mrb[119].mxu0  ;;  %3477 = vst.msk [vmem:[#allocation2 + $0xf0] sm:$0xff] %vm172_vm4, %v3441_v59  ;;  %v3948_v63 = vadd.f32 %v8493_v55, %v3546_v45  ;;  %v3544_v7 = vld [vmem:[#allocation2 + $0xc0] sm:$0xff]  ;;  %v3442_v8 = vadd.f32 %v8460_v5, %v3039_v3  ;;  %v3383_v10 = vpop.f32.mrb[119].mxu1  ;;  %v4032_v55 = vld [vmem:[#allocation2 + $0x8] sm:$0xff] }
 0x1d2   : > { %3475 = vst.msk [vmem:[#allocation2 + $0xe0] sm:$0xff] %vm172_vm4, %v3439_v1  ;;  %v3946_v12 = vadd.f32 %v3875_v58, %v3544_v7  ;;  %v3547_v13 = vld [vmem:[#allocation2 + $0xd8] sm:$0xff]  ;;  %v3440_v42 = vadd.f32 %v3383_v10, %v3037_v9  ;;  %v4037_v1 = vld [vmem:[#allocation2 + $0x30] sm:$0xff] }
 0x1d3   : > { %3984 = vst.msk [vmem:[#allocation2 + $0xd0] sm:$0xff] %vm172_vm4, %v3948_v63  ;;  %3478 = vst.msk [vmem:[#allocation2 + $0xf8] sm:$0xff] %vm172_vm4, %v3442_v8  ;;  %v3949_v11 = vadd.f32 %v8494_v0, %v3547_v13  ;;  %v3545_v51 = vld [vmem:[#allocation2 + $0xc8] sm:$0xff]  ;;  %v4035_v63 = vld [vmem:[#allocation2 + $0x20] sm:$0xff] }
 0x1d4   : > { %3982 = vst.msk [vmem:[#allocation2 + $0xc0] sm:$0xff] %vm172_vm4, %v3946_v12  ;;  %3476 = vst.msk [vmem:[#allocation2 + $0xe8] sm:$0xff] %vm172_vm4, %v3440_v42  ;;  %v3947_v21 = vadd.f32 %v3878_v14, %v3545_v51  ;;  %v4038_v12 = vld [vmem:[#allocation2 + $0x38] sm:$0xff] }
 0x1d5   : > { %3985 = vst.msk [vmem:[#allocation2 + $0xd8] sm:$0xff] %vm172_vm4, %v3949_v11 }
 0x1d6   : > { %v8497_v4 = vpop.f32.mrb[120].mxu0  ;;  %3983 = vst.msk [vmem:[#allocation2 + $0xc8] sm:$0xff] %vm172_vm4, %v3947_v21  ;;  %v8463_v23 = vpop.f32.mrb[120].mxu1 }
 0x1d7   : > { %v3891_v6 = vpop.f32.mrb[121].mxu0  ;;  %v3445_v18 = vadd.f32 %v8463_v23, %v3042_v22  ;;  %v3396_v25 = vpop.f32.mrb[121].mxu1 }
 0x1d8   : > { %v8498_v20 = vpop.f32.mrb[122].mxu0  ;;  %v3550_v30 = vld [vmem:[#allocation2 + $0xf0] sm:$0xff]  ;;  %v3443_v60 = vadd.f32 %v3396_v25, %v3040_v24  ;;  %v8464_v27 = vpop.f32.mrb[122].mxu1  ;;  %v8784_v24 = vmov 1983009808  }
 0x1d9   : > { %v3894_v28 = vpop.f32.mrb[123].mxu0  ;;  %3481 = vst.msk [vmem:[#allocation2 + $0x110] sm:$0xff] %vm172_vm4, %v3445_v18  ;;  %v3952_v32 = vadd.f32 %v8497_v4, %v3550_v30  ;;  %v3548_v35 = vld [vmem:[#allocation2 + $0xe0] sm:$0xff]  ;;  %v3446_v17 = vadd.f32 %v8464_v27, %v3043_v19  ;;  %v3399_v38 = vpop.f32.mrb[123].mxu1  ;;  %v4036_v4 = vld [vmem:[#allocation2 + $0x28] sm:$0xff]  ;;  %v5304_v25 = vunpack.c.l.s4 %v8784_v24 }
 0x1da   : > { %3479 = vst.msk [vmem:[#allocation2 + $0x100] sm:$0xff] %vm172_vm4, %v3443_v60  ;;  %v3950_v56 = vadd.f32 %v3891_v6, %v3548_v35  ;;  %v3551_v39 = vld [vmem:[#allocation2 + $0xf8] sm:$0xff]  ;;  %v3444_v2 = vadd.f32 %v3399_v38, %v3041_v37 }
 0x1db   : > { %3988 = vst.msk [vmem:[#allocation2 + $0xf0] sm:$0xff] %vm172_vm4, %v3952_v32  ;;  %3482 = vst.msk [vmem:[#allocation2 + $0x118] sm:$0xff] %vm172_vm4, %v3446_v17  ;;  %v3953_v29 = vadd.f32 %v8498_v20, %v3551_v39  ;;  %v3549_v40 = vld [vmem:[#allocation2 + $0xe8] sm:$0xff]  ;;  %v5306_v20 = vlaneseq  ;;  %v5305_v17 = vunpack.c.0.s8 %v5304_v25 }
 0x1dc   : > { %3986 = vst.msk [vmem:[#allocation2 + $0xe0] sm:$0xff] %vm172_vm4, %v3950_v56  ;;  %3480 = vst.msk [vmem:[#allocation2 + $0x108] sm:$0xff] %vm172_vm4, %v3444_v2  ;;  %v3951_v41 = vadd.f32 %v3894_v28, %v3549_v40  ;;  %v4041_v28 = vld [vmem:[#allocation2 + $0x50] sm:$0xff]  ;;  %v4039_v56 = vld [vmem:[#allocation2 + $0x40] sm:$0xff] }
 0x1dd   : > { %3989 = vst.msk [vmem:[#allocation2 + $0xf8] sm:$0xff] %vm172_vm4, %v3953_v29  ;;  %v5307_v37 = vshrl.u32 %v5306_v20, 7  ;;  %v9879_v29 = vld [vmem:[%s10823_s2] ss:$0 sm:$0xff] }
 0x1de   : > { %v8501_v43 = vpop.f32.mrb[124].mxu0  ;;  %3987 = vst.msk [vmem:[#allocation2 + $0xe8] sm:$0xff] %vm172_vm4, %v3951_v41  ;;  %v8507_v33 = vpop.f32.mrb[124].mxu1 }
 0x1df   : > { %v3907_v36 = vpop.f32.mrb[125].mxu0  ;;  %v4569_v46 = vadd.f32 %v8507_v33, %v4033_v44  ;;  %v4424_v49 = vpop.f32.mrb[125].mxu1 }
 0x1e0   : > { %v8502_v50 = vpop.f32.mrb[126].mxu0  ;;  %v3554_v16 = vld [vmem:[#allocation2 + $0x110] sm:$0xff]  ;;  %v4567_v34 = vadd.f32 %v4424_v49, %v4031_v47  ;;  %v8508_v57 = vpop.f32.mrb[126].mxu1  ;;  %v4040_v49 = vld [vmem:[#allocation2 + $0x48] sm:$0xff] }
 0x1e1   : > { %v3910_v15 = vpop.f32.mrb[127].mxu0  ;;  %v3956_v52 = vadd.f32 %v8501_v43, %v3554_v16  ;;  %4605 = vst.msk [vmem:[#allocation2 + $0x10] sm:$0xff] %vm172_vm4, %v4569_v46  ;;  %v3552_v53 = vld [vmem:[#allocation2 + $0x100] sm:$0xff]  ;;  %v4570_v54 = vadd.f32 %v8508_v57, %v4034_v26  ;;  %v4427_v31 = vpop.f32.mrb[127].mxu1  ;;  %v4042_v43 = vld [vmem:[#allocation2 + $0x58] sm:$0xff] }
 0x1e2   : > { %v3954_v48 = vadd.f32 %v3907_v36, %v3552_v53  ;;  %4603 = vst.msk [vmem:[#allocation2] sm:$0xff] %vm172_vm4, %v4567_v34  ;;  %v3555_v58 = vld [vmem:[#allocation2 + $0x118] sm:$0xff]  ;;  %v4568_v59 = vadd.f32 %v4427_v31, %v4032_v55 }
 0x1e3   : > { %3992 = vst.msk [vmem:[#allocation2 + $0x110] sm:$0xff] %vm172_vm4, %v3956_v52  ;;  %v3957_v61 = vadd.f32 %v8502_v50, %v3555_v58  ;;  %4606 = vst.msk [vmem:[#allocation2 + $0x18] sm:$0xff] %vm172_vm4, %v4570_v54  ;;  %v3553_v62 = vld [vmem:[#allocation2 + $0x108] sm:$0xff]  ;;  %v9884_v52 = vsub.s32 %v5305_v17, %v5307_v37 }
 0x1e4   : > { %3990 = vst.msk [vmem:[#allocation2 + $0x100] sm:$0xff] %vm172_vm4, %v3954_v48  ;;  %v3955_v0 = vadd.f32 %v3910_v15, %v3553_v62  ;;  %4604 = vst.msk [vmem:[#allocation2 + $0x8] sm:$0xff] %vm172_vm4, %v4568_v59 }
 0x1e5   : > { %3993 = vst.msk [vmem:[#allocation2 + $0x118] sm:$0xff] %vm172_vm4, %v3957_v61 }
 0x1e6   : > { %v8545_v45 = vpop.f32.mrb[128].mxu0  ;;  %3991 = vst.msk [vmem:[#allocation2 + $0x108] sm:$0xff] %vm172_vm4, %v3955_v0  ;;  %v8511_v3 = vpop.f32.mrb[128].mxu1 }
 0x1e7   : > { %v4936_v5 = vpop.f32.mrb[129].mxu0  ;;  %v4573_v14 = vadd.f32 %v8511_v3, %v4037_v1  ;;  %v4440_v7 = vpop.f32.mrb[129].mxu1 }
 0x1e8   : > { %v8546_v8 = vpop.f32.mrb[130].mxu0  ;;  %v4678_v9 = vld [vmem:[#allocation2 + $0x10] sm:$0xff]  ;;  %v4571_v10 = vadd.f32 %v4440_v7, %v4035_v63  ;;  %v8512_v13 = vpop.f32.mrb[130].mxu1  ;;  %v4043_v7 = vld [vmem:[#allocation2 + $0x60] sm:$0xff] }
 0x1e9   : > { %v4939_v42 = vpop.f32.mrb[131].mxu0  ;;  %4609 = vst.msk [vmem:[#allocation2 + $0x30] sm:$0xff] %vm172_vm4, %v4573_v14  ;;  %v5081_v11 = vadd.f32 %v8545_v45, %v4678_v9  ;;  %v4676_v51 = vld [vmem:[#allocation2] sm:$0xff]  ;;  %v4574_v21 = vadd.f32 %v8512_v13, %v4038_v12  ;;  %v4443_v22 = vpop.f32.mrb[131].mxu1  ;;  %v4045_v45 = vld [vmem:[#allocation2 + $0x70] sm:$0xff] }
 0x1ea   : > { %4607 = vst.msk [vmem:[#allocation2 + $0x20] sm:$0xff] %vm172_vm4, %v4571_v10  ;;  %v5079_v23 = vadd.f32 %v4936_v5, %v4676_v51  ;;  %v4679_v6 = vld [vmem:[#allocation2 + $0x18] sm:$0xff]  ;;  %v4572_v18 = vadd.f32 %v4443_v22, %v4036_v4 }
 0x1eb   : > { %5117 = vst.msk [vmem:[#allocation2 + $0x10] sm:$0xff] %vm172_vm4, %v5081_v11  ;;  %4610 = vst.msk [vmem:[#allocation2 + $0x38] sm:$0xff] %vm172_vm4, %v4574_v21  ;;  %v5082_v30 = vadd.f32 %v8546_v8, %v4679_v6  ;;  %v4677_v60 = vld [vmem:[#allocation2 + $0x8] sm:$0xff] }
 0x1ec   : > { %5115 = vst.msk [vmem:[#allocation2] sm:$0xff] %vm172_vm4, %v5079_v23  ;;  %4608 = vst.msk [vmem:[#allocation2 + $0x28] sm:$0xff] %vm172_vm4, %v4572_v18  ;;  %v5080_v19 = vadd.f32 %v4939_v42, %v4677_v60 }
 0x1ed   : > { %5118 = vst.msk [vmem:[#allocation2 + $0x18] sm:$0xff] %vm172_vm4, %v5082_v30 }
 0x1ee   : > { %v8549_v27 = vpop.f32.mrb[132].mxu0  ;;  %5116 = vst.msk [vmem:[#allocation2 + $0x8] sm:$0xff] %vm172_vm4, %v5080_v19  ;;  %v8515_v32 = vpop.f32.mrb[132].mxu1 }
 0x1ef   : > { %v4952_v35 = vpop.f32.mrb[133].mxu0  ;;  %v4577_v38 = vadd.f32 %v8515_v32, %v4041_v28  ;;  %v4456_v39 = vpop.f32.mrb[133].mxu1 }
 0x1f0   : > { %v8550_v2 = vpop.f32.mrb[134].mxu0  ;;  %v4682_v40 = vld [vmem:[#allocation2 + $0x30] sm:$0xff]  ;;  %v4575_v41 = vadd.f32 %v4456_v39, %v4039_v56  ;;  %v8516_v44 = vpop.f32.mrb[134].mxu1 }
 0x1f1   : > { %v4955_v33 = vpop.f32.mrb[135].mxu0  ;;  %4613 = vst.msk [vmem:[#allocation2 + $0x50] sm:$0xff] %vm172_vm4, %v4577_v38  ;;  %v5085_v36 = vadd.f32 %v8549_v27, %v4682_v40  ;;  %v4680_v46 = vld [vmem:[#allocation2 + $0x20] sm:$0xff]  ;;  %v4578_v47 = vadd.f32 %v8516_v44, %v4042_v43  ;;  %v4459_v50 = vpop.f32.mrb[135].mxu1 }
 0x1f2   : > { %v5153_v16 = vld [vmem:[#allocation2 + $0x10] sm:$0xff]  ;;  %4611 = vst.msk [vmem:[#allocation2 + $0x40] sm:$0xff] %vm172_vm4, %v4575_v41  ;;  %v5083_v34 = vadd.f32 %v4952_v35, %v4680_v46  ;;  %v4683_v26 = vld [vmem:[#allocation2 + $0x38] sm:$0xff]  ;;  %v4576_v57 = vadd.f32 %v4459_v50, %v4040_v49 }
 0x1f3   : > { %v5196_v15 = vadd.f32 %v9879_v29, %v5153_v16  ;;  %v5151_v53 = vld [vmem:[#allocation2] sm:$0xff]  ;;  %5121 = vst.msk [vmem:[#allocation2 + $0x30] sm:$0xff] %vm172_vm4, %v5085_v36  ;;  %4614 = vst.msk [vmem:[#allocation2 + $0x58] sm:$0xff] %vm172_vm4, %v4578_v47  ;;  %v5086_v54 = vadd.f32 %v8550_v2, %v4683_v26  ;;  %v4681_v55 = vld [vmem:[#allocation2 + $0x28] sm:$0xff] }
 0x1f4   : > { %v5194_v31 = vadd.f32 %v9879_v29, %v5151_v53  ;;  %v5154_v48 = vld [vmem:[#allocation2 + $0x18] sm:$0xff]  ;;  %5119 = vst.msk [vmem:[#allocation2 + $0x20] sm:$0xff] %vm172_vm4, %v5083_v34  ;;  %4612 = vst.msk [vmem:[#allocation2 + $0x48] sm:$0xff] %vm172_vm4, %v4576_v57  ;;  %v5084_v58 = vadd.f32 %v4955_v33, %v4681_v55 }
 0x1f5   : > { %v5232_v59 = vmax.f32 %v5196_v15, 0.0  ;;  %5122 = vst.msk [vmem:[#allocation2 + $0x38] sm:$0xff] %vm172_vm4, %v5086_v54  ;;  %v5197_v0 = vadd.f32 %v9879_v29, %v5154_v48  ;;  %v5152_v46 = vld [vmem:[#allocation2 + $0x8] sm:$0xff] }
 0x1f6   : > { %v9892_v61 = vpop.f32.mrb[136].mxu0  ;;  %v5230_v62 = vmax.f32 %v5194_v31, 0.0  ;;  %5120 = vst.msk [vmem:[#allocation2 + $0x28] sm:$0xff] %vm172_vm4, %v5084_v58  ;;  %v8519_v1 = vpop.f32.mrb[136].mxu1 }
 0x1f7   : > { %v9896_v3 = vpop.f32.mrb[137].mxu0  ;;  %v5336_v5 = vcombine.high %v5232_v59, %v5232_v59  ;;  %v5343_v14 = vrot.slane %v5232_v59, %v9884_v52  ;;  %v4581_v63 = vadd.f32 %v8519_v1, %v4045_v45  ;;  %v4472_v8 = vpop.f32.mrb[137].mxu1  ;;  %v5233_v18 = vmax.f32 %v5197_v0, 0.0 }
 0x1f8   : > { %v9899_v9 = vpop.f32.mrb[138].mxu0  ;;  %v5302_v10 = vcombine.high %v5230_v62, %v5230_v62  ;;  %v5309_v12 = vrot.slane %v5230_v62, %v9884_v52  ;;  %v4579_v13 = vadd.f32 %v4472_v8, %v4043_v7  ;;  %v9902_v42 = vpop.f32.mrb[138].mxu1  ;;  %v5195_v62 = vadd.f32 %v9879_v29, %v5152_v46 }
 0x1f9   : > { %v9904_v11 = vpop.f32.mrb[139].mxu0  ;;  %v5350_v51 = vrot.slane %v5336_v5, %v9884_v52  ;;  %v5351_v21 = vcombine.high %v5343_v14, %v5343_v14  ;;  %4617 = vst.msk [vmem:[#allocation2 + $0x70] sm:$0xff] %vm172_vm4, %v4581_v63  ;;  %v9908_v4 = vpop.f32.mrb[139].mxu1  ;;  %v5360_v54 = vrot.slane %v5233_v18, %v9884_v52  ;;  %v5353_v1 = vcombine.high %v5233_v18, %v5233_v18 }
 0x1fa   : > { %v5316_v22 = vrot.slane %v5302_v10, %v9884_v52  ;;  %v5317_v23 = vcombine.high %v5309_v12, %v5309_v12  ;;  %v6035_v6 = vsel %vm6034_vm9, %v5309_v12, -inf  ;;  %4615 = vst.msk [vmem:[#allocation2 + $0x60] sm:$0xff] %vm172_vm4, %v4579_v13  ;;  %v5231_v13 = vmax.f32 %v5195_v62, 0.0 }
 0x1fb   : > { %v5352_v24 = vcombine.high %v5350_v51, %v5350_v51  ;;  %v6091_v25 = vsel %vm6034_vm9, %v5351_v21, -inf  ;;  %v6098_v20 = vsel %vm6034_vm9, %v5350_v51, -inf  ;;  %v6036_v30 = vrot.slane %v6035_v6, 4 }
 0x1fc   : > { %v6092_v60 = vrot.slane %v6091_v25, 4  ;;  %v6099_v19 = vrot.slane %v6098_v20, 4  ;;  %v5318_v27 = vcombine.high %v5316_v22, %v5316_v22  ;;  %v6042_v28 = vsel %vm6034_vm9, %v5317_v23, -inf }
 0x1fd   : > { %v6105_v32 = vsel %vm6034_vm9, %v5352_v24, -inf  ;;  %v6037_v35 = vmax.f32 %v6035_v6, %v6036_v30  ;;  %v6043_v17 = vrot.slane %v6042_v28, 4  ;;  %v6049_v37 = vsel %vm6034_vm9, %v5316_v22, -inf }
 0x1fe   : > { %v9918_v38 = vpop.f32.mrb[140].mxu0  ;;  %v6093_v56 = vmax.f32 %v6091_v25, %v6092_v60  ;;  %v6100_v39 = vmax.f32 %v6098_v20, %v6099_v19  ;;  %v6106_v2 = vrot.slane %v6105_v32, 4  ;;  %v6050_v40 = vrot.slane %v6049_v37, 4  ;;  %v9920_v41 = vpop.f32.mrb[140].mxu1 }
 0x1ff   : > { %v9922_v43 = vpop.f32.mrb[141].mxu0  ;;  %v6038_v44 = vrot.slane %v6037_v35, 2  ;;  %v6044_v33 = vmax.f32 %v6042_v28, %v6043_v17  ;;  %v6056_v36 = vsel %vm6034_vm9, %v5318_v27, -inf  ;;  %v9925_v47 = vpop.f32.mrb[141].mxu1  ;;  %v6112_v10 = vsel %vm6034_vm9, %v5360_v54, -inf }
 0x200   : > { %v9927_v49 = vpop.f32.mrb[142].mxu0  ;;  %v6094_v50 = vrot.slane %v6093_v56, 2  ;;  %v6101_v16 = vrot.slane %v6100_v39, 2  ;;  %v6107_v34 = vmax.f32 %v6105_v32, %v6106_v2  ;;  %v6051_v26 = vmax.f32 %v6049_v37, %v6050_v40  ;;  %v9929_v57 = vpop.f32.mrb[142].mxu1 }
 0x201   : > { %v6039_v15 = vmax.f32 %v6037_v35, %v6038_v44  ;;  %v6045_v53 = vrot.slane %v6044_v33, 2  ;;  %v9932_v55 = vpop.f32.mrb[143].mxu1  ;;  %v9934_v31 = vpop.f32.mrb[143].mxu0  ;;  %v6057_v45 = vrot.slane %v6056_v36, 4  ;;  %v5368_v12 = vcombine.high %v5360_v54, %v5360_v54 }
 0x202   : > { %v6095_v48 = vmax.f32 %v6093_v56, %v6094_v50  ;;  %v6108_v58 = vrot.slane %v6107_v34, 2  ;;  %v6052_v59 = vrot.slane %v6051_v26, 2  ;;  %v6102_v0 = vmax.f32 %v6100_v39, %v6101_v16 }
 0x203   : > { %v6040_v5 = vrot.slane %v6039_v15, 1  ;;  %v6046_v14 = vmax.f32 %v6044_v33, %v6045_v53  ;;  %v6058_v21 = vmax.f32 %v6056_v36, %v6057_v45  ;;  %v5367_v22 = vrot.slane %v5353_v1, %v9884_v52 }
 0x204   : > { %v6096_v63 = vrot.slane %v6095_v48, 1  ;;  %v6109_v7 = vmax.f32 %v6107_v34, %v6108_v58  ;;  %v6053_v8 = vmax.f32 %v6051_v26, %v6052_v59  ;;  %v6103_v51 = vrot.slane %v6102_v0, 1 }
 0x205   : > { %v6113_v23 = vrot.slane %v6112_v10, 4  ;;  %v6041_v6 = vmax.f32 %v6039_v15, %v6040_v5  ;;  %v6047_v24 = vrot.slane %v6046_v14, 1  ;;  %v6119_v60 = vsel %vm6034_vm9, %v5368_v12, -inf }
 0x206   : > { %v6097_v25 = vmax.f32 %v6095_v48, %v6096_v63  ;;  %v6110_v20 = vrot.slane %v6109_v7, 1  ;;  %v6054_v30 = vrot.slane %v6053_v8, 1  ;;  %v9940_v19 = vpop.f32.mrb[144].mxu1  ;;  %v9942_v27 = vpop.f32.mrb[144].mxu0  ;;  %v6104_v28 = vmax.f32 %v6102_v0, %v6103_v51 }
 0x207   : > { %v6114_v18 = vmax.f32 %v6112_v10, %v6113_v23  ;;  %v6059_v32 = vrot.slane %v6058_v21, 2  ;;  %v5369_v35 = vcombine.high %v5367_v22, %v5367_v22  ;;  %v5319_v17 = vcombine.high %v5231_v13, %v5231_v13  ;;  %v9947_v50 = vpop.f32.mrb[145].mxu1  ;;  %v9949_v16 = vpop.f32.mrb[145].mxu0 }
 0x208   : > { %v6048_v37 = vmax.f32 %v6046_v14, %v6047_v24  ;;  %v6931_v56 = vsel %vm172_vm4, %v6041_v6, -inf  ;;  %v6120_v39 = vrot.slane %v6119_v60, 4  ;;  %v6126_v2 = vsel %vm6034_vm9, %v5367_v22, -inf }
 0x209   : > { %v6111_v40 = vmax.f32 %v6109_v7, %v6110_v20  ;;  %v6932_v44 = vsel %vm172_vm4, %v6097_v25, -inf  ;;  %v6055_v33 = vmax.f32 %v6053_v8, %v6054_v30  ;;  %v6115_v36 = vrot.slane %v6114_v18, 2 }
 0x20a   : > { %v6127_v46 = vrot.slane %v6126_v2, 4  ;;  %v6935_v34 = vsel %vm172_vm4, %v6104_v28, -inf  ;;  %v6060_v26 = vmax.f32 %v6058_v21, %v6059_v32  ;;  %v6133_v15 = vsel %vm6034_vm9, %v5369_v35, -inf }
 0x20b   : > { %v5326_v53 = vrot.slane %v5231_v13, %v9884_v52  ;;  %v6933_v54 = vmax.f32 %v6931_v56, %v6932_v44  ;;  %v6934_v48 = vsel %vm172_vm4, %v6048_v37, -inf  ;;  %v6121_v58 = vmax.f32 %v6119_v60, %v6120_v39 }
 0x20c   : > { %v5333_v59 = vrot.slane %v5319_v17, %v9884_v52  ;;  %v6937_v62 = vsel %vm172_vm4, %v6055_v33, -inf  ;;  %v6938_v0 = vsel %vm172_vm4, %v6111_v40, -inf  ;;  %v6116_v45 = vmax.f32 %v6114_v18, %v6115_v36  ;;  %v5157_v17 = vld [vmem:[#allocation2 + $0x30] sm:$0xff]  ;;  %v5155_v40 = vld [vmem:[#allocation2 + $0x20] sm:$0xff] }
 0x20d   : > { %v5334_v1 = vcombine.high %v5326_v53, %v5326_v53  ;;  %v6128_v5 = vmax.f32 %v6126_v2, %v6127_v46  ;;  %v6134_v14 = vrot.slane %v6133_v15, 4  ;;  %v6063_v7 = vsel %vm6034_vm9, %v5326_v53, -inf }
 0x20e   : > { %v5335_v63 = vcombine.high %v5333_v59, %v5333_v59  ;;  %v6061_v8 = vrot.slane %v6060_v26, 1  ;;  %v6064_v10 = vrot.slane %v6063_v7, 4  ;;  %v6936_v13 = vmax.f32 %v6934_v48, %v6935_v34 }
 0x20f   : > { %v6070_v12 = vsel %vm6034_vm9, %v5334_v1, -inf  ;;  %v6939_v51 = vmax.f32 %v6937_v62, %v6938_v0  ;;  %v6122_v21 = vrot.slane %v6121_v58, 2  ;;  %v8002_v23 = vpack.c.bf16 %v6933_v54, %v6933_v54  ;;  %v9965_v0 = vpop.f32.mrb[146].mxu1 }
 0x210   : > { %v6071_v22 = vrot.slane %v6070_v12, 4  ;;  %v6117_v6 = vrot.slane %v6116_v45, 1  ;;  %v6065_v24 = vmax.f32 %v6063_v7, %v6064_v10  ;;  %v6077_v25 = vsel %vm6034_vm9, %v5333_v59, -inf }
 0x211   : > { %v6129_v20 = vrot.slane %v6128_v5, 2  ;;  %v6135_v30 = vmax.f32 %v6133_v15, %v6134_v14  ;;  %v6084_v60 = vsel %vm6034_vm9, %v5335_v63, -inf  ;;  %v6062_v28 = vmax.f32 %v6060_v26, %v6061_v8 }
 0x212   : > { %v6072_v18 = vmax.f32 %v6070_v12, %v6071_v22  ;;  %v6066_v32 = vrot.slane %v6065_v24, 2  ;;  %v6078_v35 = vrot.slane %v6077_v25, 4  ;;  %v8003_v37 = vpack.c.bf16 %v6936_v13, %v6936_v13 }
 0x213   : > { %v8004_v56 = vpack.c.bf16 %v6939_v51, %v6939_v51  ;;  %v6123_v39 = vmax.f32 %v6121_v58, %v6122_v21  ;;  %v6118_v44 = vmax.f32 %v6116_v45, %v6117_v6  ;;  %v6085_v46 = vrot.slane %v6084_v60, 4  ;;  %v9967_v58 = vpop.f32.mrb[146].mxu0 }
 0x214   : > { %v6073_v2 = vrot.slane %v6072_v18, 2  ;;  %v6067_v33 = vmax.f32 %v6065_v24, %v6066_v32  ;;  %v6079_v36 = vmax.f32 %v6077_v25, %v6078_v35  ;;  %v7379_v34 = vunpack.c.l.b16 %v8002_v23  ;;  %v5158_v32 = vld [vmem:[#allocation2 + $0x38] sm:$0xff] }
 0x215   : > { %v6130_v53 = vmax.f32 %v6128_v5, %v6129_v20  ;;  %v6136_v54 = vrot.slane %v6135_v30, 2  ;;  %v5200_v15 = vadd.f32 %v9879_v29, %v5157_v17  ;;  %v6940_v48 = vsel %vm172_vm4, %v6062_v28, -inf }
 0x216   : > { %v6074_v26 = vmax.f32 %v6072_v18, %v6073_v2  ;;  %v6080_v59 = vrot.slane %v6079_v36, 2  ;;  %v5198_v62 = vadd.f32 %v9879_v29, %v5155_v40  ;;  %v7380_v1 = vunpack.c.l.b16 %v8003_v37 }
 0x217   : > { %v6124_v45 = vrot.slane %v6123_v39, 1  ;;  %v6068_v14 = vrot.slane %v6067_v33, 1  ;;  %v5236_v63 = vmax.f32 %v5200_v15, 0.0  ;;  %v6941_v5 = vsel %vm172_vm4, %v6118_v44, -inf }
 0x218   : > { %v6086_v7 = vmax.f32 %v6084_v60, %v6085_v46  ;;  %v5234_v8 = vmax.f32 %v5198_v62, 0.0  ;;  %v6131_v10 = vrot.slane %v6130_v53, 1  ;;  %v6137_v12 = vmax.f32 %v6135_v30, %v6136_v54 }
 0x219   : > { %v6942_v13 = vmax.f32 %v6940_v48, %v6941_v5  ;;  %v5403_v51 = vcombine.high %v5236_v63, %v5236_v63  ;;  %v7381_v21 = vunpack.c.l.b16 %v8004_v56  ;;  %v6075_v22 = vrot.slane %v6074_v26, 1 }
 0x21a   : > { %v6081_v23 = vmax.f32 %v6079_v36, %v6080_v59  ;;  %v7444_v6 = vsel %vm7443_vm10, %v7380_v1, %v7379_v34  ;;  %v6125_v24 = vmax.f32 %v6123_v39, %v6124_v45  ;;  %v6069_v25 = vmax.f32 %v6067_v33, %v6068_v14 }
 0x21b   : > { %v5417_v20 = vrot.slane %v5403_v51, %v9884_v52  ;;  %v6087_v18 = vrot.slane %v6086_v7, 2  ;;  %v5370_v28 = vcombine.high %v5234_v8, %v5234_v8  ;;  %v6132_v60 = vmax.f32 %v6130_v53, %v6131_v10 }
 0x21c   : > { %v6138_v35 = vrot.slane %v6137_v12, 1  ;;  %v8005_v17 = vpack.c.bf16 %v6942_v13, %v6942_v13  ;;  %v7446_v37 = vsel %vm7445_vm11, %v7381_v21, %v7444_v6  ;;  %v6076_v56 = vmax.f32 %v6074_v26, %v6075_v22  ;;  %v9985_v21 = vpop.f32.mrb[147].mxu1  ;;  %v9987_v22 = vpop.f32.mrb[147].mxu0 }
 0x21d   : > { %v5419_v30 = vcombine.high %v5417_v20, %v5417_v20  ;;  %v6082_v2 = vrot.slane %v6081_v23, 1  ;;  %v5377_v40 = vrot.slane %v5234_v8, %v9884_v52  ;;  %v6943_v44 = vsel %vm172_vm4, %v6069_v25, -inf }
 0x21e   : > { %v6944_v39 = vsel %vm172_vm4, %v6125_v24, -inf  ;;  %v5201_v36 = vadd.f32 %v9879_v29, %v5158_v32  ;;  %v6088_v46 = vmax.f32 %v6086_v7, %v6087_v18  ;;  %v5410_v34 = vrot.slane %v5236_v63, %v9884_v52 }
 0x21f   : > { %v6203_v33 = vsel %vm6034_vm9, %v5419_v30, -inf  ;;  %v5384_v54 = vrot.slane %v5370_v28, %v9884_v52  ;;  %v6139_v15 = vmax.f32 %v6137_v12, %v6138_v35  ;;  %v6947_v48 = vsel %vm172_vm4, %v6132_v60, -inf }
 0x220   : > { %v6204_v53 = vrot.slane %v6203_v33, 4  ;;  %v7382_v26 = vunpack.c.l.b16 %v8005_v17  ;;  %v6140_v59 = vsel %vm6034_vm9, %v5377_v40, -inf  ;;  %v6083_v62 = vmax.f32 %v6081_v23, %v6082_v2 }
 0x221   : > { %v6945_v1 = vmax.f32 %v6943_v44, %v6944_v39  ;;  %v6946_v45 = vsel %vm172_vm4, %v6076_v56, -inf  ;;  %v5385_v14 = vcombine.high %v5384_v54, %v5384_v54  ;;  %v6141_v8 = vrot.slane %v6140_v59, 4 }
 0x222   : > { %v6205_v5 = vmax.f32 %v6203_v33, %v6204_v53  ;;  %v6147_v7 = vsel %vm6034_vm9, %v5384_v54, -inf  ;;  %v5237_v63 = vmax.f32 %v5201_v36, 0.0  ;;  %v6089_v10 = vrot.slane %v6088_v46, 1 }
 0x223   : > { %v5418_v13 = vcombine.high %v5410_v34, %v5410_v34  ;;  %v6148_v12 = vrot.slane %v6147_v7, 4  ;;  %v6154_v51 = vsel %vm6034_vm9, %v5385_v14, -inf  ;;  %v6948_v23 = vmax.f32 %v6946_v45, %v6947_v48 }
 0x224   : > { %v6189_v6 = vsel %vm6034_vm9, %v5410_v34, -inf  ;;  %v6142_v24 = vmax.f32 %v6140_v59, %v6141_v8  ;;  %v6155_v25 = vrot.slane %v6154_v51, 4  ;;  %v6949_v20 = vsel %vm172_vm4, %v6083_v62, -inf }
 0x225   : > { %v6950_v18 = vsel %vm172_vm4, %v6139_v15, -inf  ;;  %v8006_v28 = vpack.c.bf16 %v6945_v1, %v6945_v1  ;;  %v6149_v32 = vmax.f32 %v6147_v7, %v6148_v12  ;;  %v7448_v60 = vsel %vm7447_vm12, %v7382_v26, %v7446_v37  ;;  %v5156_v1 = vld [vmem:[#allocation2 + $0x28] sm:$0xff] }
 0x226   : > { %v6206_v35 = vrot.slane %v6205_v5, 2  ;;  %v6143_v17 = vrot.slane %v6142_v24, 2  ;;  %v5420_v30 = vcombine.high %v5237_v63, %v5237_v63  ;;  %v6190_v56 = vrot.slane %v6189_v6, 4 }
 0x227   : > { %v6196_v2 = vsel %vm6034_vm9, %v5418_v13, -inf  ;;  %v6156_v40 = vmax.f32 %v6154_v51, %v6155_v25  ;;  %v5427_v44 = vrot.slane %v5237_v63, %v9884_v52  ;;  %v6090_v39 = vmax.f32 %v6088_v46, %v6089_v10 }
 0x228   : > { %v6951_v33 = vmax.f32 %v6949_v20, %v6950_v18  ;;  %v8007_v36 = vpack.c.bf16 %v6948_v23, %v6948_v23  ;;  %v6144_v34 = vmax.f32 %v6142_v24, %v6143_v17  ;;  %v7383_v53 = vunpack.c.l.b16 %v8006_v28  ;;  %v4686_v17 = vld [vmem:[#allocation2 + $0x50] sm:$0xff] }
 0x229   : > { %v6150_v54 = vrot.slane %v6149_v32, 2  ;;  %v5434_v15 = vrot.slane %v5420_v30, %v9884_v52  ;;  %v5435_v48 = vcombine.high %v5427_v44, %v5427_v44  ;;  %v6197_v37 = vrot.slane %v6196_v2, 4 }
 0x22a   : > { %v6207_v26 = vmax.f32 %v6205_v5, %v6206_v35  ;;  %v6145_v59 = vrot.slane %v6144_v34, 1  ;;  %v6210_v62 = vsel %vm6034_vm9, %v5427_v44, -inf  ;;  %v7450_v45 = vsel %vm7449_vm13, %v7383_v53, %v7448_v60 }
 0x22b   : > { %v6191_v14 = vmax.f32 %v6189_v6, %v6190_v56  ;;  %v6157_v8 = vrot.slane %v6156_v40, 2  ;;  %v6211_v46 = vrot.slane %v6210_v62, 4  ;;  %v8008_v7 = vpack.c.bf16 %v6951_v33, %v6951_v33  ;;  %v10006_v33 = vpop.f32.mrb[148].mxu1 }
 0x22c   : > { %v7384_v63 = vunpack.c.l.b16 %v8007_v36  ;;  %v6146_v10 = vmax.f32 %v6144_v34, %v6145_v59  ;;  %v6217_v13 = vsel %vm6034_vm9, %v5435_v48, -inf  ;;  %v6151_v12 = vmax.f32 %v6149_v32, %v6150_v54  ;;  %v10008_v36 = vpop.f32.mrb[148].mxu0 }
 0x22d   : > { %v5436_v51 = vcombine.high %v5434_v15, %v5434_v15  ;;  %v6212_v23 = vmax.f32 %v6210_v62, %v6211_v46  ;;  %v5199_v5 = vadd.f32 %v9879_v29, %v5156_v1  ;;  %v6208_v25 = vrot.slane %v6207_v26, 1 }
 0x22e   : > { %v7452_v24 = vsel %vm7451_vm14, %v7384_v63, %v7450_v45  ;;  %v6952_v20 = vsel %vm172_vm4, %v6090_v39, -inf  ;;  %v6953_v6 = vsel %vm172_vm4, %v6146_v10, -inf  ;;  %v6158_v18 = vmax.f32 %v6156_v40, %v6157_v8 }
 0x22f   : > { %v6954_v28 = vmax.f32 %v6952_v20, %v6953_v6  ;;  %v6218_v60 = vrot.slane %v6217_v13, 4  ;;  %v6224_v35 = vsel %vm6034_vm9, %v5434_v15, -inf  ;;  %v7385_v32 = vunpack.c.l.b16 %v8008_v7 }
 0x230   : > { %v6192_v30 = vrot.slane %v6191_v14, 2  ;;  %v10004_v56 = vmax.f32 %v6196_v2, %v6197_v37  ;;  %v6213_v44 = vrot.slane %v6212_v23, 2  ;;  %v6152_v34 = vrot.slane %v6151_v12, 1 }
 0x231   : > { %v8009_v39 = vpack.c.bf16 %v6954_v28, %v6954_v28  ;;  %v6231_v53 = vsel %vm6034_vm9, %v5436_v51, -inf  ;;  %v5235_v40 = vmax.f32 %v5199_v5, 0.0  ;;  %v7454_v54 = vsel %vm7453_vm15, %v7385_v32, %v7452_v24  ;;  %v10029_v24 = vpop.f32.mrb[149].mxu1 }
 0x232   : > { %v6209_v48 = vmax.f32 %v6207_v26, %v6208_v25  ;;  %v6225_v15 = vrot.slane %v6224_v35, 4  ;;  %v5089_v59 = vadd.f32 %v9892_v61, %v4686_v17  ;;  %v6159_v62 = vrot.slane %v6158_v18, 1 }
 0x233   : > { %v7386_v2 = vunpack.c.l.b16 %v8009_v39  ;;  %v6219_v37 = vmax.f32 %v6217_v13, %v6218_v60  ;;  %v5386_v1 = vcombine.high %v5235_v40, %v5235_v40  ;;  %v6199_v45 = vrot.slane %v10004_v56, 2 }
 0x234   : > { %v6214_v8 = vmax.f32 %v6212_v23, %v6213_v44  ;;  %v6232_v46 = vrot.slane %v6231_v53, 4  ;;  %v5393_v7 = vrot.slane %v5235_v40, %v9884_v52  ;;  %5125 = vst.msk [vmem:[#allocation2 + $0x50] sm:$0xff] %vm172_vm4, %v5089_v59  ;;  %v10017_v63 = vmax.f32 %v6191_v14, %v6192_v30  ;;  %v10031_v14 = vpop.f32.mrb[149].mxu0  ;;  %v4684_v30 = vld [vmem:[#allocation2 + $0x40] sm:$0xff] }
 0x235   : > { %v6153_v61 = vmax.f32 %v6151_v12, %v6152_v34  ;;  %v7456_v26 = vsel %vm7455_vm0, %v7386_v2, %v7454_v54  ;;  %v5400_v10 = vrot.slane %v5386_v1, %v9884_v52  ;;  %v10027_v13 = vsel %vm172_vm4, %v6209_v48, -inf }
 0x236   : > { %v7506_v51 = vpack.c.b16 %v7456_v26, %v7456_v26  ;;  %v6226_v23 = vmax.f32 %v6224_v35, %v6225_v15  ;;  %v5401_v5 = vcombine.high %v5393_v7, %v5393_v7  ;;  %v6160_v25 = vmax.f32 %v6158_v18, %v6159_v62  ;;  %v4687_v15 = vld [vmem:[#allocation2 + $0x58] sm:$0xff] }
 0x237   : > { %v6220_v20 = vrot.slane %v6219_v37, 2  ;;  %v5402_v6 = vcombine.high %v5400_v10, %v5400_v10  ;;  %v6161_v28 = vsel %vm6034_vm9, %v5393_v7, -inf  ;;  %v6215_v12 = vrot.slane %v6214_v8, 1 }
 0x238   : > { %7523 = vst.msk [vmem:[%s10022_s13] sm:$0xf] %vm7522_vm1, %v7506_v51  ;;  %v6233_v60 = vmax.f32 %v6231_v53, %v6232_v46  ;;  %v6162_v17 = vrot.slane %v6161_v28, 4  ;;  %v6168_v32 = vsel %vm6034_vm9, %v5401_v5, -inf  ;;  %v6955_v35 = vsel %vm172_vm4, %v6153_v61, -inf  ;;  %v4046_v51 = vld [vmem:[#allocation2 + $0x78] sm:$0xff] }
 0x239   : > { %v6169_v44 = vrot.slane %v6168_v32, 4  ;;  %v6175_v34 = vsel %vm6034_vm9, %v5400_v10, -inf  ;;  %v6182_v39 = vsel %vm6034_vm9, %v5402_v6, -inf  ;;  %v6227_v18 = vrot.slane %v6226_v23, 2  ;;  %v4685_v10 = vld [vmem:[#allocation2 + $0x48] sm:$0xff] }
 0x23a   : > { %v6163_v40 = vmax.f32 %v6161_v28, %v6162_v17  ;;  %v6176_v54 = vrot.slane %v6175_v34, 4  ;;  %v6183_v48 = vrot.slane %v6182_v39, 4  ;;  %v6221_v59 = vmax.f32 %v6219_v37, %v6220_v20 }
 0x23b   : > { %v6958_v62 = vsel %vm172_vm4, %v6160_v25, -inf  ;;  %v6170_v53 = vmax.f32 %v6168_v32, %v6169_v44  ;;  %v5161_v2 = vld [vmem:[#allocation2 + $0x50] sm:$0xff]  ;;  %v5087_v1 = vadd.f32 %v9896_v3, %v4684_v30  ;;  %v6216_v46 = vmax.f32 %v6214_v8, %v6215_v12  ;;  %v4044_v3 = vld [vmem:[#allocation2 + $0x68] sm:$0xff] }
 0x23c   : > { %v6234_v7 = vrot.slane %v6233_v60, 2  ;;  %v6164_v61 = vrot.slane %v6163_v40, 2  ;;  %v6177_v26 = vmax.f32 %v6175_v34, %v6176_v54  ;;  %v5204_v6 = vadd.f32 %v9879_v29, %v5161_v2  ;;  %v4690_v8 = vld [vmem:[#allocation2 + $0x70] sm:$0xff] }
 0x23d   : > { %v6171_v5 = vrot.slane %v6170_v53, 2  ;;  %5123 = vst.msk [vmem:[#allocation2 + $0x40] sm:$0xff] %vm172_vm4, %v5087_v1  ;;  %v4582_v28 = vadd.f32 %v9902_v42, %v4046_v51  ;;  %v5090_v37 = vadd.f32 %v9899_v9, %v4687_v15  ;;  %v6228_v25 = vmax.f32 %v6226_v23, %v6227_v18  ;;  %v4049_v54 = vld [vmem:[#allocation2 + $0x90] sm:$0xff]  ;;  %v10050_v42 = vpop.f32.mrb[150].mxu1  ;;  %v10052_v9 = vpop.f32.mrb[150].mxu0 }
 0x23e   : > { %v6165_v20 = vmax.f32 %v6163_v40, %v6164_v61  ;;  %v6178_v17 = vrot.slane %v6177_v26, 2  ;;  %v6184_v32 = vmax.f32 %v6182_v39, %v6183_v48  ;;  %v5240_v30 = vmax.f32 %v5204_v6, 0.0 }
 0x23f   : > { %v6172_v12 = vmax.f32 %v6170_v53, %v6171_v5  ;;  %4618 = vst.msk [vmem:[#allocation2 + $0x78] sm:$0xff] %vm172_vm4, %v4582_v28  ;;  %5126 = vst.msk [vmem:[#allocation2 + $0x58] sm:$0xff] %vm172_vm4, %v5090_v37  ;;  %v4580_v44 = vadd.f32 %v9908_v4, %v4044_v3  ;;  %v5088_v34 = vadd.f32 %v9904_v11, %v4685_v10  ;;  %v6222_v39 = vrot.slane %v6221_v59, 1  ;;  %v4047_v4 = vld [vmem:[#allocation2 + $0x80] sm:$0xff] }
 0x240   : > { %v6200_v23 = vmax.f32 %v10004_v56, %v6199_v45  ;;  %v6235_v18 = vmax.f32 %v6233_v60, %v6234_v7  ;;  %v4585_v40 = vadd.f32 %v9920_v41, %v4049_v54  ;;  %v6959_v48 = vsel %vm172_vm4, %v6216_v46, -inf }
 0x241   : > { %v6166_v15 = vrot.slane %v6165_v20, 1  ;;  %v6179_v53 = vmax.f32 %v6177_v26, %v6178_v17  ;;  %4616 = vst.msk [vmem:[#allocation2 + $0x68] sm:$0xff] %vm172_vm4, %v4580_v44  ;;  %5124 = vst.msk [vmem:[#allocation2 + $0x48] sm:$0xff] %vm172_vm4, %v5088_v34  ;;  %v5093_v11 = vadd.f32 %v9918_v38, %v4690_v8  ;;  %v6957_v2 = vmax.f32 %v6955_v35, %v10027_v13 }
 0x242   : > { %v6960_v1 = vmax.f32 %v6958_v62, %v6959_v48  ;;  %v6185_v61 = vrot.slane %v6184_v32, 2  ;;  %4621 = vst.msk [vmem:[#allocation2 + $0x90] sm:$0xff] %vm172_vm4, %v4585_v40  ;;  %v4583_v56 = vadd.f32 %v9925_v47, %v4047_v4  ;;  %v6194_v41 = vrot.slane %v10017_v63, 1 }
 0x243   : > { %v6229_v45 = vrot.slane %v6228_v25, 1  ;;  %v6173_v60 = vrot.slane %v6172_v12, 1  ;;  %v5477_v46 = vrot.slane %v5240_v30, %v9884_v52  ;;  %5129 = vst.msk [vmem:[#allocation2 + $0x70] sm:$0xff] %vm172_vm4, %v5093_v11  ;;  %v6201_v7 = vrot.slane %v6200_v23, 1 }
 0x244   : > { %v6223_v26 = vmax.f32 %v6221_v59, %v6222_v39  ;;  %v6236_v38 = vrot.slane %v6235_v18, 1  ;;  %4619 = vst.msk [vmem:[#allocation2 + $0x80] sm:$0xff] %vm172_vm4, %v4583_v56  ;;  %v6167_v13 = vmax.f32 %v6165_v20, %v6166_v15  ;;  %v6180_v35 = vrot.slane %v6179_v53, 1  ;;  %v5159_v47 = vld [vmem:[#allocation2 + $0x40] sm:$0xff]  ;;  %v10077_v39 = vpop.f32.mrb[151].mxu0 }
 0x245   : > { %v5470_v62 = vcombine.high %v5240_v30, %v5240_v30  ;;  %v8010_v51 = vpack.c.bf16 %v6957_v2, %v6957_v2  ;;  %v8011_v10 = vpack.c.bf16 %v6960_v1, %v6960_v1  ;;  %v6186_v5 = vmax.f32 %v6184_v32, %v6185_v61  ;;  %v10075_v32 = vpop.f32.mrb[151].mxu1 }
 0x246   : > { %v6195_v6 = vmax.f32 %v10017_v63, %v6194_v41  ;;  %v6230_v28 = vmax.f32 %v6228_v25, %v6229_v45  ;;  %v6174_v37 = vmax.f32 %v6172_v12, %v6173_v60  ;;  %v6287_v17 = vsel %vm6034_vm9, %v5477_v46, -inf }
 0x247   : > { %v6202_v3 = vmax.f32 %v6200_v23, %v6201_v7  ;;  %v6237_v8 = vmax.f32 %v6235_v18, %v6236_v38  ;;  %v6962_v59 = vsel %vm172_vm4, %v6223_v26, -inf  ;;  %v5485_v44 = vcombine.high %v5477_v46, %v5477_v46  ;;  %v5162_v26 = vld [vmem:[#allocation2 + $0x58] sm:$0xff] }
 0x248   : > { %v6181_v34 = vmax.f32 %v6179_v53, %v6180_v35  ;;  %v6961_v20 = vsel %vm172_vm4, %v6167_v13, -inf  ;;  %v5484_v30 = vrot.slane %v5470_v62, %v9884_v52  ;;  %v5202_v54 = vadd.f32 %v9879_v29, %v5159_v47 }
 0x249   : > { %v7387_v63 = vunpack.c.l.b16 %v8010_v51  ;;  %v7388_v25 = vunpack.c.l.b16 %v8011_v10  ;;  %v6187_v12 = vrot.slane %v6186_v5, 1  ;;  %v6288_v40 = vrot.slane %v6287_v17, 4 }
 0x24a   : > { %v10080_v23 = vsel %vm172_vm4, %v6195_v6, -inf  ;;  %v6965_v18 = vsel %vm172_vm4, %v6230_v28, -inf  ;;  %v6964_v48 = vsel %vm172_vm4, %v6174_v37, -inf  ;;  %v5238_v15 = vmax.f32 %v5202_v54, 0.0  ;;  %v5160_v28 = vld [vmem:[#allocation2 + $0x48] sm:$0xff] }
 0x24b   : > { %v10085_v53 = vsel %vm172_vm4, %v6202_v3, -inf  ;;  %v6963_v11 = vmax.f32 %v6961_v20, %v6962_v59  ;;  %v6968_v4 = vsel %vm172_vm4, %v6237_v8, -inf  ;;  %v6294_v2 = vsel %vm6034_vm9, %v5485_v44, -inf }
 0x24c   : > { %v6967_v1 = vsel %vm172_vm4, %v6181_v34, -inf  ;;  %v5486_v61 = vcombine.high %v5484_v30, %v5484_v30  ;;  %v5437_v56 = vcombine.high %v5238_v15, %v5238_v15  ;;  %v5444_v41 = vrot.slane %v5238_v15, %v9884_v52 }
 0x24d   : > { %v7457_v45 = vsel %vm7443_vm10, %v7388_v25, %v7387_v63  ;;  %v6188_v60 = vmax.f32 %v6186_v5, %v6187_v12  ;;  %v6966_v46 = vmax.f32 %v6964_v48, %v6965_v18  ;;  %v10092_v7 = vmax.f32 %v6287_v17, %v6288_v40  ;;  %v4688_v25 = vld [vmem:[#allocation2 + $0x60] sm:$0xff] }
 0x24e   : > { %v6295_v38 = vrot.slane %v6294_v2, 4  ;;  %v5451_v13 = vrot.slane %v5437_v56, %v9884_v52  ;;  %v5452_v35 = vcombine.high %v5444_v41, %v5444_v41  ;;  %v6238_v62 = vsel %vm6034_vm9, %v5444_v41, -inf }
 0x24f   : > { %v6969_v51 = vmax.f32 %v6967_v1, %v6968_v4  ;;  %v8012_v10 = vpack.c.bf16 %v6963_v11, %v6963_v11  ;;  %v6301_v47 = vsel %vm6034_vm9, %v5484_v30, -inf  ;;  %v6239_v6 = vrot.slane %v6238_v62, 4 }
 0x250   : > { %v10098_v37 = vsel %vm6034_vm9, %v5486_v61, -inf  ;;  %v6245_v5 = vsel %vm6034_vm9, %v5452_v35, -inf  ;;  %v6252_v17 = vsel %vm6034_vm9, %v5451_v13, -inf  ;;  %v5205_v3 = vadd.f32 %v9879_v29, %v5162_v26  ;;  %v10111_v13 = vpop.f32.mrb[152].mxu1  ;;  %v10113_v35 = vpop.f32.mrb[152].mxu0 }
 0x251   : > { %v8013_v8 = vpack.c.bf16 %v6966_v46, %v6966_v46  ;;  %v6290_v59 = vrot.slane %v10092_v7, 2  ;;  %v6240_v44 = vmax.f32 %v6238_v62, %v6239_v6  ;;  %v6246_v34 = vrot.slane %v6245_v5, 4 }
 0x252   : > { %v10104_v20 = vmax.f32 %v6294_v2, %v6295_v38  ;;  %v6253_v54 = vrot.slane %v6252_v17, 4  ;;  %v5241_v30 = vmax.f32 %v5205_v3, 0.0  ;;  %v5203_v63 = vadd.f32 %v9879_v29, %v5160_v28 }
 0x253   : > { %v8014_v12 = vpack.c.bf16 %v6969_v51, %v6969_v51  ;;  %v6302_v40 = vrot.slane %v6301_v47, 4  ;;  %v6241_v18 = vrot.slane %v6240_v44, 2  ;;  %v6247_v48 = vmax.f32 %v6245_v5, %v6246_v34 }
 0x254   : > { %v6254_v15 = vmax.f32 %v6252_v17, %v6253_v54  ;;  %v5487_v11 = vcombine.high %v5241_v30, %v5241_v30  ;;  %v5494_v4 = vrot.slane %v5241_v30, %v9884_v52  ;;  %v5239_v1 = vmax.f32 %v5203_v63, 0.0 }
 0x255   : > { %v7389_v61 = vunpack.c.l.b16 %v8012_v10  ;;  %v6242_v56 = vmax.f32 %v6240_v44, %v6241_v18  ;;  %v6248_v41 = vrot.slane %v6247_v48, 2  ;;  %v5091_v2 = vadd.f32 %v9922_v43, %v4688_v25 }
 0x256   : > { %v6309_v46 = vrot.slane %v10098_v37, 4  ;;  %v6255_v26 = vrot.slane %v6254_v15, 2  ;;  %v5501_v29 = vrot.slane %v5487_v11, %v9884_v52  ;;  %v5502_v38 = vcombine.high %v5494_v4, %v5494_v4 }
 0x257   : > { %v7390_v62 = vunpack.c.l.b16 %v8013_v8  ;;  %v7458_v51 = vsel %vm7445_vm11, %v7389_v61, %v7457_v45  ;;  %v6243_v6 = vrot.slane %v6242_v56, 1  ;;  %v6249_v28 = vmax.f32 %v6247_v48, %v6248_v41  ;;  %5127 = vst.msk [vmem:[#allocation2 + $0x60] sm:$0xff] %vm172_vm4, %v5091_v2 }
 0x258   : > { %v6256_v10 = vmax.f32 %v6254_v15, %v6255_v26  ;;  %v5503_v5 = vcombine.high %v5501_v29, %v5501_v29  ;;  %v6315_v43 = vsel %vm6034_vm9, %v5502_v38, -inf  ;;  %v5460_v17 = vrot.slane %v5239_v1, %v9884_v52 }
 0x259   : > { %v6297_v3 = vrot.slane %v10104_v20, 2  ;;  %v6244_v44 = vmax.f32 %v6242_v56, %v6243_v6  ;;  %v6250_v34 = vrot.slane %v6249_v28, 1  ;;  %v6322_v54 = vsel %vm6034_vm9, %v5501_v29, -inf }
 0x25a   : > { %v7459_v8 = vsel %vm7447_vm12, %v7390_v62, %v7458_v51  ;;  %v10122_v30 = vmax.f32 %v6301_v47, %v6302_v40  ;;  %v6257_v45 = vrot.slane %v6256_v10, 1  ;;  %v6970_v63 = vsel %vm172_vm4, %v6188_v60, -inf  ;;  %v5165_v62 = vld [vmem:[#allocation2 + $0x70] sm:$0xff] }
 0x25b   : > { %v6251_v25 = vmax.f32 %v6249_v28, %v6250_v34  ;;  %v6971_v18 = vsel %vm172_vm4, %v6244_v44, -inf  ;;  %v6316_v48 = vrot.slane %v6315_v43, 4  ;;  %v6329_v15 = vsel %vm6034_vm9, %v5503_v5, -inf }
 0x25c   : > { %v6258_v11 = vmax.f32 %v6256_v10, %v6257_v45  ;;  %v6972_v4 = vmax.f32 %v6970_v63, %v6971_v18  ;;  %v6323_v61 = vrot.slane %v6322_v54, 4  ;;  %v5468_v56 = vcombine.high %v5460_v17, %v5460_v17  ;;  %v10138_v45 = vld [vmem:[%s10823_s2] ss:$0 sm:$0xff] }
 0x25d   : > { %v7391_v41 = vunpack.c.l.b16 %v8014_v12  ;;  %v6974_v2 = vsel %vm172_vm4, %v6251_v25, -inf  ;;  %v5453_v26 = vcombine.high %v5239_v1, %v5239_v1  ;;  %v6259_v47 = vsel %vm6034_vm9, %v5460_v17, -inf }
 0x25e   : > { %v6975_v40 = vmax.f32 %v10080_v23, %v6974_v2  ;;  %v6977_v60 = vsel %vm172_vm4, %v6258_v11, -inf  ;;  %v8015_v29 = vpack.c.bf16 %v6972_v4, %v6972_v4  ;;  %v6330_v38 = vrot.slane %v6329_v15, 4 }
 0x25f   : > { %v7460_v51 = vsel %vm7449_vm13, %v7391_v41, %v7459_v8  ;;  %v6978_v6 = vmax.f32 %v10085_v53, %v6977_v60  ;;  %v6317_v28 = vmax.f32 %v6315_v43, %v6316_v48  ;;  %v6260_v10 = vrot.slane %v6259_v47, 4 }
 0x260   : > { %v8016_v5 = vpack.c.bf16 %v6975_v40, %v6975_v40  ;;  %v7392_v12 = vunpack.c.l.b16 %v8015_v29  ;;  %v6324_v44 = vmax.f32 %v6322_v54, %v6323_v61  ;;  %v6266_v1 = vsel %vm6034_vm9, %v5468_v56, -inf }
 0x261   : > { %v8017_v34 = vpack.c.bf16 %v6978_v6, %v6978_v6  ;;  %v5467_v17 = vrot.slane %v5453_v26, %v9884_v52  ;;  %v6261_v23 = vmax.f32 %v6259_v47, %v6260_v10  ;;  %v5208_v8 = vadd.f32 %v10138_v45, %v5165_v62  ;;  %v10155_v10 = vpop.f32.mrb[153].mxu0 }
 0x262   : > { %v7393_v63 = vunpack.c.l.b16 %v8016_v5  ;;  %v7461_v53 = vsel %vm7451_vm14, %v7392_v12, %v7460_v51  ;;  %v6331_v43 = vmax.f32 %v6329_v15, %v6330_v38  ;;  %v6267_v25 = vrot.slane %v6266_v1, 4 }
 0x263   : > { %v6291_v54 = vmax.f32 %v10092_v7, %v6290_v59  ;;  %v7394_v18 = vunpack.c.l.b16 %v8017_v34  ;;  %v6318_v48 = vrot.slane %v6317_v28, 2  ;;  %v6262_v11 = vrot.slane %v6261_v23, 2 }
 0x264   : > { %v6310_v4 = vmax.f32 %v10098_v37, %v6309_v46  ;;  %v7462_v61 = vsel %vm7453_vm15, %v7393_v63, %v7461_v53  ;;  %v6325_v56 = vrot.slane %v6324_v44, 2  ;;  %v6268_v41 = vmax.f32 %v6266_v1, %v6267_v25  ;;  %v10162_v25 = vpop.f32.mrb[154].mxu0 }
 0x265   : > { %v6298_v2 = vmax.f32 %v10104_v20, %v6297_v3  ;;  %v6304_v26 = vrot.slane %v10122_v30, 2  ;;  %v7463_v15 = vsel %vm7455_vm0, %v7394_v18, %v7462_v61  ;;  %v5244_v47 = vmax.f32 %v5208_v8, 0.0  ;;  %v10153_v3 = vpop.f32.mrb[153].mxu1 }
 0x266   : > { %v7507_v40 = vpack.c.b16 %v7463_v15, %v7463_v15  ;;  %v6332_v60 = vrot.slane %v6331_v43, 2  ;;  %v5469_v7 = vcombine.high %v5467_v17, %v5467_v17  ;;  %v6273_v59 = vsel %vm6034_vm9, %v5467_v17, -inf  ;;  %v10160_v53 = vpop.f32.mrb[154].mxu1 }
 0x267   : > { %v6319_v29 = vmax.f32 %v6317_v28, %v6318_v48  ;;  %v6263_v38 = vmax.f32 %v6261_v23, %v6262_v11  ;;  %v6269_v37 = vrot.slane %v6268_v41, 2  ;;  %v6311_v46 = vrot.slane %v6310_v4, 2 }
 0x268   : > { %7524 = vst.msk [vmem:[%s10022_s13 + $0x4] sm:$0xf] %vm7522_vm1, %v7507_v40  ;;  %v6326_v62 = vmax.f32 %v6324_v44, %v6325_v56  ;;  %v6292_v51 = vrot.slane %v6291_v54, 1  ;;  %v6274_v6 = vrot.slane %v6273_v59, 4  ;;  %v5537_v20 = vcombine.high %v5244_v47, %v5244_v47 }
 0x269   : > { %v6299_v5 = vrot.slane %v6298_v2, 1  ;;  %v6305_v12 = vmax.f32 %v10122_v30, %v6304_v26  ;;  %v6333_v1 = vmax.f32 %v6331_v43, %v6332_v60  ;;  %v6280_v34 = vsel %vm6034_vm9, %v5469_v7, -inf }
 0x26a   : > { %v6320_v28 = vrot.slane %v6319_v29, 1  ;;  %v6264_v17 = vrot.slane %v6263_v38, 1  ;;  %v6270_v23 = vmax.f32 %v6268_v41, %v6269_v37  ;;  %v6312_v8 = vmax.f32 %v6310_v4, %v6311_v46  ;;  %v5163_v41 = vld [vmem:[#allocation2 + $0x60] sm:$0xff] }
 0x26b   : > { %v6327_v63 = vrot.slane %v6326_v62, 1  ;;  %v5544_v44 = vrot.slane %v5244_v47, %v9884_v52  ;;  %v6293_v18 = vmax.f32 %v6291_v54, %v6292_v51  ;;  %v6275_v48 = vmax.f32 %v6273_v59, %v6274_v6 }
 0x26c   : > { %v6281_v11 = vrot.slane %v6280_v34, 4  ;;  %v5551_v61 = vrot.slane %v5537_v20, %v9884_v52  ;;  %v6300_v30 = vmax.f32 %v6298_v2, %v6299_v5  ;;  %v6306_v43 = vrot.slane %v6305_v12, 1 }
 0x26d   : > { %v6334_v56 = vrot.slane %v6333_v1, 1  ;;  %v6321_v26 = vmax.f32 %v6319_v29, %v6320_v28  ;;  %v6265_v15 = vmax.f32 %v6263_v38, %v6264_v17  ;;  %v6271_v40 = vrot.slane %v6270_v23, 1 }
 0x26e   : > { %v6313_v4 = vrot.slane %v6312_v8, 1  ;;  %v6328_v60 = vmax.f32 %v6326_v62, %v6327_v63  ;;  %v5552_v7 = vcombine.high %v5544_v44, %v5544_v44  ;;  %v6385_v47 = vsel %vm6034_vm9, %v5544_v44, -inf }
 0x26f   : > { %v10167_v37 = vsel %vm172_vm4, %v6293_v18, -inf  ;;  %v6276_v54 = vrot.slane %v6275_v48, 2  ;;  %v6282_v59 = vmax.f32 %v6280_v34, %v6281_v11  ;;  %v5553_v46 = vcombine.high %v5551_v61, %v5551_v61 }
 0x270   : > { %v10169_v51 = vmax.f32 %v6305_v12, %v6306_v43  ;;  %v10172_v2 = vsel %vm172_vm4, %v6300_v30, -inf  ;;  %v6335_v29 = vmax.f32 %v6333_v1, %v6334_v56  ;;  %v5206_v38 = vadd.f32 %v10138_v45, %v5163_v41  ;;  %v4050_v43 = vld [vmem:[#allocation2 + $0x98] sm:$0xff]  ;;  %v4053_v41 = vld [vmem:[#allocation2 + $0xb0] sm:$0xff] }
 0x271   : > { %v6980_v6 = vsel %vm172_vm4, %v6321_v26, -inf  ;;  %v6272_v62 = vmax.f32 %v6270_v23, %v6271_v40  ;;  %v6979_v20 = vsel %vm172_vm4, %v6265_v15, -inf  ;;  %v6386_v5 = vrot.slane %v6385_v47, 4  ;;  %v4691_v56 = vld [vmem:[#allocation2 + $0x78] sm:$0xff] }
 0x272   : > { %v10177_v28 = vmax.f32 %v6312_v8, %v6313_v4  ;;  %v6983_v17 = vsel %vm172_vm4, %v6328_v60, -inf  ;;  %v10181_v34 = vsel %vm6034_vm9, %v5552_v7, -inf  ;;  %v5242_v12 = vmax.f32 %v5206_v38, 0.0  ;;  %v4689_v7 = vld [vmem:[#allocation2 + $0x68] sm:$0xff]  ;;  %v10211_v38 = vpop.f32.mrb[155].mxu1 }
 0x273   : > { %v10183_v63 = vmax.f32 %v6275_v48, %v6276_v54  ;;  %v6283_v44 = vrot.slane %v6282_v59, 2  ;;  %v10186_v1 = vsel %vm6034_vm9, %v5551_v61, -inf  ;;  %v10189_v18 = vsel %vm6034_vm9, %v5553_v46, -inf }
 0x274   : > { %v10191_v23 = vmax.f32 %v6979_v20, %v6980_v6  ;;  %v10194_v8 = vsel %vm172_vm4, %v6335_v29, -inf  ;;  %v5504_v11 = vcombine.high %v5242_v12, %v5242_v12  ;;  %v5511_v30 = vrot.slane %v5242_v12, %v9884_v52  ;;  %v4048_v12 = vld [vmem:[#allocation2 + $0x88] sm:$0xff] }
 0x275   : > { %v6982_v48 = vsel %vm172_vm4, %v6272_v62, -inf  ;;  %v10198_v26 = vmax.f32 %v6385_v47, %v6386_v5  ;;  %v6393_v61 = vrot.slane %v10181_v34, 4  ;;  %v4586_v15 = vadd.f32 %v9929_v57, %v4050_v43  ;;  %v10213_v57 = vpop.f32.mrb[155].mxu0  ;;  %v4692_v43 = vld [vmem:[#allocation2 + $0x80] sm:$0xff] }
 0x276   : > { %v5518_v4 = vrot.slane %v5504_v11, %v9884_v52  ;;  %v5519_v60 = vcombine.high %v5511_v30, %v5511_v30  ;;  %v6278_v54 = vrot.slane %v10183_v63, 1  ;;  %v10206_v46 = vmax.f32 %v6282_v59, %v6283_v44  ;;  %v4694_v11 = vld [vmem:[#allocation2 + $0x90] sm:$0xff] }
 0x277   : > { %v6336_v29 = vsel %vm6034_vm9, %v5511_v30, -inf  ;;  %4622 = vst.msk [vmem:[#allocation2 + $0x98] sm:$0xff] %vm172_vm4, %v4586_v15  ;;  %v5094_v47 = vadd.f32 %v9927_v49, %v4691_v56  ;;  %v10215_v6 = vmax.f32 %v6982_v48, %v6983_v17  ;;  %v4584_v30 = vadd.f32 %v9932_v55, %v4048_v12 }
 0x278   : > { %v5520_v62 = vcombine.high %v5518_v4, %v5518_v4  ;;  %v6337_v20 = vrot.slane %v6336_v29, 4  ;;  %v6343_v5 = vsel %vm6034_vm9, %v5519_v60, -inf  ;;  %v6350_v44 = vsel %vm6034_vm9, %v5518_v4, -inf }
 0x279   : > { %v6344_v59 = vrot.slane %v6343_v5, 4  ;;  %5130 = vst.msk [vmem:[#allocation2 + $0x78] sm:$0xff] %vm172_vm4, %v5094_v47  ;;  %v5092_v49 = vadd.f32 %v9934_v31, %v4689_v7  ;;  %v6351_v48 = vrot.slane %v6350_v44, 4  ;;  %4620 = vst.msk [vmem:[#allocation2 + $0x88] sm:$0xff] %vm172_vm4, %v4584_v30  ;;  %v4589_v4 = vadd.f32 %v9940_v19, %v4053_v41  ;;  %v4051_v47 = vld [vmem:[#allocation2 + $0xa0] sm:$0xff] }
 0x27a   : > { %v6338_v17 = vmax.f32 %v6336_v29, %v6337_v20  ;;  %v6357_v15 = vsel %vm6034_vm9, %v5520_v62, -inf  ;;  %v5097_v55 = vadd.f32 %v9942_v27, %v4694_v11  ;;  %v4587_v12 = vadd.f32 %v9947_v50, %v4051_v47  ;;  %v4054_v20 = vld [vmem:[#allocation2 + $0xb8] sm:$0xff]  ;;  %v4052_v62 = vld [vmem:[#allocation2 + $0xa8] sm:$0xff]  ;;  %v4057_v27 = vld [vmem:[#allocation2 + $0xd0] sm:$0xff] }
 0x27b   : > { %v6345_v60 = vmax.f32 %v6343_v5, %v6344_v59  ;;  %v6358_v40 = vrot.slane %v6357_v15, 4  ;;  %5128 = vst.msk [vmem:[#allocation2 + $0x68] sm:$0xff] %vm172_vm4, %v5092_v49  ;;  %v6352_v7 = vmax.f32 %v6350_v44, %v6351_v48  ;;  %v5095_v29 = vadd.f32 %v9949_v16, %v4692_v43  ;;  %4625 = vst.msk [vmem:[#allocation2 + $0xb0] sm:$0xff] %vm172_vm4, %v4589_v4  ;;  %v4062_v47 = vld [vmem:[#allocation2 + $0xf8] sm:$0xff] }
 0x27c   : > { %v6339_v31 = vrot.slane %v6338_v17, 2  ;;  %5133 = vst.msk [vmem:[#allocation2 + $0x90] sm:$0xff] %vm172_vm4, %v5097_v55  ;;  %v4590_v59 = vadd.f32 %v9965_v0, %v4054_v20  ;;  %v4588_v19 = vadd.f32 %v9985_v21, %v4052_v62  ;;  %v6279_v41 = vmax.f32 %v10183_v63, %v6278_v54  ;;  %4623 = vst.msk [vmem:[#allocation2 + $0xa0] sm:$0xff] %vm172_vm4, %v4587_v12  ;;  %v4058_v63 = vld [vmem:[#allocation2 + $0xd8] sm:$0xff]  ;;  %v4056_v54 = vld [vmem:[#allocation2 + $0xc8] sm:$0xff] }
 0x27d   : > { %v6346_v56 = vrot.slane %v6345_v60, 2  ;;  %v6359_v5 = vmax.f32 %v6357_v15, %v6358_v40  ;;  %v6353_v44 = vrot.slane %v6352_v7, 2  ;;  %5131 = vst.msk [vmem:[#allocation2 + $0x80] sm:$0xff] %vm172_vm4, %v5095_v29  ;;  %v4593_v16 = vadd.f32 %v10006_v33, %v4057_v27  ;;  %v4055_v40 = vld [vmem:[#allocation2 + $0xc0] sm:$0xff]  ;;  %v4061_v15 = vld [vmem:[#allocation2 + $0xf0] sm:$0xff] }
 0x27e   : > { %v6340_v11 = vmax.f32 %v6338_v17, %v6339_v31  ;;  %v4695_v50 = vld [vmem:[#allocation2 + $0x98] sm:$0xff]  ;;  %4626 = vst.msk [vmem:[#allocation2 + $0xb8] sm:$0xff] %vm172_vm4, %v4590_v59  ;;  %4624 = vst.msk [vmem:[#allocation2 + $0xa8] sm:$0xff] %vm172_vm4, %v4588_v19  ;;  %v4591_v21 = vadd.f32 %v10029_v24, %v4055_v40  ;;  %v6285_v43 = vrot.slane %v10206_v46, 1  ;;  %v4594_v33 = vadd.f32 %v10050_v42, %v4058_v63  ;;  %v4059_v55 = vld [vmem:[#allocation2 + $0xe0] sm:$0xff] }
 0x27f   : > { %v6347_v30 = vmax.f32 %v6345_v60, %v6346_v56  ;;  %v6360_v49 = vrot.slane %v6359_v5, 2  ;;  %v5098_v0 = vadd.f32 %v9967_v58, %v4695_v50  ;;  %4629 = vst.msk [vmem:[#allocation2 + $0xd0] sm:$0xff] %vm172_vm4, %v4593_v16  ;;  %v4592_v56 = vadd.f32 %v10075_v32, %v4056_v54  ;;  %v10270_v50 = vpop.f32.mrb[156].mxu1 }
 0x280   : > { %v6341_v17 = vrot.slane %v6340_v11, 1  ;;  %v5166_v48 = vld [vmem:[#allocation2 + $0x78] sm:$0xff]  ;;  %v6354_v4 = vmax.f32 %v6352_v7, %v6353_v44  ;;  %4627 = vst.msk [vmem:[#allocation2 + $0xc0] sm:$0xff] %vm172_vm4, %v4591_v21  ;;  %v4597_v24 = vadd.f32 %v10111_v13, %v4061_v15  ;;  %v6394_v31 = vmax.f32 %v10181_v34, %v6393_v61  ;;  %v4693_v32 = vld [vmem:[#allocation2 + $0x88] sm:$0xff]  ;;  %4630 = vst.msk [vmem:[#allocation2 + $0xd8] sm:$0xff] %vm172_vm4, %v4594_v33 }
 0x281   : > { %v6348_v60 = vrot.slane %v6347_v30, 1  ;;  %v5209_v58 = vadd.f32 %v10138_v45, %v5166_v48  ;;  %5134 = vst.msk [vmem:[#allocation2 + $0x98] sm:$0xff] %vm172_vm4, %v5098_v0  ;;  %4628 = vst.msk [vmem:[#allocation2 + $0xc8] sm:$0xff] %vm172_vm4, %v4592_v56  ;;  %v4595_v7 = vadd.f32 %v10153_v3, %v4059_v55  ;;  %v4598_v29 = vadd.f32 %v10160_v53, %v4062_v47  ;;  %v4060_v34 = vld [vmem:[#allocation2 + $0xe8] sm:$0xff]  ;;  %v10292_v47 = vpop.f32.mrb[157].mxu1 }
 0x282   : > { %v6342_v42 = vmax.f32 %v6340_v11, %v6341_v17  ;;  %v5164_v12 = vld [vmem:[#allocation2 + $0x68] sm:$0xff]  ;;  %v6985_v20 = vsel %vm172_vm4, %v6279_v41, -inf  ;;  %v6361_v13 = vmax.f32 %v6359_v5, %v6360_v49  ;;  %4633 = vst.msk [vmem:[#allocation2 + $0xf0] sm:$0xff] %vm172_vm4, %v4597_v24  ;;  %v6286_v61 = vmax.f32 %v10206_v46, %v6285_v43  ;;  %v10272_v46 = vpop.f32.mrb[156].mxu0 }
 0x283   : > { %v5245_v62 = vmax.f32 %v5209_v58, 0.0  ;;  %v5207_v59 = vadd.f32 %v10138_v45, %v5164_v12  ;;  %v10825_v19 = vrot.slane %v10186_v1, 4  ;;  %v5096_v11 = vadd.f32 %v9987_v22, %v4693_v32  ;;  %4631 = vst.msk [vmem:[#allocation2 + $0xe0] sm:$0xff] %vm172_vm4, %v4595_v7  ;;  %4634 = vst.msk [vmem:[#allocation2 + $0xf8] sm:$0xff] %vm172_vm4, %v4598_v29 }
 0x284   : > { %v4596_v3 = vadd.f32 %v10211_v38, %v4060_v34  ;;  %v8018_v53 = vpack.c.bf16 %v10191_v23, %v10191_v23  ;;  %v6349_v5 = vmax.f32 %v6347_v30, %v6348_v60  ;;  %v6355_v41 = vrot.slane %v6354_v4, 1  ;;  %v5169_v34 = vld [vmem:[#allocation2 + $0x90] sm:$0xff] }
 0x285   : > { %v6401_v27 = vmax.f32 %v10186_v1, %v10825_v19  ;;  %v5554_v44 = vcombine.high %v5245_v62, %v5245_v62  ;;  %v6987_v1 = vmax.f32 %v6985_v20, %v10194_v8  ;;  %v8019_v22 = vpack.c.bf16 %v10215_v6, %v10215_v6  ;;  %5132 = vst.msk [vmem:[#allocation2 + $0x88] sm:$0xff] %vm172_vm4, %v5096_v11 }
 0x286   : > { %v6989_v16 = vsel %vm172_vm4, %v6342_v42, -inf  ;;  %v5243_v40 = vmax.f32 %v5207_v59, 0.0  ;;  %4632 = vst.msk [vmem:[#allocation2 + $0xe8] sm:$0xff] %vm172_vm4, %v4596_v3  ;;  %v10826_v23 = vrot.slane %v10198_v26, 2  ;;  %v10827_v30 = vrot.slane %v10189_v18, 4 }
 0x287   : > { %v6362_v0 = vrot.slane %v6361_v13, 1  ;;  %v5568_v8 = vrot.slane %v5554_v44, %v9884_v52  ;;  %v6997_v6 = vsel %vm172_vm4, %v10169_v51, -inf  ;;  %v6395_v21 = vrot.slane %v6394_v31, 2  ;;  %v10294_v51 = vpop.f32.mrb[157].mxu0 }
 0x288   : > { %v6389_v38 = vmax.f32 %v10198_v26, %v10826_v23  ;;  %v6408_v49 = vmax.f32 %v10189_v18, %v10827_v30  ;;  %v6402_v63 = vrot.slane %v6401_v27, 2  ;;  %v6988_v54 = vsel %vm172_vm4, %v6286_v61, -inf }
 0x289   : > { %v6356_v43 = vmax.f32 %v6354_v4, %v6355_v41  ;;  %v6990_v17 = vmax.f32 %v6988_v54, %v6989_v16  ;;  %v6992_v48 = vsel %vm172_vm4, %v6349_v5, -inf  ;;  %v5570_v33 = vcombine.high %v5568_v8, %v5568_v8 }
 0x28a   : > { %v8020_v26 = vpack.c.bf16 %v6987_v1, %v6987_v1  ;;  %v7395_v56 = vunpack.c.l.b16 %v8018_v53  ;;  %v7396_v15 = vunpack.c.l.b16 %v8019_v22  ;;  %v5521_v60 = vcombine.high %v5243_v40, %v5243_v40 }
 0x28b   : > { %v6390_v18 = vrot.slane %v6389_v38, 1  ;;  %v6409_v58 = vrot.slane %v6408_v49, 2  ;;  %v6363_v24 = vmax.f32 %v6361_v13, %v6362_v0  ;;  %v5561_v55 = vrot.slane %v5245_v62, %v9884_v52 }
 0x28c   : > { %v6396_v42 = vmax.f32 %v6394_v31, %v6395_v21  ;;  %v6993_v4 = vmax.f32 %v10167_v37, %v6992_v48  ;;  %v6427_v12 = vsel %vm6034_vm9, %v5570_v33, -inf  ;;  %v5528_v32 = vrot.slane %v5243_v40, %v9884_v52 }
 0x28d   : > { %v6403_v7 = vmax.f32 %v6401_v27, %v6402_v63  ;;  %v6995_v29 = vsel %vm172_vm4, %v6356_v43, -inf  ;;  %v8021_v20 = vpack.c.bf16 %v6990_v17, %v6990_v17  ;;  %v6428_v59 = vrot.slane %v6427_v12, 4 }
 0x28e   : > { %v7397_v13 = vunpack.c.l.b16 %v8020_v26  ;;  %v7464_v62 = vsel %vm7443_vm10, %v7396_v15, %v7395_v56  ;;  %v5535_v61 = vrot.slane %v5521_v60, %v9884_v52  ;;  %v6364_v19 = vsel %vm6034_vm9, %v5528_v32, -inf }
 0x28f   : > { %v6998_v31 = vsel %vm172_vm4, %v6363_v24, -inf  ;;  %v5569_v37 = vcombine.high %v5561_v55, %v5561_v55  ;;  %v6429_v11 = vmax.f32 %v6427_v12, %v6428_v59  ;;  %v6365_v3 = vrot.slane %v6364_v19, 4  ;;  %v5167_v24 = vld [vmem:[#allocation2 + $0x80] sm:$0xff] }
 0x290   : > { %v6996_v53 = vmax.f32 %v10172_v2, %v6995_v29  ;;  %v8022_v27 = vpack.c.bf16 %v6993_v4, %v6993_v4  ;;  %v6371_v5 = vsel %vm6034_vm9, %v5535_v61, -inf  ;;  %v5212_v41 = vadd.f32 %v10138_v45, %v5169_v34 }
 0x291   : > { %v6410_v44 = vmax.f32 %v6408_v49, %v6409_v58  ;;  %v7398_v1 = vunpack.c.l.b16 %v8021_v20  ;;  %v6413_v22 = vsel %vm6034_vm9, %v5561_v55, -inf  ;;  %v6366_v16 = vmax.f32 %v6364_v19, %v6365_v3 }
 0x292   : > { %v7465_v40 = vsel %vm7445_vm11, %v7397_v13, %v7464_v62  ;;  %v6397_v23 = vrot.slane %v6396_v42, 1  ;;  %v6999_v30 = vmax.f32 %v6997_v6, %v6998_v31  ;;  %v5536_v0 = vcombine.high %v5535_v61, %v5535_v61 }
 0x293   : > { %v6420_v8 = vsel %vm6034_vm9, %v5569_v37, -inf  ;;  %v6430_v21 = vrot.slane %v6429_v11, 2  ;;  %v6367_v63 = vrot.slane %v6366_v16, 2  ;;  %v6372_v2 = vrot.slane %v6371_v5, 4 }
 0x294   : > { %v8023_v54 = vpack.c.bf16 %v6996_v53, %v6996_v53  ;;  %v7399_v43 = vunpack.c.l.b16 %v8022_v27  ;;  %v6414_v17 = vrot.slane %v6413_v22, 4  ;;  %v5248_v48 = vmax.f32 %v5212_v41, 0.0  ;;  %v10321_v27 = vpop.f32.mrb[158].mxu1 }
 0x295   : > { %v6391_v33 = vmax.f32 %v6389_v38, %v6390_v18  ;;  %v6404_v49 = vrot.slane %v6403_v7, 1  ;;  %v7466_v26 = vsel %vm7447_vm12, %v7398_v1, %v7465_v40  ;;  %v6368_v56 = vmax.f32 %v6366_v16, %v6367_v63 }
 0x296   : > { %v6398_v15 = vmax.f32 %v6396_v42, %v6397_v23  ;;  %v6411_v60 = vrot.slane %v6410_v44, 1  ;;  %v6421_v58 = vrot.slane %v6420_v8, 4  ;;  %v6378_v6 = vsel %vm6034_vm9, %v5536_v0, -inf }
 0x297   : > { %v8024_v55 = vpack.c.bf16 %v6999_v30, %v6999_v30  ;;  %v6431_v4 = vmax.f32 %v6429_v11, %v6430_v21  ;;  %v6369_v12 = vrot.slane %v6368_v56, 1  ;;  %v6373_v32 = vmax.f32 %v6371_v5, %v6372_v2  ;;  %v10323_v5 = vpop.f32.mrb[158].mxu0 }
 0x298   : > { %v7400_v29 = vunpack.c.l.b16 %v8023_v54  ;;  %v7467_v20 = vsel %vm7449_vm13, %v7399_v43, %v7466_v26  ;;  %v6415_v59 = vmax.f32 %v6413_v22, %v6414_v17  ;;  %v5611_v38 = vrot.slane %v5248_v48, %v9884_v52 }
 0x299   : > { %v6370_v18 = vmax.f32 %v6368_v56, %v6369_v12  ;;  %v6379_v34 = vrot.slane %v6378_v6, 4  ;;  %v5604_v13 = vcombine.high %v5248_v48, %v5248_v48  ;;  %v5210_v42 = vadd.f32 %v10138_v45, %v5167_v24 }
 0x29a   : > { %v6405_v62 = vmax.f32 %v6403_v7, %v6404_v49  ;;  %v10316_v61 = vsel %vm172_vm4, %v6391_v33, -inf  ;;  %v6422_v19 = vmax.f32 %v6420_v8, %v6421_v58  ;;  %v7000_v31 = vsel %vm172_vm4, %v10177_v28, -inf  ;;  %v10343_v58 = vpop.f32.mrb[159].mxu0 }
 0x29b   : > { %v7401_v37 = vunpack.c.l.b16 %v8024_v55  ;;  %v6432_v11 = vrot.slane %v6431_v4, 1  ;;  %v6374_v3 = vrot.slane %v6373_v32, 2  ;;  %v7001_v53 = vsel %vm172_vm4, %v6370_v18, -inf }
 0x29c   : > { %v7468_v41 = vsel %vm7451_vm14, %v7400_v29, %v7467_v20  ;;  %v7002_v1 = vmax.f32 %v7000_v31, %v7001_v53  ;;  %v5619_v7 = vcombine.high %v5611_v38, %v5611_v38  ;;  %v6483_v22 = vsel %vm6034_vm9, %v5611_v38, -inf  ;;  %v4698_v31 = vld [vmem:[#allocation2 + $0xb0] sm:$0xff] }
 0x29d   : > { %v6416_v16 = vrot.slane %v6415_v59, 2  ;;  %v6380_v40 = vmax.f32 %v6378_v6, %v6379_v34  ;;  %v5618_v23 = vrot.slane %v5604_v13, %v9884_v52  ;;  %v5246_v28 = vmax.f32 %v5210_v42, 0.0 }
 0x29e   : > { %v10328_v30 = vmax.f32 %v6410_v44, %v6411_v60  ;;  %v10331_v0 = vsel %vm172_vm4, %v6398_v15, -inf  ;;  %v6423_v8 = vrot.slane %v6422_v19, 2  ;;  %v8025_v21 = vpack.c.bf16 %v7002_v1, %v7002_v1  ;;  %v10341_v60 = vpop.f32.mrb[159].mxu1 }
 0x29f   : > { %v6433_v63 = vmax.f32 %v6431_v4, %v6432_v11  ;;  %v6375_v2 = vmax.f32 %v6373_v32, %v6374_v3  ;;  %v7469_v54 = vsel %vm7453_vm15, %v7401_v37, %v7468_v41  ;;  %v6484_v43 = vrot.slane %v6483_v22, 4  ;;  %v4696_v41 = vld [vmem:[#allocation2 + $0xa0] sm:$0xff] }
 0x2a0   : > { %v7402_v17 = vunpack.c.l.b16 %v8025_v21  ;;  %v6490_v48 = vsel %vm6034_vm9, %v5619_v7, -inf  ;;  %v5571_v33 = vcombine.high %v5246_v28, %v5246_v28  ;;  %v5578_v49 = vrot.slane %v5246_v28, %v9884_v52 }
 0x2a1   : > { %v10337_v26 = vsel %vm172_vm4, %v6405_v62, -inf  ;;  %v10339_v44 = vmax.f32 %v6415_v59, %v6416_v16  ;;  %v6381_v56 = vrot.slane %v6380_v40, 2  ;;  %v5620_v15 = vcombine.high %v5618_v23, %v5618_v23 }
 0x2a2   : > { %v10345_v6 = vmax.f32 %v6422_v19, %v6423_v8  ;;  %v7470_v24 = vsel %vm7455_vm0, %v7402_v17, %v7469_v54  ;;  %v5585_v55 = vrot.slane %v5571_v33, %v9884_v52  ;;  %v5586_v4 = vcombine.high %v5578_v49, %v5578_v49  ;;  %v4697_v54 = vld [vmem:[#allocation2 + $0xa8] sm:$0xff] }
 0x2a3   : > { %v10350_v12 = vsel %vm172_vm4, %v6433_v63, -inf  ;;  %v7508_v32 = vpack.c.b16 %v7470_v24, %v7470_v24  ;;  %v6491_v29 = vrot.slane %v6490_v48, 4  ;;  %v6497_v20 = vsel %vm6034_vm9, %v5618_v23, -inf  ;;  %v4699_v23 = vld [vmem:[#allocation2 + $0xb8] sm:$0xff] }
 0x2a4   : > { %v6376_v59 = vrot.slane %v6375_v2, 1  ;;  %v6485_v38 = vmax.f32 %v6483_v22, %v6484_v43  ;;  %v5587_v18 = vcombine.high %v5585_v55, %v5585_v55  ;;  %v6434_v34 = vsel %vm6034_vm9, %v5578_v49, -inf }
 0x2a5   : > { %v6382_v13 = vmax.f32 %v6380_v40, %v6381_v56  ;;  %7525 = vst.msk [vmem:[%s10022_s13 + $0x8] sm:$0xf] %vm7522_vm1, %v7508_v32  ;;  %v6504_v42 = vsel %vm6034_vm9, %v5620_v15, -inf  ;;  %v6435_v62 = vrot.slane %v6434_v34, 4  ;;  %v6441_v19 = vsel %vm6034_vm9, %v5586_v4, -inf  ;;  %v5170_v40 = vld [vmem:[#allocation2 + $0x98] sm:$0xff] }
 0x2a6   : > { %v6498_v37 = vrot.slane %v6497_v20, 4  ;;  %v6442_v11 = vrot.slane %v6441_v19, 4  ;;  %v6448_v3 = vsel %vm6034_vm9, %v5585_v55, -inf  ;;  %v6455_v53 = vsel %vm6034_vm9, %v5587_v18, -inf  ;;  %v5168_v32 = vld [vmem:[#allocation2 + $0x88] sm:$0xff] }
 0x2a7   : > { %v6492_v1 = vmax.f32 %v6490_v48, %v6491_v29  ;;  %v6436_v7 = vmax.f32 %v6434_v34, %v6435_v62  ;;  %v6449_v22 = vrot.slane %v6448_v3, 4  ;;  %v6456_v16 = vrot.slane %v6455_v53, 4 }
 0x2a8   : > { %v6377_v28 = vmax.f32 %v6375_v2, %v6376_v59  ;;  %v6505_v8 = vrot.slane %v6504_v42, 4  ;;  %v6443_v21 = vmax.f32 %v6441_v19, %v6442_v11  ;;  %v5101_v63 = vadd.f32 %v10008_v36, %v4698_v31 }
 0x2a9   : > { %v6437_v43 = vrot.slane %v6436_v7, 2  ;;  %v6450_v17 = vmax.f32 %v6448_v3, %v6449_v22  ;;  %v6457_v33 = vmax.f32 %v6455_v53, %v6456_v16  ;;  %v5099_v49 = vadd.f32 %v10031_v14, %v4696_v41 }
 0x2aa   : > { %v6486_v56 = vrot.slane %v6485_v38, 2  ;;  %v6444_v15 = vrot.slane %v6443_v21, 2  ;;  %v5213_v48 = vadd.f32 %v10138_v45, %v5170_v40  ;;  %5137 = vst.msk [vmem:[#allocation2 + $0xb0] sm:$0xff] %vm172_vm4, %v5101_v63  ;;  %v5102_v24 = vadd.f32 %v10052_v9, %v4699_v23 }
 0x2ab   : > { %v6438_v55 = vmax.f32 %v6436_v7, %v6437_v43  ;;  %v6451_v2 = vrot.slane %v6450_v17, 2  ;;  %v6458_v4 = vrot.slane %v6457_v33, 2  ;;  %5135 = vst.msk [vmem:[#allocation2 + $0xa0] sm:$0xff] %vm172_vm4, %v5099_v49  ;;  %v5100_v36 = vadd.f32 %v10077_v39, %v4697_v54 }
 0x2ac   : > { %v6383_v29 = vrot.slane %v6382_v13, 1  ;;  %v6493_v59 = vrot.slane %v6492_v1, 2  ;;  %v6499_v18 = vmax.f32 %v6497_v20, %v6498_v37  ;;  %v6445_v14 = vmax.f32 %v6443_v21, %v6444_v15  ;;  %5138 = vst.msk [vmem:[#allocation2 + $0xb8] sm:$0xff] %vm172_vm4, %v5102_v24  ;;  %v10378_v21 = vpop.f32.mrb[160].mxu0 }
 0x2ad   : > { %v7003_v34 = vsel %vm172_vm4, %v6377_v28, -inf  ;;  %v6506_v62 = vmax.f32 %v6504_v42, %v6505_v8  ;;  %v6439_v19 = vrot.slane %v6438_v55, 1  ;;  %v6452_v31 = vmax.f32 %v6450_v17, %v6451_v2  ;;  %5136 = vst.msk [vmem:[#allocation2 + $0xa8] sm:$0xff] %vm172_vm4, %v5100_v36 }
 0x2ae   : > { %v6418_v9 = vrot.slane %v10339_v44, 1  ;;  %v6446_v11 = vrot.slane %v6445_v14, 1  ;;  %v5249_v3 = vmax.f32 %v5213_v48, 0.0  ;;  %v5211_v53 = vadd.f32 %v10138_v45, %v5168_v32 }
 0x2af   : > { %v6425_v39 = vrot.slane %v10345_v6, 1  ;;  %v6487_v41 = vmax.f32 %v6485_v38, %v6486_v56  ;;  %v6440_v20 = vmax.f32 %v6438_v55, %v6439_v19  ;;  %v6459_v37 = vmax.f32 %v6457_v33, %v6458_v4 }
 0x2b0   : > { %v6384_v7 = vmax.f32 %v6382_v13, %v6383_v29  ;;  %v7005_v22 = vmax.f32 %v7003_v34, %v10350_v12  ;;  %v6500_v16 = vrot.slane %v6499_v18, 2  ;;  %v6453_v42 = vrot.slane %v6452_v31, 1 }
 0x2b1   : > { %v6494_v40 = vmax.f32 %v6492_v1, %v6493_v59  ;;  %v6507_v23 = vrot.slane %v6506_v62, 2  ;;  %v6447_v28 = vmax.f32 %v6445_v14, %v6446_v11  ;;  %v10376_v8 = vsel %vm172_vm4, %v10328_v30, -inf }
 0x2b2   : > { %v6419_v63 = vmax.f32 %v10339_v44, %v6418_v9  ;;  %v7007_v38 = vsel %vm172_vm4, %v6440_v20, -inf  ;;  %v5621_v54 = vcombine.high %v5249_v3, %v5249_v3  ;;  %v5247_v43 = vmax.f32 %v5211_v53, 0.0 }
 0x2b3   : > { %v6426_v13 = vmax.f32 %v10345_v6, %v6425_v39  ;;  %v6488_v12 = vrot.slane %v6487_v41, 1  ;;  %v6460_v17 = vrot.slane %v6459_v37, 1  ;;  %v5628_v1 = vrot.slane %v5249_v3, %v9884_v52  ;;  %v10407_v3 = vpop.f32.mrb[161].mxu0 }
 0x2b4   : > { %v8026_v33 = vpack.c.bf16 %v7005_v22, %v7005_v22  ;;  %v10384_v49 = vmax.f32 %v6499_v18, %v6500_v16  ;;  %v6454_v56 = vmax.f32 %v6452_v31, %v6453_v42  ;;  %v7006_v30 = vsel %vm172_vm4, %v6384_v7, -inf  ;;  %v5173_v16 = vld [vmem:[#allocation2 + $0xb0] sm:$0xff] }
 0x2b5   : > { %v6495_v15 = vrot.slane %v6494_v40, 1  ;;  %v10387_v48 = vmax.f32 %v6506_v62, %v6507_v23  ;;  %v7008_v44 = vmax.f32 %v7006_v30, %v7007_v38  ;;  %v7010_v24 = vsel %vm172_vm4, %v6447_v28, -inf }
 0x2b6   : > { %v10391_v55 = vsel %vm172_vm4, %v6419_v63, -inf  ;;  %v5635_v6 = vrot.slane %v5621_v54, %v9884_v52  ;;  %v5588_v2 = vcombine.high %v5247_v43, %v5247_v43  ;;  %v5595_v4 = vrot.slane %v5247_v43, %v9884_v52 }
 0x2b7   : > { %v10396_v32 = vsel %vm172_vm4, %v6426_v13, -inf  ;;  %v6461_v36 = vmax.f32 %v6459_v37, %v6460_v17  ;;  %v5636_v29 = vcombine.high %v5628_v1, %v5628_v1  ;;  %v6511_v59 = vsel %vm6034_vm9, %v5628_v1, -inf  ;;  %v5171_v13 = vld [vmem:[#allocation2 + $0xa0] sm:$0xff] }
 0x2b8   : > { %v10399_v18 = vmax.f32 %v6487_v41, %v6488_v12  ;;  %v6502_v14 = vrot.slane %v10384_v49, 1  ;;  %v7011_v34 = vmax.f32 %v10316_v61, %v7010_v24  ;;  %v7013_v62 = vsel %vm172_vm4, %v6454_v56, -inf }
 0x2b9   : > { %v7403_v19 = vunpack.c.l.b16 %v8026_v33  ;;  %v10404_v31 = vmax.f32 %v6494_v40, %v6495_v15  ;;  %v6509_v9 = vrot.slane %v10387_v48, 1  ;;  %v8027_v11 = vpack.c.bf16 %v7008_v44, %v7008_v44 }
 0x2ba   : > { %v5637_v53 = vcombine.high %v5635_v6, %v5635_v6  ;;  %v6512_v39 = vrot.slane %v6511_v59, 4  ;;  %v5602_v20 = vrot.slane %v5588_v2, %v9884_v52  ;;  %v5603_v41 = vcombine.high %v5595_v4, %v5595_v4 }
 0x2bb   : > { %v7014_v37 = vmax.f32 %v10331_v0, %v7013_v62  ;;  %v7016_v7 = vsel %vm172_vm4, %v6461_v36, -inf  ;;  %v6518_v61 = vsel %vm6034_vm9, %v5636_v29, -inf  ;;  %v6462_v22 = vsel %vm6034_vm9, %v5595_v4, -inf }
 0x2bc   : > { %v8028_v42 = vpack.c.bf16 %v7011_v34, %v7011_v34  ;;  %v6463_v40 = vrot.slane %v6462_v22, 4  ;;  %v6469_v23 = vsel %vm6034_vm9, %v5603_v41, -inf  ;;  %v6476_v28 = vsel %vm6034_vm9, %v5602_v20, -inf }
 0x2bd   : > { %v7404_v63 = vunpack.c.l.b16 %v8027_v11  ;;  %v6525_v38 = vsel %vm6034_vm9, %v5635_v6, -inf  ;;  %v6470_v54 = vrot.slane %v6469_v23, 4  ;;  %v6477_v43 = vrot.slane %v6476_v28, 4 }
 0x2be   : > { %v7017_v0 = vmax.f32 %v10337_v26, %v7016_v7  ;;  %v10418_v12 = vmax.f32 %v6511_v59, %v6512_v39  ;;  %v6464_v17 = vmax.f32 %v6462_v22, %v6463_v40  ;;  %v5216_v1 = vadd.f32 %v10138_v45, %v5173_v16 }
 0x2bf   : > { %v8029_v33 = vpack.c.bf16 %v7014_v37, %v7014_v37  ;;  %v6532_v56 = vsel %vm6034_vm9, %v5637_v53, -inf  ;;  %v6471_v30 = vmax.f32 %v6469_v23, %v6470_v54  ;;  %v6478_v15 = vmax.f32 %v6476_v28, %v6477_v43 }
 0x2c0   : > { %v7405_v44 = vunpack.c.l.b16 %v8028_v42  ;;  %v6465_v24 = vrot.slane %v6464_v17, 2  ;;  %v10422_v2 = vmax.f32 %v5216_v1, 0.0  ;;  %v5214_v6 = vadd.f32 %v10138_v45, %v5171_v13 }
 0x2c1   : > { %v7471_v4 = vsel %vm7443_vm10, %v7404_v63, %v7403_v19  ;;  %v6519_v36 = vrot.slane %v6518_v61, 4  ;;  %v6472_v26 = vrot.slane %v6471_v30, 2  ;;  %v6479_v29 = vrot.slane %v6478_v15, 2 }
 0x2c2   : > { %v8030_v59 = vpack.c.bf16 %v7017_v0, %v7017_v0  ;;  %v6466_v34 = vmax.f32 %v6464_v17, %v6465_v24  ;;  %v5679_v62 = vrot.slane %v10422_v2, %v9884_v52  ;;  %v5250_v11 = vmax.f32 %v5214_v6, 0.0 }
 0x2c3   : > { %v7406_v53 = vunpack.c.l.b16 %v8029_v33  ;;  %v6533_v39 = vrot.slane %v6532_v56, 4  ;;  %v6473_v20 = vmax.f32 %v6471_v30, %v6472_v26  ;;  %v6480_v41 = vmax.f32 %v6478_v15, %v6479_v29 }
 0x2c4   : > { %v7472_v37 = vsel %vm7445_vm11, %v7405_v44, %v7471_v4  ;;  %v6467_v7 = vrot.slane %v6466_v34, 1  ;;  %v6588_v45 = vsel %vm6034_vm9, %v5679_v62, -inf  ;;  %v5638_v22 = vcombine.high %v5250_v11, %v5250_v11  ;;  %v10435_v44 = vpop.f32.mrb[162].mxu0 }
 0x2c5   : > { %v6474_v19 = vrot.slane %v6473_v20, 1  ;;  %v6481_v16 = vrot.slane %v6480_v41, 1  ;;  %v6589_v42 = vrot.slane %v6588_v45, 4  ;;  %v5645_v40 = vrot.slane %v5250_v11, %v9884_v52 }
 0x2c6   : > { %v6514_v23 = vrot.slane %v10418_v12, 2  ;;  %v6520_v28 = vmax.f32 %v6518_v61, %v6519_v36  ;;  %v6526_v63 = vrot.slane %v6525_v38, 4  ;;  %v6468_v54 = vmax.f32 %v6466_v34, %v6467_v7 }
 0x2c7   : > { %v6534_v43 = vmax.f32 %v6532_v56, %v6533_v39  ;;  %v6475_v13 = vmax.f32 %v6473_v20, %v6474_v19  ;;  %v6482_v0 = vmax.f32 %v6480_v41, %v6481_v16  ;;  %v5652_v17 = vrot.slane %v5638_v22, %v9884_v52 }
 0x2c8   : > { %v7407_v1 = vunpack.c.l.b16 %v8030_v59  ;;  %v7473_v33 = vsel %vm7447_vm12, %v7406_v53, %v7472_v37  ;;  %v7019_v30 = vsel %vm172_vm4, %v6468_v54, -inf  ;;  %v5653_v15 = vcombine.high %v5645_v40, %v5645_v40  ;;  %v5172_v54 = vld [vmem:[#allocation2 + $0xa8] sm:$0xff] }
 0x2c9   : > { %v7020_v24 = vmax.f32 %v10376_v8, %v7019_v30  ;;  %v7022_v6 = vsel %vm172_vm4, %v6475_v13, -inf  ;;  %v7025_v61 = vsel %vm172_vm4, %v6482_v0, -inf  ;;  %v6590_v4 = vmax.f32 %v6588_v45, %v6589_v42 }
 0x2ca   : > { %v6521_v56 = vrot.slane %v6520_v28, 2  ;;  %v6527_v36 = vmax.f32 %v6525_v38, %v6526_v63  ;;  %v7023_v26 = vmax.f32 %v10391_v55, %v7022_v6  ;;  %v7026_v29 = vmax.f32 %v10396_v32, %v7025_v61  ;;  %v5174_v63 = vld [vmem:[#allocation2 + $0xb8] sm:$0xff] }
 0x2cb   : > { %v6535_v59 = vrot.slane %v6534_v43, 2  ;;  %v8031_v34 = vpack.c.bf16 %v7020_v24, %v7020_v24  ;;  %v6539_v62 = vsel %vm6034_vm9, %v5653_v15, -inf  ;;  %v6546_v11 = vsel %vm6034_vm9, %v5652_v17, -inf  ;;  %v10456_v24 = vld [vmem:[%s10823_s2] ss:$0 sm:$0xff] }
 0x2cc   : > { %v8032_v53 = vpack.c.bf16 %v7023_v26, %v7023_v26  ;;  %v8033_v39 = vpack.c.bf16 %v7026_v29, %v7026_v29  ;;  %v7474_v8 = vsel %vm7449_vm13, %v7407_v1, %v7473_v33  ;;  %v5654_v20 = vcombine.high %v5652_v17, %v5652_v17  ;;  %v10463_v26 = vpop.f32.mrb[163].mxu0 }
 0x2cd   : > { %v7408_v41 = vunpack.c.l.b16 %v8031_v34  ;;  %v6591_v37 = vrot.slane %v6590_v4, 2  ;;  %v6540_v7 = vrot.slane %v6539_v62, 4  ;;  %v6547_v45 = vrot.slane %v6546_v11, 4 }
 0x2ce   : > { %v6515_v38 = vmax.f32 %v10418_v12, %v6514_v23  ;;  %v6528_v55 = vrot.slane %v6527_v36, 2  ;;  %v7409_v22 = vunpack.c.l.b16 %v8032_v53  ;;  %v5672_v32 = vcombine.high %v10422_v2, %v10422_v2 }
 0x2cf   : > { %v7410_v19 = vunpack.c.l.b16 %v8033_v39  ;;  %v7475_v16 = vsel %vm7451_vm14, %v7408_v41, %v7474_v8  ;;  %v6541_v42 = vmax.f32 %v6539_v62, %v6540_v7  ;;  %v6548_v40 = vmax.f32 %v6546_v11, %v6547_v45 }
 0x2d0   : > { %v6522_v13 = vmax.f32 %v6520_v28, %v6521_v56  ;;  %v6536_v0 = vmax.f32 %v6534_v43, %v6535_v59  ;;  %v7476_v17 = vsel %vm7453_vm15, %v7409_v22, %v7475_v16  ;;  %v6553_v1 = vsel %vm6034_vm9, %v5654_v20, -inf }
 0x2d1   : > { %v7477_v12 = vsel %vm7455_vm0, %v7410_v19, %v7476_v17  ;;  %v6592_v23 = vmax.f32 %v6590_v4, %v6591_v37  ;;  %v6542_v33 = vrot.slane %v6541_v42, 2  ;;  %v6549_v30 = vrot.slane %v6548_v40, 2 }
 0x2d2   : > { %v7509_v2 = vpack.c.b16 %v7477_v12, %v7477_v12  ;;  %v5686_v15 = vrot.slane %v5672_v32, %v9884_v52  ;;  %v5217_v28 = vadd.f32 %v10456_v24, %v5174_v63  ;;  %v5215_v43 = vadd.f32 %v10456_v24, %v5172_v54 }
 0x2d3   : > { %v6503_v6 = vmax.f32 %v10384_v49, %v6502_v14  ;;  %v6543_v61 = vmax.f32 %v6541_v42, %v6542_v33  ;;  %v6550_v4 = vmax.f32 %v6548_v40, %v6549_v30  ;;  %v6554_v56 = vrot.slane %v6553_v1, 4 }
 0x2d4   : > { %v7027_v29 = vsel %vm172_vm4, %v10399_v18, -inf  ;;  %v6516_v59 = vrot.slane %v6515_v38, 1  ;;  %v6523_v34 = vrot.slane %v6522_v13, 1  ;;  %v6529_v62 = vmax.f32 %v6527_v36, %v6528_v55  ;;  %7526 = vst.msk [vmem:[%s10022_s13 + $0xc] sm:$0xf] %vm7522_vm1, %v7509_v2 }
 0x2d5   : > { %v6593_v11 = vrot.slane %v6592_v23, 1  ;;  %v6544_v53 = vrot.slane %v6543_v61, 1  ;;  %v6551_v39 = vrot.slane %v6550_v4, 1  ;;  %v6555_v8 = vmax.f32 %v6553_v1, %v6554_v56 }
 0x2d6   : > { %v6537_v20 = vrot.slane %v6536_v0, 1  ;;  %v5687_v41 = vcombine.high %v5686_v15, %v5686_v15  ;;  %v5253_v49 = vmax.f32 %v5217_v28, 0.0  ;;  %v5251_v14 = vmax.f32 %v5215_v43, 0.0 }
 0x2d7   : > { %v6595_v37 = vsel %vm6034_vm9, %v5686_v15, -inf  ;;  %v6545_v7 = vmax.f32 %v6543_v61, %v6544_v53  ;;  %v6552_v45 = vmax.f32 %v6550_v4, %v6551_v39  ;;  %v6556_v22 = vrot.slane %v6555_v8, 2 }
 0x2d8   : > { %v10473_v18 = vmax.f32 %v10387_v48, %v6509_v9  ;;  %v7030_v36 = vsel %vm172_vm4, %v10404_v31, -inf  ;;  %v6517_v55 = vmax.f32 %v6515_v38, %v6516_v59  ;;  %v6530_v32 = vrot.slane %v6529_v62, 1 }
 0x2d9   : > { %v6594_v19 = vmax.f32 %v6592_v23, %v6593_v11  ;;  %v6557_v16 = vmax.f32 %v6555_v8, %v6556_v22  ;;  %v7028_v42 = vsel %vm172_vm4, %v6545_v7, -inf  ;;  %v7031_v40 = vsel %vm172_vm4, %v6552_v45, -inf }
 0x2da   : > { %v6524_v63 = vmax.f32 %v6522_v13, %v6523_v34  ;;  %v6538_v54 = vmax.f32 %v6536_v0, %v6537_v20  ;;  %v6596_v17 = vrot.slane %v6595_v37, 4  ;;  %v5655_v1 = vcombine.high %v5251_v14, %v5251_v14 }
 0x2db   : > { %v6602_v12 = vsel %vm6034_vm9, %v5687_v41, -inf  ;;  %v6558_v33 = vrot.slane %v6557_v16, 1  ;;  %v5695_v48 = vrot.slane %v5253_v49, %v9884_v52  ;;  %v5662_v9 = vrot.slane %v5251_v14, %v9884_v52 }
 0x2dc   : > { %v7033_v31 = vsel %vm172_vm4, %v6503_v6, -inf  ;;  %v10484_v38 = vsel %vm172_vm4, %v6517_v55, -inf  ;;  %v7029_v23 = vmax.f32 %v7027_v29, %v7028_v42  ;;  %v7032_v30 = vmax.f32 %v7030_v36, %v7031_v40 }
 0x2dd   : > { %v6531_v2 = vmax.f32 %v6529_v62, %v6530_v32  ;;  %v7049_v13 = vsel %vm172_vm4, %v6594_v19, -inf  ;;  %v6559_v0 = vmax.f32 %v6557_v16, %v6558_v33  ;;  %v5688_v15 = vcombine.high %v5253_v49, %v5253_v49 }
 0x2de   : > { %v10488_v28 = vsel %vm172_vm4, %v6524_v63, -inf  ;;  %v10490_v43 = vmax.f32 %v6595_v37, %v6596_v17  ;;  %v6603_v61 = vrot.slane %v6602_v12, 4  ;;  %v5669_v4 = vrot.slane %v5655_v1, %v9884_v52  ;;  %v4702_v1 = vld [vmem:[#allocation2 + $0xd0] sm:$0xff] }
 0x2df   : > { %v7048_v6 = vsel %vm172_vm4, %v6538_v54, -inf  ;;  %v7034_v56 = vsel %vm172_vm4, %v6559_v0, -inf  ;;  %v5703_v59 = vcombine.high %v5695_v48, %v5695_v48  ;;  %v5670_v29 = vcombine.high %v5662_v9, %v5662_v9  ;;  %v4703_v0 = vld [vmem:[#allocation2 + $0xd8] sm:$0xff] }
 0x2e0   : > { %v10495_v34 = vmax.f32 %v7048_v6, %v7049_v13  ;;  %v8034_v62 = vpack.c.bf16 %v7029_v23, %v7029_v23  ;;  %v8035_v11 = vpack.c.bf16 %v7032_v30, %v7032_v30  ;;  %v6609_v53 = vsel %vm6034_vm9, %v5695_v48, -inf }
 0x2e1   : > { %v10499_v39 = vsel %vm172_vm4, %v6531_v2, -inf  ;;  %v7035_v8 = vmax.f32 %v7033_v31, %v7034_v56  ;;  %v10502_v20 = vrot.slane %v5688_v15, %v9884_v52  ;;  %v6560_v41 = vsel %vm6034_vm9, %v5662_v9, -inf  ;;  %v4701_v15 = vld [vmem:[#allocation2 + $0xc8] sm:$0xff] }
 0x2e2   : > { %v6598_v49 = vrot.slane %v10490_v43, 2  ;;  %v10506_v14 = vmax.f32 %v6602_v12, %v6603_v61  ;;  %v5671_v37 = vcombine.high %v5669_v4, %v5669_v4  ;;  %v6561_v7 = vrot.slane %v6560_v41, 4  ;;  %v4700_v12 = vld [vmem:[#allocation2 + $0xc0] sm:$0xff] }
 0x2e3   : > { %v6610_v45 = vrot.slane %v6609_v53, 4  ;;  %v10509_v22 = vsel %vm6034_vm9, %v5703_v59, -inf  ;;  %v6567_v36 = vsel %vm6034_vm9, %v5670_v29, -inf  ;;  %v6574_v55 = vsel %vm6034_vm9, %v5669_v4, -inf }
 0x2e4   : > { %v8041_v32 = vpack.c.bf16 %v10495_v34, %v10495_v34  ;;  %v7411_v19 = vunpack.c.l.b16 %v8034_v62  ;;  %v7412_v16 = vunpack.c.l.b16 %v8035_v11  ;;  %v6562_v42 = vmax.f32 %v6560_v41, %v6561_v7  ;;  %v4704_v41 = vld [vmem:[#allocation2 + $0xe0] sm:$0xff] }
 0x2e5   : > { %v8036_v40 = vpack.c.bf16 %v7035_v8, %v7035_v8  ;;  %v5704_v63 = vcombine.high %v10502_v20, %v10502_v20  ;;  %v6568_v54 = vrot.slane %v6567_v36, 4  ;;  %v6575_v17 = vrot.slane %v6574_v55, 4  ;;  %v4706_v8 = vld [vmem:[#allocation2 + $0xf0] sm:$0xff] }
 0x2e6   : > { %v6617_v33 = vrot.slane %v10509_v22, 4  ;;  %v10520_v48 = vsel %vm6034_vm9, %v10502_v20, -inf  ;;  %v6563_v9 = vrot.slane %v6562_v42, 2  ;;  %v6581_v31 = vsel %vm6034_vm9, %v5671_v37, -inf }
 0x2e7   : > { %v10523_v23 = vmax.f32 %v6609_v53, %v6610_v45  ;;  %v6569_v30 = vmax.f32 %v6567_v36, %v6568_v54  ;;  %v6576_v2 = vmax.f32 %v6574_v55, %v6575_v17  ;;  %v6582_v13 = vrot.slane %v6581_v31, 4  ;;  %v4065_v45 = vld [vmem:[#allocation2 + $0x110] sm:$0xff]  ;;  %v4066_v17 = vld [vmem:[#allocation2 + $0x118] sm:$0xff] }
 0x2e8   : > { %v7478_v61 = vsel %vm7443_vm10, %v7412_v16, %v7411_v19  ;;  %v6564_v4 = vmax.f32 %v6562_v42, %v6563_v9  ;;  %v5105_v6 = vadd.f32 %v10113_v35, %v4702_v1  ;;  %v5103_v56 = vadd.f32 %v10155_v10, %v4700_v12  ;;  %v4063_v16 = vld [vmem:[#allocation2 + $0x100] sm:$0xff]  ;;  %v4707_v42 = vld [vmem:[#allocation2 + $0xf8] sm:$0xff] }
 0x2e9   : > { %v7413_v59 = vunpack.c.l.b16 %v8036_v40  ;;  %v6570_v29 = vrot.slane %v6569_v30, 2  ;;  %v6577_v62 = vrot.slane %v6576_v2, 2  ;;  %v6583_v11 = vmax.f32 %v6581_v31, %v6582_v13  ;;  %v4705_v40 = vld [vmem:[#allocation2 + $0xe8] sm:$0xff] }
 0x2ea   : > { %v6565_v53 = vrot.slane %v6564_v4, 1  ;;  %v7036_v37 = vsel %vm172_vm4, %v10473_v18, -inf  ;;  %5141 = vst.msk [vmem:[#allocation2 + $0xd0] sm:$0xff] %vm172_vm4, %v5105_v6  ;;  %5139 = vst.msk [vmem:[#allocation2 + $0xc0] sm:$0xff] %vm172_vm4, %v5103_v56  ;;  %v5106_v7 = vadd.f32 %v10162_v25, %v4703_v0  ;;  %v5104_v35 = vadd.f32 %v10213_v57, %v4701_v15  ;;  %v4064_v31 = vld [vmem:[#allocation2 + $0x108] sm:$0xff] }
 0x2eb   : > { %v6571_v10 = vmax.f32 %v6569_v30, %v6570_v29  ;;  %v6578_v36 = vmax.f32 %v6576_v2, %v6577_v62  ;;  %v6584_v55 = vrot.slane %v6583_v11, 2  ;;  %v4601_v19 = vadd.f32 %v10270_v50, %v4065_v45 }
 0x2ec   : > { %v6566_v54 = vmax.f32 %v6564_v4, %v6565_v53  ;;  %5142 = vst.msk [vmem:[#allocation2 + $0xd8] sm:$0xff] %vm172_vm4, %v5106_v7  ;;  %5140 = vst.msk [vmem:[#allocation2 + $0xc8] sm:$0xff] %vm172_vm4, %v5104_v35  ;;  %v5109_v18 = vadd.f32 %v10272_v46, %v4706_v8  ;;  %v4599_v25 = vadd.f32 %v10292_v47, %v4063_v16  ;;  %v6624_v4 = vrot.slane %v10520_v48, 4 }
 0x2ed   : > { %v5107_v57 = vadd.f32 %v10294_v51, %v4704_v41  ;;  %v6572_v1 = vrot.slane %v6571_v10, 1  ;;  %v6579_v12 = vrot.slane %v6578_v36, 1  ;;  %v6585_v9 = vmax.f32 %v6583_v11, %v6584_v55  ;;  %4637 = vst.msk [vmem:[#allocation2 + $0x110] sm:$0xff] %vm172_vm4, %v4601_v19 }
 0x2ee   : > { %v4602_v50 = vadd.f32 %v10321_v27, %v4066_v17  ;;  %v7037_v30 = vsel %vm172_vm4, %v6566_v54, -inf  ;;  %5145 = vst.msk [vmem:[#allocation2 + $0xf0] sm:$0xff] %vm172_vm4, %v5109_v18  ;;  %4635 = vst.msk [vmem:[#allocation2 + $0x100] sm:$0xff] %vm172_vm4, %v4599_v25  ;;  %v5110_v46 = vadd.f32 %v10323_v5, %v4707_v42  ;;  %v4600_v47 = vadd.f32 %v10341_v60, %v4064_v31 }
 0x2ef   : > { %5143 = vst.msk [vmem:[#allocation2 + $0xe0] sm:$0xff] %vm172_vm4, %v5107_v57  ;;  %v5108_v51 = vadd.f32 %v10343_v58, %v4705_v40  ;;  %v6573_v2 = vmax.f32 %v6571_v10, %v6572_v1  ;;  %v6580_v13 = vmax.f32 %v6578_v36, %v6579_v12  ;;  %v6586_v0 = vrot.slane %v6585_v9, 1 }
 0x2f0   : > { %v7038_v15 = vmax.f32 %v7036_v37, %v7037_v30  ;;  %4638 = vst.msk [vmem:[#allocation2 + $0x118] sm:$0xff] %vm172_vm4, %v4602_v50  ;;  %v10551_v27 = vmax.f32 %v10509_v22, %v6617_v33  ;;  %v6630_v5 = vsel %vm6034_vm9, %v5704_v63, -inf  ;;  %v7479_v60 = vsel %vm7445_vm11, %v7413_v59, %v7478_v61  ;;  %5146 = vst.msk [vmem:[#allocation2 + $0xf8] sm:$0xff] %vm172_vm4, %v5110_v46 }
 0x2f1   : > { %4636 = vst.msk [vmem:[#allocation2 + $0x108] sm:$0xff] %vm172_vm4, %v4600_v47  ;;  %5144 = vst.msk [vmem:[#allocation2 + $0xe8] sm:$0xff] %vm172_vm4, %v5108_v51  ;;  %v6587_v58 = vmax.f32 %v6585_v9, %v6586_v0  ;;  %v7040_v6 = vsel %vm172_vm4, %v6573_v2, -inf  ;;  %v7043_v22 = vsel %vm172_vm4, %v6580_v13, -inf  ;;  %v5177_v56 = vld [vmem:[#allocation2 + $0xd0] sm:$0xff]  ;;  %v5175_v29 = vld [vmem:[#allocation2 + $0xc0] sm:$0xff]  ;;  %v7418_v62 = vunpack.c.l.b16 %v8041_v32 }
 0x2f2   : > { %v8037_v33 = vpack.c.bf16 %v7038_v15, %v7038_v15  ;;  %v7041_v20 = vmax.f32 %v10484_v38, %v7040_v6  ;;  %v7044_v63 = vmax.f32 %v10488_v28, %v7043_v22  ;;  %v5220_v61 = vadd.f32 %v10456_v24, %v5177_v56 }
 0x2f3   : > { %v5218_v59 = vadd.f32 %v10456_v24, %v5175_v29  ;;  %v6631_v11 = vrot.slane %v6630_v5, 4  ;;  %v7046_v8 = vsel %vm172_vm4, %v6587_v58, -inf  ;;  %v6612_v38 = vrot.slane %v10523_v23, 2 }
 0x2f4   : > { %v7414_v41 = vunpack.c.l.b16 %v8037_v33  ;;  %v7047_v53 = vmax.f32 %v10499_v39, %v7046_v8  ;;  %v8038_v37 = vpack.c.bf16 %v7041_v20, %v7041_v20  ;;  %v8039_v7 = vpack.c.bf16 %v7044_v63, %v7044_v63 }
 0x2f5   : > { %v5256_v35 = vmax.f32 %v5220_v61, 0.0  ;;  %v6625_v28 = vmax.f32 %v10520_v48, %v6624_v4  ;;  %v5254_v10 = vmax.f32 %v5218_v59, 0.0  ;;  %v6619_v36 = vrot.slane %v10551_v27, 2  ;;  %v5178_v4 = vld [vmem:[#allocation2 + $0xd8] sm:$0xff] }
 0x2f6   : > { %v7480_v45 = vsel %vm7447_vm12, %v7414_v41, %v7479_v60  ;;  %v8040_v34 = vpack.c.bf16 %v7047_v53, %v7047_v53  ;;  %v7415_v32 = vunpack.c.l.b16 %v8038_v37  ;;  %v7416_v19 = vunpack.c.l.b16 %v8039_v7 }
 0x2f7   : > { %v5739_v55 = vcombine.high %v5256_v35, %v5256_v35  ;;  %v5746_v16 = vrot.slane %v5256_v35, %v9884_v52  ;;  %v5705_v42 = vcombine.high %v5254_v10, %v5254_v10  ;;  %v5712_v39 = vrot.slane %v5254_v10, %v9884_v52 }
 0x2f8   : > { %v6632_v40 = vmax.f32 %v6630_v5, %v6631_v11  ;;  %v7417_v54 = vunpack.c.l.b16 %v8040_v34  ;;  %v7481_v18 = vsel %vm7449_vm13, %v7415_v32, %v7480_v45  ;;  %v6605_v22 = vrot.slane %v10506_v14, 2 }
 0x2f9   : > { %v5753_v48 = vrot.slane %v5739_v55, %v9884_v52  ;;  %v7482_v25 = vsel %vm7451_vm14, %v7416_v19, %v7481_v18  ;;  %v5754_v57 = vcombine.high %v5746_v16, %v5746_v16  ;;  %v6686_v17 = vsel %vm6034_vm9, %v5746_v16, -inf  ;;  %v5176_v55 = vld [vmem:[#allocation2 + $0xc8] sm:$0xff] }
 0x2fa   : > { %v5719_v1 = vrot.slane %v5705_v42, %v9884_v52  ;;  %v7483_v12 = vsel %vm7453_vm15, %v7417_v54, %v7482_v25  ;;  %v6687_v9 = vrot.slane %v6686_v17, 4  ;;  %v5720_v31 = vcombine.high %v5712_v39, %v5712_v39 }
 0x2fb   : > { %v6700_v50 = vsel %vm6034_vm9, %v5753_v48, -inf  ;;  %v7484_v30 = vsel %vm7455_vm0, %v7418_v62, %v7483_v12  ;;  %v6693_v46 = vsel %vm6034_vm9, %v5754_v57, -inf  ;;  %v6637_v15 = vsel %vm6034_vm9, %v5712_v39, -inf }
 0x2fc   : > { %v6701_v47 = vrot.slane %v6700_v50, 4  ;;  %v5721_v51 = vcombine.high %v5719_v1, %v5719_v1  ;;  %v7510_v2 = vpack.c.b16 %v7484_v30, %v7484_v30  ;;  %v6688_v13 = vmax.f32 %v6686_v17, %v6687_v9 }
 0x2fd   : > { %v6694_v0 = vrot.slane %v6693_v46, 4  ;;  %v6638_v60 = vrot.slane %v6637_v15, 4  ;;  %v6644_v58 = vsel %vm6034_vm9, %v5720_v31, -inf  ;;  %v6626_v33 = vrot.slane %v6625_v28, 2 }
 0x2fe   : > { %v6702_v5 = vmax.f32 %v6700_v50, %v6701_v47  ;;  %v6651_v6 = vsel %vm6034_vm9, %v5721_v51, -inf  ;;  %7527 = vst.msk [vmem:[%s10022_s13 + $0x10] sm:$0xf] %vm7522_vm1, %v7510_v2  ;;  %v6689_v56 = vrot.slane %v6688_v13, 2  ;;  %v6633_v29 = vrot.slane %v6632_v40, 2 }
 0x2ff   : > { %v6645_v20 = vrot.slane %v6644_v58, 4  ;;  %v6652_v63 = vrot.slane %v6651_v6, 4  ;;  %v5221_v61 = vadd.f32 %v10456_v24, %v5178_v4  ;;  %v6599_v59 = vmax.f32 %v10490_v43, %v6598_v49 }
 0x300   : > { %v6613_v62 = vmax.f32 %v10523_v23, %v6612_v38  ;;  %v6695_v11 = vmax.f32 %v6693_v46, %v6694_v0  ;;  %v6620_v8 = vmax.f32 %v10551_v27, %v6619_v36  ;;  %v6703_v41 = vrot.slane %v6702_v5, 2 }
 0x301   : > { %v6639_v53 = vmax.f32 %v6637_v15, %v6638_v60  ;;  %v6606_v37 = vmax.f32 %v10506_v14, %v6605_v22  ;;  %v6627_v7 = vmax.f32 %v6625_v28, %v6626_v33  ;;  %v6690_v35 = vmax.f32 %v6688_v13, %v6689_v56 }
 0x302   : > { %v6634_v45 = vmax.f32 %v6632_v40, %v6633_v29  ;;  %v6646_v10 = vmax.f32 %v6644_v58, %v6645_v20  ;;  %v6653_v34 = vmax.f32 %v6651_v6, %v6652_v63  ;;  %v5257_v32 = vmax.f32 %v5221_v61, 0.0 }
 0x303   : > { %v6600_v19 = vrot.slane %v6599_v59, 1  ;;  %v6614_v16 = vrot.slane %v6613_v62, 1  ;;  %v6696_v42 = vrot.slane %v6695_v11, 2  ;;  %v6621_v43 = vrot.slane %v6620_v8, 1 }
 0x304   : > { %v6704_v49 = vmax.f32 %v6702_v5, %v6703_v41  ;;  %v6640_v23 = vrot.slane %v6639_v53, 2  ;;  %v6607_v38 = vrot.slane %v6606_v37, 1  ;;  %v6628_v39 = vrot.slane %v6627_v7, 1 }
 0x305   : > { %v6691_v27 = vrot.slane %v6690_v35, 1  ;;  %v5219_v36 = vadd.f32 %v10456_v24, %v5176_v55  ;;  %v6635_v54 = vrot.slane %v6634_v45, 1  ;;  %v6647_v14 = vrot.slane %v6646_v10, 2 }
 0x306   : > { %v6654_v28 = vrot.slane %v6653_v34, 2  ;;  %v5762_v40 = vrot.slane %v5257_v32, %v9884_v52  ;;  %v6601_v18 = vmax.f32 %v6599_v59, %v6600_v19  ;;  %v6615_v48 = vmax.f32 %v6613_v62, %v6614_v16  ;;  %v5181_v62 = vld [vmem:[#allocation2 + $0xf0] sm:$0xff] }
 0x307   : > { %v6697_v25 = vmax.f32 %v6695_v11, %v6696_v42  ;;  %v5755_v57 = vcombine.high %v5257_v32, %v5257_v32  ;;  %v6622_v17 = vmax.f32 %v6620_v8, %v6621_v43  ;;  %v6705_v1 = vrot.slane %v6704_v49, 1 }
 0x308   : > { %v6641_v12 = vmax.f32 %v6639_v53, %v6640_v23  ;;  %v6608_v9 = vmax.f32 %v6606_v37, %v6607_v38  ;;  %v6629_v50 = vmax.f32 %v6627_v7, %v6628_v39  ;;  %v6692_v31 = vmax.f32 %v6690_v35, %v6691_v27 }
 0x309   : > { %v5255_v30 = vmax.f32 %v5219_v36, 0.0  ;;  %v6636_v46 = vmax.f32 %v6634_v45, %v6635_v54  ;;  %v6648_v47 = vmax.f32 %v6646_v10, %v6647_v14  ;;  %v6655_v51 = vmax.f32 %v6653_v34, %v6654_v28 }
 0x30a   : > { %v6707_v2 = vsel %vm6034_vm9, %v5762_v40, -inf  ;;  %v7051_v13 = vsel %vm172_vm4, %v6601_v18, -inf  ;;  %v10606_v0 = vsel %vm172_vm4, %v6615_v48, -inf  ;;  %v6698_v15 = vrot.slane %v6697_v25, 1 }
 0x30b   : > { %v10609_v4 = vrot.slane %v5755_v57, %v9884_v52  ;;  %v10612_v5 = vsel %vm172_vm4, %v6622_v17, -inf  ;;  %v6706_v60 = vmax.f32 %v6704_v49, %v6705_v1  ;;  %v6642_v58 = vrot.slane %v6641_v12, 1 }
 0x30c   : > { %v5770_v6 = vcombine.high %v5762_v40, %v5762_v40  ;;  %v10615_v22 = vsel %vm172_vm4, %v6629_v50, -inf  ;;  %v7067_v33 = vsel %vm172_vm4, %v6692_v31, -inf  ;;  %v6708_v56 = vrot.slane %v6707_v2, 4 }
 0x30d   : > { %v5722_v29 = vcombine.high %v5255_v30, %v5255_v30  ;;  %v7066_v20 = vsel %vm172_vm4, %v6636_v46, -inf  ;;  %v6649_v63 = vrot.slane %v6648_v47, 1  ;;  %v6656_v61 = vrot.slane %v6655_v51, 1 }
 0x30e   : > { %v10620_v59 = vsel %vm172_vm4, %v6608_v9, -inf  ;;  %v6699_v11 = vmax.f32 %v6697_v25, %v6698_v15  ;;  %v5771_v8 = vcombine.high %v10609_v4, %v10609_v4  ;;  %v5729_v41 = vrot.slane %v5255_v30, %v9884_v52 }
 0x30f   : > { %v5736_v53 = vrot.slane %v5722_v29, %v9884_v52  ;;  %v7068_v37 = vmax.f32 %v7066_v20, %v7067_v33  ;;  %v7073_v7 = vsel %vm172_vm4, %v6706_v60, -inf  ;;  %v6643_v35 = vmax.f32 %v6641_v12, %v6642_v58 }
 0x310   : > { %v6714_v45 = vsel %vm6034_vm9, %v5770_v6, -inf  ;;  %v10628_v10 = vmax.f32 %v6707_v2, %v6708_v56  ;;  %v5737_v34 = vcombine.high %v5729_v41, %v5729_v41  ;;  %v5224_v55 = vadd.f32 %v10456_v24, %v5181_v62 }
 0x311   : > { %v5738_v32 = vcombine.high %v5736_v53, %v5736_v53  ;;  %v6650_v19 = vmax.f32 %v6648_v47, %v6649_v63  ;;  %v6657_v16 = vmax.f32 %v6655_v51, %v6656_v61  ;;  %v6658_v42 = vsel %vm6034_vm9, %v5729_v41, -inf }
 0x312   : > { %v6672_v43 = vsel %vm6034_vm9, %v5736_v53, -inf  ;;  %v7070_v49 = vsel %vm172_vm4, %v6699_v11, -inf  ;;  %v6715_v23 = vrot.slane %v6714_v45, 4  ;;  %v6659_v38 = vrot.slane %v6658_v42, 4 }
 0x313   : > { %v6665_v39 = vsel %vm6034_vm9, %v5737_v34, -inf  ;;  %v7069_v27 = vsel %vm172_vm4, %v6643_v35, -inf  ;;  %v6673_v54 = vrot.slane %v6672_v43, 4  ;;  %v6679_v14 = vsel %vm6034_vm9, %v5738_v32, -inf }
 0x314   : > { %v6666_v36 = vrot.slane %v6665_v39, 4  ;;  %v8047_v28 = vpack.c.bf16 %v7068_v37, %v7068_v37  ;;  %v6660_v40 = vmax.f32 %v6658_v42, %v6659_v38  ;;  %v6680_v18 = vrot.slane %v6679_v14, 4 }
 0x315   : > { %v5260_v48 = vmax.f32 %v5224_v55, 0.0  ;;  %v7052_v25 = vsel %vm172_vm4, %v6657_v16, -inf  ;;  %v6710_v57 = vrot.slane %v10628_v10, 2  ;;  %v6674_v1 = vmax.f32 %v6672_v43, %v6673_v54 }
 0x316   : > { %v6667_v17 = vmax.f32 %v6665_v39, %v6666_v36  ;;  %v10639_v12 = vmax.f32 %v7069_v27, %v7070_v49  ;;  %v7072_v9 = vsel %vm172_vm4, %v6650_v19, -inf  ;;  %v6661_v50 = vrot.slane %v6660_v40, 2  ;;  %v5179_v39 = vld [vmem:[#allocation2 + $0xe0] sm:$0xff] }
 0x317   : > { %v6681_v31 = vmax.f32 %v6679_v14, %v6680_v18  ;;  %v10642_v30 = vmax.f32 %v6714_v45, %v6715_v23  ;;  %v6721_v46 = vsel %vm6034_vm9, %v10609_v4, -inf  ;;  %v6675_v51 = vrot.slane %v6674_v1, 2 }
 0x318   : > { %v6668_v47 = vrot.slane %v6667_v17, 2  ;;  %v7053_v2 = vmax.f32 %v7051_v13, %v7052_v25  ;;  %v6662_v15 = vmax.f32 %v6660_v40, %v6661_v50  ;;  %v5813_v58 = vrot.slane %v5260_v48, %v9884_v52 }
 0x319   : > { %v6682_v60 = vrot.slane %v6681_v31, 2  ;;  %v10647_v6 = vunpack.c.l.b16 %v8047_v28  ;;  %v7074_v33 = vmax.f32 %v7072_v9, %v7073_v7  ;;  %v6676_v29 = vmax.f32 %v6674_v1, %v6675_v51 }
 0x31a   : > { %v6669_v56 = vmax.f32 %v6667_v17, %v6668_v47  ;;  %v8048_v20 = vpack.c.bf16 %v10639_v12, %v10639_v12  ;;  %v6663_v63 = vrot.slane %v6662_v15, 1  ;;  %v5806_v62 = vcombine.high %v5260_v48, %v5260_v48 }
 0x31b   : > { %v6683_v61 = vmax.f32 %v6681_v31, %v6682_v60  ;;  %v6722_v11 = vrot.slane %v6721_v46, 4  ;;  %v6728_v4 = vsel %vm6034_vm9, %v5771_v8, -inf  ;;  %v6677_v13 = vrot.slane %v6676_v29, 1 }
 0x31c   : > { %v6670_v41 = vrot.slane %v6669_v56, 1  ;;  %v8042_v53 = vpack.c.bf16 %v7053_v2, %v7053_v2  ;;  %v6664_v37 = vmax.f32 %v6662_v15, %v6663_v63  ;;  %v6784_v45 = vsel %vm6034_vm9, %v5813_v58, -inf }
 0x31d   : > { %v6684_v35 = vrot.slane %v6683_v61, 1  ;;  %v8049_v34 = vpack.c.bf16 %v7074_v33, %v7074_v33  ;;  %v6678_v32 = vmax.f32 %v6676_v29, %v6677_v13  ;;  %v5821_v55 = vcombine.high %v5813_v58, %v5813_v58  ;;  %v5182_v29 = vld [vmem:[#allocation2 + $0xf8] sm:$0xff] }
 0x31e   : > { %v6671_v7 = vmax.f32 %v6669_v56, %v6670_v41  ;;  %v6729_v19 = vrot.slane %v6728_v4, 4  ;;  %v7055_v42 = vsel %vm172_vm4, %v6664_v37, -inf  ;;  %v5820_v43 = vrot.slane %v5806_v62, %v9884_v52 }
 0x31f   : > { %v6685_v16 = vmax.f32 %v6683_v61, %v6684_v35  ;;  %v7056_v49 = vmax.f32 %v10620_v59, %v7055_v42  ;;  %v7061_v23 = vsel %vm172_vm4, %v6678_v32, -inf  ;;  %v6785_v38 = vrot.slane %v6784_v45, 4 }
 0x320   : > { %v7058_v8 = vsel %vm172_vm4, %v6671_v7, -inf  ;;  %v10658_v27 = vmax.f32 %v6721_v46, %v6722_v11  ;;  %v7062_v54 = vmax.f32 %v10612_v5, %v7061_v23  ;;  %v7419_v28 = vunpack.c.l.b16 %v8042_v53 }
 0x321   : > { %v7059_v36 = vmax.f32 %v10606_v0, %v7058_v8  ;;  %v7064_v14 = vsel %vm172_vm4, %v6685_v16, -inf  ;;  %v8043_v18 = vpack.c.bf16 %v7056_v49, %v7056_v49  ;;  %v6791_v59 = vsel %vm6034_vm9, %v5821_v55, -inf }
 0x322   : > { %v7065_v40 = vmax.f32 %v10615_v22, %v7064_v14  ;;  %v8045_v25 = vpack.c.bf16 %v7062_v54, %v7062_v54  ;;  %v6798_v17 = vsel %vm6034_vm9, %v5820_v43, -inf  ;;  %v5222_v1 = vadd.f32 %v10456_v24, %v5179_v39 }
 0x323   : > { %v8044_v48 = vpack.c.bf16 %v7059_v36, %v7059_v36  ;;  %v7420_v9 = vunpack.c.l.b16 %v8043_v18  ;;  %v5822_v50 = vcombine.high %v5820_v43, %v5820_v43  ;;  %v6786_v0 = vmax.f32 %v6784_v45, %v6785_v38 }
 0x324   : > { %v8046_v12 = vpack.c.bf16 %v7065_v40, %v7065_v40  ;;  %v6717_v5 = vrot.slane %v10642_v30, 2  ;;  %v6730_v31 = vmax.f32 %v6728_v4, %v6729_v19  ;;  %v6792_v47 = vrot.slane %v6791_v59, 4 }
 0x325   : > { %v7421_v46 = vunpack.c.l.b16 %v8044_v48  ;;  %v7422_v51 = vunpack.c.l.b16 %v8045_v25  ;;  %v7485_v2 = vsel %vm7443_vm10, %v7420_v9, %v7419_v28  ;;  %v6799_v15 = vrot.slane %v6798_v17, 4  ;;  %v4710_v28 = vld [vmem:[#allocation2 + $0x110] sm:$0xff] }
 0x326   : > { %v7423_v22 = vunpack.c.l.b16 %v8046_v12  ;;  %v7425_v60 = vunpack.c.l.b16 %v8048_v20  ;;  %v7426_v58 = vunpack.c.l.b16 %v8049_v34  ;;  %v5258_v56 = vmax.f32 %v5222_v1, 0.0  ;;  %v5180_v34 = vld [vmem:[#allocation2 + $0xe8] sm:$0xff] }
 0x327   : > { %v7486_v33 = vsel %vm7445_vm11, %v7421_v46, %v7485_v2  ;;  %v6724_v63 = vrot.slane %v10658_v27, 2  ;;  %v6787_v62 = vrot.slane %v6786_v0, 2  ;;  %v6805_v11 = vsel %vm6034_vm9, %v5822_v50, -inf }
 0x328   : > { %v7487_v61 = vsel %vm7447_vm12, %v7422_v51, %v7486_v33  ;;  %v6731_v4 = vrot.slane %v6730_v31, 2  ;;  %v5772_v13 = vcombine.high %v5258_v56, %v5258_v56  ;;  %v5779_v53 = vrot.slane %v5258_v56, %v9884_v52 }
 0x329   : > { %v7488_v41 = vsel %vm7449_vm13, %v7423_v22, %v7487_v61  ;;  %v6793_v37 = vmax.f32 %v6791_v59, %v6792_v47  ;;  %v6800_v35 = vmax.f32 %v6798_v17, %v6799_v15  ;;  %v5225_v45 = vadd.f32 %v10456_v24, %v5182_v29 }
 0x32a   : > { %v7489_v20 = vsel %vm7451_vm14, %v10647_v6, %v7488_v41  ;;  %v6806_v32 = vrot.slane %v6805_v11, 4  ;;  %v5786_v55 = vrot.slane %v5772_v13, %v9884_v52  ;;  %v5787_v19 = vcombine.high %v5779_v53, %v5779_v53 }
 0x32b   : > { %v7490_v7 = vsel %vm7453_vm15, %v7425_v60, %v7489_v20  ;;  %v6788_v42 = vmax.f32 %v6786_v0, %v6787_v62  ;;  %v6735_v43 = vsel %vm6034_vm9, %v5779_v53, -inf  ;;  %v10682_v49 = vmax.f32 %v5225_v45, 0.0 }
 0x32c   : > { %v7491_v16 = vsel %vm7455_vm0, %v7426_v58, %v7490_v7  ;;  %v5788_v8 = vcombine.high %v5786_v55, %v5786_v55  ;;  %v6742_v23 = vsel %vm6034_vm9, %v5787_v19, -inf  ;;  %v5223_v38 = vadd.f32 %v10456_v24, %v5180_v34 }
 0x32d   : > { %v7511_v6 = vpack.c.b16 %v7491_v16, %v7491_v16  ;;  %v6732_v39 = vmax.f32 %v6730_v31, %v6731_v4  ;;  %v6794_v36 = vrot.slane %v6793_v37, 2  ;;  %v6801_v54 = vrot.slane %v6800_v35, 2 }
 0x32e   : > { %v6749_v14 = vsel %vm6034_vm9, %v5786_v55, -inf  ;;  %v6711_v40 = vmax.f32 %v10628_v10, %v6710_v57  ;;  %v6807_v18 = vmax.f32 %v6805_v11, %v6806_v32  ;;  %v6736_v59 = vrot.slane %v6735_v43, 4 }
 0x32f   : > { %7528 = vst.msk [vmem:[%s10022_s13 + $0x14] sm:$0xf] %vm7522_vm1, %v7511_v6  ;;  %v5830_v48 = vrot.slane %v10682_v49, %v9884_v52  ;;  %v6718_v25 = vmax.f32 %v10642_v30, %v6717_v5  ;;  %v6725_v17 = vmax.f32 %v10658_v27, %v6724_v63  ;;  %v6789_v1 = vrot.slane %v6788_v42, 1 }
 0x330   : > { %v6743_v12 = vrot.slane %v6742_v23, 4  ;;  %v6750_v9 = vrot.slane %v6749_v14, 4  ;;  %v6756_v50 = vsel %vm6034_vm9, %v5788_v8, -inf  ;;  %v5259_v0 = vmax.f32 %v5223_v38, 0.0 }
 0x331   : > { %v5113_v31 = vadd.f32 %v10378_v21, %v4710_v28  ;;  %v6733_v10 = vrot.slane %v6732_v39, 1  ;;  %v6795_v57 = vmax.f32 %v6793_v37, %v6794_v36  ;;  %v6802_v46 = vmax.f32 %v6800_v35, %v6801_v54 }
 0x332   : > { %v6812_v47 = vsel %vm6034_vm9, %v5830_v48, -inf  ;;  %v6712_v51 = vrot.slane %v6711_v40, 1  ;;  %v6808_v22 = vrot.slane %v6807_v18, 2  ;;  %v6737_v2 = vmax.f32 %v6735_v43, %v6736_v59 }
 0x333   : > { %5149 = vst.msk [vmem:[#allocation2 + $0x110] sm:$0xff] %vm172_vm4, %v5113_v31  ;;  %v6719_v30 = vrot.slane %v6718_v25, 1  ;;  %v6726_v27 = vrot.slane %v6725_v17, 1  ;;  %v6790_v5 = vmax.f32 %v6788_v42, %v6789_v1  ;;  %v6757_v15 = vrot.slane %v6756_v50, 4 }
 0x334   : > { %v6744_v60 = vmax.f32 %v6742_v23, %v6743_v12  ;;  %v6751_v58 = vmax.f32 %v6749_v14, %v6750_v9  ;;  %v6813_v33 = vrot.slane %v6812_v47, 4  ;;  %v5789_v56 = vcombine.high %v5259_v0, %v5259_v0  ;;  %v4708_v9 = vld [vmem:[#allocation2 + $0x100] sm:$0xff] }
 0x335   : > { %v6734_v29 = vmax.f32 %v6732_v39, %v6733_v10  ;;  %v6796_v21 = vrot.slane %v6795_v57, 1  ;;  %v6803_v63 = vrot.slane %v6802_v46, 1  ;;  %v5796_v61 = vrot.slane %v5259_v0, %v9884_v52 }
 0x336   : > { %v6713_v62 = vmax.f32 %v6711_v40, %v6712_v51  ;;  %v6809_v11 = vmax.f32 %v6807_v18, %v6808_v22  ;;  %v6738_v4 = vrot.slane %v6737_v2, 2  ;;  %v5823_v41 = vcombine.high %v10682_v49, %v10682_v49 }
 0x337   : > { %v6720_v13 = vmax.f32 %v6718_v25, %v6719_v30  ;;  %v6727_v53 = vmax.f32 %v6725_v17, %v6726_v27  ;;  %v7085_v20 = vsel %vm172_vm4, %v6790_v5, -inf  ;;  %v6758_v37 = vmax.f32 %v6756_v50, %v6757_v15 }
 0x338   : > { %v6745_v35 = vrot.slane %v6744_v60, 2  ;;  %v6752_v45 = vrot.slane %v6751_v58, 2  ;;  %v6814_v34 = vmax.f32 %v6812_v47, %v6813_v33  ;;  %v5803_v7 = vrot.slane %v5789_v56, %v9884_v52 }
 0x339   : > { %v6797_v32 = vmax.f32 %v6795_v57, %v6796_v21  ;;  %v6804_v55 = vmax.f32 %v6802_v46, %v6803_v63  ;;  %v7084_v19 = vsel %vm172_vm4, %v6734_v29, -inf  ;;  %v5804_v16 = vcombine.high %v5796_v61, %v5796_v61  ;;  %v4711_v57 = vld [vmem:[#allocation2 + $0x118] sm:$0xff] }
 0x33a   : > { %v6810_v42 = vrot.slane %v6809_v11, 1  ;;  %v7086_v43 = vmax.f32 %v7084_v19, %v7085_v20  ;;  %v6739_v6 = vmax.f32 %v6737_v2, %v6738_v4  ;;  %v5837_v49 = vrot.slane %v5823_v41, %v9884_v52  ;;  %v5185_v12 = vld [vmem:[#allocation2 + $0x110] sm:$0xff]  ;;  %v4709_v2 = vld [vmem:[#allocation2 + $0x108] sm:$0xff] }
 0x33b   : > { %v10708_v8 = vsel %vm172_vm4, %v6713_v62, -inf  ;;  %v10711_v23 = vsel %vm172_vm4, %v6720_v13, -inf  ;;  %v6759_v38 = vrot.slane %v6758_v37, 2  ;;  %v6746_v39 = vmax.f32 %v6744_v60, %v6745_v35 }
 0x33c   : > { %v6753_v36 = vmax.f32 %v6751_v58, %v6752_v45  ;;  %v6815_v54 = vrot.slane %v6814_v34, 2  ;;  %v5805_v14 = vcombine.high %v5803_v7, %v5803_v7  ;;  %v10714_v28 = vsel %vm172_vm4, %v6727_v53, -inf }
 0x33d   : > { %v10717_v40 = vsel %vm172_vm4, %v6804_v55, -inf  ;;  %v7088_v18 = vsel %vm172_vm4, %v6797_v32, -inf  ;;  %v6763_v59 = vsel %vm6034_vm9, %v5804_v16, -inf  ;;  %v6811_v48 = vmax.f32 %v6809_v11, %v6810_v42 }
 0x33e   : > { %v8053_v25 = vpack.c.bf16 %v7086_v43, %v7086_v43  ;;  %v6740_v17 = vrot.slane %v6739_v6, 1  ;;  %v5838_v1 = vcombine.high %v5837_v49, %v5837_v49  ;;  %v6760_v50 = vmax.f32 %v6758_v37, %v6759_v38 }
 0x33f   : > { %v6764_v0 = vrot.slane %v6763_v59, 4  ;;  %v6770_v31 = vsel %vm6034_vm9, %v5803_v7, -inf  ;;  %v6777_v10 = vsel %vm6034_vm9, %v5805_v14, -inf  ;;  %v6747_v46 = vrot.slane %v6746_v39, 1 }
 0x340   : > { %v6754_v47 = vrot.slane %v6753_v36, 1  ;;  %v6816_v51 = vmax.f32 %v6814_v34, %v6815_v54  ;;  %v6771_v22 = vrot.slane %v6770_v31, 4  ;;  %v6778_v27 = vrot.slane %v6777_v10, 4 }
 0x341   : > { %v6765_v30 = vmax.f32 %v6763_v59, %v6764_v0  ;;  %v5228_v5 = vadd.f32 %v10456_v24, %v5185_v12  ;;  %v5111_v15 = vadd.f32 %v10407_v3, %v4708_v9  ;;  %v6819_v60 = vsel %vm6034_vm9, %v5837_v49, -inf }
 0x342   : > { %v6826_v58 = vsel %vm6034_vm9, %v5838_v1, -inf  ;;  %v6772_v33 = vmax.f32 %v6770_v31, %v6771_v22  ;;  %v5114_v56 = vadd.f32 %v10435_v44, %v4711_v57  ;;  %v6761_v29 = vrot.slane %v6760_v50, 1 }
 0x343   : > { %v6766_v21 = vrot.slane %v6765_v30, 2  ;;  %v6779_v63 = vmax.f32 %v6777_v10, %v6778_v27  ;;  %5147 = vst.msk [vmem:[#allocation2 + $0x100] sm:$0xff] %vm172_vm4, %v5111_v15  ;;  %v5112_v61 = vadd.f32 %v10463_v26, %v4709_v2  ;;  %v6741_v62 = vmax.f32 %v6739_v6, %v6740_v17  ;;  %v8774_v2 = vld [vmem:[%s10823_s2] ss:$0 sm:$0xff] }
 0x344   : > { %v6748_v11 = vmax.f32 %v6746_v39, %v6747_v46  ;;  %v6755_v4 = vmax.f32 %v6753_v36, %v6754_v47  ;;  %v6773_v24 = vrot.slane %v6772_v33, 2  ;;  %5150 = vst.msk [vmem:[#allocation2 + $0x118] sm:$0xff] %vm172_vm4, %v5114_v56  ;;  %v6817_v3 = vrot.slane %v6816_v51, 1 }
 0x345   : > { %v6767_v41 = vmax.f32 %v6765_v30, %v6766_v21  ;;  %v6780_v13 = vrot.slane %v6779_v63, 2  ;;  %v5264_v53 = vmax.f32 %v5228_v5, 0.0  ;;  %5148 = vst.msk [vmem:[#allocation2 + $0x108] sm:$0xff] %vm172_vm4, %v5112_v61  ;;  %v10732_v44 = vunpack.c.l.b16 %v8053_v25 }
 0x346   : > { %v6820_v20 = vrot.slane %v6819_v60, 4  ;;  %v6827_v37 = vrot.slane %v6826_v58, 4  ;;  %v6774_v35 = vmax.f32 %v6772_v33, %v6773_v24  ;;  %v6762_v45 = vmax.f32 %v6760_v50, %v6761_v29 }
 0x347   : > { %v7094_v26 = vsel %vm172_vm4, %v6811_v48, -inf  ;;  %v6768_v34 = vrot.slane %v6767_v41, 1  ;;  %v6781_v7 = vmax.f32 %v6779_v63, %v6780_v13  ;;  %v7087_v32 = vsel %vm172_vm4, %v6741_v62, -inf }
 0x348   : > { %v7090_v55 = vsel %vm172_vm4, %v6748_v11, -inf  ;;  %v7093_v19 = vsel %vm172_vm4, %v6755_v4, -inf  ;;  %v6775_v16 = vrot.slane %v6774_v35, 1  ;;  %v6818_v42 = vmax.f32 %v6816_v51, %v6817_v3 }
 0x349   : > { %v6769_v43 = vmax.f32 %v6767_v41, %v6768_v34  ;;  %v6782_v6 = vrot.slane %v6781_v7, 1  ;;  %v5880_v49 = vrot.slane %v5264_v53, %v9884_v52  ;;  %v10739_v38 = vmax.f32 %v6819_v60, %v6820_v20 }
 0x34a   : > { %v10741_v39 = vmax.f32 %v6826_v58, %v6827_v37  ;;  %v6776_v36 = vmax.f32 %v6774_v35, %v6775_v16  ;;  %v5873_v54 = vcombine.high %v5264_v53, %v5264_v53  ;;  %v7089_v14 = vmax.f32 %v7087_v32, %v7088_v18  ;;  %v5183_v50 = vld [vmem:[#allocation2 + $0x100] sm:$0xff] }
 0x34b   : > { %v7096_v59 = vsel %vm172_vm4, %v6762_v45, -inf  ;;  %v6783_v48 = vmax.f32 %v6781_v7, %v6782_v6  ;;  %v7076_v25 = vsel %vm172_vm4, %v6769_v43, -inf  ;;  %v7092_v17 = vmax.f32 %v7090_v55, %v10717_v40  ;;  %v5186_v45 = vld [vmem:[#allocation2 + $0x118] sm:$0xff] }
 0x34c   : > { %v7095_v1 = vmax.f32 %v7093_v19, %v7094_v26  ;;  %v7077_v12 = vmax.f32 %v10708_v8, %v7076_v25  ;;  %v7079_v9 = vsel %vm172_vm4, %v6776_v36, -inf  ;;  %v7097_v0 = vsel %vm172_vm4, %v6818_v42, -inf }
 0x34d   : > { %v7080_v31 = vmax.f32 %v10711_v23, %v7079_v9  ;;  %v7082_v10 = vsel %vm172_vm4, %v6783_v48, -inf  ;;  %v5888_v18 = vcombine.high %v5880_v49, %v5880_v49  ;;  %v7098_v57 = vmax.f32 %v7096_v59, %v7097_v0 }
 0x34e   : > { %v7083_v46 = vmax.f32 %v10714_v28, %v7082_v10  ;;  %v8050_v47 = vpack.c.bf16 %v7077_v12, %v7077_v12  ;;  %v5887_v51 = vrot.slane %v5873_v54, %v9884_v52  ;;  %v8054_v40 = vpack.c.bf16 %v7089_v14, %v7089_v14  ;;  %v5184_v12 = vld [vmem:[#allocation2 + $0x108] sm:$0xff] }
 0x34f   : > { %v8051_v22 = vpack.c.bf16 %v7080_v31, %v7080_v31  ;;  %v6882_v8 = vsel %vm6034_vm9, %v5880_v49, -inf  ;;  %v5226_v30 = vadd.f32 %v8774_v2, %v5183_v50  ;;  %v8055_v27 = vpack.c.bf16 %v7092_v17, %v7092_v17 }
 0x350   : > { %v6822_v23 = vrot.slane %v10739_v38, 2  ;;  %v8052_v5 = vpack.c.bf16 %v7083_v46, %v7083_v46  ;;  %v7427_v15 = vunpack.c.l.b16 %v8050_v47  ;;  %v8056_v60 = vpack.c.bf16 %v7095_v1, %v7095_v1 }
 0x351   : > { %v7428_v58 = vunpack.c.l.b16 %v8051_v22  ;;  %v6889_v28 = vsel %vm6034_vm9, %v5888_v18, -inf  ;;  %v5262_v33 = vmax.f32 %v5226_v30, 0.0  ;;  %v8057_v56 = vpack.c.bf16 %v7098_v57, %v7098_v57 }
 0x352   : > { %v7429_v29 = vunpack.c.l.b16 %v8052_v5  ;;  %v5889_v21 = vcombine.high %v5887_v51, %v5887_v51  ;;  %v6883_v63 = vrot.slane %v6882_v8, 4  ;;  %v7431_v61 = vunpack.c.l.b16 %v8054_v40 }
 0x353   : > { %v6829_v62 = vrot.slane %v10741_v39, 2  ;;  %v7492_v11 = vsel %vm7443_vm10, %v7428_v58, %v7427_v15  ;;  %v5839_v4 = vcombine.high %v5262_v33, %v5262_v33  ;;  %v6890_v3 = vrot.slane %v6889_v28, 4 }
 0x354   : > { %v7493_v24 = vsel %vm7445_vm11, %v7429_v29, %v7492_v11  ;;  %v6896_v41 = vsel %vm6034_vm9, %v5887_v51, -inf  ;;  %v5846_v13 = vrot.slane %v5262_v33, %v9884_v52  ;;  %v7432_v53 = vunpack.c.l.b16 %v8055_v27 }
 0x355   : > { %v7433_v20 = vunpack.c.l.b16 %v8056_v60  ;;  %v7494_v37 = vsel %vm7447_vm12, %v10732_v44, %v7493_v24  ;;  %v5853_v35 = vrot.slane %v5839_v4, %v9884_v52  ;;  %v7434_v26 = vunpack.c.l.b16 %v8057_v56 }
 0x356   : > { %v7495_v34 = vsel %vm7449_vm13, %v7431_v61, %v7494_v37  ;;  %v6884_v7 = vmax.f32 %v6882_v8, %v6883_v63  ;;  %v6903_v32 = vsel %vm6034_vm9, %v5889_v21, -inf  ;;  %v6897_v19 = vrot.slane %v6896_v41, 4 }
 0x357   : > { %v7496_v55 = vsel %vm7451_vm14, %v7432_v53, %v7495_v34  ;;  %v5854_v16 = vcombine.high %v5846_v13, %v5846_v13  ;;  %v6833_v42 = vsel %vm6034_vm9, %v5846_v13, -inf  ;;  %v6891_v6 = vmax.f32 %v6889_v28, %v6890_v3 }
 0x358   : > { %v7497_v43 = vsel %vm7453_vm15, %v7433_v20, %v7496_v55  ;;  %v5855_v44 = vcombine.high %v5853_v35, %v5853_v35  ;;  %v5229_v49 = vadd.f32 %v8774_v2, %v5186_v45  ;;  %v6904_v54 = vrot.slane %v6903_v32, 4 }
 0x359   : > { %v7498_v36 = vsel %vm7455_vm0, %v7434_v26, %v7497_v43  ;;  %v6840_v14 = vsel %vm6034_vm9, %v5854_v16, -inf  ;;  %v6847_v59 = vsel %vm6034_vm9, %v5853_v35, -inf  ;;  %v6823_v48 = vmax.f32 %v10739_v38, %v6822_v23 }
 0x35a   : > { %v7512_v25 = vpack.c.b16 %v7498_v36, %v7498_v36  ;;  %v6834_v17 = vrot.slane %v6833_v42, 4  ;;  %v6841_v1 = vrot.slane %v6840_v14, 4  ;;  %v6830_v9 = vmax.f32 %v10741_v39, %v6829_v62 }
 0x35b   : > { %v6848_v50 = vrot.slane %v6847_v59, 4  ;;  %v6885_v0 = vrot.slane %v6884_v7, 2  ;;  %v6898_v31 = vmax.f32 %v6896_v41, %v6897_v19  ;;  %v6854_v10 = vsel %vm6034_vm9, %v5855_v44, -inf }
 0x35c   : > { %7529 = vst.msk [vmem:[%s10022_s13 + $0x18] sm:$0xf] %vm7522_vm1, %v7512_v25  ;;  %v5265_v18 = vmax.f32 %v5229_v49, 0.0  ;;  %v6892_v57 = vrot.slane %v6891_v6, 2  ;;  %v6905_v46 = vmax.f32 %v6903_v32, %v6904_v54  ;;  %v5227_v47 = vadd.f32 %v8774_v2, %v5184_v12 }
 0x35d   : > { %v6824_v51 = vrot.slane %v6823_v48, 1  ;;  %v6835_v40 = vmax.f32 %v6833_v42, %v6834_v17  ;;  %v6842_v38 = vmax.f32 %v6840_v14, %v6841_v1  ;;  %v6849_v8 = vmax.f32 %v6847_v59, %v6848_v50 }
 0x35e   : > { %v5890_v22 = vcombine.high %v5265_v18, %v5265_v18  ;;  %v6855_v30 = vrot.slane %v6854_v10, 4  ;;  %v5897_v27 = vrot.slane %v5265_v18, %v9884_v52  ;;  %v5263_v39 = vmax.f32 %v5227_v47, 0.0 }
 0x35f   : > { %v6831_v23 = vrot.slane %v6830_v9, 1  ;;  %v6886_v5 = vmax.f32 %v6884_v7, %v6885_v0  ;;  %v6899_v15 = vrot.slane %v6898_v31, 2  ;;  %v6893_v58 = vmax.f32 %v6891_v6, %v6892_v57 }
 0x360   : > { %v5904_v60 = vrot.slane %v5890_v22, %v9884_v52  ;;  %v6906_v28 = vrot.slane %v6905_v46, 2  ;;  %v5905_v33 = vcombine.high %v5897_v27, %v5897_v27  ;;  %v6910_v56 = vsel %vm6034_vm9, %v5897_v27, -inf }
 0x361   : > { %v6836_v2 = vrot.slane %v6835_v40, 2  ;;  %v6843_v29 = vrot.slane %v6842_v38, 2  ;;  %v6911_v21 = vrot.slane %v6910_v56, 4  ;;  %v5856_v63 = vcombine.high %v5263_v39, %v5263_v39 }
 0x362   : > { %v6850_v61 = vrot.slane %v6849_v8, 2  ;;  %v6856_v62 = vmax.f32 %v6854_v10, %v6855_v30  ;;  %v6917_v11 = vsel %vm6034_vm9, %v5905_v33, -inf  ;;  %v6924_v4 = vsel %vm6034_vm9, %v5904_v60, -inf }
 0x363   : > { %v6832_v24 = vmax.f32 %v6830_v9, %v6831_v23  ;;  %v6887_v3 = vrot.slane %v6886_v5, 1  ;;  %v6900_v41 = vmax.f32 %v6898_v31, %v6899_v15  ;;  %v5863_v13 = vrot.slane %v5263_v39, %v9884_v52 }
 0x364   : > { %v6894_v53 = vrot.slane %v6893_v58, 1  ;;  %v6912_v20 = vmax.f32 %v6910_v56, %v6911_v21  ;;  %v6918_v37 = vrot.slane %v6917_v11, 4  ;;  %v6925_v35 = vrot.slane %v6924_v4, 4 }
 0x365   : > { %v10786_v45 = vmax.f32 %v6823_v48, %v6824_v51  ;;  %v6907_v26 = vmax.f32 %v6905_v46, %v6906_v28  ;;  %v6837_v34 = vmax.f32 %v6835_v40, %v6836_v2  ;;  %v5870_v7 = vrot.slane %v5856_v63, %v9884_v52 }
 0x366   : > { %v6844_v32 = vmax.f32 %v6842_v38, %v6843_v29  ;;  %v6851_v55 = vmax.f32 %v6849_v8, %v6850_v61  ;;  %v6857_v19 = vrot.slane %v6856_v62, 2  ;;  %v6919_v16 = vmax.f32 %v6917_v11, %v6918_v37 }
 0x367   : > { %v6888_v42 = vmax.f32 %v6886_v5, %v6887_v3  ;;  %v7102_v43 = vsel %vm172_vm4, %v6832_v24, -inf  ;;  %v6926_v6 = vmax.f32 %v6924_v4, %v6925_v35  ;;  %v5871_v44 = vcombine.high %v5863_v13, %v5863_v13 }
 0x368   : > { %v6895_v49 = vmax.f32 %v6893_v58, %v6894_v53  ;;  %v6901_v36 = vrot.slane %v6900_v41, 1  ;;  %v6913_v54 = vrot.slane %v6912_v20, 2  ;;  %v6920_v14 = vrot.slane %v6919_v16, 2 }
 0x369   : > { %v6908_v59 = vrot.slane %v6907_v26, 1  ;;  %v6927_v48 = vrot.slane %v6926_v6, 2  ;;  %v5872_v25 = vcombine.high %v5870_v7, %v5870_v7  ;;  %v6861_v17 = vsel %vm6034_vm9, %v5863_v13, -inf }
 0x36a   : > { %v6838_v1 = vrot.slane %v6837_v34, 1  ;;  %v6845_v52 = vrot.slane %v6844_v32, 1  ;;  %v6852_v12 = vrot.slane %v6851_v55, 1  ;;  %v6858_v9 = vmax.f32 %v6856_v62, %v6857_v19 }
 0x36b   : > { %v6921_v50 = vmax.f32 %v6919_v16, %v6920_v14  ;;  %v6862_v0 = vrot.slane %v6861_v17, 4  ;;  %v6868_v31 = vsel %vm6034_vm9, %v5871_v44, -inf  ;;  %v6875_v10 = vsel %vm6034_vm9, %v5872_v25, -inf }
 0x36c   : > { %v6914_v18 = vmax.f32 %v6912_v20, %v6913_v54  ;;  %v6928_v57 = vmax.f32 %v6926_v6, %v6927_v48  ;;  %v6869_v46 = vrot.slane %v6868_v31, 4  ;;  %v6876_v47 = vrot.slane %v6875_v10, 4 }
 0x36d   : > { %v6902_v51 = vmax.f32 %v6900_v41, %v6901_v36  ;;  %v6909_v40 = vmax.f32 %v6907_v26, %v6908_v59  ;;  %v7103_v38 = vsel %vm172_vm4, %v6888_v42, -inf  ;;  %v6863_v22 = vmax.f32 %v6861_v17, %v6862_v0 }
 0x36e   : > { %v6839_v8 = vmax.f32 %v6837_v34, %v6838_v1  ;;  %v6859_v30 = vrot.slane %v6858_v9, 1  ;;  %v6870_v27 = vmax.f32 %v6868_v31, %v6869_v46  ;;  %v6877_v39 = vmax.f32 %v6875_v10, %v6876_v47 }
 0x36f   : > { %v6846_v23 = vmax.f32 %v6844_v32, %v6845_v52  ;;  %v6853_v5 = vmax.f32 %v6851_v55, %v6852_v12  ;;  %v6922_v15 = vrot.slane %v6921_v50, 1  ;;  %v6864_v60 = vrot.slane %v6863_v22, 2 }
 0x370   : > { %v6915_v58 = vrot.slane %v6914_v18, 1  ;;  %v6929_v28 = vrot.slane %v6928_v57, 1  ;;  %v6871_v33 = vrot.slane %v6870_v27, 2  ;;  %v6878_v56 = vrot.slane %v6877_v39, 2 }
 0x371   : > { %v7109_v2 = vsel %vm172_vm4, %v6902_v51, -inf  ;;  %v7106_v29 = vsel %vm172_vm4, %v6895_v49, -inf  ;;  %v7112_v21 = vsel %vm172_vm4, %v6909_v40, -inf  ;;  %v6865_v63 = vmax.f32 %v6863_v22, %v6864_v60 }
 0x372   : > { %v6860_v61 = vmax.f32 %v6858_v9, %v6859_v30  ;;  %v7105_v62 = vsel %vm172_vm4, %v6839_v8, -inf  ;;  %v6872_v11 = vmax.f32 %v6870_v27, %v6871_v33  ;;  %v6879_v4 = vmax.f32 %v6877_v39, %v6878_v56 }
 0x373   : > { %v7108_v24 = vsel %vm172_vm4, %v6846_v23, -inf  ;;  %v7111_v3 = vsel %vm172_vm4, %v6853_v5, -inf  ;;  %v6923_v41 = vmax.f32 %v6921_v50, %v6922_v15  ;;  %v6866_v13 = vrot.slane %v6865_v63, 1 }
 0x374   : > { %v6916_v53 = vmax.f32 %v6914_v18, %v6915_v58  ;;  %v6930_v20 = vmax.f32 %v6928_v57, %v6929_v28  ;;  %v6873_v37 = vrot.slane %v6872_v11, 1  ;;  %v6880_v35 = vrot.slane %v6879_v4, 1 }
 0x375   : > { %v7099_v26 = vsel %vm172_vm4, %v10786_v45, -inf  ;;  %v7104_v34 = vmax.f32 %v7102_v43, %v7103_v38  ;;  %v6867_v7 = vmax.f32 %v6865_v63, %v6866_v13  ;;  %v7107_v32 = vmax.f32 %v7105_v62, %v7106_v29 }
 0x376   : > { %v7114_v55 = vsel %vm172_vm4, %v6860_v61, -inf  ;;  %v6874_v19 = vmax.f32 %v6872_v11, %v6873_v37  ;;  %v6881_v16 = vmax.f32 %v6879_v4, %v6880_v35  ;;  %v7110_v42 = vmax.f32 %v7108_v24, %v7109_v2 }
 0x377   : > { %v7113_v6 = vmax.f32 %v7111_v3, %v7112_v21  ;;  %v7117_v44 = vsel %vm172_vm4, %v6867_v7, -inf  ;;  %v7118_v49 = vsel %vm172_vm4, %v6923_v41, -inf  ;;  %v7115_v36 = vsel %vm172_vm4, %v6916_v53, -inf }
 0x378   : > { %v7121_v54 = vsel %vm172_vm4, %v6930_v20, -inf  ;;  %v7100_v14 = vsel %vm172_vm4, %v6881_v16, -inf  ;;  %v7120_v45 = vsel %vm172_vm4, %v6874_v19, -inf  ;;  %v8059_v43 = vpack.c.bf16 %v7104_v34, %v7104_v34 }
 0x379   : > { %v7116_v59 = vmax.f32 %v7114_v55, %v7115_v36  ;;  %v7101_v48 = vmax.f32 %v7099_v26, %v7100_v14  ;;  %v8060_v25 = vpack.c.bf16 %v7107_v32, %v7107_v32  ;;  %v7119_v17 = vmax.f32 %v7117_v44, %v7118_v49 }
 0x37a   : > { %v8061_v1 = vpack.c.bf16 %v7110_v42, %v7110_v42  ;;  %v7122_v52 = vmax.f32 %v7120_v45, %v7121_v54  ;;  %v8062_v9 = vpack.c.bf16 %v7113_v6, %v7113_v6  ;;  %v7436_v50 = vunpack.c.l.b16 %v8059_v43 }
 0x37b   : > { %v8058_v12 = vpack.c.bf16 %v7101_v48, %v7101_v48  ;;  %v8063_v0 = vpack.c.bf16 %v7116_v59, %v7116_v59  ;;  %v7437_v10 = vunpack.c.l.b16 %v8060_v25  ;;  %v8064_v18 = vpack.c.bf16 %v7119_v17, %v7119_v17 }
 0x37c   : > { %v7438_v57 = vunpack.c.l.b16 %v8061_v1  ;;  %v8065_v46 = vpack.c.bf16 %v7122_v52, %v7122_v52  ;;  %v7439_v51 = vunpack.c.l.b16 %v8062_v9 }
 0x37d   : > { %v7435_v31 = vunpack.c.l.b16 %v8058_v12  ;;  %v7440_v38 = vunpack.c.l.b16 %v8063_v0  ;;  %v7441_v8 = vunpack.c.l.b16 %v8064_v18 }
 0x37e   : > { %v7442_v27 = vunpack.c.l.b16 %v8065_v46 }
 0x37f   : > { %v7499_v47 = vsel %vm7443_vm10, %v7436_v50, %v7435_v31 }
 0x380   : > { %v7500_v40 = vsel %vm7445_vm11, %v7437_v10, %v7499_v47 }
 0x381   : > { %v7501_v22 = vsel %vm7447_vm12, %v7438_v57, %v7500_v40 }
 0x382   : > { %v7502_v30 = vsel %vm7449_vm13, %v7439_v51, %v7501_v22 }
 0x383   : > { %v7503_v39 = vsel %vm7451_vm14, %v7440_v38, %v7502_v30 }
 0x384   : > { %v7504_v23 = vsel %vm7453_vm15, %v7441_v8, %v7503_v39 }
 0x385   : > { %v7505_v5 = vsel %vm7455_vm0, %v7442_v27, %v7504_v23 }
 0x386   : > { %v7513_v15 = vpack.c.b16 %v7505_v5, %v7505_v5 }
 0x388   : > { %7530 = vst.msk [vmem:[%s10022_s13 + $0x1c] sm:$0xf] %vm7522_vm1, %v7513_v15 }
 0x389 PF: > { %s13_s12 = sadd.s32 1, %s8781_s12  }
 0x38a   : > { %p10_p4 = scmp.ge.s32.totalorder %s13_s12, 4  }
 0x38c   :  { %12 = sbr.rel (!%p10_p4) target bundleno = 1 (0x1), region = 70 }

</bundles_post_ra>
